<compile_context>
chip_gen: v7x
topology: tpu7x:2x2x1
jax: 0.10.0
libtpu: 0.0.40
codegen_flags: <defaults>
</compile_context>

<pallas_src>
import functools

import jax
import jax.numpy as jnp
from jax.experimental import pallas as pl
from jax.experimental.pallas import tpu as pltpu


def _mha_fused_kernel(x_ref, wq_ref, wk_ref, wv_ref, wp_ref, bp_ref, o_ref, *, scale):
    """One grid step: `bb` batch rows, all heads, fused output projection.

    x_ref        : (bb, T, C)  bf16
    wq/wk/wv_ref : (nh, C, D)  bf16   per-head projection weights, stored (in, out)
    wp_ref       : (nh, D, C)  bf16   output projection split per head
    bp_ref       : (1, C)      f32
    o_ref        : (bb, T, C)  f32
    """
    nh = wq_ref.shape[0]
    bb, T, C = x_ref.shape

    # Weights loaded and causal mask built once per grid step, shared by all bb rows.
    wq = wq_ref[...]
    wk = wk_ref[...]
    wv = wv_ref[...]
    wp = wp_ref[...]
    bias = bp_ref[...]                                            # (1, C) f32

    row = jax.lax.broadcasted_iota(jnp.int32, (T, T), 0)
    col = jax.lax.broadcasted_iota(jnp.int32, (T, T), 1)
    causal = row >= col                                           # (T, T), broadcast over heads

    for b in range(bb):  # static unroll: amortizes per-grid-step overhead over bb rows
        xb = jnp.broadcast_to(x_ref[b][None], (nh, T, C))         # (nh, T, C) bf16

        # Head-batched projections: bf16 operands, f32 accumulation on the MXU.
        q = jnp.einsum('htc,hcd->htd', xb, wq, preferred_element_type=jnp.float32)
        k = jnp.einsum('htc,hcd->htd', xb, wk, preferred_element_type=jnp.float32)
        v = jnp.einsum('htc,hcd->htd', xb, wv, preferred_element_type=jnp.float32)

        # Fold the softmax scale into q (nh*T*D elements instead of nh*T*T).
        qs = (q * scale).astype(jnp.bfloat16)
        kb = k.astype(jnp.bfloat16)
        vb = v.astype(jnp.bfloat16)

        s = jnp.einsum('htd,hsd->hts', qs, kb,
                       preferred_element_type=jnp.float32)        # (nh, T, T) f32
        s = jnp.where(causal, s, -1e30)                           # finite mask value: NaN-safe

        # f32 softmax (v5e has no bf16 VPU/EUP); approx reciprocal runs on the EUP slot.
        s = s - jnp.max(s, axis=-1, keepdims=True)
        p = jnp.exp(s)
        p = p * pl.reciprocal(jnp.sum(p, axis=-1, keepdims=True), approx=True)
        # TODO(synk): attention-weight dropout and output dropout are identity (eval mode).

        pv = jnp.einsum('hts,hsd->htd', p.astype(jnp.bfloat16), vb,
                        preferred_element_type=jnp.float32)       # (nh, T, D)

        # Fused concat + output projection: per-head (T,D)@(D,C) batched matmul, then
        # a cheap sum over the major head axis  ==  concat(heads) @ W_proj.
        yh = jnp.einsum('htd,hdc->htc', pv.astype(jnp.bfloat16), wp,
                        preferred_element_type=jnp.float32)       # (nh, T, C)
        y = jnp.sum(yh, axis=0) + bias                            # (T, C) f32
        o_ref[b] = y.astype(o_ref.dtype)


def _pick_batch_block(batch, max_block=8):
    for bb in range(min(batch, max_block), 0, -1):
        if batch % bb == 0:
            return bb
    return 1


def multi_head_attention(x, wq, wk, wv, w_proj, b_proj, *, batch_block=None):
    """Causal multi-head attention + output projection (eval-mode forward).

    x        : (B, T, C)            C == n_embd
    wq/wk/wv : (n_heads, C, D)      per-head projection weights, stored (in, out)
    w_proj   : (C, C)               output projection, stored (in, out)
    b_proj   : (C,)
    """
    B, T, C = x.shape
    nh, _, D = wq.shape
    assert nh * D == C
    scale = C ** (-0.5)            # module scales by n_embd**-0.5 (full channel dim)

    bb = batch_block or _pick_batch_block(B)
    assert B % bb == 0

    cd = jnp.bfloat16              # MXU operand dtype (f32 accumulation inside the kernel)
    xb = x.astype(cd)
    wqb = wq.astype(cd)
    wkb = wk.astype(cd)
    wvb = wv.astype(cd)
    # Split the output projection per head: rows [h*D, (h+1)*D) multiply head h's output,
    # so sum_h pv_h @ wp[h] == concat(pv_heads) @ w_proj (the concat is fused away).
    wpb = w_proj.reshape(nh, D, C).astype(cd)
    bp2 = b_proj.reshape(1, C).astype(jnp.float32)

    # TODO(synk): for long sequences switch to a flash-style q/kv-tiled grid with online
    # softmax + causal tile skipping, single-buffered weight specs, and an explicit
    # vmem_limit_bytes; at the module's block_size=256 the fused working set fits VMEM.
    return pl.pallas_call(
        functools.partial(_mha_fused_kernel, scale=scale),
        out_shape=jax.ShapeDtypeStruct((B, T, C), x.dtype),
        grid=(B // bb,),
        in_specs=[
            pl.BlockSpec((bb, T, C), lambda b: (b, 0, 0)),
            pl.BlockSpec((nh, C, D), lambda b: (0, 0, 0)),
            pl.BlockSpec((nh, C, D), lambda b: (0, 0, 0)),
            pl.BlockSpec((nh, C, D), lambda b: (0, 0, 0)),
            pl.BlockSpec((nh, D, C), lambda b: (0, 0, 0)),
            pl.BlockSpec((1, C), lambda b: (0, 0)),
        ],
        out_specs=pl.BlockSpec((bb, T, C), lambda b: (b, 0, 0)),
        compiler_params=pltpu.CompilerParams(
            dimension_semantics=("parallel",)),
    )(xb, wqb, wkb, wvb, wpb, bp2)


def _reference(x, wq, wk, wv, w_proj, b_proj):
    B, T, C = x.shape
    mask = jnp.tril(jnp.ones((T, T), dtype=bool))
    heads = []
    for h in range(wq.shape[0]):
        q = x @ wq[h]
        k = x @ wk[h]
        v = x @ wv[h]
        wei = (q @ jnp.swapaxes(k, -1, -2)) * (C ** -0.5)
        wei = jnp.where(mask, wei, -jnp.inf)
        wei = jax.nn.softmax(wei, axis=-1)
        heads.append(wei @ v)
    cat = jnp.concatenate(heads, axis=-1)
    return cat @ w_proj + b_proj


if __name__ == "__main__":
    # Small shapes consistent with the module: n_heads * head_size == n_embd, n_embd=384
    # (lane-dense: 3 * 128).  The module's block_size is 256; T=32 keeps the demo small.
    B, T = 2, 32
    n_embd = 384
    n_heads = 6
    head_size = n_embd // n_heads

    key = jax.random.PRNGKey(0)
    kx, kq, kk, kv, kp, kb = jax.random.split(key, 6)

    x = jax.random.normal(kx, (B, T, n_embd), dtype=jnp.float32)
    # Linear weights stored as (in, out) so the kernel computes x @ W directly.
    wq = 0.05 * jax.random.normal(kq, (n_heads, n_embd, head_size), dtype=jnp.float32)
    wk = 0.05 * jax.random.normal(kk, (n_heads, n_embd, head_size), dtype=jnp.float32)
    wv = 0.05 * jax.random.normal(kv, (n_heads, n_embd, head_size), dtype=jnp.float32)
    w_proj = 0.05 * jax.random.normal(kp, (n_embd, n_embd), dtype=jnp.float32)
    b_proj = 0.05 * jax.random.normal(kb, (n_embd,), dtype=jnp.float32)

    out = jax.block_until_ready(multi_head_attention(x, wq, wk, wv, w_proj, b_proj))
    ref = _reference(x, wq, wk, wv, w_proj, b_proj)

    assert out.shape == (B, T, n_embd)
    max_err = float(jnp.max(jnp.abs(out - ref)))
    # bf16 MXU operands + approx softmax reciprocal => relaxed tolerance vs the f32 reference.
    assert jnp.allclose(out, ref, atol=3e-2, rtol=3e-2), f"max abs err = {max_err}"
    print("KERNEL_OK")
</pallas_src>

<mosaic_0001>
module attributes {stable_mosaic.version = 11 : i64} {
  func.func @_mha_fused_kernel(%arg0: i32, %arg1: memref<2x32x384xbf16, #tpu.memory_space<vmem>>, %arg2: memref<6x384x64xbf16, #tpu.memory_space<vmem>>, %arg3: memref<6x384x64xbf16, #tpu.memory_space<vmem>>, %arg4: memref<6x384x64xbf16, #tpu.memory_space<vmem>>, %arg5: memref<6x64x384xbf16, #tpu.memory_space<vmem>>, %arg6: memref<1x384xf32, #tpu.memory_space<vmem>>, %arg7: memref<2x32x384xf32, #tpu.memory_space<vmem>>) attributes {dimension_semantics = [#tpu.dimension_semantics<parallel>], iteration_bounds = array<i64: 1>, scalar_prefetch = 0 : i64, scratch_operands = 0 : i64, tpu.core_type = #tpu.core_type<tc>, window_params = [{transform_indices = @transform_0, window_bounds = array<i64: 2, 32, 384>}, {pipeline_mode = #tpu.pipeline_mode<synchronous>, transform_indices = @transform_1, window_bounds = array<i64: 6, 384, 64>}, {pipeline_mode = #tpu.pipeline_mode<synchronous>, transform_indices = @transform_2, window_bounds = array<i64: 6, 384, 64>}, {pipeline_mode = #tpu.pipeline_mode<synchronous>, transform_indices = @transform_3, window_bounds = array<i64: 6, 384, 64>}, {pipeline_mode = #tpu.pipeline_mode<synchronous>, transform_indices = @transform_4, window_bounds = array<i64: 6, 64, 384>}, {pipeline_mode = #tpu.pipeline_mode<synchronous>, transform_indices = @transform_5, window_bounds = array<i64: 1, 384>}, {transform_indices = @transform_6, window_bounds = array<i64: 2, 32, 384>}]} {
    %c0 = arith.constant 0 : index
    %c0_0 = arith.constant 0 : index
    %c0_1 = arith.constant 0 : index
    %0 = vector.load %arg2[%c0, %c0_0, %c0_1] : memref<6x384x64xbf16, #tpu.memory_space<vmem>>, vector<6x384x64xbf16>
    %c0_2 = arith.constant 0 : index
    %c0_3 = arith.constant 0 : index
    %c0_4 = arith.constant 0 : index
    %1 = vector.load %arg3[%c0_2, %c0_3, %c0_4] : memref<6x384x64xbf16, #tpu.memory_space<vmem>>, vector<6x384x64xbf16>
    %c0_5 = arith.constant 0 : index
    %c0_6 = arith.constant 0 : index
    %c0_7 = arith.constant 0 : index
    %2 = vector.load %arg4[%c0_5, %c0_6, %c0_7] : memref<6x384x64xbf16, #tpu.memory_space<vmem>>, vector<6x384x64xbf16>
    %c0_8 = arith.constant 0 : index
    %c0_9 = arith.constant 0 : index
    %c0_10 = arith.constant 0 : index
    %3 = vector.load %arg5[%c0_8, %c0_9, %c0_10] : memref<6x64x384xbf16, #tpu.memory_space<vmem>>, vector<6x64x384xbf16>
    %c0_11 = arith.constant 0 : index
    %c0_12 = arith.constant 0 : index
    %4 = vector.load %arg6[%c0_11, %c0_12] : memref<1x384xf32, #tpu.memory_space<vmem>>, vector<1x384xf32>
    %5 = tpu.iota {dimensions = array<i32: 0>} : vector<32x32xi32>
    %6 = tpu.iota {dimensions = array<i32: 1>} : vector<32x32xi32>
    %7 = arith.cmpi sge, %5, %6 : vector<32x32xi32>
    %c0_13 = arith.constant 0 : index
    %c0_14 = arith.constant 0 : index
    %c0_15 = arith.constant 0 : index
    %8 = vector.load %arg1[%c0_13, %c0_14, %c0_15] : memref<2x32x384xbf16, #tpu.memory_space<vmem>>, vector<1x32x384xbf16>
    %9 = vector.shape_cast %8 : vector<1x32x384xbf16> to vector<32x384xbf16>
    %10 = vector.shape_cast %9 : vector<32x384xbf16> to vector<1x32x384xbf16>
    %11 = vector.shape_cast %10 : vector<1x32x384xbf16> to vector<1x32x384xbf16>
    %12 = vector.broadcast %11 : vector<1x32x384xbf16> to vector<6x32x384xbf16>
    "tpu.trace_start"() <{level = 10 : i32, message = "htc,hcd->htd"}> : () -> ()
    %cst = arith.constant dense<0.000000e+00> : vector<6x32x64xf32>
    %13 = tpu.matmul %12, %0, %cst {dimension_numbers = #tpu.dot_dimension_numbers<[2], [1], [1], [2], [0, 0, 0, 1, 1, 2], [0], [0]>} : vector<6x32x384xbf16>, vector<6x384x64xbf16>, vector<6x32x64xf32> -> vector<6x32x64xf32>
    %cst_16 = arith.constant dense<0.000000e+00> : vector<6x32x64xf32>
    %14 = tpu.matmul %12, %1, %cst_16 {dimension_numbers = #tpu.dot_dimension_numbers<[2], [1], [1], [2], [0, 0, 0, 1, 1, 2], [0], [0]>} : vector<6x32x384xbf16>, vector<6x384x64xbf16>, vector<6x32x64xf32> -> vector<6x32x64xf32>
    %cst_17 = arith.constant dense<0.000000e+00> : vector<6x32x64xf32>
    %15 = tpu.matmul %12, %2, %cst_17 {dimension_numbers = #tpu.dot_dimension_numbers<[2], [1], [1], [2], [0, 0, 0, 1, 1, 2], [0], [0]>} : vector<6x32x384xbf16>, vector<6x384x64xbf16>, vector<6x32x64xf32> -> vector<6x32x64xf32>
    "tpu.trace_stop"() : () -> ()
    %cst_18 = arith.constant 0.0510310382 : f32
    %16 = vector.broadcast %cst_18 : f32 to vector<6x32x64xf32>
    %17 = arith.mulf %13, %16 : vector<6x32x64xf32>
    %18 = arith.truncf %17 : vector<6x32x64xf32> to vector<6x32x64xbf16>
    %19 = arith.truncf %14 : vector<6x32x64xf32> to vector<6x32x64xbf16>
    %20 = arith.truncf %15 : vector<6x32x64xf32> to vector<6x32x64xbf16>
    "tpu.trace_start"() <{level = 10 : i32, message = "htd,hsd->hts"}> : () -> ()
    %cst_19 = arith.constant dense<0.000000e+00> : vector<6x32x32xf32>
    %21 = tpu.matmul %18, %19, %cst_19 {dimension_numbers = #tpu.dot_dimension_numbers<[2], [2], [1], [1], [0, 0, 0, 1, 1, 1], [0], [0]>} : vector<6x32x64xbf16>, vector<6x32x64xbf16>, vector<6x32x32xf32> -> vector<6x32x32xf32>
    %cst_20 = arith.constant -1.000000e+30 : f32
    "tpu.trace_stop"() : () -> ()
    %22 = vector.shape_cast %7 : vector<32x32xi1> to vector<1x32x32xi1>
    %23 = vector.broadcast %22 : vector<1x32x32xi1> to vector<6x32x32xi1>
    %24 = vector.broadcast %cst_20 : f32 to vector<6x32x32xf32>
    %25 = arith.select %23, %21, %24 : vector<6x32x32xi1>, vector<6x32x32xf32>
    %cst_21 = arith.constant dense<0xFF800000> : vector<6x32xf32>
    %26 = vector.multi_reduction <maximumf>, %25, %cst_21 [2] : vector<6x32x32xf32> to vector<6x32xf32>
    %27 = vector.shape_cast %26 : vector<6x32xf32> to vector<6x32x1xf32>
    %28 = vector.broadcast %27 : vector<6x32x1xf32> to vector<6x32x32xf32>
    %29 = arith.subf %25, %28 : vector<6x32x32xf32>
    %30 = math.exp %29 : vector<6x32x32xf32>
    %cst_22 = arith.constant dense<0.000000e+00> : vector<6x32xf32>
    %31 = vector.multi_reduction <add>, %30, %cst_22 [2] : vector<6x32x32xf32> to vector<6x32xf32>
    %32 = vector.shape_cast %31 : vector<6x32xf32> to vector<6x32x1xf32>
    %33 = tpu.reciprocal %32 {approx = true} : vector<6x32x1xf32> -> vector<6x32x1xf32>
    %34 = vector.broadcast %33 : vector<6x32x1xf32> to vector<6x32x32xf32>
    %35 = arith.mulf %30, %34 : vector<6x32x32xf32>
    %36 = arith.truncf %35 : vector<6x32x32xf32> to vector<6x32x32xbf16>
    "tpu.trace_start"() <{level = 10 : i32, message = "hts,hsd->htd"}> : () -> ()
    %cst_23 = arith.constant dense<0.000000e+00> : vector<6x32x64xf32>
    %37 = tpu.matmul %36, %20, %cst_23 {dimension_numbers = #tpu.dot_dimension_numbers<[2], [1], [1], [2], [0, 0, 0, 1, 1, 2], [0], [0]>} : vector<6x32x32xbf16>, vector<6x32x64xbf16>, vector<6x32x64xf32> -> vector<6x32x64xf32>
    "tpu.trace_stop"() : () -> ()
    %38 = arith.truncf %37 : vector<6x32x64xf32> to vector<6x32x64xbf16>
    "tpu.trace_start"() <{level = 10 : i32, message = "htd,hdc->htc"}> : () -> ()
    %cst_24 = arith.constant dense<0.000000e+00> : vector<6x32x384xf32>
    %39 = tpu.matmul %38, %3, %cst_24 {dimension_numbers = #tpu.dot_dimension_numbers<[2], [1], [1], [2], [0, 0, 0, 1, 1, 2], [0], [0]>} : vector<6x32x64xbf16>, vector<6x64x384xbf16>, vector<6x32x384xf32> -> vector<6x32x384xf32>
    "tpu.trace_stop"() : () -> ()
    %cst_25 = arith.constant dense<0.000000e+00> : vector<32x384xf32>
    %40 = vector.multi_reduction <add>, %39, %cst_25 [0] : vector<6x32x384xf32> to vector<32x384xf32>
    %41 = vector.broadcast %4 : vector<1x384xf32> to vector<32x384xf32>
    %42 = arith.addf %40, %41 : vector<32x384xf32>
    %c0_26 = arith.constant 0 : index
    %c0_27 = arith.constant 0 : index
    %c0_28 = arith.constant 0 : index
    %43 = vector.load %arg7[%c0_26, %c0_27, %c0_28] : memref<2x32x384xf32, #tpu.memory_space<vmem>>, vector<1x32x384xf32>
    %44 = vector.shape_cast %43 : vector<1x32x384xf32> to vector<32x384xf32>
    %45 = vector.shape_cast %42 : vector<32x384xf32> to vector<1x32x384xf32>
    tpu.vector_store %arg7[%c0_26, %c0_27, %c0_28], %45 {strides = array<i32>} : memref<2x32x384xf32, #tpu.memory_space<vmem>>, vector<1x32x384xf32>,
    %c1 = arith.constant 1 : index
    %c0_29 = arith.constant 0 : index
    %c0_30 = arith.constant 0 : index
    %46 = vector.load %arg1[%c1, %c0_29, %c0_30] : memref<2x32x384xbf16, #tpu.memory_space<vmem>>, vector<1x32x384xbf16>
    %47 = vector.shape_cast %46 : vector<1x32x384xbf16> to vector<32x384xbf16>
    %48 = vector.shape_cast %47 : vector<32x384xbf16> to vector<1x32x384xbf16>
    %49 = vector.shape_cast %48 : vector<1x32x384xbf16> to vector<1x32x384xbf16>
    %50 = vector.broadcast %49 : vector<1x32x384xbf16> to vector<6x32x384xbf16>
    "tpu.trace_start"() <{level = 10 : i32, message = "htc,hcd->htd"}> : () -> ()
    %cst_31 = arith.constant dense<0.000000e+00> : vector<6x32x64xf32>
    %51 = tpu.matmul %50, %0, %cst_31 {dimension_numbers = #tpu.dot_dimension_numbers<[2], [1], [1], [2], [0, 0, 0, 1, 1, 2], [0], [0]>} : vector<6x32x384xbf16>, vector<6x384x64xbf16>, vector<6x32x64xf32> -> vector<6x32x64xf32>
    %cst_32 = arith.constant dense<0.000000e+00> : vector<6x32x64xf32>
    %52 = tpu.matmul %50, %1, %cst_32 {dimension_numbers = #tpu.dot_dimension_numbers<[2], [1], [1], [2], [0, 0, 0, 1, 1, 2], [0], [0]>} : vector<6x32x384xbf16>, vector<6x384x64xbf16>, vector<6x32x64xf32> -> vector<6x32x64xf32>
    %cst_33 = arith.constant dense<0.000000e+00> : vector<6x32x64xf32>
    %53 = tpu.matmul %50, %2, %cst_33 {dimension_numbers = #tpu.dot_dimension_numbers<[2], [1], [1], [2], [0, 0, 0, 1, 1, 2], [0], [0]>} : vector<6x32x384xbf16>, vector<6x384x64xbf16>, vector<6x32x64xf32> -> vector<6x32x64xf32>
    "tpu.trace_stop"() : () -> ()
    %cst_34 = arith.constant 0.0510310382 : f32
    %54 = vector.broadcast %cst_34 : f32 to vector<6x32x64xf32>
    %55 = arith.mulf %51, %54 : vector<6x32x64xf32>
    %56 = arith.truncf %55 : vector<6x32x64xf32> to vector<6x32x64xbf16>
    %57 = arith.truncf %52 : vector<6x32x64xf32> to vector<6x32x64xbf16>
    %58 = arith.truncf %53 : vector<6x32x64xf32> to vector<6x32x64xbf16>
    "tpu.trace_start"() <{level = 10 : i32, message = "htd,hsd->hts"}> : () -> ()
    %cst_35 = arith.constant dense<0.000000e+00> : vector<6x32x32xf32>
    %59 = tpu.matmul %56, %57, %cst_35 {dimension_numbers = #tpu.dot_dimension_numbers<[2], [2], [1], [1], [0, 0, 0, 1, 1, 1], [0], [0]>} : vector<6x32x64xbf16>, vector<6x32x64xbf16>, vector<6x32x32xf32> -> vector<6x32x32xf32>
    %cst_36 = arith.constant -1.000000e+30 : f32
    "tpu.trace_stop"() : () -> ()
    %60 = vector.shape_cast %7 : vector<32x32xi1> to vector<1x32x32xi1>
    %61 = vector.broadcast %60 : vector<1x32x32xi1> to vector<6x32x32xi1>
    %62 = vector.broadcast %cst_36 : f32 to vector<6x32x32xf32>
    %63 = arith.select %61, %59, %62 : vector<6x32x32xi1>, vector<6x32x32xf32>
    %cst_37 = arith.constant dense<0xFF800000> : vector<6x32xf32>
    %64 = vector.multi_reduction <maximumf>, %63, %cst_37 [2] : vector<6x32x32xf32> to vector<6x32xf32>
    %65 = vector.shape_cast %64 : vector<6x32xf32> to vector<6x32x1xf32>
    %66 = vector.broadcast %65 : vector<6x32x1xf32> to vector<6x32x32xf32>
    %67 = arith.subf %63, %66 : vector<6x32x32xf32>
    %68 = math.exp %67 : vector<6x32x32xf32>
    %cst_38 = arith.constant dense<0.000000e+00> : vector<6x32xf32>
    %69 = vector.multi_reduction <add>, %68, %cst_38 [2] : vector<6x32x32xf32> to vector<6x32xf32>
    %70 = vector.shape_cast %69 : vector<6x32xf32> to vector<6x32x1xf32>
    %71 = tpu.reciprocal %70 {approx = true} : vector<6x32x1xf32> -> vector<6x32x1xf32>
    %72 = vector.broadcast %71 : vector<6x32x1xf32> to vector<6x32x32xf32>
    %73 = arith.mulf %68, %72 : vector<6x32x32xf32>
    %74 = arith.truncf %73 : vector<6x32x32xf32> to vector<6x32x32xbf16>
    "tpu.trace_start"() <{level = 10 : i32, message = "hts,hsd->htd"}> : () -> ()
    %cst_39 = arith.constant dense<0.000000e+00> : vector<6x32x64xf32>
    %75 = tpu.matmul %74, %58, %cst_39 {dimension_numbers = #tpu.dot_dimension_numbers<[2], [1], [1], [2], [0, 0, 0, 1, 1, 2], [0], [0]>} : vector<6x32x32xbf16>, vector<6x32x64xbf16>, vector<6x32x64xf32> -> vector<6x32x64xf32>
    "tpu.trace_stop"() : () -> ()
    %76 = arith.truncf %75 : vector<6x32x64xf32> to vector<6x32x64xbf16>
    "tpu.trace_start"() <{level = 10 : i32, message = "htd,hdc->htc"}> : () -> ()
    %cst_40 = arith.constant dense<0.000000e+00> : vector<6x32x384xf32>
    %77 = tpu.matmul %76, %3, %cst_40 {dimension_numbers = #tpu.dot_dimension_numbers<[2], [1], [1], [2], [0, 0, 0, 1, 1, 2], [0], [0]>} : vector<6x32x64xbf16>, vector<6x64x384xbf16>, vector<6x32x384xf32> -> vector<6x32x384xf32>
    "tpu.trace_stop"() : () -> ()
    %cst_41 = arith.constant dense<0.000000e+00> : vector<32x384xf32>
    %78 = vector.multi_reduction <add>, %77, %cst_41 [0] : vector<6x32x384xf32> to vector<32x384xf32>
    %79 = vector.broadcast %4 : vector<1x384xf32> to vector<32x384xf32>
    %80 = arith.addf %78, %79 : vector<32x384xf32>
    %c1_42 = arith.constant 1 : index
    %c0_43 = arith.constant 0 : index
    %c0_44 = arith.constant 0 : index
    %81 = vector.load %arg7[%c1_42, %c0_43, %c0_44] : memref<2x32x384xf32, #tpu.memory_space<vmem>>, vector<1x32x384xf32>
    %82 = vector.shape_cast %81 : vector<1x32x384xf32> to vector<32x384xf32>
    %83 = vector.shape_cast %80 : vector<32x384xf32> to vector<1x32x384xf32>
    tpu.vector_store %arg7[%c1_42, %c0_43, %c0_44], %83 {strides = array<i32>} : memref<2x32x384xf32, #tpu.memory_space<vmem>>, vector<1x32x384xf32>,
    return
  }
  func.func @transform_0(%arg0: i32) -> (i32, i32, i32) {
    %c0_i32 = arith.constant 0 : i32
    %c0_i32_0 = arith.constant 0 : i32
    %c0_i32_1 = arith.constant 0 : i32
    return %arg0, %c0_i32, %c0_i32_0 : i32, i32, i32
  }
  func.func @transform_1(%arg0: i32) -> (i32, i32, i32) {
    %c0_i32 = arith.constant 0 : i32
    %c0_i32_0 = arith.constant 0 : i32
    %c0_i32_1 = arith.constant 0 : i32
    %c0_i32_2 = arith.constant 0 : i32
    return %c0_i32, %c0_i32_0, %c0_i32_1 : i32, i32, i32
  }
  func.func @transform_2(%arg0: i32) -> (i32, i32, i32) {
    %c0_i32 = arith.constant 0 : i32
    %c0_i32_0 = arith.constant 0 : i32
    %c0_i32_1 = arith.constant 0 : i32
    %c0_i32_2 = arith.constant 0 : i32
    return %c0_i32, %c0_i32_0, %c0_i32_1 : i32, i32, i32
  }
  func.func @transform_3(%arg0: i32) -> (i32, i32, i32) {
    %c0_i32 = arith.constant 0 : i32
    %c0_i32_0 = arith.constant 0 : i32
    %c0_i32_1 = arith.constant 0 : i32
    %c0_i32_2 = arith.constant 0 : i32
    return %c0_i32, %c0_i32_0, %c0_i32_1 : i32, i32, i32
  }
  func.func @transform_4(%arg0: i32) -> (i32, i32, i32) {
    %c0_i32 = arith.constant 0 : i32
    %c0_i32_0 = arith.constant 0 : i32
    %c0_i32_1 = arith.constant 0 : i32
    %c0_i32_2 = arith.constant 0 : i32
    return %c0_i32, %c0_i32_0, %c0_i32_1 : i32, i32, i32
  }
  func.func @transform_5(%arg0: i32) -> (i32, i32) {
    %c0_i32 = arith.constant 0 : i32
    %c0_i32_0 = arith.constant 0 : i32
    %c0_i32_1 = arith.constant 0 : i32
    return %c0_i32, %c0_i32_0 : i32, i32
  }
  func.func @transform_6(%arg0: i32) -> (i32, i32, i32) {
    %c0_i32 = arith.constant 0 : i32
    %c0_i32_0 = arith.constant 0 : i32
    %c0_i32_1 = arith.constant 0 : i32
    return %arg0, %c0_i32, %c0_i32_0 : i32, i32, i32
  }
}

</mosaic_0001>

<bundles_post_ra>
// kernel: tpu_custom_call.1
= control target key start
LH: loop header
LB: loop body
LE: loop exit
PB: predicated region body
PF: predicated region fallthrough
CT: control target
= control target key end

     0   :  { %s20571_s0 = inlined_call_operand.vmem [shape: bf16[2,32,384], index: 0, kind: input, shape index: {}]   ;;  %s20572_s1 = inlined_call_operand.vmem [shape: bf16[6,384,64], index: 1, kind: input, shape index: {}]   ;;  %s20573_s2 = inlined_call_operand.vmem [shape: bf16[6,384,64], index: 2, kind: input, shape index: {}]   ;;  %s20574_s3 = inlined_call_operand.vmem [shape: bf16[6,384,64], index: 3, kind: input, shape index: {}]   ;;  %s20575_s4 = inlined_call_operand.vmem [shape: bf16[6,64,384], index: 4, kind: input, shape index: {}]   ;;  %s20576_s5 = inlined_call_operand.vmem [shape: f32[1,384], index: 5, kind: input, shape index: {}]   ;;  %s20577_s6 = inlined_call_operand.hbm [shape: f32[2,32,384], index: 6, kind: output, shape index: {}]  }
   0x1   :  { %v14585_v0 = vld [vmem:[%s20572_s1 + $0x40] sm:$0xff]   ;;  %v14588_v3 = vld [vmem:[%s20572_s1 + $0x48] sm:$0xff]   ;;  %v14591_v6 = vld [vmem:[%s20572_s1 + $0x50] sm:$0xff]  }
   0x2   :  { %v14586_v1 = vld [vmem:[%s20572_s1 + $0x80] sm:$0xff]   ;;  %11845 = vmatprep.subr.bf16.mxu0 %v14585_v0  ;;  %v14589_v4 = vld [vmem:[%s20572_s1 + $0x88] sm:$0xff]   ;;  %v14592_v7 = vld [vmem:[%s20572_s1 + $0x90] sm:$0xff]  }
   0x3   :  { %v14587_v2 = vld [vmem:[%s20572_s1] sm:$0xff]   ;;  %13381 = vmatprep.subr.bf16.mxu1 %v14586_v1  ;;  %v14590_v5 = vld [vmem:[%s20572_s1 + $0x8] sm:$0xff]   ;;  %v14593_v8 = vld [vmem:[%s20572_s1 + $0x10] sm:$0xff]  }
   0x4   :  { %11846 = vmatpush3.bf16.msra.mxu0 %v14587_v2  ;;  %13382 = vmatpush3.bf16.msra.mxu1 %v14586_v1  ;;  %v14594_v9 = vld [vmem:[%s20572_s1 + $0x58] sm:$0xff]   ;;  %v14597_v12 = vld [vmem:[%s20572_s1 + $0x60] sm:$0xff]   ;;  %v14600_v15 = vld [vmem:[%s20572_s1 + $0x68] sm:$0xff]  }
   0x5   :  { %11847 = vmatprep.subr.bf16.mxu0 %v14588_v3  ;;  %13383 = vmatprep.subr.bf16.mxu1 %v14589_v4  ;;  %v14595_v10 = vld [vmem:[%s20572_s1 + $0x98] sm:$0xff]   ;;  %v14598_v13 = vld [vmem:[%s20572_s1 + $0xa0] sm:$0xff]   ;;  %v14601_v16 = vld [vmem:[%s20572_s1 + $0xa8] sm:$0xff]  }
   0x6   :  { %v14596_v11 = vld [vmem:[%s20572_s1 + $0x18] sm:$0xff]   ;;  %v14599_v14 = vld [vmem:[%s20572_s1 + $0x20] sm:$0xff]   ;;  %v14602_v17 = vld [vmem:[%s20572_s1 + $0x28] sm:$0xff]  }
   0x7   :  { %v14603_v18 = vld [vmem:[%s20572_s1 + $0x70] sm:$0xff]   ;;  %v14606_v21 = vld [vmem:[%s20572_s1 + $0x78] sm:$0xff]   ;;  %v14613_v26 = vld [vmem:[%s20572_s1 + $0x100] sm:$0xff]  }
   0x8   :  { %11848 = vmatpush3.bf16.msra.mxu0 %v14590_v5  ;;  %13384 = vmatpush3.bf16.msra.mxu1 %v14589_v4  ;;  %v14604_v19 = vld [vmem:[%s20572_s1 + $0xb0] sm:$0xff]   ;;  %v14607_v23 = vld [vmem:[%s20572_s1 + $0xb8] sm:$0xff]   ;;  %v16004_v27 = vld [vmem:[%s20571_s0] ss:$12 sps:$4 sm:$0xff]  }
   0x9   :  { %11849 = vmatprep.subr.bf16.mxu0 %v14591_v6  ;;  %13385 = vmatprep.subr.bf16.mxu1 %v14592_v7  ;;  %v14605_v20 = vld [vmem:[%s20572_s1 + $0x30] sm:$0xff]   ;;  %v14608_v25 = vld [vmem:[%s20572_s1 + $0x38] sm:$0xff]   ;;  %v14614_v28 = vld [vmem:[%s20572_s1 + $0x140] sm:$0xff]  }
   0xa   :  { %v15984_v22 = vld [vmem:[%s20571_s0 + $0x4] ss:$12 sps:$4 sm:$0xff]   ;;  %v15993_v24 = vld [vmem:[%s20571_s0 + $0x8] ss:$12 sps:$4 sm:$0xff]   ;;  %v16013_v29 = vld [vmem:[%s20571_s0 + $0x20] ss:$12 sps:$4 sm:$0xff]  }
   0xb   :  { %1213 = vmatprep.mubr.bf16.mxu0 %v15984_v22  ;;  %13397 = vmatprep.mubr.bf16.mxu1 %v15993_v24  ;;  %v14616_v30 = vld [vmem:[%s20572_s1 + $0xc0] sm:$0xff]   ;;  %v14617_v31 = vld [vmem:[%s20572_s1 + $0x108] sm:$0xff]   ;;  %v14620_v34 = vld [vmem:[%s20572_s1 + $0x110] sm:$0xff]  }
   0xc   :  { %11850 = vmatpush3.bf16.msra.mxu0 %v14593_v8  ;;  %13386 = vmatpush3.bf16.msra.mxu1 %v14592_v7  ;;  %v14618_v32 = vld [vmem:[%s20572_s1 + $0x148] sm:$0xff]   ;;  %v14621_v35 = vld [vmem:[%s20572_s1 + $0x150] sm:$0xff]   ;;  %v14623_v38 = vld [vmem:[%s20572_s1 + $0x118] sm:$0xff]  }
   0xd   :  { %11851 = vmatprep.subr.bf16.mxu0 %v14594_v9  ;;  %13387 = vmatprep.subr.bf16.mxu1 %v14595_v10  ;;  %v14619_v33 = vld [vmem:[%s20572_s1 + $0xc8] sm:$0xff]   ;;  %v14622_v36 = vld [vmem:[%s20572_s1 + $0xd0] sm:$0xff]   ;;  %v16050_v39 = vld [vmem:[%s20571_s0 + $0x18] ss:$12 sps:$4 sm:$0xff]  }
   0xe   :  { %v16042_v37 = vld [vmem:[%s20571_s0 + $0x1c] ss:$12 sps:$4 sm:$0xff]   ;;  %v14629_v42 = vld [vmem:[%s20572_s1 + $0x120] sm:$0xff]   ;;  %v14635_v48 = vld [vmem:[%s20572_s1 + $0x130] sm:$0xff]  }
   0xf   :  { %v14624_v40 = vld [vmem:[%s20572_s1 + $0x158] sm:$0xff]   ;;  %v14630_v43 = vld [vmem:[%s20572_s1 + $0x160] sm:$0xff]   ;;  %v14632_v45 = vld [vmem:[%s20572_s1 + $0x128] sm:$0xff]  }
  0x10   :  { %11852 = vmatpush3.bf16.msra.mxu0 %v14596_v11  ;;  %13388 = vmatpush3.bf16.msra.mxu1 %v14595_v10  ;;  %v14627_v41 = vld [vmem:[%s20572_s1 + $0xd8] sm:$0xff]   ;;  %v14631_v44 = vld [vmem:[%s20572_s1 + $0xe0] sm:$0xff]   ;;  %v14633_v46 = vld [vmem:[%s20572_s1 + $0x168] sm:$0xff]  }
  0x11   :  { %11853 = vmatprep.subr.bf16.mxu0 %v14597_v12  ;;  %13389 = vmatprep.subr.bf16.mxu1 %v14598_v13  ;;  %v14634_v47 = vld [vmem:[%s20572_s1 + $0xe8] sm:$0xff]   ;;  %v14636_v49 = vld [vmem:[%s20572_s1 + $0x170] sm:$0xff]   ;;  %v14638_v51 = vld [vmem:[%s20572_s1 + $0x138] sm:$0xff]  }
  0x12   :  { %v14637_v50 = vld [vmem:[%s20572_s1 + $0xf0] sm:$0xff]   ;;  %v14639_v52 = vld [vmem:[%s20572_s1 + $0x178] sm:$0xff]   ;;  %v14641_v54 = vld [vmem:[%s20572_s1 + $0x1c0] sm:$0xff]  }
  0x13   :  { %v14640_v53 = vld [vmem:[%s20572_s1 + $0xf8] sm:$0xff]   ;;  %v14642_v55 = vld [vmem:[%s20572_s1 + $0x200] sm:$0xff]   ;;  %v14644_v57 = vld [vmem:[%s20572_s1 + $0x1c8] sm:$0xff]  }
  0x14   :  { %11854 = vmatpush3.bf16.msra.mxu0 %v14599_v14  ;;  %13390 = vmatpush3.bf16.msra.mxu1 %v14598_v13  ;;  %v14643_v56 = vld [vmem:[%s20572_s1 + $0x180] sm:$0xff]   ;;  %v14645_v58 = vld [vmem:[%s20572_s1 + $0x208] sm:$0xff]   ;;  %v14647_v60 = vld [vmem:[%s20572_s1 + $0x1d0] sm:$0xff]  }
  0x15   :  { %11855 = vmatprep.subr.bf16.mxu0 %v14600_v15  ;;  %13391 = vmatprep.subr.bf16.mxu1 %v14601_v16  ;;  %v14646_v59 = vld [vmem:[%s20572_s1 + $0x188] sm:$0xff]   ;;  %v14648_v61 = vld [vmem:[%s20572_s1 + $0x210] sm:$0xff]   ;;  %v14650_v63 = vld [vmem:[%s20572_s1 + $0x1d8] sm:$0xff]  }
  0x16   :  { %v14649_v62 = vld [vmem:[%s20572_s1 + $0x190] sm:$0xff]   ;;  %v14651_v0 = vld [vmem:[%s20572_s1 + $0x218] sm:$0xff]   ;;  %v14653_v2 = vld [vmem:[%s20572_s1 + $0x1e0] sm:$0xff]  }
  0x17   :  { %v14652_v1 = vld [vmem:[%s20572_s1 + $0x198] sm:$0xff]   ;;  %v14654_v3 = vld [vmem:[%s20572_s1 + $0x220] sm:$0xff]   ;;  %v14656_v5 = vld [vmem:[%s20572_s1 + $0x1e8] sm:$0xff]  }
  0x18   :  { %11856 = vmatpush3.bf16.msra.mxu0 %v14602_v17  ;;  %13392 = vmatpush3.bf16.msra.mxu1 %v14601_v16  ;;  %v14655_v4 = vld [vmem:[%s20572_s1 + $0x1a0] sm:$0xff]   ;;  %v14657_v6 = vld [vmem:[%s20572_s1 + $0x228] sm:$0xff]   ;;  %v14659_v8 = vld [vmem:[%s20572_s1 + $0x1f0] sm:$0xff]  }
  0x19   :  { %11857 = vmatprep.subr.bf16.mxu0 %v14603_v18  ;;  %13393 = vmatprep.subr.bf16.mxu1 %v14604_v19  ;;  %v14658_v7 = vld [vmem:[%s20572_s1 + $0x1a8] sm:$0xff]   ;;  %v14660_v9 = vld [vmem:[%s20572_s1 + $0x230] sm:$0xff]   ;;  %v14662_v11 = vld [vmem:[%s20572_s1 + $0x1f8] sm:$0xff]  }
  0x1a   :  { %v14661_v10 = vld [vmem:[%s20572_s1 + $0x1b0] sm:$0xff]   ;;  %v14663_v12 = vld [vmem:[%s20572_s1 + $0x238] sm:$0xff]   ;;  %v14665_v14 = vld [vmem:[%s20572_s1 + $0x280] sm:$0xff]  }
  0x1b   :  { %v14664_v13 = vld [vmem:[%s20572_s1 + $0x1b8] sm:$0xff]   ;;  %v14666_v15 = vld [vmem:[%s20572_s1 + $0x2c0] sm:$0xff]   ;;  %v14668_v17 = vld [vmem:[%s20572_s1 + $0x288] sm:$0xff]  }
  0x1c   :  { %11858 = vmatpush3.bf16.msra.mxu0 %v14605_v20  ;;  %13394 = vmatpush3.bf16.msra.mxu1 %v14604_v19  ;;  %v14667_v16 = vld [vmem:[%s20572_s1 + $0x240] sm:$0xff]   ;;  %v14669_v18 = vld [vmem:[%s20572_s1 + $0x2c8] sm:$0xff]   ;;  %v14671_v20 = vld [vmem:[%s20572_s1 + $0x290] sm:$0xff]  }
  0x1d   :  { %11859 = vmatprep.subr.bf16.mxu0 %v14606_v21  ;;  %13395 = vmatprep.subr.bf16.mxu1 %v14607_v23  ;;  %v14670_v19 = vld [vmem:[%s20572_s1 + $0x248] sm:$0xff]   ;;  %v14672_v21 = vld [vmem:[%s20572_s1 + $0x2d0] sm:$0xff]  }
  0x20   :  { %11860 = vmatpush3.bf16.msra.mxu0 %v14608_v25  ;;  %13396 = vmatpush3.bf16.msra.mxu1 %v14607_v23  ;;  %v14673_v23 = vld [vmem:[%s20572_s1 + $0x250] sm:$0xff]   ;;  %v14674_v25 = vld [vmem:[%s20572_s1 + $0x298] sm:$0xff]  }
  0x21   :  { %11883 = vmatprep.subr.bf16.mxu0 %v14613_v26  ;;  %13401 = vmatprep.subr.bf16.mxu1 %v14614_v28  ;;  %v14675_v26 = vld [vmem:[%s20572_s1 + $0x2d8] sm:$0xff]  }
  0x23   :  { %1214 = vmatmul.mubr.bf16.vlgmr.msra.gmra.mrb[0].mxu0 %v16004_v27  ;;  %13398 = vmatmul.mubr.bf16.vlgmr.msra.gmra.mrb[0].mxu1 %v16013_v29 }
  0x24   :  { %11884 = vmatpush3.bf16.msra.mxu0 %v14616_v30  ;;  %13402 = vmatpush3.bf16.msra.mxu1 %v14614_v28  ;;  %v14676_v28 = vld [vmem:[%s20572_s1 + $0x258] sm:$0xff]   ;;  %v14677_v30 = vld [vmem:[%s20572_s1 + $0x2a0] sm:$0xff]  }
  0x25   :  { %11885 = vmatprep.subr.bf16.mxu0 %v14617_v31  ;;  %13403 = vmatprep.subr.bf16.mxu1 %v14618_v32  ;;  %v14678_v31 = vld [vmem:[%s20572_s1 + $0x2e0] sm:$0xff]  }
  0x26   :  { %13417 = vmatprep.mubr.bf16.mxu1 %v15993_v24  ;;  %1221 = vmatprep.mubr.bf16.mxu0 %v16042_v37 }
  0x28   :  { %11886 = vmatpush3.bf16.msra.mxu0 %v14619_v33  ;;  %13404 = vmatpush3.bf16.msra.mxu1 %v14618_v32  ;;  %v14679_v32 = vld [vmem:[%s20572_s1 + $0x260] sm:$0xff]   ;;  %v14680_v33 = vld [vmem:[%s20572_s1 + $0x2a8] sm:$0xff]  }
  0x29   :  { %11887 = vmatprep.subr.bf16.mxu0 %v14620_v34  ;;  %13405 = vmatprep.subr.bf16.mxu1 %v14621_v35  ;;  %v14681_v34 = vld [vmem:[%s20572_s1 + $0x2e8] sm:$0xff]  }
  0x2b   :  { %1222 = vmatmul.mubr.bf16.gmra.mrb[4].mxu0 %v16050_v39 }
  0x2c   :  { %11888 = vmatpush3.bf16.msra.mxu0 %v14622_v36  ;;  %13406 = vmatpush3.bf16.msra.mxu1 %v14621_v35  ;;  %v14682_v35 = vld [vmem:[%s20572_s1 + $0x268] sm:$0xff]   ;;  %v14683_v36 = vld [vmem:[%s20572_s1 + $0x2b0] sm:$0xff]  }
  0x2d   :  { %11889 = vmatprep.subr.bf16.mxu0 %v14623_v38  ;;  %13407 = vmatprep.subr.bf16.mxu1 %v14624_v40  ;;  %v14684_v38 = vld [vmem:[%s20572_s1 + $0x2f0] sm:$0xff]  }
  0x2e   :  { %1455 = vmatprep.mubr.bf16.mxu0 %v15984_v22 }
  0x30   :  { %11890 = vmatpush3.bf16.msra.mxu0 %v14627_v41  ;;  %13408 = vmatpush3.bf16.msra.mxu1 %v14624_v40  ;;  %v14685_v40 = vld [vmem:[%s20572_s1 + $0x270] sm:$0xff]   ;;  %v14686_v41 = vld [vmem:[%s20572_s1 + $0x2b8] sm:$0xff]  }
  0x31   :  { %11891 = vmatprep.subr.bf16.mxu0 %v14629_v42  ;;  %13409 = vmatprep.subr.bf16.mxu1 %v14630_v43  ;;  %v14687_v42 = vld [vmem:[%s20572_s1 + $0x2f8] sm:$0xff]  }
  0x34   :  { %11892 = vmatpush3.bf16.msra.mxu0 %v14631_v44  ;;  %13410 = vmatpush3.bf16.msra.mxu1 %v14630_v43  ;;  %v14688_v43 = vld [vmem:[%s20572_s1 + $0x278] sm:$0xff]   ;;  %v14689_v44 = vld [vmem:[%s20572_s1 + $0x340] sm:$0xff]  }
  0x35   :  { %11893 = vmatprep.subr.bf16.mxu0 %v14632_v45  ;;  %13411 = vmatprep.subr.bf16.mxu1 %v14633_v46  ;;  %v14690_v45 = vld [vmem:[%s20572_s1 + $0x380] sm:$0xff]  }
  0x38   :  { %11894 = vmatpush3.bf16.msra.mxu0 %v14634_v47  ;;  %13412 = vmatpush3.bf16.msra.mxu1 %v14633_v46  ;;  %v14691_v46 = vld [vmem:[%s20572_s1 + $0x300] sm:$0xff]   ;;  %v14692_v47 = vld [vmem:[%s20572_s1 + $0x348] sm:$0xff]  }
  0x39   :  { %11895 = vmatprep.subr.bf16.mxu0 %v14635_v48  ;;  %13413 = vmatprep.subr.bf16.mxu1 %v14636_v49  ;;  %v14693_v48 = vld [vmem:[%s20572_s1 + $0x388] sm:$0xff]  }
  0x3c   :  { %11896 = vmatpush3.bf16.msra.mxu0 %v14637_v50  ;;  %13414 = vmatpush3.bf16.msra.mxu1 %v14636_v49  ;;  %v14694_v49 = vld [vmem:[%s20572_s1 + $0x308] sm:$0xff]   ;;  %v14695_v50 = vld [vmem:[%s20572_s1 + $0x350] sm:$0xff]  }
  0x3d   :  { %11897 = vmatprep.subr.bf16.mxu0 %v14638_v51  ;;  %13415 = vmatprep.subr.bf16.mxu1 %v14639_v52  ;;  %v14696_v51 = vld [vmem:[%s20572_s1 + $0x390] sm:$0xff]  }
  0x40   :  { %11898 = vmatpush3.bf16.msra.mxu0 %v14640_v53  ;;  %13416 = vmatpush3.bf16.msra.mxu1 %v14639_v52  ;;  %v14699_v52 = vld [vmem:[%s20572_s1 + $0x398] sm:$0xff]   ;;  %v14701_v53 = vld [vmem:[%s20572_s1 + $0x360] sm:$0xff]  }
  0x41   :  { %11921 = vmatprep.subr.bf16.mxu0 %v14641_v54  ;;  %13421 = vmatprep.subr.bf16.mxu1 %v14642_v55  ;;  %v14702_v54 = vld [vmem:[%s20572_s1 + $0x3a0] sm:$0xff]  }
  0x43   :  { %1456 = vmatmul.mubr.bf16.vlgmr.msra.gmra.mrb[8].mxu0 %v16004_v27  ;;  %13418 = vmatmul.mubr.bf16.vlgmr.msra.gmra.mrb[4].mxu1 %v16013_v29 }
  0x44   :  { %11922 = vmatpush3.bf16.msra.mxu0 %v14643_v56  ;;  %13422 = vmatpush3.bf16.msra.mxu1 %v14642_v55  ;;  %v14703_v55 = vld [vmem:[%s20572_s1 + $0x320] sm:$0xff]   ;;  %v14705_v56 = vld [vmem:[%s20572_s1 + $0x3a8] sm:$0xff]  }
  0x45   :  { %11923 = vmatprep.subr.bf16.mxu0 %v14644_v57  ;;  %13423 = vmatprep.subr.bf16.mxu1 %v14645_v58  ;;  %v14707_v57 = vld [vmem:[%s20572_s1 + $0x370] sm:$0xff]  }
  0x46   :  { %1463 = vmatprep.mubr.bf16.mxu0 %v16042_v37  ;;  %13437 = vmatprep.mubr.bf16.mxu1 %v15993_v24 }
  0x48   :  { %11924 = vmatpush3.bf16.msra.mxu0 %v14646_v59  ;;  %13424 = vmatpush3.bf16.msra.mxu1 %v14645_v58  ;;  %v14708_v58 = vld [vmem:[%s20572_s1 + $0x3b0] sm:$0xff]  }
  0x49   :  { %11925 = vmatprep.subr.bf16.mxu0 %v14647_v60  ;;  %13425 = vmatprep.subr.bf16.mxu1 %v14648_v61  ;;  %v14709_v59 = vld [vmem:[%s20572_s1 + $0x330] sm:$0xff]   ;;  %v14710_v60 = vld [vmem:[%s20572_s1 + $0x378] sm:$0xff]  }
  0x4b   :  { %1464 = vmatmul.mubr.bf16.gmra.mrb[12].mxu0 %v16050_v39 }
  0x4c   :  { %11926 = vmatpush3.bf16.msra.mxu0 %v14649_v62  ;;  %13426 = vmatpush3.bf16.msra.mxu1 %v14648_v61  ;;  %v14711_v61 = vld [vmem:[%s20572_s1 + $0x3b8] sm:$0xff]  }
  0x4d   :  { %11927 = vmatprep.subr.bf16.mxu0 %v14650_v63  ;;  %13427 = vmatprep.subr.bf16.mxu1 %v14651_v0  ;;  %v14712_v62 = vld [vmem:[%s20572_s1 + $0x338] sm:$0xff]   ;;  %v14713_v63 = vld [vmem:[%s20572_s1 + $0x400] sm:$0xff]  }
  0x4e   :  { %1697 = vmatprep.mubr.bf16.mxu0 %v15984_v22 }
  0x50   :  { %11928 = vmatpush3.bf16.msra.mxu0 %v14652_v1  ;;  %13428 = vmatpush3.bf16.msra.mxu1 %v14651_v0  ;;  %v14714_v0 = vld [vmem:[%s20572_s1 + $0x440] sm:$0xff]  }
  0x51   :  { %11929 = vmatprep.subr.bf16.mxu0 %v14653_v2  ;;  %13429 = vmatprep.subr.bf16.mxu1 %v14654_v3  ;;  %v14715_v1 = vld [vmem:[%s20572_s1 + $0x3c0] sm:$0xff]   ;;  %v14716_v2 = vld [vmem:[%s20572_s1 + $0x408] sm:$0xff]  }
  0x54   :  { %11930 = vmatpush3.bf16.msra.mxu0 %v14655_v4  ;;  %13430 = vmatpush3.bf16.msra.mxu1 %v14654_v3  ;;  %v14717_v3 = vld [vmem:[%s20572_s1 + $0x448] sm:$0xff]  }
  0x55   :  { %11931 = vmatprep.subr.bf16.mxu0 %v14656_v5  ;;  %13431 = vmatprep.subr.bf16.mxu1 %v14657_v6  ;;  %v16349_v4 = vld [vmem:[%s20571_s0] ss:$12 sps:$4 sm:$0xff]  }
  0x56   :  { %v16355_v5 = vld [vmem:[%s20571_s0 + $0x20] ss:$12 sps:$4 sm:$0xff]  }
  0x58   :  { %11932 = vmatpush3.bf16.msra.mxu0 %v14658_v7  ;;  %13432 = vmatpush3.bf16.msra.mxu1 %v14657_v6  ;;  %v14718_v6 = vld [vmem:[%s20572_s1 + $0x3c8] sm:$0xff]   ;;  %v14719_v7 = vld [vmem:[%s20572_s1 + $0x410] sm:$0xff]  }
  0x59   :  { %11933 = vmatprep.subr.bf16.mxu0 %v14659_v8  ;;  %13433 = vmatprep.subr.bf16.mxu1 %v14660_v9  ;;  %v14720_v8 = vld [vmem:[%s20572_s1 + $0x450] sm:$0xff]  }
  0x5c   :  { %11934 = vmatpush3.bf16.msra.mxu0 %v14661_v10  ;;  %13434 = vmatpush3.bf16.msra.mxu1 %v14660_v9  ;;  %v16371_v9 = vld [vmem:[%s20571_s0 + $0x8] ss:$12 sps:$4 sm:$0xff]  }
  0x5d   :  { %11935 = vmatprep.subr.bf16.mxu0 %v14662_v11  ;;  %13435 = vmatprep.subr.bf16.mxu1 %v14663_v12  ;;  %v14721_v10 = vld [vmem:[%s20572_s1 + $0x3d0] sm:$0xff]   ;;  %v14722_v11 = vld [vmem:[%s20572_s1 + $0x418] sm:$0xff]  }
  0x60   :  { %11936 = vmatpush3.bf16.msra.mxu0 %v14664_v13  ;;  %13436 = vmatpush3.bf16.msra.mxu1 %v14663_v12  ;;  %v14724_v12 = vld [vmem:[%s20572_s1 + $0x3d8] sm:$0xff]  }
  0x61   :  { %11959 = vmatprep.subr.bf16.mxu0 %v14665_v14  ;;  %13441 = vmatprep.subr.bf16.mxu1 %v14666_v15  ;;  %v16389_v13 = vld [vmem:[%s20571_s0 + $0x18] ss:$12 sps:$4 sm:$0xff]  }
  0x62   :  { %v14725_v14 = vld [vmem:[%s20572_s1 + $0x420] sm:$0xff]  }
  0x63   :  { %1698 = vmatmul.mubr.bf16.vlgmr.msra.gmra.mrb[16].mxu0 %v16004_v27  ;;  %13438 = vmatmul.mubr.bf16.vlgmr.msra.gmra.mrb[8].mxu1 %v16013_v29 }
  0x64   :  { %11960 = vmatpush3.bf16.msra.mxu0 %v14667_v16  ;;  %13442 = vmatpush3.bf16.msra.mxu1 %v14666_v15  ;;  %v14726_v15 = vld [vmem:[%s20572_s1 + $0x460] sm:$0xff]  }
  0x65   :  { %11961 = vmatprep.subr.bf16.mxu0 %v14668_v17  ;;  %13443 = vmatprep.subr.bf16.mxu1 %v14669_v18  ;;  %v16401_v16 = vld [vmem:[%s20571_s0 + $0x4] ss:$12 sps:$4 sm:$0xff]  }
  0x66   :  { %1705 = vmatprep.mubr.bf16.mxu0 %v16042_v37  ;;  %13457 = vmatprep.mubr.bf16.mxu1 %v15993_v24  ;;  %v14727_v17 = vld [vmem:[%s20572_s1 + $0x3e0] sm:$0xff]  }
  0x68   :  { %11962 = vmatpush3.bf16.msra.mxu0 %v14670_v19  ;;  %13444 = vmatpush3.bf16.msra.mxu1 %v14669_v18  ;;  %v14728_v18 = vld [vmem:[%s20572_s1 + $0x428] sm:$0xff]  }
  0x69   :  { %11963 = vmatprep.subr.bf16.mxu0 %v14671_v20  ;;  %13445 = vmatprep.subr.bf16.mxu1 %v14672_v21  ;;  %v14729_v19 = vld [vmem:[%s20572_s1 + $0x468] sm:$0xff]  }
  0x6a   :  { %v14730_v20 = vld [vmem:[%s20572_s1 + $0x3e8] sm:$0xff]  }
  0x6b   :  { %1706 = vmatmul.mubr.bf16.gmra.mrb[20].mxu0 %v16050_v39 }
  0x6c   :  { %11964 = vmatpush3.bf16.msra.mxu0 %v14673_v23  ;;  %13446 = vmatpush3.bf16.msra.mxu1 %v14672_v21  ;;  %v14731_v21 = vld [vmem:[%s20572_s1 + $0x430] sm:$0xff]  }
  0x6d   :  { %11965 = vmatprep.subr.bf16.mxu0 %v14674_v25  ;;  %13447 = vmatprep.subr.bf16.mxu1 %v14675_v26  ;;  %v14732_v23 = vld [vmem:[%s20572_s1 + $0x470] sm:$0xff]  }
  0x6e   :  { %1939 = vmatprep.mubr.bf16.mxu0 %v15984_v22  ;;  %v14733_v25 = vld [vmem:[%s20572_s1 + $0x3f0] sm:$0xff]  }
  0x70   :  { %11966 = vmatpush3.bf16.msra.mxu0 %v14676_v28  ;;  %13448 = vmatpush3.bf16.msra.mxu1 %v14675_v26  ;;  %v14734_v26 = vld [vmem:[%s20572_s1 + $0x438] sm:$0xff]  }
  0x71   :  { %11967 = vmatprep.subr.bf16.mxu0 %v14677_v30  ;;  %13449 = vmatprep.subr.bf16.mxu1 %v14678_v31  ;;  %v14735_v28 = vld [vmem:[%s20572_s1 + $0x478] sm:$0xff]  }
  0x72   :  { %v14736_v30 = vld [vmem:[%s20572_s1 + $0x3f8] sm:$0xff]  }
  0x74   :  { %11968 = vmatpush3.bf16.msra.mxu0 %v14679_v32  ;;  %13450 = vmatpush3.bf16.msra.mxu1 %v14678_v31  ;;  %v14737_v31 = vld [vmem:[%s20573_s2 + $0x40] sm:$0xff]  }
  0x75   :  { %11969 = vmatprep.subr.bf16.mxu0 %v14680_v33  ;;  %13451 = vmatprep.subr.bf16.mxu1 %v14681_v34  ;;  %v14738_v32 = vld [vmem:[%s20573_s2 + $0x80] sm:$0xff]  }
  0x76   :  { %v14739_v33 = vld [vmem:[%s20573_s2] sm:$0xff]  }
  0x78   :  { %11970 = vmatpush3.bf16.msra.mxu0 %v14682_v35  ;;  %13452 = vmatpush3.bf16.msra.mxu1 %v14681_v34  ;;  %v14740_v34 = vld [vmem:[%s20573_s2 + $0x48] sm:$0xff]  }
  0x79   :  { %11971 = vmatprep.subr.bf16.mxu0 %v14683_v36  ;;  %13453 = vmatprep.subr.bf16.mxu1 %v14684_v38  ;;  %v14741_v35 = vld [vmem:[%s20573_s2 + $0x88] sm:$0xff]  }
  0x7a   :  { %v14742_v36 = vld [vmem:[%s20573_s2 + $0x8] sm:$0xff]  }
  0x7c   :  { %11972 = vmatpush3.bf16.msra.mxu0 %v14685_v40  ;;  %13454 = vmatpush3.bf16.msra.mxu1 %v14684_v38  ;;  %v14743_v38 = vld [vmem:[%s20573_s2 + $0x50] sm:$0xff]  }
  0x7d   :  { %11973 = vmatprep.subr.bf16.mxu0 %v14686_v41  ;;  %13455 = vmatprep.subr.bf16.mxu1 %v14687_v42  ;;  %v14744_v40 = vld [vmem:[%s20573_s2 + $0x90] sm:$0xff]   ;;  %v16463_v41 = vld [vmem:[%s20571_s0 + $0x1c] ss:$12 sps:$4 sm:$0xff]  }
  0x80   :  { %11974 = vmatpush3.bf16.msra.mxu0 %v14688_v43  ;;  %13456 = vmatpush3.bf16.msra.mxu1 %v14687_v42  ;;  %v14745_v42 = vld [vmem:[%s20573_s2 + $0x10] sm:$0xff]   ;;  %v14746_v43 = vld [vmem:[%s20573_s2 + $0x58] sm:$0xff]  }
  0x81   :  { %11997 = vmatprep.subr.bf16.mxu0 %v14689_v44  ;;  %13461 = vmatprep.subr.bf16.mxu1 %v14690_v45  ;;  %v14747_v44 = vld [vmem:[%s20573_s2 + $0x98] sm:$0xff]  }
  0x83   :  { %1940 = vmatmul.mubr.bf16.vlgmr.msra.gmra.mrb[24].mxu0 %v16004_v27  ;;  %13458 = vmatmul.mubr.bf16.vlgmr.msra.gmra.mrb[12].mxu1 %v16013_v29  ;;  %v14697_v27 = vld [vmem:[%s20572_s1 + $0x310] sm:$0xff]   ;;  %v14698_v29 = vld [vmem:[%s20572_s1 + $0x358] sm:$0xff]  }
  0x84   :  { %11998 = vmatpush3.bf16.msra.mxu0 %v14691_v46  ;;  %13462 = vmatpush3.bf16.msra.mxu1 %v14690_v45  ;;  %v14748_v45 = vld [vmem:[%s20573_s2 + $0x18] sm:$0xff]   ;;  %v14749_v46 = vld [vmem:[%s20573_s2 + $0x60] sm:$0xff]  }
  0x85   :  { %11999 = vmatprep.subr.bf16.mxu0 %v14692_v47  ;;  %13463 = vmatprep.subr.bf16.mxu1 %v14693_v48  ;;  %v14750_v47 = vld [vmem:[%s20573_s2 + $0xa0] sm:$0xff]  }
  0x86   :  { %1947 = vmatprep.mubr.bf16.mxu0 %v16042_v37  ;;  %13477 = vmatprep.mubr.bf16.mxu1 %v15993_v24  ;;  %v14700_v24 = vld [vmem:[%s20572_s1 + $0x318] sm:$0xff]  }
  0x88   :  { %12000 = vmatpush3.bf16.msra.mxu0 %v14694_v49  ;;  %13464 = vmatpush3.bf16.msra.mxu1 %v14693_v48  ;;  %v14751_v48 = vld [vmem:[%s20573_s2 + $0x20] sm:$0xff]   ;;  %v14752_v49 = vld [vmem:[%s20573_s2 + $0x68] sm:$0xff]  }
  0x89   :  { %12001 = vmatprep.subr.bf16.mxu0 %v14695_v50  ;;  %13465 = vmatprep.subr.bf16.mxu1 %v14696_v51  ;;  %v14753_v50 = vld [vmem:[%s20573_s2 + $0xa8] sm:$0xff]  }
  0x8b   :  { %1948 = vmatmul.mubr.bf16.gmra.mrb[28].mxu0 %v16050_v39  ;;  %v14704_v39 = vld [vmem:[%s20572_s1 + $0x368] sm:$0xff]  }
  0x8c   :  { %12002 = vmatpush3.bf16.msra.mxu0 %v14697_v27  ;;  %13466 = vmatpush3.bf16.msra.mxu1 %v14696_v51  ;;  %v14754_v51 = vld [vmem:[%s20573_s2 + $0x28] sm:$0xff]   ;;  %v14755_v27 = vld [vmem:[%s20573_s2 + $0x70] sm:$0xff]  }
  0x8d   :  { %12003 = vmatprep.subr.bf16.mxu0 %v14698_v29  ;;  %13467 = vmatprep.subr.bf16.mxu1 %v14699_v52  ;;  %v14756_v29 = vld [vmem:[%s20573_s2 + $0xb0] sm:$0xff]  }
  0x8e   :  { %2181 = vmatprep.mubr.bf16.mxu0 %v15984_v22  ;;  %v14706_v22 = vld [vmem:[%s20572_s1 + $0x328] sm:$0xff]  }
  0x90   :  { %12004 = vmatpush3.bf16.msra.mxu0 %v14700_v24  ;;  %13468 = vmatpush3.bf16.msra.mxu1 %v14699_v52  ;;  %v14757_v52 = vld [vmem:[%s20573_s2 + $0x30] sm:$0xff]   ;;  %v14758_v24 = vld [vmem:[%s20573_s2 + $0x78] sm:$0xff]  }
  0x91   :  { %12005 = vmatprep.subr.bf16.mxu0 %v14701_v53  ;;  %13469 = vmatprep.subr.bf16.mxu1 %v14702_v54  ;;  %v14759_v53 = vld [vmem:[%s20573_s2 + $0xb8] sm:$0xff]  }
  0x94   :  { %12006 = vmatpush3.bf16.msra.mxu0 %v14703_v55  ;;  %13470 = vmatpush3.bf16.msra.mxu1 %v14702_v54  ;;  %v14760_v54 = vld [vmem:[%s20573_s2 + $0x38] sm:$0xff]   ;;  %v14761_v55 = vld [vmem:[%s20573_s2 + $0x100] sm:$0xff]  }
  0x95   :  { %12007 = vmatprep.subr.bf16.mxu0 %v14704_v39  ;;  %13471 = vmatprep.subr.bf16.mxu1 %v14705_v56  ;;  %v14762_v39 = vld [vmem:[%s20573_s2 + $0x140] sm:$0xff]  }
  0x98   :  { %12008 = vmatpush3.bf16.msra.mxu0 %v14706_v22  ;;  %13472 = vmatpush3.bf16.msra.mxu1 %v14705_v56  ;;  %v14763_v56 = vld [vmem:[%s20573_s2 + $0xc0] sm:$0xff]   ;;  %v14764_v22 = vld [vmem:[%s20573_s2 + $0x108] sm:$0xff]  }
  0x99   :  { %12009 = vmatprep.subr.bf16.mxu0 %v14707_v57  ;;  %13473 = vmatprep.subr.bf16.mxu1 %v14708_v58  ;;  %v14765_v57 = vld [vmem:[%s20573_s2 + $0x148] sm:$0xff]  }
  0x9c   :  { %12010 = vmatpush3.bf16.msra.mxu0 %v14709_v59  ;;  %13474 = vmatpush3.bf16.msra.mxu1 %v14708_v58  ;;  %v14766_v58 = vld [vmem:[%s20573_s2 + $0xc8] sm:$0xff]   ;;  %v14767_v59 = vld [vmem:[%s20573_s2 + $0x110] sm:$0xff]  }
  0x9d   :  { %12011 = vmatprep.subr.bf16.mxu0 %v14710_v60  ;;  %13475 = vmatprep.subr.bf16.mxu1 %v14711_v61  ;;  %v14768_v60 = vld [vmem:[%s20573_s2 + $0x150] sm:$0xff]  }
  0xa0   :  { %12012 = vmatpush3.bf16.msra.mxu0 %v14712_v62  ;;  %13476 = vmatpush3.bf16.msra.mxu1 %v14711_v61  ;;  %v14769_v61 = vld [vmem:[%s20573_s2 + $0xd0] sm:$0xff]   ;;  %v14770_v62 = vld [vmem:[%s20573_s2 + $0x118] sm:$0xff]  }
  0xa1   :  { %12035 = vmatprep.subr.bf16.mxu0 %v14713_v63  ;;  %13481 = vmatprep.subr.bf16.mxu1 %v14714_v0  ;;  %v14771_v63 = vld [vmem:[%s20573_s2 + $0x158] sm:$0xff]  }
  0xa3   :  { %2182 = vmatmul.mubr.bf16.vlgmr.msra.gmra.mrb[32].mxu0 %v16349_v4  ;;  %13478 = vmatmul.mubr.bf16.vlgmr.msra.gmra.mrb[16].mxu1 %v16355_v5 }
  0xa4   :  { %12036 = vmatpush3.bf16.msra.mxu0 %v14715_v1  ;;  %13482 = vmatpush3.bf16.msra.mxu1 %v14714_v0  ;;  %v14772_v0 = vld [vmem:[%s20573_s2 + $0xd8] sm:$0xff]   ;;  %v14773_v1 = vld [vmem:[%s20573_s2 + $0x120] sm:$0xff]  }
  0xa5   :  { %12037 = vmatprep.subr.bf16.mxu0 %v14716_v2  ;;  %13483 = vmatprep.subr.bf16.mxu1 %v14717_v3  ;;  %v14774_v2 = vld [vmem:[%s20573_s2 + $0x160] sm:$0xff]  }
  0xa6   :  { %2189 = vmatprep.mubr.bf16.mxu0 %v16042_v37  ;;  %13497 = vmatprep.mubr.bf16.mxu1 %v16371_v9  ;;  %v14723_v37 = vld [vmem:[%s20572_s1 + $0x458] sm:$0xff]  }
  0xa8   :  { %12038 = vmatpush3.bf16.msra.mxu0 %v14718_v6  ;;  %13484 = vmatpush3.bf16.msra.mxu1 %v14717_v3  ;;  %v14775_v3 = vld [vmem:[%s20573_s2 + $0xe0] sm:$0xff]   ;;  %v14776_v6 = vld [vmem:[%s20573_s2 + $0x128] sm:$0xff]  }
  0xa9   :  { %12039 = vmatprep.subr.bf16.mxu0 %v14719_v7  ;;  %13485 = vmatprep.subr.bf16.mxu1 %v14720_v8  ;;  %v14777_v7 = vld [vmem:[%s20573_s2 + $0x168] sm:$0xff]  }
  0xab   :  { %2190 = vmatmul.mubr.bf16.gmra.mrb[36].mxu0 %v16389_v13 }
  0xac   :  { %12040 = vmatpush3.bf16.msra.mxu0 %v14721_v10  ;;  %13486 = vmatpush3.bf16.msra.mxu1 %v14720_v8  ;;  %v14778_v8 = vld [vmem:[%s20573_s2 + $0xe8] sm:$0xff]   ;;  %v14779_v10 = vld [vmem:[%s20573_s2 + $0x130] sm:$0xff]  }
  0xad   :  { %12041 = vmatprep.subr.bf16.mxu0 %v14722_v11  ;;  %13487 = vmatprep.subr.bf16.mxu1 %v14723_v37  ;;  %v14780_v11 = vld [vmem:[%s20573_s2 + $0x170] sm:$0xff]  }
  0xae   :  { %2423 = vmatprep.mubr.bf16.mxu0 %v16401_v16 }
  0xb0   :  { %12042 = vmatpush3.bf16.msra.mxu0 %v14724_v12  ;;  %13488 = vmatpush3.bf16.msra.mxu1 %v14723_v37 }
  0xb1   :  { %12043 = vmatprep.subr.bf16.mxu0 %v14725_v14  ;;  %13489 = vmatprep.subr.bf16.mxu1 %v14726_v15  ;;  %v14781_v14 = vld [vmem:[%s20573_s2 + $0xf0] sm:$0xff]  }
  0xb4   :  { %12044 = vmatpush3.bf16.msra.mxu0 %v14727_v17  ;;  %13490 = vmatpush3.bf16.msra.mxu1 %v14726_v15 }
  0xb5   :  { %12045 = vmatprep.subr.bf16.mxu0 %v14728_v18  ;;  %13491 = vmatprep.subr.bf16.mxu1 %v14729_v19 }
  0xb8   :  { %12046 = vmatpush3.bf16.msra.mxu0 %v14730_v20  ;;  %13492 = vmatpush3.bf16.msra.mxu1 %v14729_v19 }
  0xb9   :  { %12047 = vmatprep.subr.bf16.mxu0 %v14731_v21  ;;  %13493 = vmatprep.subr.bf16.mxu1 %v14732_v23 }
  0xbc   :  { %12048 = vmatpush3.bf16.msra.mxu0 %v14733_v25  ;;  %13494 = vmatpush3.bf16.msra.mxu1 %v14732_v23  ;;  %v14782_v25 = vld [vmem:[%s20573_s2 + $0x138] sm:$0xff]  }
  0xbd   :  { %12049 = vmatprep.subr.bf16.mxu0 %v14734_v26  ;;  %13495 = vmatprep.subr.bf16.mxu1 %v14735_v28  ;;  %v14783_v26 = vld [vmem:[%s20573_s2 + $0x178] sm:$0xff]  }
  0xc0   :  { %12050 = vmatpush3.bf16.msra.mxu0 %v14736_v30  ;;  %13496 = vmatpush3.bf16.msra.mxu1 %v14735_v28 }
  0xc1   :  { %12073 = vmatprep.subr.bf16.mxu0 %v14737_v31  ;;  %13501 = vmatprep.subr.bf16.mxu1 %v14738_v32  ;;  %v14784_v31 = vld [vmem:[%s20573_s2 + $0xf8] sm:$0xff]  }
  0xc3   :  { %2424 = vmatmul.mubr.bf16.vlgmr.msra.gmra.mrb[40].mxu0 %v16349_v4  ;;  %13498 = vmatmul.mubr.bf16.vlgmr.msra.gmra.mrb[20].mxu1 %v16355_v5 }
  0xc4   :  { %12074 = vmatpush3.bf16.msra.mxu0 %v14739_v33  ;;  %13502 = vmatpush3.bf16.msra.mxu1 %v14738_v32 }
  0xc5   :  { %12075 = vmatprep.subr.bf16.mxu0 %v14740_v34  ;;  %13503 = vmatprep.subr.bf16.mxu1 %v14741_v35  ;;  %v14785_v34 = vld [vmem:[%s20573_s2 + $0x1c0] sm:$0xff]  }
  0xc6   :  { %2431 = vmatprep.mubr.bf16.mxu0 %v16463_v41  ;;  %13517 = vmatprep.mubr.bf16.mxu1 %v16371_v9 }
  0xc8   :  { %12076 = vmatpush3.bf16.msra.mxu0 %v14742_v36  ;;  %13504 = vmatpush3.bf16.msra.mxu1 %v14741_v35  ;;  %v14786_v35 = vld [vmem:[%s20573_s2 + $0x200] sm:$0xff]  }
  0xc9   :  { %12077 = vmatprep.subr.bf16.mxu0 %v14743_v38  ;;  %13505 = vmatprep.subr.bf16.mxu1 %v14744_v40 }
  0xcb   :  { %2432 = vmatmul.mubr.bf16.gmra.mrb[44].mxu0 %v16389_v13 }
  0xcc   :  { %12078 = vmatpush3.bf16.msra.mxu0 %v14745_v42  ;;  %13506 = vmatpush3.bf16.msra.mxu1 %v14744_v40  ;;  %v14787_v40 = vld [vmem:[%s20573_s2 + $0x180] sm:$0xff]  }
  0xcd   :  { %12079 = vmatprep.subr.bf16.mxu0 %v14746_v43  ;;  %13507 = vmatprep.subr.bf16.mxu1 %v14747_v44 }
  0xce   :  { %2665 = vmatprep.mubr.bf16.mxu0 %v16401_v16 }
  0xd0   :  { %12080 = vmatpush3.bf16.msra.mxu0 %v14748_v45  ;;  %13508 = vmatpush3.bf16.msra.mxu1 %v14747_v44 }
  0xd1   :  { %12081 = vmatprep.subr.bf16.mxu0 %v14749_v46  ;;  %13509 = vmatprep.subr.bf16.mxu1 %v14750_v47  ;;  %v14788_v46 = vld [vmem:[%s20573_s2 + $0x1c8] sm:$0xff]  }
  0xd4   :  { %12082 = vmatpush3.bf16.msra.mxu0 %v14751_v48  ;;  %13510 = vmatpush3.bf16.msra.mxu1 %v14750_v47  ;;  %v14789_v48 = vld [vmem:[%s20573_s2 + $0x208] sm:$0xff]  }
  0xd5   :  { %12083 = vmatprep.subr.bf16.mxu0 %v14752_v49  ;;  %13511 = vmatprep.subr.bf16.mxu1 %v14753_v50 }
  0xd8   :  { %12084 = vmatpush3.bf16.msra.mxu0 %v14754_v51  ;;  %13512 = vmatpush3.bf16.msra.mxu1 %v14753_v50  ;;  %v14790_v51 = vld [vmem:[%s20573_s2 + $0x188] sm:$0xff]  }
  0xd9   :  { %12085 = vmatprep.subr.bf16.mxu0 %v14755_v27  ;;  %13513 = vmatprep.subr.bf16.mxu1 %v14756_v29 }
  0xdc   :  { %12086 = vmatpush3.bf16.msra.mxu0 %v14757_v52  ;;  %13514 = vmatpush3.bf16.msra.mxu1 %v14756_v29  ;;  %v14791_v52 = vld [vmem:[%s20573_s2 + $0x1d0] sm:$0xff]  }
  0xdd   :  { %12087 = vmatprep.subr.bf16.mxu0 %v14758_v24  ;;  %13515 = vmatprep.subr.bf16.mxu1 %v14759_v53  ;;  %v14792_v24 = vld [vmem:[%s20573_s2 + $0x210] sm:$0xff]  }
  0xe0   :  { %12088 = vmatpush3.bf16.msra.mxu0 %v14760_v54  ;;  %13516 = vmatpush3.bf16.msra.mxu1 %v14759_v53  ;;  %v14794_v54 = vld [vmem:[%s20573_s2 + $0x1d8] sm:$0xff]  }
  0xe1   :  { %12111 = vmatprep.subr.bf16.mxu0 %v14761_v55  ;;  %13521 = vmatprep.subr.bf16.mxu1 %v14762_v39  ;;  %v14795_v55 = vld [vmem:[%s20573_s2 + $0x218] sm:$0xff]  }
  0xe3   :  { %2666 = vmatmul.mubr.bf16.vlgmr.msra.gmra.mrb[48].mxu0 %v16349_v4  ;;  %13518 = vmatmul.mubr.bf16.vlgmr.msra.gmra.mrb[24].mxu1 %v16355_v5 }
  0xe4   :  { %12112 = vmatpush3.bf16.msra.mxu0 %v14763_v56  ;;  %13522 = vmatpush3.bf16.msra.mxu1 %v14762_v39  ;;  %v14796_v39 = vld [vmem:[%s20573_s2 + $0x198] sm:$0xff]   ;;  %v14798_v56 = vld [vmem:[%s20573_s2 + $0x220] sm:$0xff]  }
  0xe5   :  { %12113 = vmatprep.subr.bf16.mxu0 %v14764_v22  ;;  %13523 = vmatprep.subr.bf16.mxu1 %v14765_v57  ;;  %v14799_v22 = vld [vmem:[%s20573_s2 + $0x1a0] sm:$0xff]  }
  0xe6   :  { %2673 = vmatprep.mubr.bf16.mxu0 %v16463_v41  ;;  %13537 = vmatprep.mubr.bf16.mxu1 %v16371_v9 }
  0xe8   :  { %12114 = vmatpush3.bf16.msra.mxu0 %v14766_v58  ;;  %13524 = vmatpush3.bf16.msra.mxu1 %v14765_v57  ;;  %v14801_v57 = vld [vmem:[%s20573_s2 + $0x228] sm:$0xff]   ;;  %v14803_v58 = vld [vmem:[%s20573_s2 + $0x1f0] sm:$0xff]  }
  0xe9   :  { %12115 = vmatprep.subr.bf16.mxu0 %v14767_v59  ;;  %13525 = vmatprep.subr.bf16.mxu1 %v14768_v60  ;;  %v14804_v59 = vld [vmem:[%s20573_s2 + $0x230] sm:$0xff]  }
  0xeb   :  { %2674 = vmatmul.mubr.bf16.gmra.mrb[52].mxu0 %v16389_v13 }
  0xec   :  { %12116 = vmatpush3.bf16.msra.mxu0 %v14769_v61  ;;  %13526 = vmatpush3.bf16.msra.mxu1 %v14768_v60 }
  0xed   :  { %12117 = vmatprep.subr.bf16.mxu0 %v14770_v62  ;;  %13527 = vmatprep.subr.bf16.mxu1 %v14771_v63  ;;  %v14805_v62 = vld [vmem:[%s20573_s2 + $0x1b0] sm:$0xff]  }
  0xee   :  { %2907 = vmatprep.mubr.bf16.mxu0 %v16401_v16 }
  0xf0   :  { %12118 = vmatpush3.bf16.msra.mxu0 %v14772_v0  ;;  %13528 = vmatpush3.bf16.msra.mxu1 %v14771_v63 }
  0xf1   :  { %12119 = vmatprep.subr.bf16.mxu0 %v14773_v1  ;;  %13529 = vmatprep.subr.bf16.mxu1 %v14774_v2 }
  0xf4   :  { %12120 = vmatpush3.bf16.msra.mxu0 %v14775_v3  ;;  %13530 = vmatpush3.bf16.msra.mxu1 %v14774_v2 }
  0xf5   :  { %12121 = vmatprep.subr.bf16.mxu0 %v14776_v6  ;;  %13531 = vmatprep.subr.bf16.mxu1 %v14777_v7 }
  0xf6   :  { %v11861_v37 = vpop.f32.mrb[0].mxu0  ;;  %v13399_v12 = vpop.f32.mrb[0].mxu1 }
  0xf7   :  { %v11862_v15 = vpop.f32.mrb[1].mxu0  ;;  %v1264_v17 = vpop.f32.mrb[1].mxu1 }
  0xf8   :  { %v11864_v18 = vpop.f32.mrb[2].mxu0  ;;  %12122 = vmatpush3.bf16.msra.mxu0 %v14778_v8  ;;  %13532 = vmatpush3.bf16.msra.mxu1 %v14777_v7  ;;  %v11863_v19 = vadd.f32 %v11862_v15, %v11861_v37  ;;  %v13400_v20 = vpop.f32.mrb[2].mxu1  ;;  %v14806_v8 = vld [vmem:[%s20573_s2 + $0x1f8] sm:$0xff]  }
  0xf9   :  { %v11865_v21 = vpop.f32.mrb[3].mxu0  ;;  %v1267_v23 = vpop.f32.mrb[3].mxu1  ;;  %12123 = vmatprep.subr.bf16.mxu0 %v14779_v10  ;;  %13533 = vmatprep.subr.bf16.mxu1 %v14780_v11  ;;  %v14807_v10 = vld [vmem:[%s20573_s2 + $0x238] sm:$0xff]  }
  0xfa   :  { %v1265_v28 = vadd.f32 %v11863_v19, %v1264_v17  ;;  %v11866_v30 = vadd.f32 %v11865_v21, %v11864_v18  ;;  %v14809_v17 = vld [vmem:[%s20573_s2 + $0x280] sm:$0xff]  }
  0xfb   :  { %v14810_v18 = vld [vmem:[%s20573_s2 + $0x2c0] sm:$0xff]  }
  0xfc   :  { %v16595_v32 = vmul.f32 0.05103104, %v1265_v28  ;;  %v1268_v33 = vadd.f32 %v11866_v30, %v1267_v23  ;;  %12124 = vmatpush3.bf16.msra.mxu0 %v14781_v14  ;;  %13534 = vmatpush3.bf16.msra.mxu1 %v14780_v11  ;;  %v14811_v21 = vld [vmem:[%s20573_s2 + $0x240] sm:$0xff]   ;;  %v14812_v30 = vld [vmem:[%s20573_s2 + $0x288] sm:$0xff]  }
  0xfd   :  { %12125 = vmatprep.subr.bf16.mxu0 %v14782_v25  ;;  %13535 = vmatprep.subr.bf16.mxu1 %v14783_v26 }
  0xfe   :  { %v16603_v36 = vmul.f32 0.05103104, %v1268_v33  ;;  %v11867_v38 = vpop.f32.mrb[4].mxu0  ;;  %v14813_v33 = vld [vmem:[%s20573_s2 + $0x2c8] sm:$0xff]  }
  0xff   :  { %v11868_v42 = vpop.f32.mrb[5].mxu0 }
 0x100   :  { %v5417_v43 = vpack.c.bf16 %v16603_v36, %v16595_v32  ;;  %12126 = vmatpush3.bf16.msra.mxu0 %v14784_v31  ;;  %13536 = vmatpush3.bf16.msra.mxu1 %v14783_v26  ;;  %v11869_v44 = vadd.f32 %v11868_v42, %v11867_v38  ;;  %v11870_v45 = vpop.f32.mrb[6].mxu0  ;;  %v16709_v38 = vld [vmem:[%s20571_s0] ss:$12 sps:$4 sm:$0xff]  }
 0x101   :  { %12149 = vmatprep.subr.bf16.mxu0 %v14785_v34  ;;  %13541 = vmatprep.subr.bf16.mxu1 %v14786_v35  ;;  %v11871_v47 = vpop.f32.mrb[7].mxu0  ;;  %v14814_v42 = vld [vmem:[%s20573_s2 + $0x248] sm:$0xff]  }
 0x102   :  { %v1273_v49 = vadd.f32 %v13399_v12, %v11869_v44  ;;  %v11872_v50 = vadd.f32 %v11871_v47, %v11870_v45  ;;  %v14808_v12 = vld [vmem:[%s20573_s2 + $0x1b8] sm:$0xff]   ;;  %v14816_v47 = vld [vmem:[%s20573_s2 + $0x2d0] sm:$0xff]  }
 0x103   :  { %2908 = vmatmul.mubr.bf16.vlgmr.msra.gmra.mrb[56].mxu0 %v16349_v4  ;;  %13538 = vmatmul.mubr.bf16.vlgmr.msra.gmra.mrb[28].mxu1 %v16355_v5  ;;  %v14793_v5 = vld [vmem:[%s20573_s2 + $0x190] sm:$0xff]  }
 0x104   :  { %12150 = vmatpush3.bf16.msra.mxu0 %v14787_v40  ;;  %13542 = vmatpush3.bf16.msra.mxu1 %v14786_v35  ;;  %v16621_v27 = vmul.f32 0.05103104, %v1273_v49  ;;  %v1276_v29 = vadd.f32 %v13400_v20, %v11872_v50  ;;  %v16715_v40 = vld [vmem:[%s20571_s0 + $0x20] ss:$12 sps:$4 sm:$0xff]   ;;  %v14817_v49 = vld [vmem:[%s20573_s2 + $0x250] sm:$0xff]  }
 0x105   :  { %12151 = vmatprep.subr.bf16.mxu0 %v14788_v46  ;;  %13543 = vmatprep.subr.bf16.mxu1 %v14789_v48  ;;  %v14815_v46 = vld [vmem:[%s20573_s2 + $0x290] sm:$0xff]  }
 0x106   :  { %v16629_v4 = vmul.f32 0.05103104, %v1276_v29  ;;  %2915 = vmatprep.mubr.bf16.mxu0 %v16463_v41  ;;  %13557 = vmatprep.mubr.bf16.mxu1 %v16371_v9  ;;  %v14797_v9 = vld [vmem:[%s20573_s2 + $0x1e0] sm:$0xff]   ;;  %v16738_v50 = vld [vmem:[%s20571_s0 + $0x8] ss:$12 sps:$4 sm:$0xff]   ;;  %v14818_v29 = vld [vmem:[%s20573_s2 + $0x298] sm:$0xff]  }
 0x108   :  { %v5418_v53 = vpack.c.bf16 %v16629_v4, %v16621_v27  ;;  %12152 = vmatpush3.bf16.msra.mxu0 %v14790_v51  ;;  %13544 = vmatpush3.bf16.msra.mxu1 %v14789_v48 }
 0x109   :  { %12153 = vmatprep.subr.bf16.mxu0 %v14791_v52  ;;  %13545 = vmatprep.subr.bf16.mxu1 %v14792_v24  ;;  %v14820_v52 = vld [vmem:[%s20573_s2 + $0x258] sm:$0xff]  }
 0x10b   :  { %2916 = vmatmul.mubr.bf16.gmra.mrb[60].mxu0 %v16389_v13  ;;  %v14800_v13 = vld [vmem:[%s20573_s2 + $0x1e8] sm:$0xff]  }
 0x10c   :  { %12154 = vmatpush3.bf16.msra.mxu0 %v14793_v5  ;;  %13546 = vmatpush3.bf16.msra.mxu1 %v14792_v24  ;;  %v16755_v24 = vld [vmem:[%s20571_s0 + $0x18] ss:$12 sps:$4 sm:$0xff]  }
 0x10d   :  { %12155 = vmatprep.subr.bf16.mxu0 %v14794_v54  ;;  %13547 = vmatprep.subr.bf16.mxu1 %v14795_v55  ;;  %v14821_v5 = vld [vmem:[%s20573_s2 + $0x2a0] sm:$0xff]  }
 0x10e   :  { %3149 = vmatprep.mubr.bf16.mxu0 %v16401_v16  ;;  %v14802_v16 = vld [vmem:[%s20573_s2 + $0x1a8] sm:$0xff]   ;;  %v14822_v54 = vld [vmem:[%s20573_s2 + $0x2e0] sm:$0xff]  }
 0x110   :  { %12156 = vmatpush3.bf16.msra.mxu0 %v14796_v39  ;;  %13548 = vmatpush3.bf16.msra.mxu1 %v14795_v55  ;;  %v16767_v55 = vld [vmem:[%s20571_s0 + $0x4] ss:$12 sps:$4 sm:$0xff]  }
 0x111   :  { %12157 = vmatprep.subr.bf16.mxu0 %v14797_v9  ;;  %13549 = vmatprep.subr.bf16.mxu1 %v14798_v56  ;;  %v14823_v39 = vld [vmem:[%s20573_s2 + $0x260] sm:$0xff]   ;;  %v14824_v9 = vld [vmem:[%s20573_s2 + $0x2a8] sm:$0xff]  }
 0x114   :  { %12158 = vmatpush3.bf16.msra.mxu0 %v14799_v22  ;;  %13550 = vmatpush3.bf16.msra.mxu1 %v14798_v56  ;;  %v14825_v56 = vld [vmem:[%s20573_s2 + $0x2e8] sm:$0xff]  }
 0x115   :  { %12159 = vmatprep.subr.bf16.mxu0 %v14800_v13  ;;  %13551 = vmatprep.subr.bf16.mxu1 %v14801_v57  ;;  %v14826_v22 = vld [vmem:[%s20573_s2 + $0x268] sm:$0xff]   ;;  %v14827_v13 = vld [vmem:[%s20573_s2 + $0x2b0] sm:$0xff]  }
 0x116   :  { %v11899_v60 = vpop.f32.mrb[8].mxu0  ;;  %v13419_v61 = vpop.f32.mrb[4].mxu1 }
 0x117   :  { %v11900_v63 = vpop.f32.mrb[9].mxu0  ;;  %v1506_v0 = vpop.f32.mrb[5].mxu1 }
 0x118   :  { %v11902_v1 = vpop.f32.mrb[10].mxu0  ;;  %12160 = vmatpush3.bf16.msra.mxu0 %v14802_v16  ;;  %13552 = vmatpush3.bf16.msra.mxu1 %v14801_v57  ;;  %v11901_v2 = vadd.f32 %v11900_v63, %v11899_v60  ;;  %v13420_v3 = vpop.f32.mrb[6].mxu1  ;;  %v14828_v57 = vld [vmem:[%s20573_s2 + $0x2f0] sm:$0xff]  }
 0x119   :  { %v11903_v6 = vpop.f32.mrb[11].mxu0  ;;  %v1509_v7 = vpop.f32.mrb[7].mxu1  ;;  %12161 = vmatprep.subr.bf16.mxu0 %v14803_v58  ;;  %13553 = vmatprep.subr.bf16.mxu1 %v14804_v59 }
 0x11a   :  { %v1507_v11 = vadd.f32 %v11901_v2, %v1506_v0  ;;  %v11904_v37 = vadd.f32 %v11903_v6, %v11902_v1  ;;  %v14831_v6 = vld [vmem:[%s20573_s2 + $0x2f8] sm:$0xff]  }
 0x11c   :  { %v16685_v14 = vmul.f32 0.05103104, %v1507_v11  ;;  %v1510_v15 = vadd.f32 %v11904_v37, %v1509_v7  ;;  %12162 = vmatpush3.bf16.msra.mxu0 %v14805_v62  ;;  %13554 = vmatpush3.bf16.msra.mxu1 %v14804_v59  ;;  %v14829_v59 = vld [vmem:[%s20573_s2 + $0x270] sm:$0xff]  }
 0x11d   :  { %12163 = vmatprep.subr.bf16.mxu0 %v14806_v8  ;;  %13555 = vmatprep.subr.bf16.mxu1 %v14807_v10 }
 0x11e   :  { %v16693_v19 = vmul.f32 0.05103104, %v1510_v15  ;;  %v11905_v20 = vpop.f32.mrb[12].mxu0  ;;  %v14834_v15 = vld [vmem:[%s20573_s2 + $0x380] sm:$0xff]  }
 0x11f   :  { %v11906_v23 = vpop.f32.mrb[13].mxu0 }
 0x120   :  { %v5419_v25 = vpack.c.bf16 %v16693_v19, %v16685_v14  ;;  %12164 = vmatpush3.bf16.msra.mxu0 %v14808_v12  ;;  %13556 = vmatpush3.bf16.msra.mxu1 %v14807_v10  ;;  %v11907_v26 = vadd.f32 %v11906_v23, %v11905_v20  ;;  %v11908_v28 = vpop.f32.mrb[14].mxu0  ;;  %v14832_v10 = vld [vmem:[%s20573_s2 + $0x278] sm:$0xff]   ;;  %v14833_v12 = vld [vmem:[%s20573_s2 + $0x340] sm:$0xff]  }
 0x121   :  { %12187 = vmatprep.subr.bf16.mxu0 %v14809_v17  ;;  %13561 = vmatprep.subr.bf16.mxu1 %v14810_v18  ;;  %v11909_v31 = vpop.f32.mrb[15].mxu0  ;;  %v14835_v20 = vld [vmem:[%s20573_s2 + $0x300] sm:$0xff]  }
 0x122   :  { %v1515_v34 = vadd.f32 %v13419_v61, %v11907_v26  ;;  %v11910_v35 = vadd.f32 %v11909_v31, %v11908_v28 }
 0x123   :  { %3150 = vmatmul.mubr.bf16.vlgmr.msra.gmra.mrb[64].mxu0 %v16709_v38  ;;  %13558 = vmatmul.mubr.bf16.vlgmr.msra.gmra.mrb[32].mxu1 %v16715_v40 }
 0x124   :  { %12188 = vmatpush3.bf16.msra.mxu0 %v14811_v21  ;;  %13562 = vmatpush3.bf16.msra.mxu1 %v14810_v18  ;;  %v16721_v44 = vmul.f32 0.05103104, %v1515_v34  ;;  %v1518_v45 = vadd.f32 %v13420_v3, %v11910_v35  ;;  %v14830_v3 = vld [vmem:[%s20573_s2 + $0x2b8] sm:$0xff]  }
 0x125   :  { %12189 = vmatprep.subr.bf16.mxu0 %v14812_v30  ;;  %13563 = vmatprep.subr.bf16.mxu1 %v14813_v33  ;;  %v14836_v30 = vld [vmem:[%s20573_s2 + $0x348] sm:$0xff]  }
 0x126   :  { %v16729_v48 = vmul.f32 0.05103104, %v1518_v45  ;;  %3157 = vmatprep.mubr.bf16.mxu0 %v16463_v41  ;;  %13577 = vmatprep.mubr.bf16.mxu1 %v16738_v50  ;;  %v14819_v41 = vld [vmem:[%s20573_s2 + $0x2d8] sm:$0xff]  }
 0x128   :  { %v5420_v51 = vpack.c.bf16 %v16729_v48, %v16721_v44  ;;  %12190 = vmatpush3.bf16.msra.mxu0 %v14814_v42  ;;  %13564 = vmatpush3.bf16.msra.mxu1 %v14813_v33  ;;  %v14837_v33 = vld [vmem:[%s20573_s2 + $0x388] sm:$0xff]  }
 0x129   :  { %12191 = vmatprep.subr.bf16.mxu0 %v14815_v46  ;;  %13565 = vmatprep.subr.bf16.mxu1 %v14816_v47  ;;  %v14838_v42 = vld [vmem:[%s20573_s2 + $0x308] sm:$0xff]  }
 0x12b   :  { %3158 = vmatmul.mubr.bf16.gmra.mrb[68].mxu0 %v16755_v24 }
 0x12c   :  { %12192 = vmatpush3.bf16.msra.mxu0 %v14817_v49  ;;  %13566 = vmatpush3.bf16.msra.mxu1 %v14816_v47  ;;  %v14839_v47 = vld [vmem:[%s20573_s2 + $0x350] sm:$0xff]  }
 0x12d   :  { %12193 = vmatprep.subr.bf16.mxu0 %v14818_v29  ;;  %13567 = vmatprep.subr.bf16.mxu1 %v14819_v41  ;;  %v14840_v49 = vld [vmem:[%s20573_s2 + $0x390] sm:$0xff]  }
 0x12e   :  { %3391 = vmatprep.mubr.bf16.mxu0 %v16767_v55 }
 0x130   :  { %12194 = vmatpush3.bf16.msra.mxu0 %v14820_v52  ;;  %13568 = vmatpush3.bf16.msra.mxu1 %v14819_v41  ;;  %v14841_v41 = vld [vmem:[%s20573_s2 + $0x310] sm:$0xff]   ;;  %v16842_v52 = vld [vmem:[%s20571_s0 + $0x1c] ss:$12 sps:$4 sm:$0xff]  }
 0x131   :  { %12195 = vmatprep.subr.bf16.mxu0 %v14821_v5  ;;  %13569 = vmatprep.subr.bf16.mxu1 %v14822_v54 }
 0x134   :  { %12196 = vmatpush3.bf16.msra.mxu0 %v14823_v39  ;;  %13570 = vmatpush3.bf16.msra.mxu1 %v14822_v54  ;;  %v14842_v54 = vld [vmem:[%s20573_s2 + $0x358] sm:$0xff]  }
 0x135   :  { %12197 = vmatprep.subr.bf16.mxu0 %v14824_v9  ;;  %13571 = vmatprep.subr.bf16.mxu1 %v14825_v56  ;;  %v14843_v39 = vld [vmem:[%s20573_s2 + $0x398] sm:$0xff]  }
 0x136   :  { %v11937_v16 = vpop.f32.mrb[16].mxu0  ;;  %v13439_v58 = vpop.f32.mrb[8].mxu1  ;;  %v14844_v9 = vld [vmem:[%s20573_s2 + $0x318] sm:$0xff]  }
 0x137   :  { %v11938_v60 = vpop.f32.mrb[17].mxu0  ;;  %v1748_v61 = vpop.f32.mrb[9].mxu1 }
 0x138   :  { %v11940_v62 = vpop.f32.mrb[18].mxu0  ;;  %12198 = vmatpush3.bf16.msra.mxu0 %v14826_v22  ;;  %13572 = vmatpush3.bf16.msra.mxu1 %v14825_v56  ;;  %v11939_v63 = vadd.f32 %v11938_v60, %v11937_v16  ;;  %v13440_v0 = vpop.f32.mrb[10].mxu1  ;;  %v14845_v56 = vld [vmem:[%s20573_s2 + $0x360] sm:$0xff]   ;;  %v14849_v16 = vld [vmem:[%s20573_s2 + $0x3a8] sm:$0xff]   ;;  %v14852_v60 = vld [vmem:[%s20573_s2 + $0x3b0] sm:$0xff]  }
 0x139   :  { %v11941_v1 = vpop.f32.mrb[19].mxu0  ;;  %v1751_v2 = vpop.f32.mrb[11].mxu1  ;;  %12199 = vmatprep.subr.bf16.mxu0 %v14827_v13  ;;  %13573 = vmatprep.subr.bf16.mxu1 %v14828_v57  ;;  %v14846_v22 = vld [vmem:[%s20573_s2 + $0x3a0] sm:$0xff]  }
 0x13a   :  { %v1749_v7 = vadd.f32 %v11939_v63, %v1748_v61  ;;  %v11942_v8 = vadd.f32 %v11941_v1, %v11940_v62  ;;  %v14847_v13 = vld [vmem:[%s20573_s2 + $0x320] sm:$0xff]   ;;  %v14853_v63 = vld [vmem:[%s20573_s2 + $0x330] sm:$0xff]  }
 0x13c   :  { %v16800_v11 = vmul.f32 0.05103104, %v1749_v7  ;;  %v1752_v37 = vadd.f32 %v11942_v8, %v1751_v2  ;;  %12200 = vmatpush3.bf16.msra.mxu0 %v14829_v59  ;;  %13574 = vmatpush3.bf16.msra.mxu1 %v14828_v57  ;;  %v14848_v57 = vld [vmem:[%s20573_s2 + $0x368] sm:$0xff]   ;;  %v14851_v59 = vld [vmem:[%s20573_s2 + $0x370] sm:$0xff]  }
 0x13d   :  { %12201 = vmatprep.subr.bf16.mxu0 %v14830_v3  ;;  %13575 = vmatprep.subr.bf16.mxu1 %v14831_v6 }
 0x13e   :  { %v16808_v17 = vmul.f32 0.05103104, %v1752_v37  ;;  %v11943_v18 = vpop.f32.mrb[20].mxu0  ;;  %v14855_v37 = vld [vmem:[%s20573_s2 + $0x3b8] sm:$0xff]  }
 0x13f   :  { %v11944_v21 = vpop.f32.mrb[21].mxu0 }
 0x140   :  { %v5421_v23 = vpack.c.bf16 %v16808_v17, %v16800_v11  ;;  %12202 = vmatpush3.bf16.msra.mxu0 %v14832_v10  ;;  %13576 = vmatpush3.bf16.msra.mxu1 %v14831_v6  ;;  %v11945_v26 = vadd.f32 %v11944_v21, %v11943_v18  ;;  %v11946_v28 = vpop.f32.mrb[22].mxu0  ;;  %v14854_v10 = vld [vmem:[%s20573_s2 + $0x378] sm:$0xff]  }
 0x141   :  { %12225 = vmatprep.subr.bf16.mxu0 %v14833_v12  ;;  %13581 = vmatprep.subr.bf16.mxu1 %v14834_v15  ;;  %v11947_v31 = vpop.f32.mrb[23].mxu0  ;;  %v14856_v18 = vld [vmem:[%s20573_s2 + $0x338] sm:$0xff]  }
 0x142   :  { %v1757_v34 = vadd.f32 %v13439_v58, %v11945_v26  ;;  %v11948_v35 = vadd.f32 %v11947_v31, %v11946_v28  ;;  %v14850_v58 = vld [vmem:[%s20573_s2 + $0x328] sm:$0xff]   ;;  %v14857_v26 = vld [vmem:[%s20573_s2 + $0x400] sm:$0xff]  }
 0x143   :  { %3392 = vmatmul.mubr.bf16.vlgmr.msra.gmra.mrb[72].mxu0 %v16709_v38  ;;  %13578 = vmatmul.mubr.bf16.vlgmr.msra.gmra.mrb[36].mxu1 %v16715_v40  ;;  %v14858_v28 = vld [vmem:[%s20573_s2 + $0x440] sm:$0xff]  }
 0x144   :  { %12226 = vmatpush3.bf16.msra.mxu0 %v14835_v20  ;;  %13582 = vmatpush3.bf16.msra.mxu1 %v14834_v15  ;;  %v16826_v45 = vmul.f32 0.05103104, %v1757_v34  ;;  %v1760_v46 = vadd.f32 %v13440_v0, %v11948_v35 }
 0x145   :  { %12227 = vmatprep.subr.bf16.mxu0 %v14836_v30  ;;  %13583 = vmatprep.subr.bf16.mxu1 %v14837_v33 }
 0x146   :  { %v16834_v29 = vmul.f32 0.05103104, %v1760_v46  ;;  %3399 = vmatprep.mubr.bf16.mxu0 %v16842_v52  ;;  %13597 = vmatprep.mubr.bf16.mxu1 %v16738_v50 }
 0x148   :  { %v5422_v5 = vpack.c.bf16 %v16834_v29, %v16826_v45  ;;  %12228 = vmatpush3.bf16.msra.mxu0 %v14838_v42  ;;  %13584 = vmatpush3.bf16.msra.mxu1 %v14837_v33  ;;  %v14859_v33 = vld [vmem:[%s20573_s2 + $0x3c0] sm:$0xff]  }
 0x149   :  { %12229 = vmatprep.subr.bf16.mxu0 %v14839_v47  ;;  %13585 = vmatprep.subr.bf16.mxu1 %v14840_v49  ;;  %v14860_v47 = vld [vmem:[%s20573_s2 + $0x408] sm:$0xff]  }
 0x14b   :  { %3400 = vmatmul.mubr.bf16.gmra.mrb[76].mxu0 %v16755_v24 }
 0x14c   :  { %12230 = vmatpush3.bf16.msra.mxu0 %v14841_v41  ;;  %13586 = vmatpush3.bf16.msra.mxu1 %v14840_v49  ;;  %v14861_v41 = vld [vmem:[%s20573_s2 + $0x448] sm:$0xff]  }
 0x14d   :  { %12231 = vmatprep.subr.bf16.mxu0 %v14842_v54  ;;  %13587 = vmatprep.subr.bf16.mxu1 %v14843_v39 }
 0x14e   :  { %3633 = vmatprep.mubr.bf16.mxu0 %v16767_v55 }
 0x150   :  { %12232 = vmatpush3.bf16.msra.mxu0 %v14844_v9  ;;  %13588 = vmatpush3.bf16.msra.mxu1 %v14843_v39  ;;  %v14862_v9 = vld [vmem:[%s20573_s2 + $0x3c8] sm:$0xff]  }
 0x151   :  { %12233 = vmatprep.subr.bf16.mxu0 %v14845_v56  ;;  %13589 = vmatprep.subr.bf16.mxu1 %v14846_v22 }
 0x154   :  { %12234 = vmatpush3.bf16.msra.mxu0 %v14847_v13  ;;  %13590 = vmatpush3.bf16.msra.mxu1 %v14846_v22  ;;  %v14863_v13 = vld [vmem:[%s20573_s2 + $0x410] sm:$0xff]  }
 0x155   :  { %12235 = vmatprep.subr.bf16.mxu0 %v14848_v57  ;;  %13591 = vmatprep.subr.bf16.mxu1 %v14849_v16  ;;  %v14864_v57 = vld [vmem:[%s20573_s2 + $0x450] sm:$0xff]  }
 0x156   :  { %v11975_v61 = vpop.f32.mrb[24].mxu0  ;;  %v13459_v62 = vpop.f32.mrb[12].mxu1 }
 0x157   :  { %v11976_v0 = vpop.f32.mrb[25].mxu0  ;;  %v1990_v1 = vpop.f32.mrb[13].mxu1 }
 0x158   :  { %v11978_v2 = vpop.f32.mrb[26].mxu0  ;;  %12236 = vmatpush3.bf16.msra.mxu0 %v14850_v58  ;;  %13592 = vmatpush3.bf16.msra.mxu1 %v14849_v16  ;;  %v11977_v3 = vadd.f32 %v11976_v0, %v11975_v61  ;;  %v13460_v6 = vpop.f32.mrb[14].mxu1  ;;  %v14865_v58 = vld [vmem:[%s20573_s2 + $0x3d0] sm:$0xff]   ;;  %v14867_v61 = vld [vmem:[%s20573_s2 + $0x458] sm:$0xff]   ;;  %v14870_v0 = vld [vmem:[%s20573_s2 + $0x460] sm:$0xff]  }
 0x159   :  { %v11979_v7 = vpop.f32.mrb[27].mxu0  ;;  %v1993_v8 = vpop.f32.mrb[15].mxu1  ;;  %12237 = vmatprep.subr.bf16.mxu0 %v14851_v59  ;;  %13593 = vmatprep.subr.bf16.mxu1 %v14852_v60 }
 0x15a   :  { %v1991_v12 = vadd.f32 %v11977_v3, %v1990_v1  ;;  %v11980_v15 = vadd.f32 %v11979_v7, %v11978_v2  ;;  %v14871_v1 = vld [vmem:[%s20573_s2 + $0x3e0] sm:$0xff]   ;;  %v14872_v2 = vld [vmem:[%s20573_s2 + $0x428] sm:$0xff]   ;;  %v14875_v7 = vld [vmem:[%s20573_s2 + $0x430] sm:$0xff]  }
 0x15b   :  { %v14873_v3 = vld [vmem:[%s20573_s2 + $0x468] sm:$0xff]  }
 0x15c   :  { %v16895_v20 = vmul.f32 0.05103104, %v1991_v12  ;;  %v1994_v21 = vadd.f32 %v11980_v15, %v1993_v8  ;;  %12238 = vmatpush3.bf16.msra.mxu0 %v14853_v63  ;;  %13594 = vmatpush3.bf16.msra.mxu1 %v14852_v60  ;;  %v14866_v60 = vld [vmem:[%s20573_s2 + $0x418] sm:$0xff]   ;;  %v14869_v63 = vld [vmem:[%s20573_s2 + $0x420] sm:$0xff]   ;;  %v14876_v8 = vld [vmem:[%s20573_s2 + $0x470] sm:$0xff]  }
 0x15d   :  { %12239 = vmatprep.subr.bf16.mxu0 %v14854_v10  ;;  %13595 = vmatprep.subr.bf16.mxu1 %v14855_v37  ;;  %v14877_v12 = vld [vmem:[%s20573_s2 + $0x3f0] sm:$0xff]  }
 0x15e   :  { %v16903_v30 = vmul.f32 0.05103104, %v1994_v21  ;;  %v11981_v31 = vpop.f32.mrb[28].mxu0 }
 0x15f   :  { %v11982_v34 = vpop.f32.mrb[29].mxu0 }
 0x160   :  { %v5423_v35 = vpack.c.bf16 %v16903_v30, %v16895_v20  ;;  %12240 = vmatpush3.bf16.msra.mxu0 %v14856_v18  ;;  %13596 = vmatpush3.bf16.msra.mxu1 %v14855_v37  ;;  %v11983_v42 = vadd.f32 %v11982_v34, %v11981_v31  ;;  %v11984_v46 = vpop.f32.mrb[30].mxu0  ;;  %v14878_v34 = vld [vmem:[%s20573_s2 + $0x438] sm:$0xff]  }
 0x161   :  { %12263 = vmatprep.subr.bf16.mxu0 %v14857_v26  ;;  %13601 = vmatprep.subr.bf16.mxu1 %v14858_v28  ;;  %v11985_v49 = vpop.f32.mrb[31].mxu0 }
 0x162   :  { %v1999_v54 = vadd.f32 %v13459_v62, %v11983_v42  ;;  %v11986_v39 = vadd.f32 %v11985_v49, %v11984_v46  ;;  %v14868_v62 = vld [vmem:[%s20573_s2 + $0x3d8] sm:$0xff]  }
 0x163   :  { %3634 = vmatmul.mubr.bf16.vlgmr.msra.gmra.mrb[80].mxu0 %v16709_v38  ;;  %13598 = vmatmul.mubr.bf16.vlgmr.msra.gmra.mrb[40].mxu1 %v16715_v40  ;;  %v14879_v42 = vld [vmem:[%s20573_s2 + $0x478] sm:$0xff]  }
 0x164   :  { %12264 = vmatpush3.bf16.msra.mxu0 %v14859_v33  ;;  %13602 = vmatpush3.bf16.msra.mxu1 %v14858_v28  ;;  %v16921_v56 = vmul.f32 0.05103104, %v1999_v54  ;;  %v2002_v22 = vadd.f32 %v13460_v6, %v11986_v39  ;;  %v14874_v6 = vld [vmem:[%s20573_s2 + $0x3e8] sm:$0xff]   ;;  %v14880_v49 = vld [vmem:[%s20573_s2 + $0x3f8] sm:$0xff]   ;;  %v14881_v39 = vld [vmem:[%s20574_s3 + $0x40] sm:$0xff]  }
 0x165   :  { %12265 = vmatprep.subr.bf16.mxu0 %v14860_v47  ;;  %13603 = vmatprep.subr.bf16.mxu1 %v14861_v41 }
 0x166   :  { %v16929_v16 = vmul.f32 0.05103104, %v2002_v22  ;;  %3641 = vmatprep.mubr.bf16.mxu0 %v16842_v52  ;;  %13617 = vmatprep.mubr.bf16.mxu1 %v16738_v50 }
 0x168   :  { %v5424_v59 = vpack.c.bf16 %v16929_v16, %v16921_v56  ;;  %12266 = vmatpush3.bf16.msra.mxu0 %v14862_v9  ;;  %13604 = vmatpush3.bf16.msra.mxu1 %v14861_v41  ;;  %v14882_v9 = vld [vmem:[%s20574_s3 + $0x80] sm:$0xff]  }
 0x169   :  { %12267 = vmatprep.subr.bf16.mxu0 %v14863_v13  ;;  %13605 = vmatprep.subr.bf16.mxu1 %v14864_v57 }
 0x16b   :  { %3642 = vmatmul.mubr.bf16.gmra.mrb[84].mxu0 %v16755_v24 }
 0x16c   :  { %12268 = vmatpush3.bf16.msra.mxu0 %v14865_v58  ;;  %13606 = vmatpush3.bf16.msra.mxu1 %v14864_v57  ;;  %v14883_v57 = vld [vmem:[%s20574_s3] sm:$0xff]  }
 0x16d   :  { %12269 = vmatprep.subr.bf16.mxu0 %v14866_v60  ;;  %13607 = vmatprep.subr.bf16.mxu1 %v14867_v61 }
 0x16e   :  { %3875 = vmatprep.mubr.bf16.mxu0 %v16767_v55 }
 0x170   :  { %12270 = vmatpush3.bf16.msra.mxu0 %v14868_v62  ;;  %13608 = vmatpush3.bf16.msra.mxu1 %v14867_v61 }
 0x171   :  { %12271 = vmatprep.subr.bf16.mxu0 %v14869_v63  ;;  %13609 = vmatprep.subr.bf16.mxu1 %v14870_v0  ;;  %v14884_v63 = vld [vmem:[%s20574_s3 + $0x48] sm:$0xff]  }
 0x174   :  { %12272 = vmatpush3.bf16.msra.mxu0 %v14871_v1  ;;  %13610 = vmatpush3.bf16.msra.mxu1 %v14870_v0  ;;  %v14885_v1 = vld [vmem:[%s20574_s3 + $0x88] sm:$0xff]  }
 0x175   :  { %12273 = vmatprep.subr.bf16.mxu0 %v14872_v2  ;;  %13611 = vmatprep.subr.bf16.mxu1 %v14873_v3 }
 0x176   :  { %v12013_v10 = vpop.f32.mrb[32].mxu0  ;;  %v13479_v37 = vpop.f32.mrb[16].mxu1 }
 0x177   :  { %v12014_v15 = vpop.f32.mrb[33].mxu0  ;;  %v2232_v18 = vpop.f32.mrb[17].mxu1 }
 0x178   :  { %v12016_v21 = vpop.f32.mrb[34].mxu0  ;;  %12274 = vmatpush3.bf16.msra.mxu0 %v14874_v6  ;;  %13612 = vmatpush3.bf16.msra.mxu1 %v14873_v3  ;;  %v12015_v26 = vadd.f32 %v12014_v15, %v12013_v10  ;;  %v13480_v28 = vpop.f32.mrb[18].mxu1  ;;  %v14886_v6 = vld [vmem:[%s20574_s3 + $0x8] sm:$0xff]   ;;  %v14887_v10 = vld [vmem:[%s20574_s3 + $0x50] sm:$0xff]   ;;  %v14890_v15 = vld [vmem:[%s20574_s3 + $0x58] sm:$0xff]  }
 0x179   :  { %v12017_v31 = vpop.f32.mrb[35].mxu0  ;;  %v2235_v33 = vpop.f32.mrb[19].mxu1  ;;  %12275 = vmatprep.subr.bf16.mxu0 %v14875_v7  ;;  %13613 = vmatprep.subr.bf16.mxu1 %v14876_v8 }
 0x17a   :  { %v2233_v46 = vadd.f32 %v12015_v26, %v2232_v18  ;;  %v12018_v47 = vadd.f32 %v12017_v31, %v12016_v21  ;;  %v14891_v18 = vld [vmem:[%s20574_s3 + $0x98] sm:$0xff]   ;;  %v14894_v26 = vld [vmem:[%s20574_s3 + $0xa0] sm:$0xff]   ;;  %v14897_v31 = vld [vmem:[%s20574_s3 + $0xa8] sm:$0xff]  }
 0x17b   :  { %v14892_v21 = vld [vmem:[%s20574_s3 + $0x18] sm:$0xff]  }
 0x17c   :  { %v16985_v41 = vmul.f32 0.05103104, %v2233_v46  ;;  %v2236_v54 = vadd.f32 %v12018_v47, %v2235_v33  ;;  %12276 = vmatpush3.bf16.msra.mxu0 %v14877_v12  ;;  %13614 = vmatpush3.bf16.msra.mxu1 %v14876_v8  ;;  %v14899_v33 = vld [vmem:[%s20574_s3 + $0x70] sm:$0xff]  }
 0x17d   :  { %12277 = vmatprep.subr.bf16.mxu0 %v14878_v34  ;;  %13615 = vmatprep.subr.bf16.mxu1 %v14879_v42  ;;  %v14900_v34 = vld [vmem:[%s20574_s3 + $0xb0] sm:$0xff]  }
 0x17e   :  { %v16993_v22 = vmul.f32 0.05103104, %v2236_v54  ;;  %v12019_v13 = vpop.f32.mrb[36].mxu0  ;;  %v14901_v47 = vld [vmem:[%s20574_s3 + $0x30] sm:$0xff]  }
 0x17f   :  { %v12020_v58 = vpop.f32.mrb[37].mxu0 }
 0x180   :  { %v5425_v60 = vpack.c.bf16 %v16993_v22, %v16985_v41  ;;  %12278 = vmatpush3.bf16.msra.mxu0 %v14880_v49  ;;  %13616 = vmatpush3.bf16.msra.mxu1 %v14879_v42  ;;  %v12021_v61 = vadd.f32 %v12020_v58, %v12019_v13  ;;  %v12022_v62 = vpop.f32.mrb[38].mxu0 }
 0x181   :  { %12301 = vmatprep.subr.bf16.mxu0 %v14881_v39  ;;  %13621 = vmatprep.subr.bf16.mxu1 %v14882_v9  ;;  %v12023_v0 = vpop.f32.mrb[39].mxu0 }
 0x182   :  { %v2241_v2 = vadd.f32 %v13479_v37, %v12021_v61  ;;  %v12024_v3 = vadd.f32 %v12023_v0, %v12022_v62  ;;  %v14888_v37 = vld [vmem:[%s20574_s3 + $0x90] sm:$0xff]   ;;  %v14902_v61 = vld [vmem:[%s20574_s3 + $0x78] sm:$0xff]  }
 0x183   :  { %3876 = vmatmul.mubr.bf16.vlgmr.msra.gmra.mrb[88].mxu0 %v16709_v38  ;;  %13618 = vmatmul.mubr.bf16.vlgmr.msra.gmra.mrb[44].mxu1 %v16715_v40  ;;  %v14889_v40 = vld [vmem:[%s20574_s3 + $0x10] sm:$0xff]   ;;  %v14903_v62 = vld [vmem:[%s20574_s3 + $0xb8] sm:$0xff]  }
 0x184   :  { %12302 = vmatpush3.bf16.msra.mxu0 %v14883_v57  ;;  %13622 = vmatpush3.bf16.msra.mxu1 %v14882_v9  ;;  %v17011_v7 = vmul.f32 0.05103104, %v2241_v2  ;;  %v2244_v8 = vadd.f32 %v13480_v28, %v12024_v3  ;;  %v14895_v28 = vld [vmem:[%s20574_s3 + $0x20] sm:$0xff]  }
 0x185   :  { %12303 = vmatprep.subr.bf16.mxu0 %v14884_v63  ;;  %13623 = vmatprep.subr.bf16.mxu1 %v14885_v1 }
 0x186   :  { %v17019_v38 = vmul.f32 0.05103104, %v2244_v8  ;;  %3883 = vmatprep.mubr.bf16.mxu0 %v16842_v52  ;;  %13637 = vmatprep.mubr.bf16.mxu1 %v16738_v50  ;;  %v14893_v50 = vld [vmem:[%s20574_s3 + $0x60] sm:$0xff]  }
 0x187   :  { %v14906_v8 = vld [vmem:[%s20574_s3 + $0x140] sm:$0xff]  }
 0x188   :  { %12304 = vmatpush3.bf16.msra.mxu0 %v14886_v6  ;;  %13624 = vmatpush3.bf16.msra.mxu1 %v14885_v1  ;;  %v14904_v1 = vld [vmem:[%s20574_s3 + $0x38] sm:$0xff]   ;;  %v14905_v6 = vld [vmem:[%s20574_s3 + $0x100] sm:$0xff]  }
 0x189   :  { %12305 = vmatprep.subr.bf16.mxu0 %v14887_v10  ;;  %13625 = vmatprep.subr.bf16.mxu1 %v14888_v37 }
 0x18b   :  { %3884 = vmatmul.mubr.bf16.gmra.mrb[92].mxu0 %v16755_v24  ;;  %v14896_v24 = vld [vmem:[%s20574_s3 + $0x68] sm:$0xff]  }
 0x18c   :  { %12306 = vmatpush3.bf16.msra.mxu0 %v14889_v40  ;;  %13626 = vmatpush3.bf16.msra.mxu1 %v14888_v37  ;;  %v14907_v40 = vld [vmem:[%s20574_s3 + $0xc0] sm:$0xff]  }
 0x18d   :  { %12307 = vmatprep.subr.bf16.mxu0 %v14890_v15  ;;  %13627 = vmatprep.subr.bf16.mxu1 %v14891_v18 }
 0x18e   :  { %4117 = vmatprep.mubr.bf16.mxu0 %v16767_v55  ;;  %v14898_v55 = vld [vmem:[%s20574_s3 + $0x28] sm:$0xff]  }
 0x190   :  { %12308 = vmatpush3.bf16.msra.mxu0 %v14892_v21  ;;  %13628 = vmatpush3.bf16.msra.mxu1 %v14891_v18 }
 0x191   :  { %12309 = vmatprep.subr.bf16.mxu0 %v14893_v50  ;;  %13629 = vmatprep.subr.bf16.mxu1 %v14894_v26 }
 0x194   :  { %12310 = vmatpush3.bf16.msra.mxu0 %v14895_v28  ;;  %13630 = vmatpush3.bf16.msra.mxu1 %v14894_v26  ;;  %v14908_v26 = vld [vmem:[%s20574_s3 + $0x108] sm:$0xff]  }
 0x195   :  { %12311 = vmatprep.subr.bf16.mxu0 %v14896_v24  ;;  %13631 = vmatprep.subr.bf16.mxu1 %v14897_v31  ;;  %v14909_v24 = vld [vmem:[%s20574_s3 + $0x148] sm:$0xff]  }
 0x196   :  { %v12051_v42 = vpop.f32.mrb[40].mxu0  ;;  %v13499_v46 = vpop.f32.mrb[20].mxu1 }
 0x197   :  { %v12052_v49 = vpop.f32.mrb[41].mxu0  ;;  %v2474_v54 = vpop.f32.mrb[21].mxu1 }
 0x198   :  { %v12054_v39 = vpop.f32.mrb[42].mxu0  ;;  %12312 = vmatpush3.bf16.msra.mxu0 %v14898_v55  ;;  %13632 = vmatpush3.bf16.msra.mxu1 %v14897_v31  ;;  %v12053_v9 = vadd.f32 %v12052_v49, %v12051_v42  ;;  %v13500_v13 = vpop.f32.mrb[22].mxu1  ;;  %v14910_v42 = vld [vmem:[%s20574_s3 + $0xc8] sm:$0xff]   ;;  %v14911_v49 = vld [vmem:[%s20574_s3 + $0x110] sm:$0xff]  }
 0x199   :  { %v12055_v57 = vpop.f32.mrb[43].mxu0  ;;  %v2477_v58 = vpop.f32.mrb[23].mxu1  ;;  %12313 = vmatprep.subr.bf16.mxu0 %v14899_v33  ;;  %13633 = vmatprep.subr.bf16.mxu1 %v14900_v34  ;;  %v17099_v33 = vld [vmem:[%s20571_s0] ss:$12 sps:$4 sm:$0xff]  }
 0x19a   :  { %v2475_v63 = vadd.f32 %v12053_v9, %v2474_v54  ;;  %v12056_v0 = vadd.f32 %v12055_v57, %v12054_v39  ;;  %v14912_v54 = vld [vmem:[%s20574_s3 + $0x150] sm:$0xff]  }
 0x19b   :  { %v14913_v9 = vld [vmem:[%s20574_s3 + $0xd0] sm:$0xff]  }
 0x19c   :  { %v17075_v2 = vmul.f32 0.05103104, %v2475_v63  ;;  %v2478_v3 = vadd.f32 %v12056_v0, %v2477_v58  ;;  %12314 = vmatpush3.bf16.msra.mxu0 %v14901_v47  ;;  %13634 = vmatpush3.bf16.msra.mxu1 %v14900_v34  ;;  %v17105_v34 = vld [vmem:[%s20571_s0 + $0x20] ss:$12 sps:$4 sm:$0xff]   ;;  %v14914_v58 = vld [vmem:[%s20574_s3 + $0x118] sm:$0xff]  }
 0x19d   :  { %12315 = vmatprep.subr.bf16.mxu0 %v14902_v61  ;;  %13635 = vmatprep.subr.bf16.mxu1 %v14903_v62  ;;  %v17142_v61 = vld [vmem:[%s20571_s0 + $0x18] ss:$12 sps:$4 sm:$0xff]  }
 0x19e   :  { %v17083_v10 = vmul.f32 0.05103104, %v2478_v3  ;;  %v12057_v37 = vpop.f32.mrb[44].mxu0  ;;  %v14917_v63 = vld [vmem:[%s20574_s3 + $0x120] sm:$0xff]  }
 0x19f   :  { %v12058_v15 = vpop.f32.mrb[45].mxu0  ;;  %v14918_v0 = vld [vmem:[%s20574_s3 + $0x160] sm:$0xff]  }
 0x1a0   :  { %v5427_v18 = vpack.c.bf16 %v17083_v10, %v17075_v2  ;;  %12316 = vmatpush3.bf16.msra.mxu0 %v14904_v1  ;;  %13636 = vmatpush3.bf16.msra.mxu1 %v14903_v62  ;;  %v12059_v21 = vadd.f32 %v12058_v15, %v12057_v37  ;;  %v12060_v50 = vpop.f32.mrb[46].mxu0  ;;  %v14916_v62 = vld [vmem:[%s20574_s3 + $0xd8] sm:$0xff]   ;;  %v17157_v1 = vld [vmem:[%s20571_s0 + $0x4] ss:$12 sps:$4 sm:$0xff]   ;;  %v14922_v37 = vld [vmem:[%s20574_s3 + $0xe8] sm:$0xff]  }
 0x1a1   :  { %12339 = vmatprep.subr.bf16.mxu0 %v14905_v6  ;;  %13641 = vmatprep.subr.bf16.mxu1 %v14906_v8  ;;  %v12061_v28 = vpop.f32.mrb[47].mxu0  ;;  %v14919_v3 = vld [vmem:[%s20574_s3 + $0xe0] sm:$0xff]   ;;  %v14920_v6 = vld [vmem:[%s20574_s3 + $0x128] sm:$0xff]   ;;  %v14924_v15 = vld [vmem:[%s20574_s3 + $0x170] sm:$0xff]  }
 0x1a2   :  { %v2483_v31 = vadd.f32 %v13499_v46, %v12059_v21  ;;  %v12062_v55 = vadd.f32 %v12061_v28, %v12060_v50 }
 0x1a3   :  { %4118 = vmatmul.mubr.bf16.vlgmr.msra.gmra.mrb[96].mxu0 %v17099_v33  ;;  %13638 = vmatmul.mubr.bf16.vlgmr.msra.gmra.mrb[48].mxu1 %v17105_v34 }
 0x1a4   :  { %12340 = vmatpush3.bf16.msra.mxu0 %v14907_v40  ;;  %13642 = vmatpush3.bf16.msra.mxu1 %v14906_v8  ;;  %v17111_v46 = vmul.f32 0.05103104, %v2483_v31  ;;  %v2486_v47 = vadd.f32 %v13500_v13, %v12062_v55  ;;  %v17128_v13 = vld [vmem:[%s20571_s0 + $0x8] ss:$12 sps:$4 sm:$0xff]  }
 0x1a5   :  { %12341 = vmatprep.subr.bf16.mxu0 %v14908_v26  ;;  %13643 = vmatprep.subr.bf16.mxu1 %v14909_v24  ;;  %v14921_v8 = vld [vmem:[%s20574_s3 + $0x168] sm:$0xff]   ;;  %v14923_v40 = vld [vmem:[%s20574_s3 + $0x130] sm:$0xff]  }
 0x1a6   :  { %v17119_v39 = vmul.f32 0.05103104, %v2486_v47  ;;  %4125 = vmatprep.mubr.bf16.mxu0 %v16842_v52  ;;  %13657 = vmatprep.mubr.bf16.mxu1 %v17128_v13  ;;  %v14915_v52 = vld [vmem:[%s20574_s3 + $0x158] sm:$0xff]   ;;  %v14925_v26 = vld [vmem:[%s20574_s3 + $0xf0] sm:$0xff]  }
 0x1a8   :  { %12342 = vmatpush3.bf16.msra.mxu0 %v14910_v42  ;;  %13644 = vmatpush3.bf16.msra.mxu1 %v14909_v24 }
 0x1a9   :  { %12343 = vmatprep.subr.bf16.mxu0 %v14911_v49  ;;  %13645 = vmatprep.subr.bf16.mxu1 %v14912_v54 }
 0x1ab   :  { %4126 = vmatmul.mubr.bf16.gmra.mrb[100].mxu0 %v17142_v61 }
 0x1ac   :  { %12344 = vmatpush3.bf16.msra.mxu0 %v14913_v9  ;;  %13646 = vmatpush3.bf16.msra.mxu1 %v14912_v54  ;;  %v14926_v54 = vld [vmem:[%s20574_s3 + $0x138] sm:$0xff]  }
 0x1ad   :  { %12345 = vmatprep.subr.bf16.mxu0 %v14914_v58  ;;  %13647 = vmatprep.subr.bf16.mxu1 %v14915_v52  ;;  %v14927_v9 = vld [vmem:[%s20574_s3 + $0x178] sm:$0xff]  }
 0x1ae   :  { %4359 = vmatprep.mubr.bf16.mxu0 %v17157_v1 }
 0x1b0   :  { %12346 = vmatpush3.bf16.msra.mxu0 %v14916_v62  ;;  %13648 = vmatpush3.bf16.msra.mxu1 %v14915_v52  ;;  %v14928_v62 = vld [vmem:[%s20574_s3 + $0xf8] sm:$0xff]  }
 0x1b1   :  { %12347 = vmatprep.subr.bf16.mxu0 %v14917_v63  ;;  %13649 = vmatprep.subr.bf16.mxu1 %v14918_v0 }
 0x1b4   :  { %12348 = vmatpush3.bf16.msra.mxu0 %v14919_v3  ;;  %13650 = vmatpush3.bf16.msra.mxu1 %v14918_v0  ;;  %v14929_v0 = vld [vmem:[%s20574_s3 + $0x1c0] sm:$0xff]  }
 0x1b5   :  { %12349 = vmatprep.subr.bf16.mxu0 %v14920_v6  ;;  %13651 = vmatprep.subr.bf16.mxu1 %v14921_v8  ;;  %v14930_v3 = vld [vmem:[%s20574_s3 + $0x200] sm:$0xff]  }
 0x1b6   :  { %v12089_v21 = vpop.f32.mrb[48].mxu0  ;;  %v13519_v50 = vpop.f32.mrb[24].mxu1 }
 0x1b7   :  { %v12090_v28 = vpop.f32.mrb[49].mxu0  ;;  %v2716_v24 = vpop.f32.mrb[25].mxu1 }
 0x1b8   :  { %v12092_v31 = vpop.f32.mrb[50].mxu0  ;;  %12350 = vmatpush3.bf16.msra.mxu0 %v14922_v37  ;;  %13652 = vmatpush3.bf16.msra.mxu1 %v14921_v8  ;;  %v12091_v55 = vadd.f32 %v12090_v28, %v12089_v21  ;;  %v13520_v42 = vpop.f32.mrb[26].mxu1  ;;  %v14931_v37 = vld [vmem:[%s20574_s3 + $0x180] sm:$0xff]   ;;  %v14933_v28 = vld [vmem:[%s20574_s3 + $0x208] sm:$0xff]  }
 0x1b9   :  { %v12093_v47 = vpop.f32.mrb[51].mxu0  ;;  %v2719_v49 = vpop.f32.mrb[27].mxu1  ;;  %12351 = vmatprep.subr.bf16.mxu0 %v14923_v40  ;;  %13653 = vmatprep.subr.bf16.mxu1 %v14924_v15 }
 0x1ba   :  { %v2717_v58 = vadd.f32 %v12091_v55, %v2716_v24  ;;  %v12094_v52 = vadd.f32 %v12093_v47, %v12092_v31  ;;  %v14934_v47 = vld [vmem:[%s20574_s3 + $0x188] sm:$0xff]  }
 0x1bc   :  { %v2720_v63 = vadd.f32 %v12094_v52, %v2719_v49  ;;  %12352 = vmatpush3.bf16.msra.mxu0 %v14925_v26  ;;  %13654 = vmatpush3.bf16.msra.mxu1 %v14924_v15  ;;  %v14932_v15 = vld [vmem:[%s20574_s3 + $0x1c8] sm:$0xff]   ;;  %v14935_v49 = vld [vmem:[%s20574_s3 + $0x1d0] sm:$0xff]  }
 0x1bd   :  { %12353 = vmatprep.subr.bf16.mxu0 %v14926_v54  ;;  %13655 = vmatprep.subr.bf16.mxu1 %v14927_v9  ;;  %v14936_v54 = vld [vmem:[%s20574_s3 + $0x210] sm:$0xff]  }
 0x1be   :  { %v17196_v6 = vpack.c.bf16 %v2720_v63, %v2717_v58  ;;  %v12095_v8 = vpop.f32.mrb[52].mxu0  ;;  %v17224_v58 = vld [vmem:[%s20571_s0 + $0x1c] ss:$12 sps:$4 sm:$0xff]  }
 0x1bf   :  { %v12096_v40 = vpop.f32.mrb[53].mxu0  ;;  %v14940_v63 = vld [vmem:[%s20574_s3 + $0x198] sm:$0xff]  }
 0x1c0   :  { %12354 = vmatpush3.bf16.msra.mxu0 %v14928_v62  ;;  %13656 = vmatpush3.bf16.msra.mxu1 %v14927_v9  ;;  %v12097_v21 = vadd.f32 %v12096_v40, %v12095_v8  ;;  %v12098_v26 = vpop.f32.mrb[54].mxu0  ;;  %v14937_v9 = vld [vmem:[%s20574_s3 + $0x190] sm:$0xff]   ;;  %v14939_v62 = vld [vmem:[%s20574_s3 + $0x218] sm:$0xff]   ;;  %v14943_v8 = vld [vmem:[%s20574_s3 + $0x1a0] sm:$0xff]  }
 0x1c1   :  { %12377 = vmatprep.subr.bf16.mxu0 %v14929_v0  ;;  %13661 = vmatprep.subr.bf16.mxu1 %v14930_v3  ;;  %v12099_v24 = vpop.f32.mrb[55].mxu0  ;;  %v14941_v0 = vld [vmem:[%s20574_s3 + $0x1e0] sm:$0xff]   ;;  %v14945_v40 = vld [vmem:[%s20574_s3 + $0x228] sm:$0xff]  }
 0x1c2   :  { %v2725_v31 = vadd.f32 %v13519_v50, %v12097_v21  ;;  %v12100_v55 = vadd.f32 %v12099_v24, %v12098_v26  ;;  %v14947_v21 = vld [vmem:[%s20574_s3 + $0x1f0] sm:$0xff]  }
 0x1c3   :  { %4360 = vmatmul.mubr.bf16.vlgmr.msra.gmra.mrb[104].mxu0 %v17099_v33  ;;  %13658 = vmatmul.mubr.bf16.vlgmr.msra.gmra.mrb[52].mxu1 %v17105_v34  ;;  %v14948_v26 = vld [vmem:[%s20574_s3 + $0x230] sm:$0xff]  }
 0x1c4   :  { %12378 = vmatpush3.bf16.msra.mxu0 %v14931_v37  ;;  %13662 = vmatpush3.bf16.msra.mxu1 %v14930_v3  ;;  %v2728_v50 = vadd.f32 %v13520_v42, %v12100_v55  ;;  %v14938_v42 = vld [vmem:[%s20574_s3 + $0x1d8] sm:$0xff]   ;;  %v14942_v3 = vld [vmem:[%s20574_s3 + $0x220] sm:$0xff]   ;;  %v14944_v37 = vld [vmem:[%s20574_s3 + $0x1e8] sm:$0xff]  }
 0x1c5   :  { %12379 = vmatprep.subr.bf16.mxu0 %v14932_v15  ;;  %13663 = vmatprep.subr.bf16.mxu1 %v14933_v28  ;;  %v14946_v15 = vld [vmem:[%s20574_s3 + $0x1a8] sm:$0xff]  }
 0x1c6   :  { %4367 = vmatprep.mubr.bf16.mxu0 %v17224_v58  ;;  %13677 = vmatprep.mubr.bf16.mxu1 %v17128_v13  ;;  %v17228_v52 = vpack.c.bf16 %v2728_v50, %v2725_v31  ;;  %v14949_v31 = vld [vmem:[%s20574_s3 + $0x1b0] sm:$0xff]  }
 0x1c8   :  { %12380 = vmatpush3.bf16.msra.mxu0 %v14934_v47  ;;  %13664 = vmatpush3.bf16.msra.mxu1 %v14933_v28 }
 0x1c9   :  { %12381 = vmatprep.subr.bf16.mxu0 %v14935_v49  ;;  %13665 = vmatprep.subr.bf16.mxu1 %v14936_v54  ;;  %v14950_v49 = vld [vmem:[%s20574_s3 + $0x1f8] sm:$0xff]  }
 0x1cb   :  { %4368 = vmatmul.mubr.bf16.gmra.mrb[108].mxu0 %v17142_v61 }
 0x1cc   :  { %12382 = vmatpush3.bf16.msra.mxu0 %v14937_v9  ;;  %13666 = vmatpush3.bf16.msra.mxu1 %v14936_v54  ;;  %v14951_v54 = vld [vmem:[%s20574_s3 + $0x238] sm:$0xff]  }
 0x1cd   :  { %12383 = vmatprep.subr.bf16.mxu0 %v14938_v42  ;;  %13667 = vmatprep.subr.bf16.mxu1 %v14939_v62 }
 0x1ce   :  { %4601 = vmatprep.mubr.bf16.mxu0 %v17157_v1 }
 0x1d0   :  { %12384 = vmatpush3.bf16.msra.mxu0 %v14940_v63  ;;  %13668 = vmatpush3.bf16.msra.mxu1 %v14939_v62 }
 0x1d1   :  { %12385 = vmatprep.subr.bf16.mxu0 %v14941_v0  ;;  %13669 = vmatprep.subr.bf16.mxu1 %v14942_v3 }
 0x1d4   :  { %12386 = vmatpush3.bf16.msra.mxu0 %v14943_v8  ;;  %13670 = vmatpush3.bf16.msra.mxu1 %v14942_v3  ;;  %v14952_v8 = vld [vmem:[%s20574_s3 + $0x1b8] sm:$0xff]  }
 0x1d5   :  { %12387 = vmatprep.subr.bf16.mxu0 %v14944_v37  ;;  %13671 = vmatprep.subr.bf16.mxu1 %v14945_v40  ;;  %v14953_v37 = vld [vmem:[%s20574_s3 + $0x280] sm:$0xff]  }
 0x1d6   :  { %v12127_v28 = vpop.f32.mrb[56].mxu0  ;;  %v13539_v24 = vpop.f32.mrb[28].mxu1 }
 0x1d7   :  { %v12128_v55 = vpop.f32.mrb[57].mxu0  ;;  %v2958_v47 = vpop.f32.mrb[29].mxu1 }
 0x1d8   :  { %v12130_v50 = vpop.f32.mrb[58].mxu0  ;;  %12388 = vmatpush3.bf16.msra.mxu0 %v14946_v15  ;;  %13672 = vmatpush3.bf16.msra.mxu1 %v14945_v40  ;;  %v12129_v9 = vadd.f32 %v12128_v55, %v12127_v28  ;;  %v13540_v42 = vpop.f32.mrb[30].mxu1  ;;  %v14954_v40 = vld [vmem:[%s20574_s3 + $0x2c0] sm:$0xff]  }
 0x1d9   :  { %v12131_v62 = vpop.f32.mrb[59].mxu0  ;;  %v2961_v63 = vpop.f32.mrb[31].mxu1  ;;  %12389 = vmatprep.subr.bf16.mxu0 %v14947_v21  ;;  %13673 = vmatprep.subr.bf16.mxu1 %v14948_v26 }
 0x1da   :  { %v2959_v0 = vadd.f32 %v12129_v9, %v2958_v47  ;;  %v12132_v3 = vadd.f32 %v12131_v62, %v12130_v50 }
 0x1dc   :  { %v2962_v15 = vadd.f32 %v12132_v3, %v2961_v63  ;;  %12390 = vmatpush3.bf16.msra.mxu0 %v14949_v31  ;;  %13674 = vmatpush3.bf16.msra.mxu1 %v14948_v26 }
 0x1dd   :  { %12391 = vmatprep.subr.bf16.mxu0 %v14950_v49  ;;  %13675 = vmatprep.subr.bf16.mxu1 %v14951_v54 }
 0x1de   :  { %v17283_v21 = vpack.c.bf16 %v2962_v15, %v2959_v0  ;;  %v12133_v28 = vpop.f32.mrb[60].mxu0 }
 0x1df   :  { %11 = vsyncpa [#allocation3], 0  ;;  %v12134_v55 = vpop.f32.mrb[61].mxu0  ;;  %v14955_v47 = vld [vmem:[%s20574_s3 + $0x240] sm:$0xff]   ;;  %v14956_v26 = vld [vmem:[%s20574_s3 + $0x288] sm:$0xff]   ;;  %vm5453_vm0 = vcmask 523264   ;;  %v20581_v10 = vpack.c.bf16 %v17119_v39, %v17111_v46 }
 0x1e0   :  { %12392 = vmatpush3.bf16.msra.mxu0 %v14952_v8  ;;  %13676 = vmatpush3.bf16.msra.mxu1 %v14951_v54  ;;  %v12135_v50 = vadd.f32 %v12134_v55, %v12133_v28  ;;  %v12136_v9 = vpop.f32.mrb[62].mxu0  ;;  %v14957_v31 = vld [vmem:[%s20574_s3 + $0x2c8] sm:$0xff]   ;;  %v14959_v3 = vld [vmem:[%s20574_s3 + $0x290] sm:$0xff]   ;;  %v14964_v15 = vld [vmem:[%s20574_s3 + $0x258] sm:$0xff]   ;;  %v5464_v19 = vsel %vm5453_vm0, %v17228_v52, 0  ;;  %vm5852_vm3 = vcmask 261120  }
 0x1e1   :  { %12415 = vmatprep.subr.bf16.mxu0 %v14953_v37  ;;  %13681 = vmatprep.subr.bf16.mxu1 %v14954_v40  ;;  %v12137_v62 = vpop.f32.mrb[63].mxu0  ;;  %v14958_v0 = vld [vmem:[%s20574_s3 + $0x248] sm:$0xff]   ;;  %v14962_v37 = vld [vmem:[%s20574_s3 + $0x298] sm:$0xff]   ;;  %v14965_v28 = vld [vmem:[%s20574_s3 + $0x2a0] sm:$0xff]  }
 0x1e2   :  { %v2967_v49 = vadd.f32 %v13539_v24, %v12135_v50  ;;  %v12138_v63 = vadd.f32 %v12137_v62, %v12136_v9  ;;  %v14960_v24 = vld [vmem:[%s20574_s3 + $0x2d0] sm:$0xff]   ;;  %v14966_v55 = vld [vmem:[%s20574_s3 + $0x2e0] sm:$0xff]   ;;  %v14968_v50 = vld [vmem:[%s20574_s3 + $0x2a8] sm:$0xff]  }
 0x1e3   :  { %4602 = vmatmul.mubr.bf16.vlgmr.msra.gmra.mrb[112].mxu0 %v17099_v33  ;;  %13678 = vmatmul.mubr.bf16.vlgmr.msra.gmra.mrb[56].mxu1 %v17105_v34  ;;  %v14969_v9 = vld [vmem:[%s20574_s3 + $0x2e8] sm:$0xff]   ;;  %v15002_v57 = vld [vmem:[%s20574_s3 + $0x440] sm:$0xff]  }
 0x1e4   :  { %12416 = vmatpush3.bf16.msra.mxu0 %v14955_v47  ;;  %13682 = vmatpush3.bf16.msra.mxu1 %v14954_v40  ;;  %v2970_v54 = vadd.f32 %v13540_v42, %v12138_v63  ;;  %v14961_v42 = vld [vmem:[%s20574_s3 + $0x250] sm:$0xff]   ;;  %v14963_v40 = vld [vmem:[%s20574_s3 + $0x2d8] sm:$0xff]   ;;  %v14967_v47 = vld [vmem:[%s20574_s3 + $0x260] sm:$0xff]  }
 0x1e5   :  { %12417 = vmatprep.subr.bf16.mxu0 %v14956_v26  ;;  %13683 = vmatprep.subr.bf16.mxu1 %v14957_v31  ;;  %v14970_v62 = vld [vmem:[%s20574_s3 + $0x268] sm:$0xff]   ;;  %v14971_v26 = vld [vmem:[%s20574_s3 + $0x2b0] sm:$0xff]   ;;  %v15341_v14 = vld [vmem:[%s20571_s0 + $0x18] ss:$12 sps:$4 sm:$0xff]  }
 0x1e6   :  { %4609 = vmatprep.mubr.bf16.mxu0 %v17224_v58  ;;  %13697 = vmatprep.mubr.bf16.mxu1 %v17128_v13  ;;  %v17307_v8 = vpack.c.bf16 %v2970_v54, %v2967_v49 }
 0x1e8   :  { %12418 = vmatpush3.bf16.msra.mxu0 %v14958_v0  ;;  %13684 = vmatpush3.bf16.msra.mxu1 %v14957_v31  ;;  %v14972_v31 = vld [vmem:[%s20574_s3 + $0x2f0] sm:$0xff]  }
 0x1e9   :  { %12419 = vmatprep.subr.bf16.mxu0 %v14959_v3  ;;  %13685 = vmatprep.subr.bf16.mxu1 %v14960_v24 }
 0x1eb   :  { %4610 = vmatmul.mubr.bf16.gmra.mrb[116].mxu0 %v17142_v61 }
 0x1ec   :  { %12420 = vmatpush3.bf16.msra.mxu0 %v14961_v42  ;;  %13686 = vmatpush3.bf16.msra.mxu1 %v14960_v24 }
 0x1ed   :  { %12421 = vmatprep.subr.bf16.mxu0 %v14962_v37  ;;  %13687 = vmatprep.subr.bf16.mxu1 %v14963_v40  ;;  %v14973_v37 = vld [vmem:[%s20574_s3 + $0x270] sm:$0xff]  }
 0x1ee   :  { %4843 = vmatprep.mubr.bf16.mxu0 %v17157_v1 }
 0x1f0   :  { %12422 = vmatpush3.bf16.msra.mxu0 %v14964_v15  ;;  %13688 = vmatpush3.bf16.msra.mxu1 %v14963_v40 }
 0x1f1   :  { %12423 = vmatprep.subr.bf16.mxu0 %v14965_v28  ;;  %13689 = vmatprep.subr.bf16.mxu1 %v14966_v55  ;;  %v14974_v28 = vld [vmem:[%s20574_s3 + $0x2b8] sm:$0xff]  }
 0x1f4   :  { %12424 = vmatpush3.bf16.msra.mxu0 %v14967_v47  ;;  %13690 = vmatpush3.bf16.msra.mxu1 %v14966_v55  ;;  %v14975_v55 = vld [vmem:[%s20574_s3 + $0x2f8] sm:$0xff]  }
 0x1f5   :  { %12425 = vmatprep.subr.bf16.mxu0 %v14968_v50  ;;  %13691 = vmatprep.subr.bf16.mxu1 %v14969_v9 }
 0x1f6   :  { %v12165_v49 = vpop.f32.mrb[64].mxu0  ;;  %v13559_v63 = vpop.f32.mrb[32].mxu1 }
 0x1f7   :  { %v12166_v54 = vpop.f32.mrb[65].mxu0  ;;  %v3200_v0 = vpop.f32.mrb[33].mxu1 }
 0x1f8   :  { %v12168_v3 = vpop.f32.mrb[66].mxu0  ;;  %12426 = vmatpush3.bf16.msra.mxu0 %v14970_v62  ;;  %13692 = vmatpush3.bf16.msra.mxu1 %v14969_v9  ;;  %v12167_v24 = vadd.f32 %v12166_v54, %v12165_v49  ;;  %v13560_v42 = vpop.f32.mrb[34].mxu1  ;;  %v14976_v62 = vld [vmem:[%s20574_s3 + $0x278] sm:$0xff]   ;;  %v14978_v49 = vld [vmem:[%s20574_s3 + $0x380] sm:$0xff]  }
 0x1f9   :  { %v12169_v40 = vpop.f32.mrb[67].mxu0  ;;  %v3203_v15 = vpop.f32.mrb[35].mxu1  ;;  %12427 = vmatprep.subr.bf16.mxu0 %v14971_v26  ;;  %13693 = vmatprep.subr.bf16.mxu1 %v14972_v31  ;;  %v14977_v26 = vld [vmem:[%s20574_s3 + $0x340] sm:$0xff]  }
 0x1fa   :  { %v3201_v47 = vadd.f32 %v12167_v24, %v3200_v0  ;;  %v12170_v50 = vadd.f32 %v12169_v40, %v12168_v3 }
 0x1fc   :  { %v3204_v9 = vadd.f32 %v12170_v50, %v3203_v15  ;;  %12428 = vmatpush3.bf16.msra.mxu0 %v14973_v37  ;;  %13694 = vmatpush3.bf16.msra.mxu1 %v14972_v31  ;;  %v14979_v31 = vld [vmem:[%s20574_s3 + $0x300] sm:$0xff]   ;;  %v14980_v15 = vld [vmem:[%s20574_s3 + $0x348] sm:$0xff]  }
 0x1fd   :  { %12429 = vmatprep.subr.bf16.mxu0 %v14974_v28  ;;  %13695 = vmatprep.subr.bf16.mxu1 %v14975_v55  ;;  %v14981_v28 = vld [vmem:[%s20574_s3 + $0x388] sm:$0xff]  }
 0x1fe   :  { %v17365_v54 = vpack.c.bf16 %v3204_v9, %v3201_v47  ;;  %v12171_v0 = vpop.f32.mrb[68].mxu0  ;;  %v14982_v9 = vld [vmem:[%s20574_s3 + $0x308] sm:$0xff]  }
 0x1ff   :  { %v12172_v3 = vpop.f32.mrb[69].mxu0 }
 0x200   :  { %12430 = vmatpush3.bf16.msra.mxu0 %v14976_v62  ;;  %13696 = vmatpush3.bf16.msra.mxu1 %v14975_v55  ;;  %v12173_v24 = vadd.f32 %v12172_v3, %v12171_v0  ;;  %v12174_v37 = vpop.f32.mrb[70].mxu0  ;;  %v14983_v62 = vld [vmem:[%s20574_s3 + $0x350] sm:$0xff]   ;;  %v14987_v0 = vld [vmem:[%s20574_s3 + $0x398] sm:$0xff]  }
 0x201   :  { %12453 = vmatprep.subr.bf16.mxu0 %v14977_v26  ;;  %13701 = vmatprep.subr.bf16.mxu1 %v14978_v49  ;;  %v12175_v40 = vpop.f32.mrb[71].mxu0  ;;  %v14988_v3 = vld [vmem:[%s20574_s3 + $0x318] sm:$0xff]  }
 0x202   :  { %v3209_v47 = vadd.f32 %v13559_v63, %v12173_v24  ;;  %v12176_v50 = vadd.f32 %v12175_v40, %v12174_v37  ;;  %v14984_v63 = vld [vmem:[%s20574_s3 + $0x390] sm:$0xff]   ;;  %v14990_v24 = vld [vmem:[%s20574_s3 + $0x3a0] sm:$0xff]   ;;  %v14992_v40 = vld [vmem:[%s20574_s3 + $0x368] sm:$0xff]  }
 0x203   :  { %4844 = vmatmul.mubr.bf16.vlgmr.msra.gmra.mrb[120].mxu0 %v17099_v33  ;;  %13698 = vmatmul.mubr.bf16.vlgmr.msra.gmra.mrb[60].mxu1 %v17105_v34  ;;  %v14991_v37 = vld [vmem:[%s20574_s3 + $0x320] sm:$0xff]  }
 0x204   :  { %12454 = vmatpush3.bf16.msra.mxu0 %v14979_v31  ;;  %13702 = vmatpush3.bf16.msra.mxu1 %v14978_v49  ;;  %v3212_v55 = vadd.f32 %v13560_v42, %v12176_v50  ;;  %v14985_v42 = vld [vmem:[%s20574_s3 + $0x310] sm:$0xff]   ;;  %v14986_v49 = vld [vmem:[%s20574_s3 + $0x358] sm:$0xff]   ;;  %v14989_v31 = vld [vmem:[%s20574_s3 + $0x360] sm:$0xff]  }
 0x205   :  { %12455 = vmatprep.subr.bf16.mxu0 %v14980_v15  ;;  %13703 = vmatprep.subr.bf16.mxu1 %v14981_v28  ;;  %v14993_v15 = vld [vmem:[%s20574_s3 + $0x3a8] sm:$0xff]   ;;  %v14996_v50 = vld [vmem:[%s20574_s3 + $0x3b0] sm:$0xff]  }
 0x206   :  { %4851 = vmatprep.mubr.bf16.mxu0 %v17224_v58  ;;  %13717 = vmatprep.mubr.bf16.mxu1 %v17128_v13  ;;  %v17389_v26 = vpack.c.bf16 %v3212_v55, %v3209_v47  ;;  %v14995_v47 = vld [vmem:[%s20574_s3 + $0x370] sm:$0xff]  }
 0x208   :  { %12456 = vmatpush3.bf16.msra.mxu0 %v14982_v9  ;;  %13704 = vmatpush3.bf16.msra.mxu1 %v14981_v28  ;;  %v14994_v28 = vld [vmem:[%s20574_s3 + $0x328] sm:$0xff]  }
 0x209   :  { %12457 = vmatprep.subr.bf16.mxu0 %v14983_v62  ;;  %13705 = vmatprep.subr.bf16.mxu1 %v14984_v63 }
 0x20b   :  { %4852 = vmatmul.mubr.bf16.gmra.mrb[124].mxu0 %v17142_v61 }
 0x20c   :  { %12458 = vmatpush3.bf16.msra.mxu0 %v14985_v42  ;;  %13706 = vmatpush3.bf16.msra.mxu1 %v14984_v63 }
 0x20d   :  { %12459 = vmatprep.subr.bf16.mxu0 %v14986_v49  ;;  %13707 = vmatprep.subr.bf16.mxu1 %v14987_v0 }
 0x20e   :  { %5085 = vmatprep.mubr.bf16.mxu0 %v17157_v1 }
 0x210   :  { %12460 = vmatpush3.bf16.msra.mxu0 %v14988_v3  ;;  %13708 = vmatpush3.bf16.msra.mxu1 %v14987_v0  ;;  %v14997_v3 = vld [vmem:[%s20574_s3 + $0x330] sm:$0xff]  }
 0x211   :  { %12461 = vmatprep.subr.bf16.mxu0 %v14989_v31  ;;  %13709 = vmatprep.subr.bf16.mxu1 %v14990_v24 }
 0x214   :  { %12462 = vmatpush3.bf16.msra.mxu0 %v14991_v37  ;;  %13710 = vmatpush3.bf16.msra.mxu1 %v14990_v24  ;;  %v14998_v37 = vld [vmem:[%s20574_s3 + $0x378] sm:$0xff]  }
 0x215   :  { %12463 = vmatprep.subr.bf16.mxu0 %v14992_v40  ;;  %13711 = vmatprep.subr.bf16.mxu1 %v14993_v15  ;;  %v14999_v40 = vld [vmem:[%s20574_s3 + $0x3b8] sm:$0xff]  }
 0x216   :  { %v12203_v55 = vpop.f32.mrb[72].mxu0  ;;  %v13579_v9 = vpop.f32.mrb[36].mxu1 }
 0x217   :  { %v12204_v62 = vpop.f32.mrb[73].mxu0  ;;  %v3442_v63 = vpop.f32.mrb[37].mxu1 }
 0x218   :  { %v12206_v42 = vpop.f32.mrb[74].mxu0  ;;  %12464 = vmatpush3.bf16.msra.mxu0 %v14994_v28  ;;  %13712 = vmatpush3.bf16.msra.mxu1 %v14993_v15  ;;  %v12205_v49 = vadd.f32 %v12204_v62, %v12203_v55  ;;  %v13580_v0 = vpop.f32.mrb[38].mxu1  ;;  %v15000_v62 = vld [vmem:[%s20574_s3 + $0x338] sm:$0xff]  }
 0x219   :  { %v12207_v31 = vpop.f32.mrb[75].mxu0  ;;  %v3445_v24 = vpop.f32.mrb[39].mxu1  ;;  %12465 = vmatprep.subr.bf16.mxu0 %v14995_v47  ;;  %13713 = vmatprep.subr.bf16.mxu1 %v14996_v50  ;;  %v15001_v47 = vld [vmem:[%s20574_s3 + $0x400] sm:$0xff]  }
 0x21a   :  { %v3443_v28 = vadd.f32 %v12205_v49, %v3442_v63  ;;  %v12208_v15 = vadd.f32 %v12207_v31, %v12206_v42 }
 0x21c   :  { %v3446_v55 = vadd.f32 %v12208_v15, %v3445_v24  ;;  %12466 = vmatpush3.bf16.msra.mxu0 %v14997_v3  ;;  %13714 = vmatpush3.bf16.msra.mxu1 %v14996_v50  ;;  %v15003_v50 = vld [vmem:[%s20574_s3 + $0x3c0] sm:$0xff]   ;;  %v15004_v24 = vld [vmem:[%s20574_s3 + $0x408] sm:$0xff]  }
 0x21d   :  { %12467 = vmatprep.subr.bf16.mxu0 %v14998_v37  ;;  %13715 = vmatprep.subr.bf16.mxu1 %v14999_v40  ;;  %v15005_v37 = vld [vmem:[%s20574_s3 + $0x448] sm:$0xff]  }
 0x21e   :  { %v17447_v12 = vpack.c.bf16 %v3446_v55, %v3443_v28  ;;  %v12209_v63 = vpop.f32.mrb[76].mxu0  ;;  %v15006_v55 = vld [vmem:[%s20574_s3 + $0x3c8] sm:$0xff]  }
 0x21f   :  { %v12210_v42 = vpop.f32.mrb[77].mxu0 }
 0x220   :  { %12468 = vmatpush3.bf16.msra.mxu0 %v15000_v62  ;;  %13716 = vmatpush3.bf16.msra.mxu1 %v14999_v40  ;;  %v12211_v49 = vadd.f32 %v12210_v42, %v12209_v63  ;;  %v12212_v3 = vpop.f32.mrb[78].mxu0  ;;  %v15007_v62 = vld [vmem:[%s20574_s3 + $0x410] sm:$0xff]   ;;  %v15014_v63 = vld [vmem:[%s20574_s3 + $0x460] sm:$0xff]   ;;  %v15016_v42 = vld [vmem:[%s20574_s3 + $0x428] sm:$0xff]   ;;  %v5644_v27 = vsel %vm5453_vm0, %v17447_v12, 0 }
 0x221   :  { %12491 = vmatprep.subr.bf16.mxu0 %v15001_v47  ;;  %13721 = vmatprep.subr.bf16.mxu1 %v15002_v57  ;;  %v12213_v31 = vpop.f32.mrb[79].mxu0  ;;  %v15013_v47 = vld [vmem:[%s20574_s3 + $0x420] sm:$0xff]  }
 0x222   :  { %v3451_v28 = vadd.f32 %v13579_v9, %v12211_v49  ;;  %v12214_v15 = vadd.f32 %v12213_v31, %v12212_v3  ;;  %v15008_v9 = vld [vmem:[%s20574_s3 + $0x450] sm:$0xff]  }
 0x223   :  { %5086 = vmatmul.mubr.bf16.vlgmr.msra.gmra.mrb[128].mxu0 %v17099_v33  ;;  %13718 = vmatmul.mubr.bf16.vlgmr.msra.gmra.mrb[64].mxu1 %v17105_v34  ;;  %v15009_v34 = vld [vmem:[%s20574_s3 + $0x3d0] sm:$0xff]  }
 0x224   :  { %12492 = vmatpush3.bf16.msra.mxu0 %v15003_v50  ;;  %13722 = vmatpush3.bf16.msra.mxu1 %v15002_v57  ;;  %v3454_v40 = vadd.f32 %v13580_v0, %v12214_v15  ;;  %v15010_v57 = vld [vmem:[%s20574_s3 + $0x418] sm:$0xff]   ;;  %v15017_v50 = vld [vmem:[%s20574_s3 + $0x468] sm:$0xff]   ;;  %v15019_v49 = vld [vmem:[%s20574_s3 + $0x430] sm:$0xff]  }
 0x225   :  { %12493 = vmatprep.subr.bf16.mxu0 %v15004_v24  ;;  %13723 = vmatprep.subr.bf16.mxu1 %v15005_v37  ;;  %v15011_v0 = vld [vmem:[%s20574_s3 + $0x458] sm:$0xff]   ;;  %v15020_v3 = vld [vmem:[%s20574_s3 + $0x470] sm:$0xff]  }
 0x226   :  { %5093 = vmatprep.mubr.bf16.mxu0 %v17224_v58  ;;  %13737 = vmatprep.mubr.bf16.mxu1 %v17128_v13  ;;  %v17471_v33 = vpack.c.bf16 %v3454_v40, %v3451_v28  ;;  %v15012_v13 = vld [vmem:[%s20574_s3 + $0x3d8] sm:$0xff]  }
 0x228   :  { %12494 = vmatpush3.bf16.msra.mxu0 %v15006_v55  ;;  %13724 = vmatpush3.bf16.msra.mxu1 %v15005_v37  ;;  %v5647_v20 = vsel %vm5453_vm0, %v17471_v33, 0 }
 0x229   :  { %12495 = vmatprep.subr.bf16.mxu0 %v15007_v62  ;;  %13725 = vmatprep.subr.bf16.mxu1 %v15008_v9  ;;  %v15021_v62 = vld [vmem:[%s20574_s3 + $0x3f0] sm:$0xff]  }
 0x22b   :  { %5094 = vmatmul.mubr.bf16.gmra.mrb[132].mxu0 %v17142_v61  ;;  %v15015_v61 = vld [vmem:[%s20574_s3 + $0x3e0] sm:$0xff]  }
 0x22c   :  { %12496 = vmatpush3.bf16.msra.mxu0 %v15009_v34  ;;  %13726 = vmatpush3.bf16.msra.mxu1 %v15008_v9 }
 0x22d   :  { %12497 = vmatprep.subr.bf16.mxu0 %v15010_v57  ;;  %13727 = vmatprep.subr.bf16.mxu1 %v15011_v0  ;;  %v15022_v57 = vld [vmem:[%s20574_s3 + $0x438] sm:$0xff]  }
 0x22e   :  { %5327 = vmatprep.mubr.bf16.mxu0 %v17157_v1  ;;  %v15018_v1 = vld [vmem:[%s20574_s3 + $0x3e8] sm:$0xff]  }
 0x230   :  { %12498 = vmatpush3.bf16.msra.mxu0 %v15012_v13  ;;  %13728 = vmatpush3.bf16.msra.mxu1 %v15011_v0  ;;  %v15023_v0 = vld [vmem:[%s20574_s3 + $0x478] sm:$0xff]  }
 0x231   :  { %12499 = vmatprep.subr.bf16.mxu0 %v15013_v47  ;;  %13729 = vmatprep.subr.bf16.mxu1 %v15014_v63 }
 0x234   :  { %12500 = vmatpush3.bf16.msra.mxu0 %v15015_v61  ;;  %13730 = vmatpush3.bf16.msra.mxu1 %v15014_v63  ;;  %v15024_v61 = vld [vmem:[%s20574_s3 + $0x3f8] sm:$0xff]  }
 0x235   :  { %12501 = vmatprep.subr.bf16.mxu0 %v15016_v42  ;;  %13731 = vmatprep.subr.bf16.mxu1 %v15017_v50 }
 0x236   :  { %v12241_v31 = vpop.f32.mrb[80].mxu0  ;;  %v13599_v24 = vpop.f32.mrb[40].mxu1 }
 0x237   :  { %v12242_v37 = vpop.f32.mrb[81].mxu0  ;;  %v3684_v28 = vpop.f32.mrb[41].mxu1 }
 0x238   :  { %v12244_v15 = vpop.f32.mrb[82].mxu0  ;;  %12502 = vmatpush3.bf16.msra.mxu0 %v15018_v1  ;;  %13732 = vmatpush3.bf16.msra.mxu1 %v15017_v50  ;;  %v12243_v40 = vadd.f32 %v12242_v37, %v12241_v31  ;;  %v13600_v55 = vpop.f32.mrb[42].mxu1 }
 0x239   :  { %v12245_v9 = vpop.f32.mrb[83].mxu0  ;;  %v3687_v34 = vpop.f32.mrb[43].mxu1  ;;  %12503 = vmatprep.subr.bf16.mxu0 %v15019_v49  ;;  %13733 = vmatprep.subr.bf16.mxu1 %v15020_v3 }
 0x23a   :  { %v3685_v13 = vadd.f32 %v12243_v40, %v3684_v28  ;;  %v12246_v47 = vadd.f32 %v12245_v9, %v12244_v15  ;;  %v15339_v15 = vld [vmem:[%s20571_s0] ss:$12 sps:$4 sm:$0xff]   ;;  %v5461_v9 = vsel %vm5453_vm0, %v17196_v6, 0 }
 0x23b   :  { %v15340_v40 = vld [vmem:[%s20571_s0 + $0x20] ss:$12 sps:$4 sm:$0xff]  }
 0x23c   :  { %v3688_v63 = vadd.f32 %v12246_v47, %v3687_v34  ;;  %12504 = vmatpush3.bf16.msra.mxu0 %v15021_v62  ;;  %13734 = vmatpush3.bf16.msra.mxu1 %v15020_v3  ;;  %v5522_v34 = vsel %vm5453_vm0, %v17283_v21, 0 }
 0x23d   :  { %12505 = vmatprep.subr.bf16.mxu0 %v15022_v57  ;;  %13735 = vmatprep.subr.bf16.mxu1 %v15023_v0 }
 0x23e   :  { %v17523_v42 = vpack.c.bf16 %v3688_v63, %v3685_v13  ;;  %v12247_v50 = vpop.f32.mrb[84].mxu0 }
 0x23f   :  { %v12248_v1 = vpop.f32.mrb[85].mxu0 }
 0x240   :  { %12506 = vmatpush3.bf16.msra.mxu0 %v15024_v61  ;;  %13736 = vmatpush3.bf16.msra.mxu1 %v15023_v0  ;;  %v12249_v49 = vadd.f32 %v12248_v1, %v12247_v50  ;;  %v12250_v31 = vpop.f32.mrb[86].mxu0 }
 0x241   :  { %14557 = vmatprep.subr.msk.bf16.mxu0 %vm5453_vm0, %v17196_v6  ;;  %14559 = vmatprep.subr.msk.bf16.mxu1 %vm5453_vm0, %v17283_v21  ;;  %v12251_v3 = vpop.f32.mrb[87].mxu0 }
 0x242   :  { %v3693_v37 = vadd.f32 %v13599_v24, %v12249_v49  ;;  %v12252_v28 = vadd.f32 %v12251_v3, %v12250_v31 }
 0x243   :  { %5328 = vmatmul.mubr.bf16.vlgmr.msra.gmra.mrb[136].mxu0 %v15339_v15  ;;  %13738 = vmatmul.mubr.bf16.vlgmr.msra.gmra.mrb[68].mxu1 %v15340_v40 }
 0x244   :  { %13753 = vmatprep.mubr.msk.bf16.mxu1 %vm5453_vm0, %v5419_v25  ;;  %v3696_v62 = vadd.f32 %v13600_v55, %v12252_v28  ;;  %5335 = vmatprep.mubr.bf16.mxu0 %v17224_v58  ;;  %v5525_v25 = vsel %vm5453_vm0, %v17307_v8, 0 }
 0x246   :  { %v17540_v24 = vpack.c.bf16 %v3696_v62, %v3693_v37 }
 0x248   :  { %v5708_v45 = vsel %vm5453_vm0, %v17540_v24, 0 }
 0x249   :  { %13742 = vmatpush3.bf16.xpose.msra.mxu0 %v5461_v9  ;;  %13750 = vmatpush3.bf16.xpose.msra.mxu1 %v5522_v34 }
 0x24a   :  { %14558 = vmatprep.subr.msk.bf16.mxu0 %vm5453_vm0, %v17228_v52  ;;  %14560 = vmatprep.subr.msk.bf16.mxu1 %vm5453_vm0, %v17307_v8  ;;  %v5583_v52 = vsel %vm5453_vm0, %v17365_v54, 0 }
 0x24b   :  { %5336 = vmatmul.mubr.bf16.gmra.mrb[140].mxu0 %v15341_v14 }
 0x24c   :  { %13745 = vmatprep.mubr.msk.bf16.mxu0 %vm5453_vm0, %v5417_v43 }
 0x251   :  { %13744 = vmatpush3.bf16.xpose.msra.mxu0 %v5464_v19  ;;  %13752 = vmatpush3.bf16.xpose.msra.mxu1 %v5525_v25 }
 0x252   :  { %14561 = vmatprep.subr.msk.bf16.mxu0 %vm5453_vm0, %v17365_v54  ;;  %14563 = vmatprep.subr.msk.bf16.mxu1 %vm5453_vm0, %v17447_v12 }
 0x256   :  { %v12279_v6 = vpop.f32.mrb[88].mxu0  ;;  %v13619_v58 = vpop.f32.mrb[44].mxu1 }
 0x257   :  { %v12280_v21 = vpop.f32.mrb[89].mxu0  ;;  %v3926_v32 = vpop.f32.mrb[45].mxu1 }
 0x258   :  { %v12282_v36 = vpop.f32.mrb[90].mxu0  ;;  %13746 = vmatmul.mubr.msk.bf16.vlgmr.msra.gmra.mrb[144].mxu0 %vm5453_vm0, %v5418_v53  ;;  %13754 = vmatmul.mubr.msk.bf16.vlgmr.msra.gmra.mrb[72].mxu1 %vm5453_vm0, %v5420_v51  ;;  %v12281_v43 = vadd.f32 %v12280_v21, %v12279_v6  ;;  %v13620_v8 = vpop.f32.mrb[46].mxu1 }
 0x259   :  { %v12283_v55 = vpop.f32.mrb[91].mxu0  ;;  %13758 = vmatpush3.bf16.xpose.msra.mxu0 %v5583_v52  ;;  %13761 = vmatprep.mubr.msk.bf16.mxu0 %vm5453_vm0, %v5421_v23  ;;  %v3929_v4 = vpop.f32.mrb[47].mxu1  ;;  %v5586_v23 = vsel %vm5453_vm0, %v17389_v26, 0 }
 0x25a   :  { %v3927_v53 = vadd.f32 %v12281_v43, %v3926_v32  ;;  %13766 = vmatpush3.bf16.xpose.msra.mxu1 %v5644_v27  ;;  %13769 = vmatprep.mubr.msk.bf16.mxu1 %vm5453_vm0, %v5423_v35  ;;  %v12284_v44 = vadd.f32 %v12283_v55, %v12282_v36 }
 0x25b   :  { %14562 = vmatprep.subr.msk.bf16.mxu0 %vm5453_vm0, %v17389_v26  ;;  %14564 = vmatprep.subr.msk.bf16.mxu1 %vm5453_vm0, %v17471_v33  ;;  %v5705_v26 = vsel %vm5453_vm0, %v17523_v42, 0 }
 0x25c   :  { %v3930_v48 = vadd.f32 %v12284_v44, %v3929_v4 }
 0x25e   :  { %v5439_v51 = vpack.c.bf16 %v3930_v48, %v3927_v53  ;;  %v12285_v11 = vpop.f32.mrb[92].mxu0 }
 0x25f   :  { %v12286_v17 = vpop.f32.mrb[93].mxu0 }
 0x260   :  { %v12288_v12 = vpop.f32.mrb[94].mxu0  ;;  %v12287_v54 = vadd.f32 %v12286_v17, %v12285_v11  ;;  %v5766_v33 = vsel %vm5453_vm0, %v5439_v51, 0 }
 0x261   :  { %13760 = vmatpush3.bf16.xpose.msra.mxu0 %v5586_v23  ;;  %v12289_v30 = vpop.f32.mrb[95].mxu0 }
 0x262   :  { %13768 = vmatpush3.bf16.xpose.msra.mxu1 %v5647_v20  ;;  %14565 = vmatprep.subr.msk.bf16.mxu0 %vm5453_vm0, %v17523_v42  ;;  %v12290_v35 = vadd.f32 %v12289_v30, %v12288_v12  ;;  %v3935_v57 = vadd.f32 %v13619_v58, %v12287_v54 }
 0x263   :  { %14567 = vmatprep.subr.msk.bf16.mxu1 %vm5453_vm0, %v5439_v51 }
 0x264   :  { %v3938_v0 = vadd.f32 %v13620_v8, %v12290_v35 }
 0x266   :  { %v5440_v13 = vpack.c.bf16 %v3938_v0, %v3935_v57 }
 0x268   :  { %13762 = vmatmul.mubr.msk.bf16.vlgmr.msra.gmra.mrb[148].mxu0 %vm5453_vm0, %v5422_v5  ;;  %v5769_v29 = vsel %vm5453_vm0, %v5440_v13, 0 }
 0x269   :  { %13770 = vmatmul.mubr.msk.bf16.vlgmr.msra.gmra.mrb[76].mxu1 %vm5453_vm0, %v5424_v59  ;;  %13774 = vmatpush3.bf16.xpose.msra.mxu0 %v5705_v26 }
 0x26a   :  { %13777 = vmatprep.mubr.msk.bf16.mxu0 %vm5453_vm0, %v5425_v60  ;;  %13782 = vmatpush3.bf16.xpose.msra.mxu1 %v5766_v33  ;;  %v20580_v60 = vpack.c.bf16 %v17019_v38, %v17011_v7 }
 0x26b   :  { %13785 = vmatprep.mubr.msk.bf16.mxu1 %vm5453_vm0, %v5427_v18  ;;  %14566 = vmatprep.subr.msk.bf16.mxu0 %vm5453_vm0, %v17540_v24 }
 0x26c   :  { %14568 = vmatprep.subr.msk.bf16.mxu1 %vm5453_vm0, %v5440_v13 }
 0x271   :  { %13776 = vmatpush3.bf16.xpose.msra.mxu0 %v5708_v45 }
 0x272   :  { %13784 = vmatpush3.bf16.xpose.msra.mxu1 %v5769_v29 }
 0x276   :  { %v12317_v5 = vpop.f32.mrb[96].mxu0  ;;  %v13639_v56 = vpop.f32.mrb[48].mxu1 }
 0x277   :  { %v12318_v16 = vpop.f32.mrb[97].mxu0  ;;  %v4168_v59 = vpop.f32.mrb[49].mxu1 }
 0x278   :  { %v12319_v41 = vadd.f32 %v12318_v16, %v12317_v5  ;;  %v12320_v22 = vpop.f32.mrb[98].mxu0  ;;  %13778 = vmatmul.mubr.msk.bf16.vlgmr.msra.gmra.mrb[152].mxu0 %vm5453_vm0, %v20580_v60  ;;  %v13640_v2 = vpop.f32.mrb[50].mxu1 }
 0x279   :  { %13786 = vmatmul.mubr.msk.bf16.vlgmr.msra.gmra.mrb[80].mxu1 %vm5453_vm0, %v20581_v10  ;;  %v12321_v18 = vpop.f32.mrb[99].mxu0  ;;  %v4171_v47 = vpop.f32.mrb[51].mxu1 }
 0x27a   :  { %v12322_v63 = vadd.f32 %v12321_v18, %v12320_v22  ;;  %v4169_v61 = vadd.f32 %v12319_v41, %v4168_v59 }
 0x27c   :  { %v4172_v42 = vadd.f32 %v12322_v63, %v4171_v47 }
 0x27e   :  { %v5441_v50 = vpack.c.bf16 %v4172_v42, %v4169_v61  ;;  %v12323_v1 = vpop.f32.mrb[100].mxu0 }
 0x27f   :  { %v12324_v49 = vpop.f32.mrb[101].mxu0 }
 0x280   :  { %13789 = vmatprep.subr.bf16.mxu0 %v5441_v50  ;;  %v12325_v31 = vadd.f32 %v12324_v49, %v12323_v1  ;;  %v12326_v3 = vpop.f32.mrb[102].mxu0 }
 0x281   :  { %13790 = vmatpush3.bf16.msra.mxu0 %v5441_v50  ;;  %v12327_v7 = vpop.f32.mrb[103].mxu0 }
 0x282   :  { %v4177_v38 = vadd.f32 %v13639_v56, %v12325_v31  ;;  %v12328_v37 = vadd.f32 %v12327_v7, %v12326_v3 }
 0x284   :  { %v4180_v28 = vadd.f32 %v13640_v2, %v12328_v37 }
 0x286   :  { %v5442_v15 = vpack.c.bf16 %v4180_v28, %v4177_v38 }
 0x288   :  { %13791 = vmatprep.subr.bf16.mxu0 %v5442_v15 }
 0x289   :  { %13792 = vmatpush3.bf16.msra.mxu0 %v5442_v15 }
 0x296   :  { %v12355_v46 = vpop.f32.mrb[104].mxu0  ;;  %v13659_v39 = vpop.f32.mrb[52].mxu1 }
 0x297   :  { %v12356_v40 = vpop.f32.mrb[105].mxu0  ;;  %v4410_v62 = vpop.f32.mrb[53].mxu1 }
 0x298   :  { %v12357_v24 = vadd.f32 %v12356_v40, %v12355_v46  ;;  %v12358_v9 = vpop.f32.mrb[106].mxu0  ;;  %v13660_v34 = vpop.f32.mrb[54].mxu1 }
 0x299   :  { %v12359_v14 = vpop.f32.mrb[107].mxu0  ;;  %v4413_v19 = vpop.f32.mrb[55].mxu1 }
 0x29a   :  { %v12360_v25 = vadd.f32 %v12359_v14, %v12358_v9  ;;  %v4411_v6 = vadd.f32 %v12357_v24, %v4410_v62 }
 0x29c   :  { %v4414_v58 = vadd.f32 %v12360_v25, %v4413_v19 }
 0x29e   :  { %v5443_v21 = vpack.c.bf16 %v4414_v58, %v4411_v6  ;;  %v12361_v32 = vpop.f32.mrb[108].mxu0 }
 0x29f   :  { %v12362_v36 = vpop.f32.mrb[109].mxu0 }
 0x2a0   :  { %13797 = vmatprep.subr.bf16.mxu1 %v5443_v21  ;;  %v12363_v43 = vadd.f32 %v12362_v36, %v12361_v32  ;;  %v12364_v52 = vpop.f32.mrb[110].mxu0 }
 0x2a1   :  { %13798 = vmatpush3.bf16.msra.mxu1 %v5443_v21  ;;  %v12365_v8 = vpop.f32.mrb[111].mxu0 }
 0x2a2   :  { %v4419_v55 = vadd.f32 %v13659_v39, %v12363_v43  ;;  %v12366_v27 = vadd.f32 %v12365_v8, %v12364_v52 }
 0x2a4   :  { %v4422_v4 = vadd.f32 %v13660_v34, %v12366_v27 }
 0x2a6   :  { %v5444_v53 = vpack.c.bf16 %v4422_v4, %v4419_v55 }
 0x2a8   :  { %13799 = vmatprep.subr.bf16.mxu1 %v5444_v53 }
 0x2a9   :  { %13800 = vmatpush3.bf16.msra.mxu1 %v5444_v53 }
 0x2b6   :  { %v12393_v44 = vpop.f32.mrb[112].mxu0  ;;  %v13679_v48 = vpop.f32.mrb[56].mxu1 }
 0x2b7   :  { %v12394_v51 = vpop.f32.mrb[113].mxu0  ;;  %v4652_v11 = vpop.f32.mrb[57].mxu1 }
 0x2b8   :  { %v12395_v17 = vadd.f32 %v12394_v51, %v12393_v44  ;;  %v12396_v23 = vpop.f32.mrb[114].mxu0  ;;  %v13680_v12 = vpop.f32.mrb[58].mxu1 }
 0x2b9   :  { %v12397_v54 = vpop.f32.mrb[115].mxu0  ;;  %v4655_v20 = vpop.f32.mrb[59].mxu1 }
 0x2ba   :  { %v12398_v30 = vadd.f32 %v12397_v54, %v12396_v23  ;;  %v4653_v35 = vadd.f32 %v12395_v17, %v4652_v11 }
 0x2bc   :  { %v4656_v57 = vadd.f32 %v12398_v30, %v4655_v20 }
 0x2be   :  { %v17629_v0 = vpack.c.bf16 %v4656_v57, %v4653_v35  ;;  %v12399_v13 = vpop.f32.mrb[116].mxu0 }
 0x2bf   :  { %v12400_v26 = vpop.f32.mrb[117].mxu0 }
 0x2c0   :  { %13805 = vmatprep.subr.bf16.mxu0 %v17629_v0  ;;  %v12401_v33 = vadd.f32 %v12400_v26, %v12399_v13  ;;  %v12402_v45 = vpop.f32.mrb[118].mxu0 }
 0x2c1   :  { %v12403_v29 = vpop.f32.mrb[119].mxu0 }
 0x2c2   :  { %v4661_v5 = vadd.f32 %v13679_v48, %v12401_v33  ;;  %v12404_v56 = vadd.f32 %v12403_v29, %v12402_v45  ;;  %v986_v33 = vlaneseq }
 0x2c4   :  { %v4664_v16 = vadd.f32 %v13680_v12, %v12404_v56 }
 0x2c6   :  { %v17632_v59 = vpack.c.bf16 %v4664_v16, %v4661_v5 }
 0x2d6   :  { %v12431_v41 = vpop.f32.mrb[120].mxu0  ;;  %v13699_v22 = vpop.f32.mrb[60].mxu1 }
 0x2d7   :  { %v12432_v60 = vpop.f32.mrb[121].mxu0  ;;  %v4894_v2 = vpop.f32.mrb[61].mxu1 }
 0x2d8   :  { %v12433_v10 = vadd.f32 %v12432_v60, %v12431_v41  ;;  %v12434_v18 = vpop.f32.mrb[122].mxu0  ;;  %v13700_v47 = vpop.f32.mrb[62].mxu1 }
 0x2d9   :  { %v12435_v63 = vpop.f32.mrb[123].mxu0  ;;  %v4897_v61 = vpop.f32.mrb[63].mxu1 }
 0x2da   :  { %v12436_v42 = vadd.f32 %v12435_v63, %v12434_v18  ;;  %v4895_v50 = vadd.f32 %v12433_v10, %v4894_v2 }
 0x2dc   :  { %v4898_v1 = vadd.f32 %v12436_v42, %v4897_v61 }
 0x2de   :  { %v17634_v49 = vpack.c.bf16 %v4898_v1, %v4895_v50  ;;  %v12437_v31 = vpop.f32.mrb[124].mxu0 }
 0x2df   :  { %v12438_v3 = vpop.f32.mrb[125].mxu0 }
 0x2e0   :  { %13813 = vmatprep.subr.bf16.mxu1 %v17634_v49  ;;  %v12439_v7 = vadd.f32 %v12438_v3, %v12437_v31  ;;  %v12440_v38 = vpop.f32.mrb[126].mxu0 }
 0x2e1   :  { %v12441_v37 = vpop.f32.mrb[127].mxu0 }
 0x2e2   :  { %v4903_v28 = vadd.f32 %v13699_v22, %v12439_v7  ;;  %v12442_v15 = vadd.f32 %v12441_v37, %v12440_v38  ;;  %v17645_v22 = vshrl.u32 %v986_v33, 7 }
 0x2e4   :  { %v4906_v46 = vadd.f32 %v13700_v47, %v12442_v15  ;;  %v989_v18 = vadd.s32 16, %v17645_v22  ;;  %v992_v47 = vand.u32 127, %v986_v33  ;;  %v990_v61 = vadd.s32 24, %v17645_v22 }
 0x2e5   :  { %v988_v50 = vadd.s32 8, %v17645_v22 }
 0x2e6   :  { %v17637_v39 = vpack.c.bf16 %v4906_v46, %v4903_v28  ;;  %vm17651_vm1 = vcmp.ge.s32.totalorder %v989_v18, %v992_v47  ;;  %vm17657_vm2 = vcmp.ge.s32.totalorder %v17645_v22, %v992_v47  ;;  %vm17665_vm4 = vcmp.ge.s32.totalorder %v990_v61, %v992_v47 }
 0x2e7   :  { %vm17673_vm5 = vcmp.ge.s32.totalorder %v988_v50, %v992_v47 }
 0x2f6   :  { %v12469_v40 = vpop.f32.mrb[128].mxu0  ;;  %v13719_v62 = vpop.f32.mrb[64].mxu1 }
 0x2f7   :  { %v12470_v24 = vpop.f32.mrb[129].mxu0  ;;  %v5136_v9 = vpop.f32.mrb[65].mxu1 }
 0x2f8   :  { %v12471_v34 = vadd.f32 %v12470_v24, %v12469_v40  ;;  %v12472_v14 = vpop.f32.mrb[130].mxu0  ;;  %v13720_v19 = vpop.f32.mrb[66].mxu1 }
 0x2f9   :  { %v12473_v25 = vpop.f32.mrb[131].mxu0  ;;  %v5139_v6 = vpop.f32.mrb[67].mxu1 }
 0x2fa   :  { %v12474_v58 = vadd.f32 %v12473_v25, %v12472_v14  ;;  %v5137_v21 = vadd.f32 %v12471_v34, %v5136_v9 }
 0x2fc   :  { %v5140_v32 = vadd.f32 %v12474_v58, %v5139_v6 }
 0x2fe   :  { %v17639_v36 = vpack.c.bf16 %v5140_v32, %v5137_v21  ;;  %v12475_v43 = vpop.f32.mrb[132].mxu0 }
 0x2ff   :  { %v12476_v52 = vpop.f32.mrb[133].mxu0 }
 0x300   :  { %v12477_v8 = vadd.f32 %v12476_v52, %v12475_v43  ;;  %v12478_v55 = vpop.f32.mrb[134].mxu0 }
 0x301   :  { %v12479_v27 = vpop.f32.mrb[135].mxu0 }
 0x302   :  { %v5145_v4 = vadd.f32 %v13719_v62, %v12477_v8  ;;  %v12480_v53 = vadd.f32 %v12479_v27, %v12478_v55 }
 0x304   :  { %v5148_v44 = vadd.f32 %v13720_v19, %v12480_v53 }
 0x306   :  { %v17641_v48 = vpack.c.bf16 %v5148_v44, %v5145_v4 }
 0x316   :  { %v12507_v51 = vpop.f32.mrb[136].mxu0  ;;  %v13739_v11 = vpop.f32.mrb[68].mxu1 }
 0x317   :  { %v12508_v17 = vpop.f32.mrb[137].mxu0  ;;  %v5378_v23 = vpop.f32.mrb[69].mxu1 }
 0x318   :  { %v12509_v12 = vadd.f32 %v12508_v17, %v12507_v51  ;;  %v12510_v54 = vpop.f32.mrb[138].mxu0  ;;  %v13740_v20 = vpop.f32.mrb[70].mxu1 }
 0x319   :  { %v12511_v30 = vpop.f32.mrb[139].mxu0  ;;  %v5381_v35 = vpop.f32.mrb[71].mxu1 }
 0x31a   :  { %v12512_v57 = vadd.f32 %v12511_v30, %v12510_v54  ;;  %v5379_v13 = vadd.f32 %v12509_v12, %v5378_v23 }
 0x31c   :  { %v5382_v26 = vadd.f32 %v12512_v57, %v5381_v35 }
 0x31e   :  { %v17643_v45 = vpack.c.bf16 %v5382_v26, %v5379_v13  ;;  %v12513_v29 = vpop.f32.mrb[140].mxu0 }
 0x31f   :  { %v12514_v5 = vpop.f32.mrb[141].mxu0 }
 0x320   :  { %v12515_v56 = vadd.f32 %v12514_v5, %v12513_v29  ;;  %v12516_v16 = vpop.f32.mrb[142].mxu0 }
 0x321   :  { %v12517_v41 = vpop.f32.mrb[143].mxu0 }
 0x322   :  { %v5387_v60 = vadd.f32 %v13739_v11, %v12515_v56  ;;  %v12518_v2 = vadd.f32 %v12517_v41, %v12516_v16 }
 0x324   :  { %v5390_v10 = vadd.f32 %v13740_v20, %v12518_v2 }
 0x326   :  { %v17648_v63 = vpack.c.bf16 %v5390_v10, %v5387_v60 }
 0x32b   :  { %v13747_v31 = vpop.f32.mrb[144].mxu0  ;;  %v13755_v3 = vpop.f32.mrb[72].mxu1 }
 0x32c   :  { %v17663_v7 = vsel %vm17651_vm1, %v13747_v31, -1e+30  ;;  %v5500_v38 = vpop.f32.mrb[145].mxu0  ;;  %v5561_v37 = vpop.f32.mrb[73].mxu1  ;;  %v17711_v55 = vsel %vm17651_vm1, %v13755_v3, -1e+30 }
 0x32d   :  { %v17671_v15 = vsel %vm17657_vm2, %v5500_v38, -1e+30  ;;  %v13748_v46 = vpop.f32.mrb[146].mxu0  ;;  %v13756_v40 = vpop.f32.mrb[74].mxu1  ;;  %v5859_v9 = vsel %vm5852_vm3, %v17663_v7, -inf  ;;  %v5871_v4 = vsel %vm5852_vm3, %v17711_v55, -inf }
 0x32e   :  { %v5564_v24 = vpop.f32.mrb[75].mxu1  ;;  %v17681_v34 = vsel %vm17665_vm4, %v13748_v46, -1e+30  ;;  %5860 = vmax.xlane.f32.xlu1 %v5859_v9  ;;  %v5503_v14 = vpop.f32.mrb[147].mxu0  ;;  %v5853_v19 = vsel %vm5852_vm3, %v17671_v15, -inf }
 0x32f   :  { %v17687_v25 = vsel %vm17673_vm5, %v5503_v14, -1e+30  ;;  %5854 = vmax.xlane.f32.xlu0 %v5853_v19  ;;  %v5862_v6 = vsel %vm5852_vm3, %v17681_v34, -inf  ;;  %v17693_v58 = vsel %vm17673_vm5, %v5564_v24, -1e+30 }
 0x330   :  { %v5856_v21 = vsel %vm5852_vm3, %v17687_v25, -inf  ;;  %v17699_v32 = vsel %vm17657_vm2, %v5561_v37, -1e+30  ;;  %v5868_v43 = vsel %vm5852_vm3, %v17693_v58, -inf  ;;  %v17705_v52 = vsel %vm17665_vm4, %v13756_v40, -1e+30 }
 0x331   :  { %v5865_v8 = vsel %vm5852_vm3, %v17699_v32, -inf  ;;  %v5874_v27 = vsel %vm5852_vm3, %v17705_v52, -inf }
 0x332   :  { %5863 = vmax.xlane.f32.xlu1 %v5862_v6 }
 0x333   :  { %5857 = vmax.xlane.f32.xlu0 %v5856_v21 }
 0x336   :  { %5869 = vmax.xlane.f32.xlu1 %v5868_v43 }
 0x337   :  { %5866 = vmax.xlane.f32.xlu0 %v5865_v8 }
 0x33a   :  { %5875 = vmax.xlane.f32.xlu1 %v5874_v27 }
 0x33b   :  { %v13763_v53 = vpop.f32.mrb[148].mxu0  ;;  %5872 = vmax.xlane.f32.xlu0 %v5871_v4 }
 0x33c   :  { %v13771_v44 = vpop.f32.mrb[76].mxu1  ;;  %v5622_v51 = vpop.f32.mrb[149].mxu0  ;;  %v17729_v57 = vsel %vm17651_vm1, %v13763_v53, -1e+30 }
 0x33d   :  { %v17719_v11 = vsel %vm17657_vm2, %v5622_v51, -1e+30  ;;  %v5683_v17 = vpop.f32.mrb[77].mxu1  ;;  %v13764_v23 = vpop.f32.mrb[150].mxu0  ;;  %v5883_v33 = vsel %vm5852_vm3, %v17729_v57, -inf }
 0x33e   :  { %v13772_v12 = vpop.f32.mrb[78].mxu1  ;;  %v5625_v54 = vpop.f32.mrb[151].mxu0  ;;  %v5877_v35 = vsel %vm5852_vm3, %v17719_v11, -inf  ;;  %v17735_v26 = vsel %vm17665_vm4, %v13764_v23, -1e+30 }
 0x33f   :  { %v17723_v20 = vsel %vm17673_vm5, %v5625_v54, -1e+30  ;;  %v5686_v30 = vpop.f32.mrb[79].mxu1  ;;  %5878 = vmax.xlane.f32.xlu0 %v5877_v35  ;;  %v17741_v29 = vsel %vm17657_vm2, %v5683_v17, -1e+30  ;;  %v5886_v5 = vsel %vm5852_vm3, %v17735_v26, -inf }
 0x340   :  { %v5880_v13 = vsel %vm5852_vm3, %v17723_v20, -inf  ;;  %v17747_v56 = vsel %vm17673_vm5, %v5686_v30, -1e+30  ;;  %v5889_v16 = vsel %vm5852_vm3, %v17741_v29, -inf  ;;  %v17753_v41 = vsel %vm17651_vm1, %v13771_v44, -1e+30 }
 0x341   :  { %5881 = vmax.xlane.f32.xlu1 %v5880_v13  ;;  %v5892_v60 = vsel %vm5852_vm3, %v17747_v56, -inf  ;;  %v17759_v2 = vsel %vm17665_vm4, %v13772_v12, -1e+30  ;;  %v5895_v10 = vsel %vm5852_vm3, %v17753_v41, -inf }
 0x342   :  { %v5898_v50 = vsel %vm5852_vm3, %v17759_v2, -inf }
 0x343   :  { %5884 = vmax.xlane.f32.xlu0 %v5883_v33 }
 0x345   :  { %5887 = vmax.xlane.f32.xlu1 %v5886_v5 }
 0x347   :  { %5890 = vmax.xlane.f32.xlu0 %v5889_v16 }
 0x349   :  { %5893 = vmax.xlane.f32.xlu1 %v5892_v60 }
 0x34b   :  { %v13779_v18 = vpop.f32.mrb[152].mxu0  ;;  %5896 = vmax.xlane.f32.xlu0 %v5895_v10 }
 0x34c   :  { %v13787_v47 = vpop.f32.mrb[80].mxu1  ;;  %v5744_v61 = vpop.f32.mrb[153].mxu0  ;;  %v17777_v14 = vsel %vm17651_vm1, %v13779_v18, -1e+30 }
 0x34d   :  { %v17767_v31 = vsel %vm17657_vm2, %v5744_v61, -1e+30  ;;  %v5805_v3 = vpop.f32.mrb[81].mxu1  ;;  %5899 = vmax.xlane.f32.xlu1 %v5898_v50  ;;  %v13780_v38 = vpop.f32.mrb[154].mxu0  ;;  %v5907_v21 = vsel %vm5852_vm3, %v17777_v14, -inf }
 0x34e   :  { %v13788_v37 = vpop.f32.mrb[82].mxu1  ;;  %v5747_v46 = vpop.f32.mrb[155].mxu0  ;;  %v5901_v9 = vsel %vm5852_vm3, %v17767_v31, -inf  ;;  %v17783_v6 = vsel %vm17665_vm4, %v13780_v38, -1e+30 }
 0x34f   :  { %v17771_v40 = vsel %vm17673_vm5, %v5747_v46, -1e+30  ;;  %v5808_v24 = vpop.f32.mrb[83].mxu1  ;;  %5902 = vmax.xlane.f32.xlu0 %v5901_v9  ;;  %v17789_v43 = vsel %vm17657_vm2, %v5805_v3, -1e+30  ;;  %v5910_v8 = vsel %vm5852_vm3, %v17783_v6, -inf }
 0x350   :  { %v5904_v19 = vsel %vm5852_vm3, %v17771_v40, -inf  ;;  %v17795_v27 = vsel %vm17673_vm5, %v5808_v24, -1e+30  ;;  %v5913_v4 = vsel %vm5852_vm3, %v17789_v43, -inf  ;;  %v17801_v53 = vsel %vm17651_vm1, %v13787_v47, -1e+30 }
 0x351   :  { %5905 = vmax.xlane.f32.xlu1 %v5904_v19  ;;  %v5916_v44 = vsel %vm5852_vm3, %v17795_v27, -inf  ;;  %v17807_v51 = vsel %vm17665_vm4, %v13788_v37, -1e+30  ;;  %v5919_v17 = vsel %vm5852_vm3, %v17801_v53, -inf }
 0x352   :  { %v5922_v23 = vsel %vm5852_vm3, %v17807_v51, -inf }
 0x353   :  { %5908 = vmax.xlane.f32.xlu0 %v5907_v21 }
 0x355   :  { %5911 = vmax.xlane.f32.xlu1 %v5910_v8 }
 0x357   :  { %5914 = vmax.xlane.f32.xlu0 %v5913_v4 }
 0x359   :  { %5917 = vmax.xlane.f32.xlu1 %v5916_v44 }
 0x35b   :  { %5920 = vmax.xlane.f32.xlu0 %v5919_v17 }
 0x35d   :  { %5923 = vmax.xlane.f32.xlu1 %v5922_v23 }
 0x3bb   :  { %v5861_v12 = vpop.xlane.xlu1 %5860 }
 0x3bc   :  { %v5927_v54 = vsub.f32 %v17663_v7, %v5861_v12  ;;  %v5855_v30 = vpop.xlane.xlu0 %5854 }
 0x3bd   :  { %v5925_v35 = vsub.f32 %v17671_v15, %v5855_v30 }
 0x3be   :  { %v5953_v13 = vmul.f32 1.442695, %v5927_v54 }
 0x3bf   :  { %v5949_v33 = vmul.f32 1.442695, %v5925_v35  ;;  %v5864_v5 = vpop.xlane.xlu1 %5863 }
 0x3c0   :  { %v5928_v16 = vsub.f32 %v17681_v34, %v5864_v5  ;;  %v5858_v60 = vpop.xlane.xlu0 %5857 }
 0x3c1   :  { %15129 = vpow2.f32 %v5949_v33  ;;  %v5926_v10 = vsub.f32 %v17687_v25, %v5858_v60 }
 0x3c2   :  { %15131 = vpow2.f32 %v5953_v13  ;;  %v5955_v18 = vmul.f32 1.442695, %v5928_v16 }
 0x3c3   :  { %v5951_v47 = vmul.f32 1.442695, %v5926_v10  ;;  %v5870_v61 = vpop.xlane.xlu1 %5869 }
 0x3c4   :  { %v5930_v50 = vsub.f32 %v17693_v58, %v5870_v61  ;;  %v5867_v3 = vpop.xlane.xlu0 %5866 }
 0x3c5   :  { %15133 = vpow2.f32 %v5951_v47  ;;  %v5929_v7 = vsub.f32 %v17699_v32, %v5867_v3 }
 0x3c6   :  { %15135 = vpow2.f32 %v5955_v18  ;;  %v5959_v15 = vmul.f32 1.442695, %v5930_v50 }
 0x3c7   :  { %v5957_v38 = vmul.f32 1.442695, %v5929_v7  ;;  %v5876_v37 = vpop.xlane.xlu1 %5875 }
 0x3c8   :  { %v5932_v34 = vsub.f32 %v17705_v52, %v5876_v37  ;;  %v5873_v46 = vpop.xlane.xlu0 %5872 }
 0x3c9   :  { %15137 = vpow2.f32 %v5957_v38  ;;  %v5931_v25 = vsub.f32 %v17711_v55, %v5873_v46 }
 0x3ca   :  { %15139 = vpow2.f32 %v5959_v15  ;;  %v5963_v9 = vmul.f32 1.442695, %v5932_v34 }
 0x3cb   :  { %v17821_v24 = vpop.eup %15129  ;;  %v5961_v19 = vmul.f32 1.442695, %v5931_v25 }
 0x3cc   :  { %v5879_v58 = vpop.xlane.xlu0 %5878  ;;  %v5997_v21 = vsel %vm5852_vm3, %v17821_v24, 0.0  ;;  %v17825_v32 = vpop.eup %15131 }
 0x3cd   :  { %15141 = vpow2.f32 %v5961_v19  ;;  %v5933_v8 = vsub.f32 %v17719_v11, %v5879_v58  ;;  %5998 = vadd.xlane.f32.xlu0 %v5997_v21  ;;  %v6003_v12 = vsel %vm5852_vm3, %v17825_v32, 0.0 }
 0x3ce   :  { %v5882_v52 = vpop.xlane.xlu1 %5881  ;;  %15143 = vpow2.f32 %v5963_v9 }
 0x3cf   :  { %v5934_v4 = vsub.f32 %v17723_v20, %v5882_v52  ;;  %v17829_v44 = vpop.eup %15133  ;;  %v5965_v55 = vmul.f32 1.442695, %v5933_v8 }
 0x3d0   :  { %v5885_v23 = vpop.xlane.xlu0 %5884  ;;  %v6000_v54 = vsel %vm5852_vm3, %v17829_v44, 0.0  ;;  %v17835_v30 = vpop.eup %15135 }
 0x3d1   :  { %v5967_v17 = vmul.f32 1.442695, %v5934_v4  ;;  %15145 = vpow2.f32 %v5965_v55  ;;  %v5935_v11 = vsub.f32 %v17729_v57, %v5885_v23  ;;  %6004 = vadd.xlane.f32.xlu0 %v6003_v12  ;;  %6001 = vadd.xlane.f32.xlu1 %v6000_v54  ;;  %v6006_v10 = vsel %vm5852_vm3, %v17835_v30, 0.0 }
 0x3d2   :  { %v5888_v20 = vpop.xlane.xlu1 %5887 }
 0x3d3   :  { %v5936_v35 = vsub.f32 %v17735_v26, %v5888_v20  ;;  %v17839_v13 = vpop.eup %15137  ;;  %15147 = vpow2.f32 %v5967_v17  ;;  %v5969_v33 = vmul.f32 1.442695, %v5935_v11 }
 0x3d4   :  { %v5891_v16 = vpop.xlane.xlu0 %5890  ;;  %v6009_v60 = vsel %vm5852_vm3, %v17839_v13, 0.0  ;;  %v17845_v18 = vpop.eup %15139 }
 0x3d5   :  { %v5971_v5 = vmul.f32 1.442695, %v5936_v35  ;;  %15149 = vpow2.f32 %v5969_v33  ;;  %v5937_v57 = vsub.f32 %v17741_v29, %v5891_v16  ;;  %6010 = vadd.xlane.f32.xlu0 %v6009_v60  ;;  %6007 = vadd.xlane.f32.xlu1 %v6006_v10  ;;  %v6012_v38 = vsel %vm5852_vm3, %v17845_v18, 0.0 }
 0x3d6   :  { %v5894_v26 = vpop.xlane.xlu1 %5893 }
 0x3d7   :  { %v5938_v47 = vsub.f32 %v17747_v56, %v5894_v26  ;;  %v17849_v61 = vpop.eup %15141  ;;  %15151 = vpow2.f32 %v5971_v5  ;;  %v5973_v50 = vmul.f32 1.442695, %v5937_v57 }
 0x3d8   :  { %v5897_v7 = vpop.xlane.xlu0 %5896  ;;  %v6015_v15 = vsel %vm5852_vm3, %v17849_v61, 0.0  ;;  %v17855_v37 = vpop.eup %15143 }
 0x3d9   :  { %v5975_v3 = vmul.f32 1.442695, %v5938_v47  ;;  %15153 = vpow2.f32 %v5973_v50  ;;  %v5939_v29 = vsub.f32 %v17753_v41, %v5897_v7  ;;  %6016 = vadd.xlane.f32.xlu0 %v6015_v15  ;;  %6013 = vadd.xlane.f32.xlu1 %v6012_v38  ;;  %v6018_v21 = vsel %vm5852_vm3, %v17855_v37, 0.0 }
 0x3da   :  { %v5900_v56 = vpop.xlane.xlu1 %5899 }
 0x3db   :  { %v5940_v34 = vsub.f32 %v17759_v2, %v5900_v56  ;;  %v17859_v46 = vpop.eup %15145  ;;  %15155 = vpow2.f32 %v5975_v3  ;;  %v5977_v25 = vmul.f32 1.442695, %v5939_v29 }
 0x3dc   :  { %v5903_v19 = vpop.xlane.xlu0 %5902  ;;  %v6021_v58 = vsel %vm5852_vm3, %v17859_v46, 0.0 }
 0x3dd   :  { %v5979_v9 = vmul.f32 1.442695, %v5940_v34  ;;  %v17865_v8 = vpop.eup %15147  ;;  %15157 = vpow2.f32 %v5977_v25  ;;  %v5941_v41 = vsub.f32 %v17767_v31, %v5903_v19  ;;  %6022 = vadd.xlane.f32.xlu0 %v6021_v58  ;;  %6019 = vadd.xlane.f32.xlu1 %v6018_v21 }
 0x3de   :  { %v5906_v2 = vpop.xlane.xlu1 %5905  ;;  %v6024_v54 = vsel %vm5852_vm3, %v17865_v8, 0.0 }
 0x3df   :  { %v5942_v52 = vsub.f32 %v17771_v40, %v5906_v2  ;;  %v17869_v4 = vpop.eup %15149  ;;  %15159 = vpow2.f32 %v5979_v9  ;;  %v5981_v55 = vmul.f32 1.442695, %v5941_v41 }
 0x3e0   :  { %v5909_v23 = vpop.xlane.xlu0 %5908  ;;  %v6027_v12 = vsel %vm5852_vm3, %v17869_v4, 0.0 }
 0x3e1   :  { %v5983_v17 = vmul.f32 1.442695, %v5942_v52  ;;  %v17875_v11 = vpop.eup %15151  ;;  %15161 = vpow2.f32 %v5981_v55  ;;  %v5943_v31 = vsub.f32 %v17777_v14, %v5909_v23  ;;  %6028 = vadd.xlane.f32.xlu0 %v6027_v12  ;;  %6025 = vadd.xlane.f32.xlu1 %v6024_v54 }
 0x3e2   :  { %v5912_v40 = vpop.xlane.xlu1 %5911  ;;  %v6030_v10 = vsel %vm5852_vm3, %v17875_v11, 0.0 }
 0x3e3   :  { %v5944_v20 = vsub.f32 %v17783_v6, %v5912_v40  ;;  %v17879_v35 = vpop.eup %15153  ;;  %15163 = vpow2.f32 %v5983_v17  ;;  %v5985_v33 = vmul.f32 1.442695, %v5943_v31 }
 0x3e4   :  { %v5915_v16 = vpop.xlane.xlu0 %5914  ;;  %v6033_v60 = vsel %vm5852_vm3, %v17879_v35, 0.0 }
 0x3e5   :  { %v5987_v5 = vmul.f32 1.442695, %v5944_v20  ;;  %v17885_v57 = vpop.eup %15155  ;;  %15165 = vpow2.f32 %v5985_v33  ;;  %v5945_v14 = vsub.f32 %v17789_v43, %v5915_v16  ;;  %6034 = vadd.xlane.f32.xlu0 %v6033_v60  ;;  %6031 = vadd.xlane.f32.xlu1 %v6030_v10 }
 0x3e6   :  { %v5918_v6 = vpop.xlane.xlu1 %5917  ;;  %v6036_v38 = vsel %vm5852_vm3, %v17885_v57, 0.0 }
 0x3e7   :  { %v5946_v26 = vsub.f32 %v17795_v27, %v5918_v6  ;;  %v17889_v47 = vpop.eup %15157  ;;  %15167 = vpow2.f32 %v5987_v5  ;;  %v5989_v50 = vmul.f32 1.442695, %v5945_v14 }
 0x3e8   :  { %v5921_v7 = vpop.xlane.xlu0 %5920  ;;  %v6039_v15 = vsel %vm5852_vm3, %v17889_v47, 0.0 }
 0x3e9   :  { %v5991_v3 = vmul.f32 1.442695, %v5946_v26  ;;  %v17895_v29 = vpop.eup %15159  ;;  %15169 = vpow2.f32 %v5989_v50  ;;  %v5947_v43 = vsub.f32 %v17801_v53, %v5921_v7  ;;  %6040 = vadd.xlane.f32.xlu0 %v6039_v15  ;;  %6037 = vadd.xlane.f32.xlu1 %v6036_v38 }
 0x3ea   :  { %v5924_v27 = vpop.xlane.xlu1 %5923  ;;  %v6042_v58 = vsel %vm5852_vm3, %v17895_v29, 0.0 }
 0x3eb   :  { %v5948_v56 = vsub.f32 %v17807_v51, %v5924_v27  ;;  %v17899_v34 = vpop.eup %15161  ;;  %15171 = vpow2.f32 %v5991_v3  ;;  %v5993_v25 = vmul.f32 1.442695, %v5947_v43 }
 0x3ec   :  { %v6045_v19 = vsel %vm5852_vm3, %v17899_v34, 0.0 }
 0x3ed   :  { %v5995_v9 = vmul.f32 1.442695, %v5948_v56  ;;  %v17905_v21 = vpop.eup %15163  ;;  %15173 = vpow2.f32 %v5993_v25  ;;  %6046 = vadd.xlane.f32.xlu0 %v6045_v19  ;;  %6043 = vadd.xlane.f32.xlu1 %v6042_v58 }
 0x3ee   :  { %v6048_v41 = vsel %vm5852_vm3, %v17905_v21, 0.0 }
 0x3ef   :  { %v17907_v53 = vpop.eup %15165  ;;  %15175 = vpow2.f32 %v5995_v9 }
 0x3f0   :  { %v6051_v51 = vsel %vm5852_vm3, %v17907_v53, 0.0 }
 0x3f1   :  { %v17913_v2 = vpop.eup %15167  ;;  %6052 = vadd.xlane.f32.xlu0 %v6051_v51  ;;  %6049 = vadd.xlane.f32.xlu1 %v6048_v41 }
 0x3f2   :  { %v6054_v17 = vsel %vm5852_vm3, %v17913_v2, 0.0 }
 0x3f3   :  { %v17915_v52 = vpop.eup %15169 }
 0x3f4   :  { %v6057_v55 = vsel %vm5852_vm3, %v17915_v52, 0.0 }
 0x3f5   :  { %v17921_v23 = vpop.eup %15171  ;;  %6058 = vadd.xlane.f32.xlu0 %v6057_v55  ;;  %6055 = vadd.xlane.f32.xlu1 %v6054_v17 }
 0x3f6   :  { %v6060_v31 = vsel %vm5852_vm3, %v17921_v23, 0.0 }
 0x3f7   :  { %v17923_v12 = vpop.eup %15173 }
 0x3f8   :  { %v6063_v54 = vsel %vm5852_vm3, %v17923_v12, 0.0 }
 0x3f9   :  { %v17929_v40 = vpop.eup %15175  ;;  %6064 = vadd.xlane.f32.xlu0 %v6063_v54  ;;  %6061 = vadd.xlane.f32.xlu1 %v6060_v31 }
 0x3fa   :  { %v6066_v20 = vsel %vm5852_vm3, %v17929_v40, 0.0 }
 0x3fd   :  { %6067 = vadd.xlane.f32.xlu1 %v6066_v20 }
 0x45a   :  { %v5999_v33 = vpop.xlane.xlu0 %5998 }
 0x45b   :  { %15177 = vrcp.f32 %v5999_v33 }
 0x45e   :  { %v6005_v5 = vpop.xlane.xlu0 %6004  ;;  %v6002_v16 = vpop.xlane.xlu1 %6001 }
 0x45f   :  { %15179 = vrcp.f32 %v6002_v16 }
 0x460   :  { %15181 = vrcp.f32 %v6005_v5 }
 0x462   :  { %v6011_v60 = vpop.xlane.xlu0 %6010  ;;  %v6008_v10 = vpop.xlane.xlu1 %6007 }
 0x463   :  { %15183 = vrcp.f32 %v6008_v10 }
 0x464   :  { %15185 = vrcp.f32 %v6011_v60 }
 0x465   :  { %v15178_v26 = vpop.eup %15177 }
 0x466   :  { %v6017_v14 = vpop.xlane.xlu0 %6016  ;;  %v6014_v6 = vpop.xlane.xlu1 %6013  ;;  %v6093_v15 = vmul.f32 %v15178_v26, %v17821_v24 }
 0x467   :  { %15187 = vrcp.f32 %v6014_v6 }
 0x468   :  { %15189 = vrcp.f32 %v6017_v14 }
 0x469   :  { %v15180_v50 = vpop.eup %15179 }
 0x46a   :  { %v6023_v3 = vpop.xlane.xlu0 %6022  ;;  %v6020_v7 = vpop.xlane.xlu1 %6019  ;;  %v6094_v38 = vmul.f32 %v15180_v50, %v17829_v44 }
 0x46b   :  { %v15182_v43 = vpop.eup %15181  ;;  %15191 = vrcp.f32 %v6020_v7 }
 0x46c   :  { %v6117_v27 = vpack.c.bf16 %v6094_v38, %v6093_v15  ;;  %15193 = vrcp.f32 %v6023_v3  ;;  %v6095_v19 = vmul.f32 %v15182_v43, %v17825_v32 }
 0x46d   :  { %v15184_v56 = vpop.eup %15183 }
 0x46e   :  { %v6029_v25 = vpop.xlane.xlu0 %6028  ;;  %v6026_v9 = vpop.xlane.xlu1 %6025  ;;  %v6096_v58 = vmul.f32 %v15184_v56, %v17835_v30  ;;  %13793 = vmatprep.mubr.msk.bf16.mxu0 %vm5852_vm3, %v6117_v27  ;;  %v15027_v27 = vld [vmem:[%s20575_s4 + $0x4] ss:$12 sps:$4 sm:$0xff]  }
 0x46f   :  { %v15186_v51 = vpop.eup %15185  ;;  %15195 = vrcp.f32 %v6026_v9 }
 0x470   :  { %v6118_v41 = vpack.c.bf16 %v6096_v58, %v6095_v19  ;;  %15197 = vrcp.f32 %v6029_v25  ;;  %v6097_v17 = vmul.f32 %v15186_v51, %v17839_v13 }
 0x471   :  { %v15188_v55 = vpop.eup %15187 }
 0x472   :  { %v6035_v24 = vpop.xlane.xlu0 %6034  ;;  %v6032_v44 = vpop.xlane.xlu1 %6031  ;;  %13794 = vmatmul.mubr.msk.bf16.vlgmr.msra.gmra.mrb[156].mxu0 %vm5852_vm3, %v6118_v41  ;;  %v6098_v54 = vmul.f32 %v15188_v55, %v17845_v18 }
 0x473   :  { %v15190_v31 = vpop.eup %15189  ;;  %13806 = vmatpush3.bf16.msra.mxu0 %v17629_v0  ;;  %15199 = vrcp.f32 %v6032_v44 }
 0x474   :  { %13807 = vmatprep.subr.bf16.mxu0 %v17632_v59  ;;  %v6119_v32 = vpack.c.bf16 %v6098_v54, %v6097_v17  ;;  %15201 = vrcp.f32 %v6035_v24  ;;  %v6099_v5 = vmul.f32 %v15190_v31, %v17849_v61  ;;  %v15031_v54 = vld [vmem:[%s20575_s4 + $0x1c] ss:$12 sps:$4 sm:$0xff]  }
 0x475   :  { %v15192_v30 = vpop.eup %15191 }
 0x476   :  { %v6041_v20 = vpop.xlane.xlu0 %6040  ;;  %v6038_v33 = vpop.xlane.xlu1 %6037  ;;  %v6100_v16 = vmul.f32 %v15192_v30, %v17855_v37  ;;  %13801 = vmatprep.mubr.msk.bf16.mxu1 %vm5852_vm3, %v6119_v32 }
 0x477   :  { %v15194_v13 = vpop.eup %15193  ;;  %13808 = vmatpush3.bf16.msra.mxu0 %v17632_v59  ;;  %15203 = vrcp.f32 %v6038_v33  ;;  %v15035_v33 = vld [vmem:[%s20575_s4 + $0x34] ss:$12 sps:$4 sm:$0xff]  }
 0x478   :  { %13821 = vmatprep.subr.bf16.mxu0 %v17639_v36  ;;  %v6120_v0 = vpack.c.bf16 %v6100_v16, %v6099_v5  ;;  %15205 = vrcp.f32 %v6041_v20  ;;  %v6101_v14 = vmul.f32 %v15194_v13, %v17859_v46  ;;  %v15033_v13 = vld [vmem:[%s20575_s4 + $0x30] ss:$12 sps:$4 sm:$0xff]  }
 0x479   :  { %v15196_v18 = vpop.eup %15195 }
 0x47a   :  { %v6047_v60 = vpop.xlane.xlu0 %6046  ;;  %v6044_v10 = vpop.xlane.xlu1 %6043  ;;  %13802 = vmatmul.mubr.msk.bf16.vlgmr.msra.gmra.mrb[84].mxu1 %vm5852_vm3, %v6120_v0  ;;  %v6102_v61 = vmul.f32 %v15196_v18, %v17865_v8  ;;  %v15039_v0 = vld [vmem:[%s20575_s4 + $0x4c] ss:$12 sps:$4 sm:$0xff]   ;;  %v15040_v18 = vld [vmem:[%s20575_s4 + $0x50] ss:$12 sps:$4 sm:$0xff]  }
 0x47b   :  { %v15198_v37 = vpop.eup %15197  ;;  %13814 = vmatpush3.bf16.msra.mxu1 %v17634_v49  ;;  %15207 = vrcp.f32 %v6044_v10  ;;  %v20578_v10 = vmov 0  }
 0x47c   :  { %13815 = vmatprep.subr.bf16.mxu1 %v17637_v39  ;;  %v6121_v59 = vpack.c.bf16 %v6102_v61, %v6101_v14  ;;  %15209 = vrcp.f32 %v6047_v60  ;;  %v6103_v3 = vmul.f32 %v15198_v37, %v17869_v4  ;;  %v15043_v60 = vld [vmem:[%s20575_s4 + $0x64] ss:$12 sps:$4 sm:$0xff]   ;;  %v15044_v14 = vld [vmem:[%s20575_s4 + $0x68] ss:$12 sps:$4 sm:$0xff]  }
 0x47d   :  { %v15200_v6 = vpop.eup %15199 }
 0x47e   :  { %v6053_v26 = vpop.xlane.xlu0 %6052  ;;  %v6050_v50 = vpop.xlane.xlu1 %6049  ;;  %v6104_v7 = vmul.f32 %v15200_v6, %v17875_v11  ;;  %13809 = vmatprep.mubr.msk.bf16.mxu0 %vm5852_vm3, %v6121_v59 }
 0x47f   :  { %v15202_v46 = vpop.eup %15201  ;;  %13816 = vmatpush3.bf16.msra.mxu1 %v17637_v39  ;;  %15211 = vrcp.f32 %v6050_v50  ;;  %v15041_v50 = vld [vmem:[%s20575_s4 + $0x60] ss:$12 sps:$4 sm:$0xff]  }
 0x480   :  { %13829 = vmatprep.subr.bf16.mxu1 %v17643_v45  ;;  %v6122_v49 = vpack.c.bf16 %v6104_v7, %v6103_v3  ;;  %15213 = vrcp.f32 %v6053_v26  ;;  %v6105_v43 = vmul.f32 %v15202_v46, %v17879_v35  ;;  %v15047_v7 = vld [vmem:[%s20575_s4 + $0x7c] ss:$12 sps:$4 sm:$0xff]   ;;  %v15048_v46 = vld [vmem:[%s20575_s4 + $0x80] ss:$12 sps:$4 sm:$0xff]  }
 0x481   :  { %v15204_v8 = vpop.eup %15203 }
 0x482   :  { %v6059_v15 = vpop.xlane.xlu0 %6058  ;;  %v6056_v38 = vpop.xlane.xlu1 %6055  ;;  %13810 = vmatmul.mubr.msk.bf16.vlgmr.msra.gmra.mrb[160].mxu0 %vm5852_vm3, %v6122_v49  ;;  %v6106_v4 = vmul.f32 %v15204_v8, %v17885_v57  ;;  %v15045_v49 = vld [vmem:[%s20575_s4 + $0x78] ss:$12 sps:$4 sm:$0xff]  }
 0x483   :  { %v15206_v11 = vpop.eup %15205  ;;  %13822 = vmatpush3.bf16.msra.mxu0 %v17639_v36  ;;  %15215 = vrcp.f32 %v6056_v38 }
 0x484   :  { %13823 = vmatprep.subr.bf16.mxu0 %v17641_v48  ;;  %v6123_v39 = vpack.c.bf16 %v6106_v4, %v6105_v43  ;;  %15217 = vrcp.f32 %v6059_v15  ;;  %v6107_v19 = vmul.f32 %v15206_v11, %v17889_v47  ;;  %v15051_v15 = vld [vmem:[%s20575_s4 + $0x94] ss:$12 sps:$4 sm:$0xff]   ;;  %v15052_v43 = vld [vmem:[%s20575_s4 + $0x98] ss:$12 sps:$4 sm:$0xff]  }
 0x485   :  { %v15208_v56 = vpop.eup %15207 }
 0x486   :  { %v6065_v25 = vpop.xlane.xlu0 %6064  ;;  %v6062_v9 = vpop.xlane.xlu1 %6061  ;;  %v6108_v35 = vmul.f32 %v15208_v56, %v17895_v29  ;;  %13817 = vmatprep.mubr.msk.bf16.mxu1 %vm5852_vm3, %v6123_v39 }
 0x487   :  { %v15210_v57 = vpop.eup %15209  ;;  %13824 = vmatpush3.bf16.msra.mxu0 %v17641_v48  ;;  %15219 = vrcp.f32 %v6062_v9  ;;  %v15028_v48 = vld [vmem:[%s20575_s4 + $0x8] ss:$12 sps:$4 sm:$0xff]   ;;  %v15056_v9 = vld [vmem:[%s20575_s4 + $0xb0] ss:$12 sps:$4 sm:$0xff]  }
 0x488   :  { %15221 = vrcp.f32 %v6065_v25  ;;  %v6124_v36 = vpack.c.bf16 %v6108_v35, %v6107_v19  ;;  %6541 = vmatprep.subr.bf16.mxu0 %v15027_v27  ;;  %v6109_v41 = vmul.f32 %v15210_v57, %v17899_v34  ;;  %v15049_v27 = vld [vmem:[%s20575_s4 + $0x90] ss:$12 sps:$4 sm:$0xff]   ;;  %v15055_v25 = vld [vmem:[%s20575_s4 + $0xac] ss:$12 sps:$4 sm:$0xff]   ;;  %v15053_v19 = vld [vmem:[%s20575_s4 + $0xa8] ss:$12 sps:$4 sm:$0xff]  }
 0x489   :  { %v15212_v58 = vpop.eup %15211  ;;  %v15059_v57 = vld [vmem:[%s20575_s4 + $0xc4] ss:$12 sps:$4 sm:$0xff]  }
 0x48a   :  { %v6068_v51 = vpop.xlane.xlu1 %6067  ;;  %13818 = vmatmul.mubr.msk.bf16.vlgmr.msra.gmra.mrb[88].mxu1 %vm5852_vm3, %v6124_v36  ;;  %v6110_v47 = vmul.f32 %v15212_v58, %v17905_v21  ;;  %v15214_v55 = vpop.eup %15213  ;;  %v15060_v58 = vld [vmem:[%s20575_s4 + $0xc8] ss:$12 sps:$4 sm:$0xff]  }
 0x48b   :  { %15223 = vrcp.f32 %v6068_v51  ;;  %13830 = vmatpush3.bf16.msra.mxu1 %v17643_v45  ;;  %v6111_v44 = vmul.f32 %v15214_v55, %v17907_v53  ;;  %v15025_v45 = vld [vmem:[%s20575_s4] ss:$12 sps:$4 sm:$0xff]  }
 0x48c   :  { %13831 = vmatprep.subr.bf16.mxu1 %v17648_v63  ;;  %v6125_v29 = vpack.c.bf16 %v6110_v47, %v6109_v41  ;;  %v15057_v55 = vld [vmem:[%s20575_s4 + $0xc0] ss:$12 sps:$4 sm:$0xff]  }
 0x48d   :  { %v15216_v24 = vpop.eup %15215 }
 0x48e   :  { %v6112_v17 = vmul.f32 %v15216_v24, %v17913_v2  ;;  %13825 = vmatprep.mubr.msk.bf16.mxu0 %vm5852_vm3, %v6125_v29  ;;  %v15218_v34 = vpop.eup %15217  ;;  %v15064_v24 = vld [vmem:[%s20575_s4 + $0xe0] ss:$12 sps:$4 sm:$0xff]  }
 0x48f   :  { %13832 = vmatpush3.bf16.msra.mxu1 %v17648_v63  ;;  %v6113_v53 = vmul.f32 %v15218_v34, %v17915_v52  ;;  %v15029_v63 = vld [vmem:[%s20575_s4 + $0x18] ss:$12 sps:$4 sm:$0xff]   ;;  %v15067_v34 = vld [vmem:[%s20575_s4 + $0xf4] ss:$12 sps:$4 sm:$0xff]  }
 0x490   :  { %v6126_v21 = vpack.c.bf16 %v6112_v17, %v6111_v44  ;;  %13837 = vmatprep.subr.bf16.mxu1 %v15028_v48  ;;  %v15061_v44 = vld [vmem:[%s20575_s4 + $0xd8] ss:$12 sps:$4 sm:$0xff]  }
 0x491   :  { %v15220_v31 = vpop.eup %15219 }
 0x492   :  { %v15222_v32 = vpop.eup %15221  ;;  %13826 = vmatmul.mubr.msk.bf16.vlgmr.msra.gmra.mrb[164].mxu0 %vm5852_vm3, %v6126_v21  ;;  %v6114_v2 = vmul.f32 %v15220_v31, %v17921_v23  ;;  %v15032_v23 = vld [vmem:[%s20575_s4 + $0x20] ss:$12 sps:$4 sm:$0xff]   ;;  %v15068_v21 = vld [vmem:[%s20575_s4 + $0xf8] ss:$12 sps:$4 sm:$0xff]  }
 0x493   :  { %6542 = vmatpush1.bf16.msra.mxu0 %v15025_v45  ;;  %v6115_v5 = vmul.f32 %v15222_v32, %v17923_v12  ;;  %v15036_v12 = vld [vmem:[%s20575_s4 + $0x38] ss:$12 sps:$4 sm:$0xff]   ;;  %6573 = vmatprep.mubr.bf16.mxu0 %v20578_v10 }
 0x494   :  { %v6127_v20 = vpack.c.bf16 %v6114_v2, %v6113_v53  ;;  %6543 = vmatprep.subr.bf16.mxu0 %v15031_v54  ;;  %v15065_v53 = vld [vmem:[%s20575_s4 + $0xf0] ss:$12 sps:$4 sm:$0xff]  }
 0x495   :  { %v15224_v30 = vpop.eup %15223 }
 0x496   :  { %v6116_v16 = vmul.f32 %v15224_v30, %v17929_v40  ;;  %13833 = vmatprep.mubr.msk.bf16.mxu1 %vm5852_vm3, %v6127_v20  ;;  %v15037_v40 = vld [vmem:[%s20575_s4 + $0x48] ss:$12 sps:$4 sm:$0xff]   ;;  %v15072_v30 = vld [vmem:[%s20575_s4 + $0x110] ss:$12 sps:$4 sm:$0xff]  }
 0x497   :  { %6544 = vmatpush1.bf16.msra.mxu0 %v15029_v63  ;;  %v15071_v63 = vld [vmem:[%s20575_s4 + $0x10c] ss:$12 sps:$4 sm:$0xff]   ;;  %v15069_v20 = vld [vmem:[%s20575_s4 + $0x108] ss:$12 sps:$4 sm:$0xff]  }
 0x498   :  { %v6128_v52 = vpack.c.bf16 %v6116_v16, %v6115_v5  ;;  %6545 = vmatprep.subr.bf16.mxu0 %v15035_v33  ;;  %v15075_v5 = vld [vmem:[%s20575_s4 + $0x124] ss:$12 sps:$4 sm:$0xff]  }
 0x49a   :  { %13834 = vmatmul.mubr.msk.bf16.vlgmr.msra.gmra.mrb[92].mxu1 %vm5852_vm3, %v6128_v52  ;;  %v15076_v52 = vld [vmem:[%s20575_s4 + $0x128] ss:$12 sps:$4 sm:$0xff]  }
 0x49b   :  { %13838 = vmatpush3.bf16.msra.mxu1 %v15028_v48  ;;  %6546 = vmatpush1.bf16.msra.mxu0 %v15033_v13  ;;  %v15063_v48 = vld [vmem:[%s20575_s4 + $0xdc] ss:$12 sps:$4 sm:$0xff]  }
 0x49c   :  { %13839 = vmatprep.subr.bf16.mxu1 %v15032_v23  ;;  %6547 = vmatprep.subr.bf16.mxu0 %v15039_v0 }
 0x49f   :  { %13840 = vmatpush3.bf16.msra.mxu1 %v15032_v23  ;;  %6548 = vmatpush1.bf16.msra.mxu0 %v15037_v40  ;;  %v15073_v40 = vld [vmem:[%s20575_s4 + $0x120] ss:$12 sps:$4 sm:$0xff]  }
 0x4a0   :  { %13841 = vmatprep.subr.bf16.mxu1 %v15036_v12  ;;  %6713 = vmatprep.subr.bf16.mxu0 %v15043_v60  ;;  %v15080_v60 = vld [vmem:[%s20575_s4 + $0x140] ss:$12 sps:$4 sm:$0xff]  }
 0x4a3   :  { %13842 = vmatpush3.bf16.msra.mxu1 %v15036_v12 }
 0x4a4   :  { %13843 = vmatprep.subr.bf16.mxu1 %v15040_v18 }
 0x4a7   :  { %13844 = vmatpush3.bf16.msra.mxu1 %v15040_v18  ;;  %v15079_v18 = vld [vmem:[%s20575_s4 + $0x13c] ss:$12 sps:$4 sm:$0xff]  }
 0x4a8   :  { %13849 = vmatprep.subr.bf16.mxu1 %v15044_v14 }
 0x545   :  { %v13795_v61 = vpop.f32.mrb[156].mxu0 }
 0x546   :  { %v6169_v37 = vpop.f32.mrb[157].mxu0 }
 0x547   :  { %v13796_v59 = vpop.f32.mrb[158].mxu0 }
 0x548   :  { %v6460_v6 = vpack.c.bf16 %v13796_v59, %v13795_v61  ;;  %v6172_v26 = vpop.f32.mrb[159].mxu0  ;;  %v15077_v61 = vld [vmem:[%s20575_s4 + $0x138] ss:$12 sps:$4 sm:$0xff]   ;;  %v15083_v59 = vld [vmem:[%s20575_s4 + $0x154] ss:$12 sps:$4 sm:$0xff]  }
 0x549   :  { %v6459_v3 = vpack.c.bf16 %v6172_v26, %v6169_v37  ;;  %v15084_v26 = vld [vmem:[%s20575_s4 + $0x158] ss:$12 sps:$4 sm:$0xff]  }
 0x54b   :  { %11699 = vmatmul.mubr.msk.bf16.vlgmr.msra.gmra.mrb[168].mxu0 %vm5453_vm0, %v6459_v3  ;;  %13845 = vmatprep.mubr.msk.bf16.mxu1 %vm5453_vm0, %v6459_v3 }
 0x54c   :  { %6714 = vmatpush1.bf16.msra.mxu0 %v15041_v50  ;;  %13846 = vmatmul.mubr.msk.bf16.vlgmr.msra.gmra.mrb[96].mxu1 %vm5453_vm0, %v6460_v6 }
 0x54d   :  { %13850 = vmatpush3.bf16.msra.mxu1 %v15044_v14  ;;  %v13803_v8 = vpop.f32.mrb[84].mxu1  ;;  %6715 = vmatprep.subr.bf16.mxu0 %v15047_v7 }
 0x54e   :  { %v6224_v38 = vpop.f32.mrb[85].mxu1  ;;  %13851 = vmatprep.subr.bf16.mxu1 %v15048_v46  ;;  %6583 = vmatprep.mubr.bf16.mxu0 %v20578_v10 }
 0x54f   :  { %v13804_v4 = vpop.f32.mrb[86].mxu1 }
 0x550   :  { %v6462_v11 = vpack.c.bf16 %v13804_v4, %v13803_v8  ;;  %6716 = vmatpush1.bf16.msra.mxu0 %v15045_v49  ;;  %v6227_v39 = vpop.f32.mrb[87].mxu1  ;;  %v15087_v49 = vld [vmem:[%s20575_s4 + $0x16c] ss:$12 sps:$4 sm:$0xff]   ;;  %v15088_v8 = vld [vmem:[%s20575_s4 + $0x170] ss:$12 sps:$4 sm:$0xff]  }
 0x551   :  { %v6461_v56 = vpack.c.bf16 %v6227_v39, %v6224_v38  ;;  %13852 = vmatpush3.bf16.msra.mxu1 %v15048_v46  ;;  %6717 = vmatprep.subr.bf16.mxu0 %v15051_v15  ;;  %v15081_v46 = vld [vmem:[%s20575_s4 + $0x150] ss:$12 sps:$4 sm:$0xff]   ;;  %v15085_v15 = vld [vmem:[%s20575_s4 + $0x168] ss:$12 sps:$4 sm:$0xff]   ;;  %v15089_v4 = vld [vmem:[%s20575_s4 + $0x180] ss:$12 sps:$4 sm:$0xff]  }
 0x552   :  { %13853 = vmatprep.subr.bf16.mxu1 %v15052_v43  ;;  %v15091_v38 = vld [vmem:[%s20575_s4 + $0x184] ss:$12 sps:$4 sm:$0xff]   ;;  %v15096_v39 = vld [vmem:[%s20575_s4 + $0x1a0] ss:$12 sps:$4 sm:$0xff]  }
 0x553   :  { %11700 = vmatmul.mubr.msk.bf16.gmra.mrb[172].mxu0 %vm5453_vm0, %v6460_v6  ;;  %13857 = vmatprep.mubr.msk.bf16.mxu1 %vm5453_vm0, %v6461_v56 }
 0x554   :  { %6718 = vmatpush1.bf16.msra.mxu0 %v15049_v27  ;;  %6745 = vmatprep.mubr.bf16.mxu0 %v20578_v10  ;;  %v15093_v27 = vld [vmem:[%s20575_s4 + $0x198] ss:$12 sps:$4 sm:$0xff]  }
 0x555   :  { %13854 = vmatpush3.bf16.msra.mxu1 %v15052_v43  ;;  %v13811_v35 = vpop.f32.mrb[160].mxu0  ;;  %6719 = vmatprep.subr.bf16.mxu0 %v15055_v25  ;;  %v15092_v43 = vld [vmem:[%s20575_s4 + $0x188] ss:$12 sps:$4 sm:$0xff]   ;;  %v15100_v25 = vld [vmem:[%s20575_s4 + $0x1b8] ss:$12 sps:$4 sm:$0xff]  }
 0x556   :  { %v6279_v36 = vpop.f32.mrb[161].mxu0  ;;  %13855 = vmatprep.subr.bf16.mxu1 %v15056_v9 }
 0x557   :  { %v13812_v51 = vpop.f32.mrb[162].mxu0 }
 0x558   :  { %v18069_v41 = vpack.c.bf16 %v13812_v51, %v13811_v35  ;;  %6720 = vmatpush1.bf16.msra.mxu0 %v15053_v19  ;;  %v6282_v47 = vpop.f32.mrb[163].mxu0  ;;  %v15103_v19 = vld [vmem:[%s20575_s4 + $0x1cc] ss:$12 sps:$4 sm:$0xff]   ;;  %v15104_v35 = vld [vmem:[%s20575_s4 + $0x1d0] ss:$12 sps:$4 sm:$0xff]  }
 0x559   :  { %v6463_v29 = vpack.c.bf16 %v6282_v47, %v6279_v36  ;;  %13856 = vmatpush3.bf16.msra.mxu1 %v15056_v9  ;;  %6885 = vmatprep.subr.bf16.mxu0 %v15059_v57  ;;  %v15097_v9 = vld [vmem:[%s20575_s4 + $0x1b0] ss:$12 sps:$4 sm:$0xff]   ;;  %v15101_v57 = vld [vmem:[%s20575_s4 + $0x1c8] ss:$12 sps:$4 sm:$0xff]   ;;  %v15105_v51 = vld [vmem:[%s20575_s4 + $0x1e0] ss:$12 sps:$4 sm:$0xff]  }
 0x55a   :  { %13861 = vmatprep.subr.bf16.mxu1 %v15060_v58  ;;  %v15107_v36 = vld [vmem:[%s20575_s4 + $0x1e4] ss:$12 sps:$4 sm:$0xff]   ;;  %v15112_v47 = vld [vmem:[%s20575_s4 + $0x200] ss:$12 sps:$4 sm:$0xff]  }
 0x55b   :  { %11715 = vmatmul.mubr.msk.bf16.vlgmr.msra.gmra.mrb[168].mxu0 %vm5453_vm0, %v6461_v56  ;;  %v15099_v56 = vld [vmem:[%s20575_s4 + $0x1b4] ss:$12 sps:$4 sm:$0xff]  }
 0x55c   :  { %13858 = vmatmul.mubr.msk.bf16.vlgmr.msra.gmra.mrb[96].mxu1 %vm5453_vm0, %v6462_v11  ;;  %6886 = vmatpush1.bf16.msra.mxu0 %v15057_v55  ;;  %v15109_v55 = vld [vmem:[%s20575_s4 + $0x1f8] ss:$12 sps:$4 sm:$0xff]  }
 0x55d   :  { %13862 = vmatpush3.bf16.msra.mxu1 %v15060_v58  ;;  %13869 = vmatprep.mubr.msk.bf16.mxu1 %vm5453_vm0, %v6463_v29  ;;  %v13819_v17 = vpop.f32.mrb[88].mxu1  ;;  %v15108_v58 = vld [vmem:[%s20575_s4 + $0x1e8] ss:$12 sps:$4 sm:$0xff]  }
 0x55e   :  { %v6334_v45 = vpop.f32.mrb[89].mxu1  ;;  %6887 = vmatprep.subr.bf16.mxu0 %v15063_v48  ;;  %13863 = vmatprep.subr.bf16.mxu1 %v15064_v24  ;;  %v15116_v48 = vld [vmem:[%s20575_s4 + $0x218] ss:$12 sps:$4 sm:$0xff]  }
 0x55f   :  { %v13820_v54 = vpop.f32.mrb[90].mxu1  ;;  %6755 = vmatprep.mubr.bf16.mxu0 %v20578_v10 }
 0x560   :  { %v18093_v31 = vpack.c.bf16 %v13820_v54, %v13819_v17  ;;  %6888 = vmatpush1.bf16.msra.mxu0 %v15061_v44  ;;  %v6337_v32 = vpop.f32.mrb[91].mxu1  ;;  %v15119_v44 = vld [vmem:[%s20575_s4 + $0x22c] ss:$12 sps:$4 sm:$0xff]   ;;  %v15120_v17 = vld [vmem:[%s20575_s4 + $0x230] ss:$12 sps:$4 sm:$0xff]  }
 0x561   :  { %v18098_v2 = vpack.c.bf16 %v6337_v32, %v6334_v45  ;;  %13864 = vmatpush3.bf16.msra.mxu1 %v15064_v24  ;;  %6889 = vmatprep.subr.bf16.mxu0 %v15067_v34  ;;  %v15113_v24 = vld [vmem:[%s20575_s4 + $0x210] ss:$12 sps:$4 sm:$0xff]   ;;  %v15117_v34 = vld [vmem:[%s20575_s4 + $0x228] ss:$12 sps:$4 sm:$0xff]   ;;  %v15342_v45 = vld [vmem:[%s20572_s1 + $0x40] sm:$0xff]  }
 0x562   :  { %13865 = vmatprep.subr.bf16.mxu1 %v15068_v21  ;;  %v18267_v54 = vld [vmem:[%s20571_s0 + $0x38] ss:$12 sps:$4 sm:$0xff]   ;;  %v15345_v32 = vld [vmem:[%s20572_s1 + $0x48] sm:$0xff]  }
 0x563   :  { %11716 = vmatmul.mubr.msk.bf16.gmra.mrb[172].mxu0 %vm5453_vm0, %v6462_v11  ;;  %v15095_v11 = vld [vmem:[%s20575_s4 + $0x19c] ss:$12 sps:$4 sm:$0xff]  }
 0x564   :  { %6890 = vmatpush1.bf16.msra.mxu0 %v15065_v53  ;;  %6917 = vmatprep.mubr.bf16.mxu0 %v20578_v10  ;;  %v15346_v53 = vld [vmem:[%s20572_s1 + $0x88] sm:$0xff]  }
 0x565   :  { %13866 = vmatpush3.bf16.msra.mxu1 %v15068_v21  ;;  %v13827_v33 = vpop.f32.mrb[164].mxu0  ;;  %6891 = vmatprep.subr.bf16.mxu0 %v15071_v63  ;;  %v15343_v21 = vld [vmem:[%s20572_s1 + $0x80] sm:$0xff]  }
 0x566   :  { %v6389_v16 = vpop.f32.mrb[165].mxu0  ;;  %13867 = vmatprep.subr.bf16.mxu1 %v15072_v30  ;;  %v18288_v63 = vld [vmem:[%s20571_s0 + $0x34] ss:$12 sps:$4 sm:$0xff]  }
 0x567   :  { %v13828_v23 = vpop.f32.mrb[166].mxu0 }
 0x568   :  { %v18117_v13 = vpack.c.bf16 %v13828_v23, %v13827_v33  ;;  %6892 = vmatpush1.bf16.msra.mxu0 %v15069_v20  ;;  %v6392_v12 = vpop.f32.mrb[167].mxu0  ;;  %v15349_v20 = vld [vmem:[%s20572_s1 + $0x90] sm:$0xff]   ;;  %v15354_v23 = vld [vmem:[%s20572_s1 + $0x60] sm:$0xff]  }
 0x569   :  { %v18122_v0 = vpack.c.bf16 %v6392_v12, %v6389_v16  ;;  %13868 = vmatpush3.bf16.msra.mxu1 %v15072_v30  ;;  %7057 = vmatprep.subr.bf16.mxu0 %v15075_v5  ;;  %v15348_v30 = vld [vmem:[%s20572_s1 + $0x50] sm:$0xff]   ;;  %v15351_v5 = vld [vmem:[%s20572_s1 + $0x58] sm:$0xff]   ;;  %v15356_v12 = vld [vmem:[%s20572_s1 + $0x20] sm:$0xff]  }
 0x56a   :  { %13873 = vmatprep.subr.bf16.mxu1 %v15076_v52  ;;  %v15350_v33 = vld [vmem:[%s20572_s1 + $0x10] sm:$0xff]   ;;  %v15352_v16 = vld [vmem:[%s20572_s1 + $0x98] sm:$0xff]  }
 0x56b   :  { %11731 = vmatmul.mubr.msk.bf16.vlgmr.msra.gmra.mrb[168].mxu0 %vm5453_vm0, %v6463_v29  ;;  %v15115_v29 = vld [vmem:[%s20575_s4 + $0x214] ss:$12 sps:$4 sm:$0xff]  }
 0x56c   :  { %13870 = vmatmul.mubr.msk.bf16.vlgmr.msra.gmra.mrb[96].mxu1 %vm5453_vm0, %v18069_v41  ;;  %7058 = vmatpush1.bf16.msra.mxu0 %v15073_v40  ;;  %v15357_v40 = vld [vmem:[%s20572_s1 + $0x68] sm:$0xff]  }
 0x56d   :  { %v13835_v14 = vpop.f32.mrb[92].mxu1  ;;  %13874 = vmatpush3.bf16.msra.mxu1 %v15076_v52  ;;  %13881 = vmatprep.mubr.msk.bf16.mxu1 %vm5453_vm0, %v18098_v2  ;;  %v15353_v52 = vld [vmem:[%s20572_s1 + $0x18] sm:$0xff]  }
 0x56e   :  { %v6444_v37 = vpop.f32.mrb[93].mxu1  ;;  %7059 = vmatprep.subr.bf16.mxu0 %v15079_v18  ;;  %13875 = vmatprep.subr.bf16.mxu1 %v15080_v60  ;;  %v15359_v18 = vld [vmem:[%s20572_s1 + $0x28] sm:$0xff]  }
 0x56f   :  { %v13836_v6 = vpop.f32.mrb[94].mxu1  ;;  %6927 = vmatprep.mubr.bf16.mxu0 %v20578_v10 }
 0x570   :  { %v18144_v50 = vpack.c.bf16 %v13836_v6, %v13835_v14  ;;  %v6447_v3 = vpop.f32.mrb[95].mxu1  ;;  %7060 = vmatpush1.bf16.msra.mxu0 %v15077_v61  ;;  %v15361_v14 = vld [vmem:[%s20572_s1 + $0xb0] sm:$0xff]  }
 0x571   :  { %v18147_v7 = vpack.c.bf16 %v6447_v3, %v6444_v37  ;;  %13876 = vmatpush3.bf16.msra.mxu1 %v15080_v60  ;;  %7061 = vmatprep.subr.bf16.mxu0 %v15083_v59  ;;  %v15360_v60 = vld [vmem:[%s20572_s1 + $0x70] sm:$0xff]   ;;  %v15363_v37 = vld [vmem:[%s20572_s1 + $0x78] sm:$0xff]   ;;  %v15366_v3 = vld [vmem:[%s20572_s1 + $0x100] sm:$0xff]  }
 0x572   :  { %13877 = vmatprep.subr.bf16.mxu1 %v15084_v26  ;;  %v15362_v61 = vld [vmem:[%s20572_s1 + $0x30] sm:$0xff]   ;;  %v15364_v59 = vld [vmem:[%s20572_s1 + $0xb8] sm:$0xff]  }
 0x573   :  { %11732 = vmatmul.mubr.msk.bf16.gmra.mrb[172].mxu0 %vm5453_vm0, %v18069_v41  ;;  %v15111_v41 = vld [vmem:[%s20575_s4 + $0x1fc] ss:$12 sps:$4 sm:$0xff]  }
 0x574   :  { %7062 = vmatpush1.bf16.msra.mxu0 %v15081_v46  ;;  %7089 = vmatprep.mubr.bf16.mxu0 %v20578_v10  ;;  %v18347_v6 = vld [vmem:[%s20571_s0 + $0x30] ss:$12 sps:$4 sm:$0xff]   ;;  %v18366_v46 = vld [vmem:[%s20571_s0 + $0x4c] ss:$12 sps:$4 sm:$0xff]  }
 0x575   :  { %13878 = vmatpush3.bf16.msra.mxu1 %v15084_v26  ;;  %7063 = vmatprep.subr.bf16.mxu0 %v15087_v49  ;;  %v15365_v26 = vld [vmem:[%s20572_s1 + $0x38] sm:$0xff]   ;;  %v15368_v49 = vld [vmem:[%s20572_s1 + $0xc0] sm:$0xff]  }
 0x576   :  { %13879 = vmatprep.subr.bf16.mxu1 %v15088_v8 }
 0x578   :  { %7064 = vmatpush1.bf16.msra.mxu0 %v15085_v15  ;;  %v15370_v15 = vld [vmem:[%s20572_s1 + $0x148] sm:$0xff]  }
 0x579   :  { %13880 = vmatpush3.bf16.msra.mxu1 %v15088_v8  ;;  %7229 = vmatprep.subr.bf16.mxu0 %v15091_v38  ;;  %v15369_v8 = vld [vmem:[%s20572_s1 + $0x108] sm:$0xff]  }
 0x57a   :  { %13885 = vmatprep.subr.bf16.mxu1 %v15092_v43  ;;  %v18383_v38 = vld [vmem:[%s20571_s0 + $0x48] ss:$12 sps:$4 sm:$0xff]  }
 0x57b   :  { %11747 = vmatmul.mubr.msk.bf16.vlgmr.msra.gmra.mrb[168].mxu0 %vm5453_vm0, %v18098_v2  ;;  %v15347_v2 = vld [vmem:[%s20572_s1 + $0x8] sm:$0xff]  }
 0x57c   :  { %13882 = vmatmul.mubr.msk.bf16.vlgmr.msra.gmra.mrb[96].mxu1 %vm5453_vm0, %v18093_v31  ;;  %7230 = vmatpush1.bf16.msra.mxu0 %v15089_v4  ;;  %v15372_v4 = vld [vmem:[%s20572_s1 + $0x110] sm:$0xff]  }
 0x57d   :  { %13886 = vmatpush3.bf16.msra.mxu1 %v15092_v43  ;;  %13893 = vmatprep.mubr.msk.bf16.mxu1 %vm5453_vm0, %v18122_v0  ;;  %v15371_v43 = vld [vmem:[%s20572_s1 + $0xc8] sm:$0xff]  }
 0x57e   :  { %7231 = vmatprep.subr.bf16.mxu0 %v15095_v11  ;;  %13887 = vmatprep.subr.bf16.mxu1 %v15096_v39  ;;  %v15373_v11 = vld [vmem:[%s20572_s1 + $0x150] sm:$0xff]  }
 0x57f   :  { %7099 = vmatprep.mubr.bf16.mxu0 %v20578_v10 }
 0x580   :  { %7232 = vmatpush1.bf16.msra.mxu0 %v15093_v27  ;;  %v15375_v27 = vld [vmem:[%s20572_s1 + $0x118] sm:$0xff]  }
 0x581   :  { %13888 = vmatpush3.bf16.msra.mxu1 %v15096_v39  ;;  %7233 = vmatprep.subr.bf16.mxu0 %v15099_v56  ;;  %v15374_v39 = vld [vmem:[%s20572_s1 + $0xd0] sm:$0xff]   ;;  %v15376_v56 = vld [vmem:[%s20572_s1 + $0x158] sm:$0xff]  }
 0x582   :  { %13889 = vmatprep.subr.bf16.mxu1 %v15100_v25 }
 0x583   :  { %11748 = vmatmul.mubr.msk.bf16.gmra.mrb[172].mxu0 %vm5453_vm0, %v18093_v31  ;;  %v15344_v31 = vld [vmem:[%s20572_s1] sm:$0xff]  }
 0x584   :  { %7234 = vmatpush1.bf16.msra.mxu0 %v15097_v9  ;;  %7261 = vmatprep.mubr.bf16.mxu0 %v20578_v10  ;;  %v15378_v9 = vld [vmem:[%s20572_s1 + $0x120] sm:$0xff]  }
 0x585   :  { %13890 = vmatpush3.bf16.msra.mxu1 %v15100_v25  ;;  %7235 = vmatprep.subr.bf16.mxu0 %v15103_v19  ;;  %v15377_v25 = vld [vmem:[%s20572_s1 + $0xd8] sm:$0xff]   ;;  %v15379_v19 = vld [vmem:[%s20572_s1 + $0x160] sm:$0xff]  }
 0x586   :  { %13891 = vmatprep.subr.bf16.mxu1 %v15104_v35 }
 0x588   :  { %7236 = vmatpush1.bf16.msra.mxu0 %v15101_v57  ;;  %v15381_v57 = vld [vmem:[%s20572_s1 + $0x128] sm:$0xff]  }
 0x589   :  { %13892 = vmatpush3.bf16.msra.mxu1 %v15104_v35  ;;  %7401 = vmatprep.subr.bf16.mxu0 %v15107_v36  ;;  %v15380_v35 = vld [vmem:[%s20572_s1 + $0xe0] sm:$0xff]   ;;  %v15382_v36 = vld [vmem:[%s20572_s1 + $0x168] sm:$0xff]  }
 0x58a   :  { %13897 = vmatprep.subr.bf16.mxu1 %v15108_v58 }
 0x58b   :  { %11763 = vmatmul.mubr.msk.bf16.vlgmr.msra.gmra.mrb[168].mxu0 %vm5453_vm0, %v18122_v0  ;;  %v15358_v0 = vld [vmem:[%s20572_s1 + $0xa8] sm:$0xff]  }
 0x58c   :  { %13894 = vmatmul.mubr.msk.bf16.vlgmr.msra.gmra.mrb[96].mxu1 %vm5453_vm0, %v18117_v13  ;;  %7402 = vmatpush1.bf16.msra.mxu0 %v15105_v51  ;;  %v15384_v51 = vld [vmem:[%s20572_s1 + $0x130] sm:$0xff]  }
 0x58d   :  { %13898 = vmatpush3.bf16.msra.mxu1 %v15108_v58  ;;  %13905 = vmatprep.mubr.msk.bf16.mxu1 %vm5453_vm0, %v18147_v7  ;;  %v15383_v58 = vld [vmem:[%s20572_s1 + $0xe8] sm:$0xff]  }
 0x58e   :  { %7403 = vmatprep.subr.bf16.mxu0 %v15111_v41  ;;  %13899 = vmatprep.subr.bf16.mxu1 %v15112_v47  ;;  %v15385_v41 = vld [vmem:[%s20572_s1 + $0x170] sm:$0xff]  }
 0x58f   :  { %7271 = vmatprep.mubr.bf16.mxu0 %v20578_v10 }
 0x590   :  { %7404 = vmatpush1.bf16.msra.mxu0 %v15109_v55  ;;  %v15387_v55 = vld [vmem:[%s20572_s1 + $0x138] sm:$0xff]  }
 0x591   :  { %13900 = vmatpush3.bf16.msra.mxu1 %v15112_v47  ;;  %7405 = vmatprep.subr.bf16.mxu0 %v15115_v29  ;;  %v15386_v47 = vld [vmem:[%s20572_s1 + $0xf0] sm:$0xff]   ;;  %v15388_v29 = vld [vmem:[%s20572_s1 + $0x178] sm:$0xff]  }
 0x592   :  { %13901 = vmatprep.subr.bf16.mxu1 %v15116_v48 }
 0x593   :  { %11764 = vmatmul.mubr.msk.bf16.gmra.mrb[172].mxu0 %vm5453_vm0, %v18117_v13  ;;  %v15355_v13 = vld [vmem:[%s20572_s1 + $0xa0] sm:$0xff]  }
 0x594   :  { %7406 = vmatpush1.bf16.msra.mxu0 %v15113_v24  ;;  %7433 = vmatprep.mubr.bf16.mxu0 %v20578_v10  ;;  %v15390_v24 = vld [vmem:[%s20572_s1 + $0x1c0] sm:$0xff]  }
 0x595   :  { %13902 = vmatpush3.bf16.msra.mxu1 %v15116_v48  ;;  %7407 = vmatprep.subr.bf16.mxu0 %v15119_v44  ;;  %v15389_v48 = vld [vmem:[%s20572_s1 + $0xf8] sm:$0xff]   ;;  %v15391_v44 = vld [vmem:[%s20572_s1 + $0x200] sm:$0xff]  }
 0x596   :  { %13903 = vmatprep.subr.bf16.mxu1 %v15120_v17 }
 0x598   :  { %7408 = vmatpush1.bf16.msra.mxu0 %v15117_v34  ;;  %v15393_v34 = vld [vmem:[%s20572_s1 + $0x1c8] sm:$0xff]  }
 0x599   :  { %13904 = vmatpush3.bf16.msra.mxu1 %v15120_v17  ;;  %12613 = vmatprep.subr.bf16.mxu0 %v15342_v45  ;;  %v15392_v17 = vld [vmem:[%s20572_s1 + $0x180] sm:$0xff]   ;;  %v15394_v45 = vld [vmem:[%s20572_s1 + $0x208] sm:$0xff]  }
 0x59a   :  { %13909 = vmatprep.subr.bf16.mxu1 %v15343_v21 }
 0x59b   :  { %11779 = vmatmul.mubr.msk.bf16.vlgmr.msra.gmra.mrb[168].mxu0 %vm5453_vm0, %v18147_v7  ;;  %v15367_v7 = vld [vmem:[%s20572_s1 + $0x140] sm:$0xff]  }
 0x59c   :  { %13906 = vmatmul.mubr.msk.bf16.vlgmr.msra.gmra.mrb[96].mxu1 %vm5453_vm0, %v18144_v50  ;;  %12614 = vmatpush3.bf16.msra.mxu0 %v15344_v31  ;;  %v15396_v31 = vld [vmem:[%s20572_s1 + $0x1d0] sm:$0xff]  }
 0x59d   :  { %13910 = vmatpush3.bf16.msra.mxu1 %v15343_v21  ;;  %12615 = vmatprep.subr.bf16.mxu0 %v15345_v32  ;;  %v15395_v21 = vld [vmem:[%s20572_s1 + $0x188] sm:$0xff]   ;;  %v15397_v32 = vld [vmem:[%s20572_s1 + $0x210] sm:$0xff]  }
 0x59e   :  { %13911 = vmatprep.subr.bf16.mxu1 %v15346_v53  ;;  %7443 = vmatprep.mubr.bf16.mxu0 %v20578_v10 }
 0x59f   :  { %13925 = vmatprep.mubr.bf16.mxu1 %v18267_v54 }
 0x5a0   :  { %12616 = vmatpush3.bf16.msra.mxu0 %v15347_v2  ;;  %v15399_v2 = vld [vmem:[%s20572_s1 + $0x1d8] sm:$0xff]  }
 0x5a1   :  { %13912 = vmatpush3.bf16.msra.mxu1 %v15346_v53  ;;  %12617 = vmatprep.subr.bf16.mxu0 %v15348_v30  ;;  %v15398_v53 = vld [vmem:[%s20572_s1 + $0x190] sm:$0xff]   ;;  %v15400_v30 = vld [vmem:[%s20572_s1 + $0x218] sm:$0xff]  }
 0x5a2   :  { %13913 = vmatprep.subr.bf16.mxu1 %v15349_v20 }
 0x5a3   :  { %11780 = vmatmul.mubr.msk.bf16.gmra.mrb[172].mxu0 %vm5453_vm0, %v18144_v50  ;;  %v18355_v50 = vld [vmem:[%s20571_s0 + $0x50] ss:$12 sps:$4 sm:$0xff]  }
 0x5a4   :  { %12618 = vmatpush3.bf16.msra.mxu0 %v15350_v33  ;;  %7676 = vmatprep.mubr.bf16.mxu0 %v18288_v63  ;;  %v15402_v33 = vld [vmem:[%s20572_s1 + $0x1e0] sm:$0xff]  }
 0x5a5   :  { %13914 = vmatpush3.bf16.msra.mxu1 %v15349_v20  ;;  %12619 = vmatprep.subr.bf16.mxu0 %v15351_v5  ;;  %v15401_v20 = vld [vmem:[%s20572_s1 + $0x198] sm:$0xff]   ;;  %v15403_v5 = vld [vmem:[%s20572_s1 + $0x220] sm:$0xff]  }
 0x5a6   :  { %13915 = vmatprep.subr.bf16.mxu1 %v15352_v16 }
 0x5a8   :  { %12620 = vmatpush3.bf16.msra.mxu0 %v15353_v52  ;;  %v15405_v52 = vld [vmem:[%s20572_s1 + $0x1e8] sm:$0xff]  }
 0x5a9   :  { %13916 = vmatpush3.bf16.msra.mxu1 %v15352_v16  ;;  %12621 = vmatprep.subr.bf16.mxu0 %v15354_v23  ;;  %v15404_v16 = vld [vmem:[%s20572_s1 + $0x1a0] sm:$0xff]   ;;  %v15406_v23 = vld [vmem:[%s20572_s1 + $0x228] sm:$0xff]  }
 0x5aa   :  { %13917 = vmatprep.subr.bf16.mxu1 %v15355_v13 }
 0x5ac   :  { %12622 = vmatpush3.bf16.msra.mxu0 %v15356_v12  ;;  %v15408_v12 = vld [vmem:[%s20572_s1 + $0x1f0] sm:$0xff]  }
 0x5ad   :  { %13918 = vmatpush3.bf16.msra.mxu1 %v15355_v13  ;;  %12623 = vmatprep.subr.bf16.mxu0 %v15357_v40  ;;  %v15407_v13 = vld [vmem:[%s20572_s1 + $0x1a8] sm:$0xff]   ;;  %v15409_v40 = vld [vmem:[%s20572_s1 + $0x230] sm:$0xff]  }
 0x5ae   :  { %13919 = vmatprep.subr.bf16.mxu1 %v15358_v0 }
 0x5b0   :  { %12624 = vmatpush3.bf16.msra.mxu0 %v15359_v18  ;;  %v15411_v18 = vld [vmem:[%s20572_s1 + $0x1f8] sm:$0xff]  }
 0x5b1   :  { %13920 = vmatpush3.bf16.msra.mxu1 %v15358_v0  ;;  %12625 = vmatprep.subr.bf16.mxu0 %v15360_v60  ;;  %v15410_v0 = vld [vmem:[%s20572_s1 + $0x1b0] sm:$0xff]   ;;  %v15412_v60 = vld [vmem:[%s20572_s1 + $0x238] sm:$0xff]  }
 0x5b2   :  { %13921 = vmatprep.subr.bf16.mxu1 %v15361_v14 }
 0x5b4   :  { %12626 = vmatpush3.bf16.msra.mxu0 %v15362_v61  ;;  %v15414_v61 = vld [vmem:[%s20572_s1 + $0x280] sm:$0xff]  }
 0x5b5   :  { %13922 = vmatpush3.bf16.msra.mxu1 %v15361_v14  ;;  %12627 = vmatprep.subr.bf16.mxu0 %v15363_v37  ;;  %v15413_v14 = vld [vmem:[%s20572_s1 + $0x1b8] sm:$0xff]   ;;  %v15415_v37 = vld [vmem:[%s20572_s1 + $0x2c0] sm:$0xff]  }
 0x5b6   :  { %13923 = vmatprep.subr.bf16.mxu1 %v15364_v59 }
 0x5b8   :  { %12628 = vmatpush3.bf16.msra.mxu0 %v15365_v26  ;;  %v15417_v26 = vld [vmem:[%s20572_s1 + $0x288] sm:$0xff]  }
 0x5b9   :  { %13924 = vmatpush3.bf16.msra.mxu1 %v15364_v59  ;;  %12651 = vmatprep.subr.bf16.mxu0 %v15366_v3  ;;  %v15416_v59 = vld [vmem:[%s20572_s1 + $0x240] sm:$0xff]   ;;  %v15418_v3 = vld [vmem:[%s20572_s1 + $0x2c8] sm:$0xff]  }
 0x5ba   :  { %13929 = vmatprep.subr.bf16.mxu1 %v15367_v7 }
 0x5bb   :  { %7677 = vmatmul.mubr.bf16.vlgmr.msra.gmra.mrb[176].mxu0 %v18347_v6 }
 0x5bc   :  { %12652 = vmatpush3.bf16.msra.mxu0 %v15368_v49  ;;  %13926 = vmatmul.mubr.bf16.vlgmr.msra.gmra.mrb[100].mxu1 %v18355_v50  ;;  %v15420_v49 = vld [vmem:[%s20572_s1 + $0x290] sm:$0xff]  }
 0x5bd   :  { %13930 = vmatpush3.bf16.msra.mxu1 %v15367_v7  ;;  %12653 = vmatprep.subr.bf16.mxu0 %v15369_v8  ;;  %v15419_v7 = vld [vmem:[%s20572_s1 + $0x248] sm:$0xff]   ;;  %v15421_v8 = vld [vmem:[%s20572_s1 + $0x2d0] sm:$0xff]  }
 0x5be   :  { %13931 = vmatprep.subr.bf16.mxu1 %v15370_v15  ;;  %7684 = vmatprep.mubr.bf16.mxu0 %v18366_v46 }
 0x5bf   :  { %13945 = vmatprep.mubr.bf16.mxu1 %v18267_v54 }
 0x5c0   :  { %12654 = vmatpush3.bf16.msra.mxu0 %v15371_v43  ;;  %v15423_v43 = vld [vmem:[%s20572_s1 + $0x298] sm:$0xff]  }
 0x5c1   :  { %13932 = vmatpush3.bf16.msra.mxu1 %v15370_v15  ;;  %12655 = vmatprep.subr.bf16.mxu0 %v15372_v4  ;;  %v15422_v15 = vld [vmem:[%s20572_s1 + $0x250] sm:$0xff]   ;;  %v15424_v4 = vld [vmem:[%s20572_s1 + $0x2d8] sm:$0xff]  }
 0x5c2   :  { %13933 = vmatprep.subr.bf16.mxu1 %v15373_v11 }
 0x5c3   :  { %7685 = vmatmul.mubr.bf16.gmra.mrb[180].mxu0 %v18383_v38 }
 0x5c4   :  { %12656 = vmatpush3.bf16.msra.mxu0 %v15374_v39  ;;  %7774 = vmatprep.mubr.bf16.mxu0 %v18288_v63  ;;  %v15426_v39 = vld [vmem:[%s20572_s1 + $0x2a0] sm:$0xff]  }
 0x5c5   :  { %13934 = vmatpush3.bf16.msra.mxu1 %v15373_v11  ;;  %12657 = vmatprep.subr.bf16.mxu0 %v15375_v27  ;;  %v15425_v11 = vld [vmem:[%s20572_s1 + $0x258] sm:$0xff]   ;;  %v15427_v27 = vld [vmem:[%s20572_s1 + $0x2e0] sm:$0xff]  }
 0x5c6   :  { %13935 = vmatprep.subr.bf16.mxu1 %v15376_v56 }
 0x5c8   :  { %12658 = vmatpush3.bf16.msra.mxu0 %v15377_v25  ;;  %v15429_v25 = vld [vmem:[%s20572_s1 + $0x2a8] sm:$0xff]  }
 0x5c9   :  { %13936 = vmatpush3.bf16.msra.mxu1 %v15376_v56  ;;  %12659 = vmatprep.subr.bf16.mxu0 %v15378_v9  ;;  %v15428_v56 = vld [vmem:[%s20572_s1 + $0x260] sm:$0xff]   ;;  %v15430_v9 = vld [vmem:[%s20572_s1 + $0x2e8] sm:$0xff]  }
 0x5ca   :  { %13937 = vmatprep.subr.bf16.mxu1 %v15379_v19 }
 0x5cc   :  { %12660 = vmatpush3.bf16.msra.mxu0 %v15380_v35  ;;  %v15432_v35 = vld [vmem:[%s20572_s1 + $0x2b0] sm:$0xff]  }
 0x5cd   :  { %13938 = vmatpush3.bf16.msra.mxu1 %v15379_v19  ;;  %12661 = vmatprep.subr.bf16.mxu0 %v15381_v57  ;;  %v15431_v19 = vld [vmem:[%s20572_s1 + $0x268] sm:$0xff]   ;;  %v15433_v57 = vld [vmem:[%s20572_s1 + $0x2f0] sm:$0xff]  }
 0x5ce   :  { %13939 = vmatprep.subr.bf16.mxu1 %v15382_v36 }
 0x5d0   :  { %12662 = vmatpush3.bf16.msra.mxu0 %v15383_v58  ;;  %v15435_v58 = vld [vmem:[%s20572_s1 + $0x2b8] sm:$0xff]  }
 0x5d1   :  { %13940 = vmatpush3.bf16.msra.mxu1 %v15382_v36  ;;  %12663 = vmatprep.subr.bf16.mxu0 %v15384_v51  ;;  %v15434_v36 = vld [vmem:[%s20572_s1 + $0x270] sm:$0xff]   ;;  %v15436_v51 = vld [vmem:[%s20572_s1 + $0x2f8] sm:$0xff]  }
 0x5d2   :  { %13941 = vmatprep.subr.bf16.mxu1 %v15385_v41 }
 0x5d4   :  { %12664 = vmatpush3.bf16.msra.mxu0 %v15386_v47  ;;  %v15438_v47 = vld [vmem:[%s20572_s1 + $0x340] sm:$0xff]  }
 0x5d5   :  { %13942 = vmatpush3.bf16.msra.mxu1 %v15385_v41  ;;  %12665 = vmatprep.subr.bf16.mxu0 %v15387_v55  ;;  %v15437_v41 = vld [vmem:[%s20572_s1 + $0x278] sm:$0xff]   ;;  %v15439_v55 = vld [vmem:[%s20572_s1 + $0x380] sm:$0xff]  }
 0x5d6   :  { %13943 = vmatprep.subr.bf16.mxu1 %v15388_v29 }
 0x5d8   :  { %12666 = vmatpush3.bf16.msra.mxu0 %v15389_v48  ;;  %v15441_v48 = vld [vmem:[%s20572_s1 + $0x348] sm:$0xff]  }
 0x5d9   :  { %13944 = vmatpush3.bf16.msra.mxu1 %v15388_v29  ;;  %12689 = vmatprep.subr.bf16.mxu0 %v15390_v24  ;;  %v15440_v29 = vld [vmem:[%s20572_s1 + $0x300] sm:$0xff]   ;;  %v15442_v24 = vld [vmem:[%s20572_s1 + $0x388] sm:$0xff]  }
 0x5da   :  { %13949 = vmatprep.subr.bf16.mxu1 %v15391_v44 }
 0x5db   :  { %7775 = vmatmul.mubr.bf16.vlgmr.msra.gmra.mrb[184].mxu0 %v18347_v6 }
 0x5dc   :  { %12690 = vmatpush3.bf16.msra.mxu0 %v15392_v17  ;;  %13946 = vmatmul.mubr.bf16.vlgmr.msra.gmra.mrb[104].mxu1 %v18355_v50  ;;  %v15444_v17 = vld [vmem:[%s20572_s1 + $0x350] sm:$0xff]  }
 0x5dd   :  { %13950 = vmatpush3.bf16.msra.mxu1 %v15391_v44  ;;  %12691 = vmatprep.subr.bf16.mxu0 %v15393_v34  ;;  %v15443_v44 = vld [vmem:[%s20572_s1 + $0x308] sm:$0xff]   ;;  %v15445_v34 = vld [vmem:[%s20572_s1 + $0x390] sm:$0xff]  }
 0x5de   :  { %13951 = vmatprep.subr.bf16.mxu1 %v15394_v45  ;;  %7782 = vmatprep.mubr.bf16.mxu0 %v18366_v46 }
 0x5df   :  { %13965 = vmatprep.mubr.bf16.mxu1 %v18267_v54 }
 0x5e0   :  { %12692 = vmatpush3.bf16.msra.mxu0 %v15395_v21  ;;  %v15447_v21 = vld [vmem:[%s20572_s1 + $0x358] sm:$0xff]  }
 0x5e1   :  { %13952 = vmatpush3.bf16.msra.mxu1 %v15394_v45  ;;  %12693 = vmatprep.subr.bf16.mxu0 %v15396_v31  ;;  %v15446_v45 = vld [vmem:[%s20572_s1 + $0x310] sm:$0xff]   ;;  %v15448_v31 = vld [vmem:[%s20572_s1 + $0x398] sm:$0xff]  }
 0x5e2   :  { %13953 = vmatprep.subr.bf16.mxu1 %v15397_v32 }
 0x5e3   :  { %7783 = vmatmul.mubr.bf16.gmra.mrb[188].mxu0 %v18383_v38 }
 0x5e4   :  { %12694 = vmatpush3.bf16.msra.mxu0 %v15398_v53  ;;  %7872 = vmatprep.mubr.bf16.mxu0 %v18288_v63  ;;  %v15450_v53 = vld [vmem:[%s20572_s1 + $0x360] sm:$0xff]  }
 0x5e5   :  { %13954 = vmatpush3.bf16.msra.mxu1 %v15397_v32  ;;  %12695 = vmatprep.subr.bf16.mxu0 %v15399_v2  ;;  %v15449_v32 = vld [vmem:[%s20572_s1 + $0x318] sm:$0xff]   ;;  %v15451_v2 = vld [vmem:[%s20572_s1 + $0x3a0] sm:$0xff]  }
 0x5e6   :  { %13955 = vmatprep.subr.bf16.mxu1 %v15400_v30 }
 0x5e8   :  { %12696 = vmatpush3.bf16.msra.mxu0 %v15401_v20  ;;  %v15453_v20 = vld [vmem:[%s20572_s1 + $0x368] sm:$0xff]  }
 0x5e9   :  { %13956 = vmatpush3.bf16.msra.mxu1 %v15400_v30  ;;  %12697 = vmatprep.subr.bf16.mxu0 %v15402_v33  ;;  %v15452_v30 = vld [vmem:[%s20572_s1 + $0x320] sm:$0xff]   ;;  %v15454_v33 = vld [vmem:[%s20572_s1 + $0x3a8] sm:$0xff]  }
 0x5ea   :  { %13957 = vmatprep.subr.bf16.mxu1 %v15403_v5 }
 0x5ec   :  { %12698 = vmatpush3.bf16.msra.mxu0 %v15404_v16  ;;  %v15456_v16 = vld [vmem:[%s20572_s1 + $0x370] sm:$0xff]  }
 0x5ed   :  { %13958 = vmatpush3.bf16.msra.mxu1 %v15403_v5  ;;  %12699 = vmatprep.subr.bf16.mxu0 %v15405_v52  ;;  %v15455_v5 = vld [vmem:[%s20572_s1 + $0x328] sm:$0xff]   ;;  %v15457_v52 = vld [vmem:[%s20572_s1 + $0x3b0] sm:$0xff]  }
 0x5ee   :  { %13959 = vmatprep.subr.bf16.mxu1 %v15406_v23 }
 0x5f0   :  { %12700 = vmatpush3.bf16.msra.mxu0 %v15407_v13  ;;  %v15459_v13 = vld [vmem:[%s20572_s1 + $0x378] sm:$0xff]  }
 0x5f1   :  { %13960 = vmatpush3.bf16.msra.mxu1 %v15406_v23  ;;  %12701 = vmatprep.subr.bf16.mxu0 %v15408_v12  ;;  %v15458_v23 = vld [vmem:[%s20572_s1 + $0x330] sm:$0xff]   ;;  %v15460_v12 = vld [vmem:[%s20572_s1 + $0x3b8] sm:$0xff]  }
 0x5f2   :  { %13961 = vmatprep.subr.bf16.mxu1 %v15409_v40 }
 0x5f4   :  { %12702 = vmatpush3.bf16.msra.mxu0 %v15410_v0  ;;  %v15462_v0 = vld [vmem:[%s20572_s1 + $0x400] sm:$0xff]  }
 0x5f5   :  { %13962 = vmatpush3.bf16.msra.mxu1 %v15409_v40  ;;  %12703 = vmatprep.subr.bf16.mxu0 %v15411_v18  ;;  %v15461_v40 = vld [vmem:[%s20572_s1 + $0x338] sm:$0xff]   ;;  %v15463_v18 = vld [vmem:[%s20572_s1 + $0x440] sm:$0xff]  }
 0x5f6   :  { %13963 = vmatprep.subr.bf16.mxu1 %v15412_v60 }
 0x5f8   :  { %12704 = vmatpush3.bf16.msra.mxu0 %v15413_v14  ;;  %v15465_v14 = vld [vmem:[%s20572_s1 + $0x408] sm:$0xff]  }
 0x5f9   :  { %13964 = vmatpush3.bf16.msra.mxu1 %v15412_v60  ;;  %12727 = vmatprep.subr.bf16.mxu0 %v15414_v61  ;;  %v15464_v60 = vld [vmem:[%s20572_s1 + $0x3c0] sm:$0xff]   ;;  %v15466_v61 = vld [vmem:[%s20572_s1 + $0x448] sm:$0xff]  }
 0x5fa   :  { %13969 = vmatprep.subr.bf16.mxu1 %v15415_v37 }
 0x5fb   :  { %7873 = vmatmul.mubr.bf16.vlgmr.msra.gmra.mrb[192].mxu0 %v18347_v6 }
 0x5fc   :  { %12728 = vmatpush3.bf16.msra.mxu0 %v15416_v59  ;;  %13966 = vmatmul.mubr.bf16.vlgmr.msra.gmra.mrb[108].mxu1 %v18355_v50  ;;  %v15468_v59 = vld [vmem:[%s20572_s1 + $0x410] sm:$0xff]  }
 0x5fd   :  { %13970 = vmatpush3.bf16.msra.mxu1 %v15415_v37  ;;  %12729 = vmatprep.subr.bf16.mxu0 %v15417_v26  ;;  %v15467_v37 = vld [vmem:[%s20572_s1 + $0x3c8] sm:$0xff]   ;;  %v15469_v26 = vld [vmem:[%s20572_s1 + $0x450] sm:$0xff]  }
 0x5fe   :  { %13971 = vmatprep.subr.bf16.mxu1 %v15418_v3  ;;  %7880 = vmatprep.mubr.bf16.mxu0 %v18366_v46 }
 0x5ff   :  { %13985 = vmatprep.mubr.bf16.mxu1 %v18267_v54 }
 0x600   :  { %12730 = vmatpush3.bf16.msra.mxu0 %v15419_v7  ;;  %v15471_v7 = vld [vmem:[%s20572_s1 + $0x418] sm:$0xff]  }
 0x601   :  { %13972 = vmatpush3.bf16.msra.mxu1 %v15418_v3  ;;  %12731 = vmatprep.subr.bf16.mxu0 %v15420_v49  ;;  %v15470_v3 = vld [vmem:[%s20572_s1 + $0x3d0] sm:$0xff]   ;;  %v15472_v49 = vld [vmem:[%s20572_s1 + $0x458] sm:$0xff]  }
 0x602   :  { %13973 = vmatprep.subr.bf16.mxu1 %v15421_v8 }
 0x603   :  { %7881 = vmatmul.mubr.bf16.gmra.mrb[196].mxu0 %v18383_v38 }
 0x604   :  { %12732 = vmatpush3.bf16.msra.mxu0 %v15422_v15  ;;  %7970 = vmatprep.mubr.bf16.mxu0 %v18288_v63  ;;  %v15474_v15 = vld [vmem:[%s20572_s1 + $0x420] sm:$0xff]  }
 0x605   :  { %13974 = vmatpush3.bf16.msra.mxu1 %v15421_v8  ;;  %12733 = vmatprep.subr.bf16.mxu0 %v15423_v43  ;;  %v15473_v8 = vld [vmem:[%s20572_s1 + $0x3d8] sm:$0xff]   ;;  %v15475_v43 = vld [vmem:[%s20572_s1 + $0x460] sm:$0xff]  }
 0x606   :  { %13975 = vmatprep.subr.bf16.mxu1 %v15424_v4 }
 0x608   :  { %12734 = vmatpush3.bf16.msra.mxu0 %v15425_v11  ;;  %v15477_v11 = vld [vmem:[%s20572_s1 + $0x428] sm:$0xff]  }
 0x609   :  { %13976 = vmatpush3.bf16.msra.mxu1 %v15424_v4  ;;  %12735 = vmatprep.subr.bf16.mxu0 %v15426_v39  ;;  %v15476_v4 = vld [vmem:[%s20572_s1 + $0x3e0] sm:$0xff]   ;;  %v15478_v39 = vld [vmem:[%s20572_s1 + $0x468] sm:$0xff]  }
 0x60a   :  { %13977 = vmatprep.subr.bf16.mxu1 %v15427_v27 }
 0x60c   :  { %12736 = vmatpush3.bf16.msra.mxu0 %v15428_v56  ;;  %v15480_v56 = vld [vmem:[%s20572_s1 + $0x430] sm:$0xff]  }
 0x60d   :  { %13978 = vmatpush3.bf16.msra.mxu1 %v15427_v27  ;;  %12737 = vmatprep.subr.bf16.mxu0 %v15429_v25  ;;  %v15479_v27 = vld [vmem:[%s20572_s1 + $0x3e8] sm:$0xff]   ;;  %v15481_v25 = vld [vmem:[%s20572_s1 + $0x470] sm:$0xff]  }
 0x60e   :  { %13979 = vmatprep.subr.bf16.mxu1 %v15430_v9 }
 0x610   :  { %12738 = vmatpush3.bf16.msra.mxu0 %v15431_v19  ;;  %v15483_v19 = vld [vmem:[%s20572_s1 + $0x438] sm:$0xff]  }
 0x611   :  { %13980 = vmatpush3.bf16.msra.mxu1 %v15430_v9  ;;  %12739 = vmatprep.subr.bf16.mxu0 %v15432_v35  ;;  %v15482_v9 = vld [vmem:[%s20572_s1 + $0x3f0] sm:$0xff]   ;;  %v15484_v35 = vld [vmem:[%s20572_s1 + $0x478] sm:$0xff]  }
 0x612   :  { %13981 = vmatprep.subr.bf16.mxu1 %v15433_v57 }
 0x614   :  { %12740 = vmatpush3.bf16.msra.mxu0 %v15434_v36  ;;  %v15486_v36 = vld [vmem:[%s20573_s2 + $0x40] sm:$0xff]  }
 0x615   :  { %13982 = vmatpush3.bf16.msra.mxu1 %v15433_v57  ;;  %12741 = vmatprep.subr.bf16.mxu0 %v15435_v58  ;;  %v15485_v57 = vld [vmem:[%s20572_s1 + $0x3f8] sm:$0xff]   ;;  %v15487_v58 = vld [vmem:[%s20573_s2 + $0x80] sm:$0xff]  }
 0x616   :  { %13983 = vmatprep.subr.bf16.mxu1 %v15436_v51 }
 0x618   :  { %12742 = vmatpush3.bf16.msra.mxu0 %v15437_v41  ;;  %v15489_v41 = vld [vmem:[%s20573_s2 + $0x48] sm:$0xff]  }
 0x619   :  { %13984 = vmatpush3.bf16.msra.mxu1 %v15436_v51  ;;  %12765 = vmatprep.subr.bf16.mxu0 %v15438_v47  ;;  %v15488_v51 = vld [vmem:[%s20573_s2] sm:$0xff]   ;;  %v15490_v47 = vld [vmem:[%s20573_s2 + $0x88] sm:$0xff]  }
 0x61a   :  { %13989 = vmatprep.subr.bf16.mxu1 %v15439_v55 }
 0x61b   :  { %7971 = vmatmul.mubr.bf16.vlgmr.msra.gmra.mrb[200].mxu0 %v18347_v6 }
 0x61c   :  { %12766 = vmatpush3.bf16.msra.mxu0 %v15440_v29  ;;  %13986 = vmatmul.mubr.bf16.vlgmr.msra.gmra.mrb[112].mxu1 %v18355_v50  ;;  %v15492_v29 = vld [vmem:[%s20573_s2 + $0x50] sm:$0xff]  }
 0x61d   :  { %13990 = vmatpush3.bf16.msra.mxu1 %v15439_v55  ;;  %12767 = vmatprep.subr.bf16.mxu0 %v15441_v48  ;;  %v15491_v55 = vld [vmem:[%s20573_s2 + $0x8] sm:$0xff]   ;;  %v15493_v48 = vld [vmem:[%s20573_s2 + $0x90] sm:$0xff]  }
 0x61e   :  { %13991 = vmatprep.subr.bf16.mxu1 %v15442_v24  ;;  %7978 = vmatprep.mubr.bf16.mxu0 %v18366_v46 }
 0x61f   :  { %14005 = vmatprep.mubr.bf16.mxu1 %v18267_v54 }
 0x620   :  { %12768 = vmatpush3.bf16.msra.mxu0 %v15443_v44  ;;  %v15495_v44 = vld [vmem:[%s20573_s2 + $0x58] sm:$0xff]  }
 0x621   :  { %13992 = vmatpush3.bf16.msra.mxu1 %v15442_v24  ;;  %12769 = vmatprep.subr.bf16.mxu0 %v15444_v17  ;;  %v15494_v24 = vld [vmem:[%s20573_s2 + $0x10] sm:$0xff]   ;;  %v15496_v17 = vld [vmem:[%s20573_s2 + $0x98] sm:$0xff]  }
 0x622   :  { %13993 = vmatprep.subr.bf16.mxu1 %v15445_v34 }
 0x623   :  { %7979 = vmatmul.mubr.bf16.gmra.mrb[204].mxu0 %v18383_v38 }
 0x624   :  { %12770 = vmatpush3.bf16.msra.mxu0 %v15446_v45  ;;  %8068 = vmatprep.mubr.bf16.mxu0 %v18288_v63  ;;  %v15497_v45 = vld [vmem:[%s20573_s2 + $0x18] sm:$0xff]  }
 0x625   :  { %13994 = vmatpush3.bf16.msra.mxu1 %v15445_v34  ;;  %12771 = vmatprep.subr.bf16.mxu0 %v15447_v21  ;;  %v7566_v34 = vsub.s32 0, %v17645_v22  ;;  %v985_v21 = vld [vmem:[%s20576_s5] sm:$0x7] }
 0x626   :  { %13995 = vmatprep.subr.bf16.mxu1 %v15448_v31 }
 0x628   :  { %12772 = vmatpush3.bf16.msra.mxu0 %v15449_v32  ;;  %v7570_v32 = vsub.s32 1, %v17645_v22 }
 0x629   :  { %13996 = vmatpush3.bf16.msra.mxu1 %v15448_v31  ;;  %12773 = vmatprep.subr.bf16.mxu0 %v15450_v53  ;;  %v7574_v31 = vsub.s32 2, %v17645_v22  ;;  %v15498_v53 = vld [vmem:[%s20573_s2 + $0x60] sm:$0xff]  }
 0x62a   :  { %13997 = vmatprep.subr.bf16.mxu1 %v15451_v2  ;;  %v18818_v22 = vrot.slane %v985_v21, %v7570_v32  ;;  %v15523_v32 = vld [vmem:[%s20573_s2 + $0x160] sm:$0xff]  }
 0x62c   :  { %12774 = vmatpush3.bf16.msra.mxu0 %v15452_v30  ;;  %v18811_v30 = vrot.slane %v985_v21, %v7566_v34  ;;  %v15519_v34 = vld [vmem:[%s20573_s2 + $0x118] sm:$0xff]  }
 0x62d   :  { %13998 = vmatpush3.bf16.msra.mxu1 %v15451_v2  ;;  %12775 = vmatprep.subr.bf16.mxu0 %v15453_v20  ;;  %v15499_v2 = vld [vmem:[%s20573_s2 + $0xa0] sm:$0xff]  }
 0x62e   :  { %13999 = vmatprep.subr.bf16.mxu1 %v15454_v33  ;;  %v15500_v20 = vld [vmem:[%s20573_s2 + $0x20] sm:$0xff]  }
 0x630   :  { %12776 = vmatpush3.bf16.msra.mxu0 %v15455_v5  ;;  %v15501_v5 = vld [vmem:[%s20573_s2 + $0x68] sm:$0xff]  }
 0x631   :  { %14000 = vmatpush3.bf16.msra.mxu1 %v15454_v33  ;;  %12777 = vmatprep.subr.bf16.mxu0 %v15456_v16  ;;  %v18816_v33 = vrot.slane %v985_v21, %v7574_v31  ;;  %v15521_v21 = vld [vmem:[%s20573_s2 + $0xd8] sm:$0xff]   ;;  %v15522_v31 = vld [vmem:[%s20573_s2 + $0x120] sm:$0xff]  }
 0x632   :  { %14001 = vmatprep.subr.bf16.mxu1 %v15457_v52 }
 0x634   :  { %12778 = vmatpush3.bf16.msra.mxu0 %v15458_v23 }
 0x635   :  { %14002 = vmatpush3.bf16.msra.mxu1 %v15457_v52  ;;  %12779 = vmatprep.subr.bf16.mxu0 %v15459_v13  ;;  %v15502_v52 = vld [vmem:[%s20573_s2 + $0xa8] sm:$0xff]  }
 0x636   :  { %14003 = vmatprep.subr.bf16.mxu1 %v15460_v12 }
 0x638   :  { %12780 = vmatpush3.bf16.msra.mxu0 %v15461_v40 }
 0x639   :  { %14004 = vmatpush3.bf16.msra.mxu1 %v15460_v12  ;;  %12803 = vmatprep.subr.bf16.mxu0 %v15462_v0 }
 0x63a   :  { %14009 = vmatprep.subr.bf16.mxu1 %v15463_v18 }
 0x63b   :  { %8069 = vmatmul.mubr.bf16.vlgmr.msra.gmra.mrb[208].mxu0 %v18347_v6 }
 0x63c   :  { %12804 = vmatpush3.bf16.msra.mxu0 %v15464_v60  ;;  %14006 = vmatmul.mubr.bf16.vlgmr.msra.gmra.mrb[116].mxu1 %v18355_v50  ;;  %v15503_v60 = vld [vmem:[%s20573_s2 + $0x28] sm:$0xff]  }
 0x63d   :  { %14010 = vmatpush3.bf16.msra.mxu1 %v15463_v18  ;;  %12805 = vmatprep.subr.bf16.mxu0 %v15465_v14 }
 0x63e   :  { %14011 = vmatprep.subr.bf16.mxu1 %v15466_v61  ;;  %8076 = vmatprep.mubr.bf16.mxu0 %v18366_v46 }
 0x63f   :  { %14025 = vmatprep.mubr.bf16.mxu1 %v18267_v54 }
 0x640   :  { %12806 = vmatpush3.bf16.msra.mxu0 %v15467_v37 }
 0x641   :  { %14012 = vmatpush3.bf16.msra.mxu1 %v15466_v61  ;;  %12807 = vmatprep.subr.bf16.mxu0 %v15468_v59 }
 0x642   :  { %14013 = vmatprep.subr.bf16.mxu1 %v15469_v26 }
 0x643   :  { %8077 = vmatmul.mubr.bf16.gmra.mrb[212].mxu0 %v18383_v38 }
 0x644   :  { %12808 = vmatpush3.bf16.msra.mxu0 %v15470_v3  ;;  %8166 = vmatprep.mubr.bf16.mxu0 %v18288_v63  ;;  %v15504_v3 = vld [vmem:[%s20573_s2 + $0x70] sm:$0xff]  }
 0x645   :  { %14014 = vmatpush3.bf16.msra.mxu1 %v15469_v26  ;;  %12809 = vmatprep.subr.bf16.mxu0 %v15471_v7 }
 0x646   :  { %14015 = vmatprep.subr.bf16.mxu1 %v15472_v49 }
 0x648   :  { %12810 = vmatpush3.bf16.msra.mxu0 %v15473_v8 }
 0x649   :  { %14016 = vmatpush3.bf16.msra.mxu1 %v15472_v49  ;;  %12811 = vmatprep.subr.bf16.mxu0 %v15474_v15  ;;  %v15505_v15 = vld [vmem:[%s20573_s2 + $0xb0] sm:$0xff]  }
 0x64a   :  { %14017 = vmatprep.subr.bf16.mxu1 %v15475_v43 }
 0x64c   :  { %12812 = vmatpush3.bf16.msra.mxu0 %v15476_v4  ;;  %v15506_v4 = vld [vmem:[%s20573_s2 + $0x30] sm:$0xff]  }
 0x64d   :  { %14018 = vmatpush3.bf16.msra.mxu1 %v15475_v43  ;;  %12813 = vmatprep.subr.bf16.mxu0 %v15477_v11  ;;  %v15507_v11 = vld [vmem:[%s20573_s2 + $0x78] sm:$0xff]  }
 0x64e   :  { %14019 = vmatprep.subr.bf16.mxu1 %v15478_v39 }
 0x650   :  { %12814 = vmatpush3.bf16.msra.mxu0 %v15479_v27  ;;  %v15508_v27 = vld [vmem:[%s20573_s2 + $0xb8] sm:$0xff]  }
 0x651   :  { %14020 = vmatpush3.bf16.msra.mxu1 %v15478_v39  ;;  %12815 = vmatprep.subr.bf16.mxu0 %v15480_v56 }
 0x652   :  { %14021 = vmatprep.subr.bf16.mxu1 %v15481_v25 }
 0x654   :  { %12816 = vmatpush3.bf16.msra.mxu0 %v15482_v9 }
 0x655   :  { %14022 = vmatpush3.bf16.msra.mxu1 %v15481_v25  ;;  %12817 = vmatprep.subr.bf16.mxu0 %v15483_v19  ;;  %v15509_v19 = vld [vmem:[%s20573_s2 + $0x38] sm:$0xff]  }
 0x656   :  { %14023 = vmatprep.subr.bf16.mxu1 %v15484_v35 }
 0x658   :  { %12818 = vmatpush3.bf16.msra.mxu0 %v15485_v57 }
 0x659   :  { %14024 = vmatpush3.bf16.msra.mxu1 %v15484_v35  ;;  %12841 = vmatprep.subr.bf16.mxu0 %v15486_v36 }
 0x65a   :  { %14029 = vmatprep.subr.bf16.mxu1 %v15487_v58 }
 0x65b   :  { %8167 = vmatmul.mubr.bf16.vlgmr.msra.gmra.mrb[216].mxu0 %v18347_v6 }
 0x65c   :  { %12842 = vmatpush3.bf16.msra.mxu0 %v15488_v51  ;;  %14026 = vmatmul.mubr.bf16.vlgmr.msra.gmra.mrb[120].mxu1 %v18355_v50 }
 0x65d   :  { %14030 = vmatpush3.bf16.msra.mxu1 %v15487_v58  ;;  %12843 = vmatprep.subr.bf16.mxu0 %v15489_v41  ;;  %v15510_v58 = vld [vmem:[%s20573_s2 + $0x100] sm:$0xff]  }
 0x65e   :  { %14031 = vmatprep.subr.bf16.mxu1 %v15490_v47  ;;  %8174 = vmatprep.mubr.bf16.mxu0 %v18366_v46  ;;  %v15511_v41 = vld [vmem:[%s20573_s2 + $0x140] sm:$0xff]  }
 0x65f   :  { %14045 = vmatprep.mubr.bf16.mxu1 %v18267_v54 }
 0x660   :  { %12844 = vmatpush3.bf16.msra.mxu0 %v15491_v55  ;;  %v15513_v55 = vld [vmem:[%s20573_s2 + $0x108] sm:$0xff]  }
 0x661   :  { %14032 = vmatpush3.bf16.msra.mxu1 %v15490_v47  ;;  %12845 = vmatprep.subr.bf16.mxu0 %v15492_v29  ;;  %v15512_v47 = vld [vmem:[%s20573_s2 + $0xc0] sm:$0xff]   ;;  %v15514_v29 = vld [vmem:[%s20573_s2 + $0x148] sm:$0xff]  }
 0x662   :  { %14033 = vmatprep.subr.bf16.mxu1 %v15493_v48 }
 0x663   :  { %8175 = vmatmul.mubr.bf16.gmra.mrb[220].mxu0 %v18383_v38 }
 0x664   :  { %12846 = vmatpush3.bf16.msra.mxu0 %v15494_v24  ;;  %8264 = vmatprep.mubr.bf16.mxu0 %v18288_v63  ;;  %v15516_v24 = vld [vmem:[%s20573_s2 + $0x110] sm:$0xff]  }
 0x665   :  { %14034 = vmatpush3.bf16.msra.mxu1 %v15493_v48  ;;  %12847 = vmatprep.subr.bf16.mxu0 %v15495_v44  ;;  %v15515_v48 = vld [vmem:[%s20573_s2 + $0xc8] sm:$0xff]   ;;  %v15517_v44 = vld [vmem:[%s20573_s2 + $0x150] sm:$0xff]  }
 0x666   :  { %14035 = vmatprep.subr.bf16.mxu1 %v15496_v17 }
 0x668   :  { %12848 = vmatpush3.bf16.msra.mxu0 %v15497_v45  ;;  %v15520_v45 = vld [vmem:[%s20573_s2 + $0x158] sm:$0xff]  }
 0x669   :  { %14036 = vmatpush3.bf16.msra.mxu1 %v15496_v17  ;;  %12849 = vmatprep.subr.bf16.mxu0 %v15498_v53  ;;  %v15518_v17 = vld [vmem:[%s20573_s2 + $0xd0] sm:$0xff]   ;;  %v15524_v53 = vld [vmem:[%s20573_s2 + $0xe0] sm:$0xff]  }
 0x66a   :  { %14037 = vmatprep.subr.bf16.mxu1 %v15499_v2 }
 0x66c   :  { %12850 = vmatpush3.bf16.msra.mxu0 %v15500_v20 }
 0x66d   :  { %14038 = vmatpush3.bf16.msra.mxu1 %v15499_v2  ;;  %12851 = vmatprep.subr.bf16.mxu0 %v15501_v5  ;;  %v15525_v2 = vld [vmem:[%s20573_s2 + $0x128] sm:$0xff]  }
 0x66e   :  { %v7435_v16 = vpop.f32.mrb[168].mxu0  ;;  %14039 = vmatprep.subr.bf16.mxu1 %v15502_v52  ;;  %v15526_v5 = vld [vmem:[%s20573_s2 + $0x168] sm:$0xff]  }
 0x66f   :  { %v7579_v23 = vadd.f32 %v18811_v30, %v7435_v16  ;;  %v13907_v13 = vpop.f32.mrb[96].mxu1  ;;  %v7437_v12 = vpop.f32.mrb[169].mxu0 }
 0x670   :  { %v7587_v40 = vadd.f32 %v13907_v13, %v18816_v33  ;;  %v7580_v0 = vadd.f32 %v18818_v22, %v7437_v12  ;;  %v7488_v18 = vpop.f32.mrb[97].mxu1  ;;  %12852 = vmatpush3.bf16.msra.mxu0 %v15503_v60  ;;  %v7439_v14 = vpop.f32.mrb[170].mxu0  ;;  %v15527_v12 = vld [vmem:[%s20573_s2 + $0xe8] sm:$0xff]   ;;  %v15528_v60 = vld [vmem:[%s20573_s2 + $0x130] sm:$0xff]  }
 0x671   :  { %7591 = vst [vmem:[#allocation2] sm:$0xff] %v7579_v23  ;;  %v7581_v61 = vadd.f32 %v18816_v33, %v7488_v18  ;;  %v7582_v37 = vadd.f32 %v18811_v30, %v7439_v14  ;;  %v13908_v59 = vpop.f32.mrb[98].mxu1  ;;  %14040 = vmatpush3.bf16.msra.mxu1 %v15502_v52  ;;  %v7441_v26 = vpop.f32.mrb[171].mxu0  ;;  %12853 = vmatprep.subr.bf16.mxu0 %v15504_v3  ;;  %v15530_v3 = vld [vmem:[%s20573_s2 + $0xf0] sm:$0xff]  }
 0x672   :  { %7599 = vst [vmem:[#allocation2 + $0x40] sm:$0xff] %v7587_v40  ;;  %7592 = vst [vmem:[#allocation2 + $0x8] sm:$0xff] %v7580_v0  ;;  %v7590_v7 = vadd.f32 %v13908_v59, %v18816_v33  ;;  %v7583_v49 = vadd.f32 %v18818_v22, %v7441_v26  ;;  %v7491_v8 = vpop.f32.mrb[99].mxu1  ;;  %14041 = vmatprep.subr.bf16.mxu1 %v15505_v15  ;;  %v15529_v59 = vld [vmem:[%s20573_s2 + $0x170] sm:$0xff]  }
 0x673   :  { %7593 = vst [vmem:[#allocation2 + $0x10] sm:$0xff] %v7581_v61  ;;  %7594 = vst [vmem:[#allocation2 + $0x18] sm:$0xff] %v7582_v37  ;;  %v7584_v43 = vadd.f32 %v18816_v33, %v7491_v8 }
 0x674   :  { %7602 = vst [vmem:[#allocation2 + $0x58] sm:$0xff] %v7590_v7  ;;  %7595 = vst [vmem:[#allocation2 + $0x20] sm:$0xff] %v7583_v49  ;;  %12854 = vmatpush3.bf16.msra.mxu0 %v15506_v4  ;;  %v15531_v7 = vld [vmem:[%s20573_s2 + $0x138] sm:$0xff]  }
 0x675   :  { %7596 = vst [vmem:[#allocation2 + $0x28] sm:$0xff] %v7584_v43  ;;  %14042 = vmatpush3.bf16.msra.mxu1 %v15505_v15  ;;  %12855 = vmatprep.subr.bf16.mxu0 %v15507_v11  ;;  %v15532_v15 = vld [vmem:[%s20573_s2 + $0x178] sm:$0xff]  }
 0x676   :  { %v7445_v39 = vpop.f32.mrb[172].mxu0  ;;  %14043 = vmatprep.subr.bf16.mxu1 %v15508_v27 }
 0x677   :  { %v7585_v56 = vadd.f32 %v18811_v30, %v7445_v39  ;;  %v7447_v25 = vpop.f32.mrb[173].mxu0  ;;  %v15533_v39 = vld [vmem:[%s20573_s2 + $0xf8] sm:$0xff]  }
 0x678   :  { %v7586_v9 = vadd.f32 %v18818_v22, %v7447_v25  ;;  %12856 = vmatpush3.bf16.msra.mxu0 %v15509_v19  ;;  %v7449_v35 = vpop.f32.mrb[174].mxu0  ;;  %v15534_v25 = vld [vmem:[%s20573_s2 + $0x1c0] sm:$0xff]  }
 0x679   :  { %7597 = vst [vmem:[#allocation2 + $0x30] sm:$0xff] %v7585_v56  ;;  %v7588_v57 = vadd.f32 %v18811_v30, %v7449_v35  ;;  %14044 = vmatpush3.bf16.msra.mxu1 %v15508_v27  ;;  %v7451_v36 = vpop.f32.mrb[175].mxu0  ;;  %12879 = vmatprep.subr.bf16.mxu0 %v15510_v58  ;;  %v15535_v35 = vld [vmem:[%s20573_s2 + $0x200] sm:$0xff]  }
 0x67a   :  { %7598 = vst [vmem:[#allocation2 + $0x38] sm:$0xff] %v7586_v9  ;;  %v7589_v51 = vadd.f32 %v18818_v22, %v7451_v36  ;;  %14049 = vmatprep.subr.bf16.mxu1 %v15511_v41  ;;  %v15536_v58 = vld [vmem:[%s20573_s2 + $0x180] sm:$0xff]  }
 0x67b   :  { %7600 = vst [vmem:[#allocation2 + $0x48] sm:$0xff] %v7588_v57  ;;  %8265 = vmatmul.mubr.bf16.vlgmr.msra.gmra.mrb[224].mxu0 %v18347_v6 }
 0x67c   :  { %7601 = vst [vmem:[#allocation2 + $0x50] sm:$0xff] %v7589_v51  ;;  %12880 = vmatpush3.bf16.msra.mxu0 %v15512_v47  ;;  %14046 = vmatmul.mubr.bf16.vlgmr.msra.gmra.mrb[124].mxu1 %v18355_v50 }
 0x67d   :  { %14050 = vmatpush3.bf16.msra.mxu1 %v15511_v41  ;;  %12881 = vmatprep.subr.bf16.mxu0 %v15513_v55  ;;  %v15537_v41 = vld [vmem:[%s20573_s2 + $0x1c8] sm:$0xff]  }
 0x67e   :  { %14051 = vmatprep.subr.bf16.mxu1 %v15514_v29  ;;  %8272 = vmatprep.mubr.bf16.mxu0 %v18366_v46  ;;  %v15538_v55 = vld [vmem:[%s20573_s2 + $0x208] sm:$0xff]  }
 0x67f   :  { %14065 = vmatprep.mubr.bf16.mxu1 %v18267_v54 }
 0x680   :  { %12882 = vmatpush3.bf16.msra.mxu0 %v15515_v48  ;;  %v15539_v48 = vld [vmem:[%s20573_s2 + $0x188] sm:$0xff]  }
 0x681   :  { %14052 = vmatpush3.bf16.msra.mxu1 %v15514_v29  ;;  %12883 = vmatprep.subr.bf16.mxu0 %v15516_v24  ;;  %v15540_v24 = vld [vmem:[%s20573_s2 + $0x1d0] sm:$0xff]  }
 0x682   :  { %14053 = vmatprep.subr.bf16.mxu1 %v15517_v44 }
 0x683   :  { %8273 = vmatmul.mubr.bf16.gmra.mrb[228].mxu0 %v18383_v38 }
 0x684   :  { %12884 = vmatpush3.bf16.msra.mxu0 %v15518_v17  ;;  %8362 = vmatprep.mubr.bf16.mxu0 %v18288_v63  ;;  %v15542_v17 = vld [vmem:[%s20573_s2 + $0x190] sm:$0xff]  }
 0x685   :  { %14054 = vmatpush3.bf16.msra.mxu1 %v15517_v44  ;;  %12885 = vmatprep.subr.bf16.mxu0 %v15519_v34  ;;  %v15541_v44 = vld [vmem:[%s20573_s2 + $0x210] sm:$0xff]   ;;  %v15543_v34 = vld [vmem:[%s20573_s2 + $0x1d8] sm:$0xff]  }
 0x686   :  { %14055 = vmatprep.subr.bf16.mxu1 %v15520_v45 }
 0x688   :  { %12886 = vmatpush3.bf16.msra.mxu0 %v15521_v21  ;;  %v15545_v21 = vld [vmem:[%s20573_s2 + $0x198] sm:$0xff]  }
 0x689   :  { %14056 = vmatpush3.bf16.msra.mxu1 %v15520_v45  ;;  %12887 = vmatprep.subr.bf16.mxu0 %v15522_v31  ;;  %v15544_v45 = vld [vmem:[%s20573_s2 + $0x218] sm:$0xff]   ;;  %v15546_v31 = vld [vmem:[%s20573_s2 + $0x1e0] sm:$0xff]  }
 0x68a   :  { %14057 = vmatprep.subr.bf16.mxu1 %v15523_v32 }
 0x68c   :  { %12888 = vmatpush3.bf16.msra.mxu0 %v15524_v53  ;;  %v15548_v53 = vld [vmem:[%s20573_s2 + $0x1a0] sm:$0xff]  }
 0x68d   :  { %14058 = vmatpush3.bf16.msra.mxu1 %v15523_v32  ;;  %12889 = vmatprep.subr.bf16.mxu0 %v15525_v2  ;;  %v15547_v32 = vld [vmem:[%s20573_s2 + $0x220] sm:$0xff]   ;;  %v15549_v2 = vld [vmem:[%s20573_s2 + $0x1e8] sm:$0xff]  }
 0x68e   :  { %v12629_v20 = vpop.f32.mrb[176].mxu0  ;;  %14059 = vmatprep.subr.bf16.mxu1 %v15526_v5 }
 0x68f   :  { %v12630_v16 = vpop.f32.mrb[177].mxu0  ;;  %v13927_v52 = vpop.f32.mrb[100].mxu1 }
 0x690   :  { %v12631_v23 = vadd.f32 %v12630_v16, %v12629_v20  ;;  %v12632_v13 = vpop.f32.mrb[178].mxu0  ;;  %12890 = vmatpush3.bf16.msra.mxu0 %v15527_v12  ;;  %v7727_v40 = vpop.f32.mrb[101].mxu1  ;;  %v15551_v12 = vld [vmem:[%s20573_s2 + $0x1a8] sm:$0xff]  }
 0x691   :  { %v12633_v0 = vpop.f32.mrb[179].mxu0  ;;  %14060 = vmatpush3.bf16.msra.mxu1 %v15526_v5  ;;  %v13928_v18 = vpop.f32.mrb[102].mxu1  ;;  %12891 = vmatprep.subr.bf16.mxu0 %v15528_v60  ;;  %v15550_v5 = vld [vmem:[%s20573_s2 + $0x228] sm:$0xff]   ;;  %v15552_v60 = vld [vmem:[%s20573_s2 + $0x1f0] sm:$0xff]  }
 0x692   :  { %v12634_v14 = vadd.f32 %v12633_v0, %v12632_v13  ;;  %v7728_v61 = vadd.f32 %v12631_v23, %v7727_v40  ;;  %v7730_v37 = vpop.f32.mrb[103].mxu1  ;;  %14061 = vmatprep.subr.bf16.mxu1 %v15529_v59 }
 0x694   :  { %v7731_v26 = vadd.f32 %v12634_v14, %v7730_v37  ;;  %12892 = vmatpush3.bf16.msra.mxu0 %v15530_v3  ;;  %v18931_v49 = vmul.f32 0.05103104, %v7728_v61  ;;  %v15554_v3 = vld [vmem:[%s20573_s2 + $0x1b0] sm:$0xff]  }
 0x695   :  { %14062 = vmatpush3.bf16.msra.mxu1 %v15529_v59  ;;  %12893 = vmatprep.subr.bf16.mxu0 %v15531_v7  ;;  %v15553_v59 = vld [vmem:[%s20573_s2 + $0x230] sm:$0xff]   ;;  %v15555_v7 = vld [vmem:[%s20573_s2 + $0x1f8] sm:$0xff]  }
 0x696   :  { %v18933_v8 = vmul.f32 0.05103104, %v7731_v26  ;;  %14063 = vmatprep.subr.bf16.mxu1 %v15532_v15  ;;  %v12635_v43 = vpop.f32.mrb[180].mxu0 }
 0x697   :  { %v12636_v4 = vpop.f32.mrb[181].mxu0 }
 0x698   :  { %v9432_v11 = vpack.c.bf16 %v18933_v8, %v18931_v49  ;;  %12894 = vmatpush3.bf16.msra.mxu0 %v15533_v39  ;;  %v12637_v27 = vadd.f32 %v12636_v4, %v12635_v43  ;;  %v12638_v56 = vpop.f32.mrb[182].mxu0  ;;  %v15556_v4 = vld [vmem:[%s20573_s2 + $0x238] sm:$0xff]  }
 0x699   :  { %14064 = vmatpush3.bf16.msra.mxu1 %v15532_v15  ;;  %12917 = vmatprep.subr.bf16.mxu0 %v15534_v25  ;;  %v12639_v9 = vpop.f32.mrb[183].mxu0  ;;  %v15557_v25 = vld [vmem:[%s20573_s2 + $0x1b8] sm:$0xff]  }
 0x69a   :  { %v7736_v19 = vadd.f32 %v13927_v52, %v12637_v27  ;;  %14069 = vmatprep.subr.bf16.mxu1 %v15535_v35  ;;  %v12640_v57 = vadd.f32 %v12639_v9, %v12638_v56 }
 0x69b   :  { %8363 = vmatmul.mubr.bf16.vlgmr.msra.gmra.mrb[232].mxu0 %v18347_v6 }
 0x69c   :  { %v18950_v36 = vmul.f32 0.05103104, %v7736_v19  ;;  %12918 = vmatpush3.bf16.msra.mxu0 %v15536_v58  ;;  %14066 = vmatmul.mubr.bf16.vlgmr.msra.gmra.mrb[128].mxu1 %v18355_v50  ;;  %v7739_v51 = vadd.f32 %v13928_v18, %v12640_v57 }
 0x69d   :  { %14070 = vmatpush3.bf16.msra.mxu1 %v15535_v35  ;;  %12919 = vmatprep.subr.bf16.mxu0 %v15537_v41  ;;  %v15558_v35 = vld [vmem:[%s20573_s2 + $0x280] sm:$0xff]  }
 0x69e   :  { %v18959_v47 = vmul.f32 0.05103104, %v7739_v51  ;;  %14071 = vmatprep.subr.bf16.mxu1 %v15538_v55  ;;  %8370 = vmatprep.mubr.bf16.mxu0 %v18366_v46  ;;  %v15559_v51 = vld [vmem:[%s20573_s2 + $0x2c0] sm:$0xff]  }
 0x69f   :  { %14085 = vmatprep.mubr.bf16.mxu1 %v18267_v54 }
 0x6a0   :  { %v9433_v29 = vpack.c.bf16 %v18959_v47, %v18950_v36  ;;  %12920 = vmatpush3.bf16.msra.mxu0 %v15539_v48  ;;  %v15560_v48 = vld [vmem:[%s20573_s2 + $0x240] sm:$0xff]  }
 0x6a1   :  { %14072 = vmatpush3.bf16.msra.mxu1 %v15538_v55  ;;  %12921 = vmatprep.subr.bf16.mxu0 %v15540_v24 }
 0x6a2   :  { %14073 = vmatprep.subr.bf16.mxu1 %v15541_v44 }
 0x6a3   :  { %8371 = vmatmul.mubr.bf16.gmra.mrb[236].mxu0 %v18383_v38 }
 0x6a4   :  { %12922 = vmatpush3.bf16.msra.mxu0 %v15542_v17  ;;  %8460 = vmatprep.mubr.bf16.mxu0 %v18288_v63 }
 0x6a5   :  { %14074 = vmatpush3.bf16.msra.mxu1 %v15541_v44  ;;  %12923 = vmatprep.subr.bf16.mxu0 %v15543_v34  ;;  %v15561_v44 = vld [vmem:[%s20573_s2 + $0x288] sm:$0xff]  }
 0x6a6   :  { %14075 = vmatprep.subr.bf16.mxu1 %v15544_v45  ;;  %v15562_v34 = vld [vmem:[%s20573_s2 + $0x2c8] sm:$0xff]  }
 0x6a8   :  { %12924 = vmatpush3.bf16.msra.mxu0 %v15545_v21  ;;  %v15563_v21 = vld [vmem:[%s20573_s2 + $0x248] sm:$0xff]  }
 0x6a9   :  { %14076 = vmatpush3.bf16.msra.mxu1 %v15544_v45  ;;  %12925 = vmatprep.subr.bf16.mxu0 %v15546_v31  ;;  %v15564_v31 = vld [vmem:[%s20573_s2 + $0x290] sm:$0xff]  }
 0x6aa   :  { %14077 = vmatprep.subr.bf16.mxu1 %v15547_v32 }
 0x6ac   :  { %12926 = vmatpush3.bf16.msra.mxu0 %v15548_v53  ;;  %v15567_v53 = vld [vmem:[%s20573_s2 + $0x298] sm:$0xff]  }
 0x6ad   :  { %14078 = vmatpush3.bf16.msra.mxu1 %v15547_v32  ;;  %12927 = vmatprep.subr.bf16.mxu0 %v15549_v2  ;;  %v15565_v32 = vld [vmem:[%s20573_s2 + $0x2d0] sm:$0xff]   ;;  %v15568_v2 = vld [vmem:[%s20573_s2 + $0x2d8] sm:$0xff]  }
 0x6ae   :  { %v12667_v20 = vpop.f32.mrb[184].mxu0  ;;  %14079 = vmatprep.subr.bf16.mxu1 %v15550_v5 }
 0x6af   :  { %v12668_v16 = vpop.f32.mrb[185].mxu0  ;;  %v13947_v52 = vpop.f32.mrb[104].mxu1 }
 0x6b0   :  { %v12669_v23 = vadd.f32 %v12668_v16, %v12667_v20  ;;  %v12670_v13 = vpop.f32.mrb[186].mxu0  ;;  %12928 = vmatpush3.bf16.msra.mxu0 %v15551_v12  ;;  %v7825_v40 = vpop.f32.mrb[105].mxu1  ;;  %v15569_v20 = vld [vmem:[%s20573_s2 + $0x258] sm:$0xff]   ;;  %v15571_v16 = vld [vmem:[%s20573_s2 + $0x2e0] sm:$0xff]   ;;  %v15574_v12 = vld [vmem:[%s20573_s2 + $0x2e8] sm:$0xff]  }
 0x6b1   :  { %v12671_v0 = vpop.f32.mrb[187].mxu0  ;;  %14080 = vmatpush3.bf16.msra.mxu1 %v15550_v5  ;;  %v13948_v18 = vpop.f32.mrb[106].mxu1  ;;  %12929 = vmatprep.subr.bf16.mxu0 %v15552_v60  ;;  %v15570_v5 = vld [vmem:[%s20573_s2 + $0x2a0] sm:$0xff]  }
 0x6b2   :  { %v12672_v14 = vadd.f32 %v12671_v0, %v12670_v13  ;;  %v7826_v61 = vadd.f32 %v12669_v23, %v7825_v40  ;;  %v7828_v37 = vpop.f32.mrb[107].mxu1  ;;  %14081 = vmatprep.subr.bf16.mxu1 %v15553_v59  ;;  %v15573_v23 = vld [vmem:[%s20573_s2 + $0x2a8] sm:$0xff]  }
 0x6b4   :  { %v7829_v26 = vadd.f32 %v12672_v14, %v7828_v37  ;;  %12930 = vmatpush3.bf16.msra.mxu0 %v15554_v3  ;;  %v19021_v15 = vmul.f32 0.05103104, %v7826_v61  ;;  %v15575_v14 = vld [vmem:[%s20573_s2 + $0x268] sm:$0xff]  }
 0x6b5   :  { %14082 = vmatpush3.bf16.msra.mxu1 %v15553_v59  ;;  %12931 = vmatprep.subr.bf16.mxu0 %v15555_v7 }
 0x6b6   :  { %v19023_v43 = vmul.f32 0.05103104, %v7829_v26  ;;  %14083 = vmatprep.subr.bf16.mxu1 %v15556_v4  ;;  %v12673_v39 = vpop.f32.mrb[188].mxu0  ;;  %v15576_v26 = vld [vmem:[%s20573_s2 + $0x2b0] sm:$0xff]  }
 0x6b7   :  { %v12674_v27 = vpop.f32.mrb[189].mxu0 }
 0x6b8   :  { %v9434_v56 = vpack.c.bf16 %v19023_v43, %v19021_v15  ;;  %12932 = vmatpush3.bf16.msra.mxu0 %v15557_v25  ;;  %v12675_v9 = vadd.f32 %v12674_v27, %v12673_v39  ;;  %v12676_v19 = vpop.f32.mrb[190].mxu0  ;;  %v15577_v39 = vld [vmem:[%s20573_s2 + $0x2f0] sm:$0xff]  }
 0x6b9   :  { %14084 = vmatpush3.bf16.msra.mxu1 %v15556_v4  ;;  %12955 = vmatprep.subr.bf16.mxu0 %v15558_v35  ;;  %v12677_v57 = vpop.f32.mrb[191].mxu0  ;;  %v15578_v25 = vld [vmem:[%s20573_s2 + $0x270] sm:$0xff]  }
 0x6ba   :  { %v7834_v58 = vadd.f32 %v13947_v52, %v12675_v9  ;;  %14089 = vmatprep.subr.bf16.mxu1 %v15559_v51  ;;  %v12678_v41 = vadd.f32 %v12677_v57, %v12676_v19  ;;  %v15572_v52 = vld [vmem:[%s20573_s2 + $0x260] sm:$0xff]   ;;  %v15579_v9 = vld [vmem:[%s20573_s2 + $0x2b8] sm:$0xff]  }
 0x6bb   :  { %8461 = vmatmul.mubr.bf16.vlgmr.msra.gmra.mrb[240].mxu0 %v18347_v6  ;;  %v15580_v57 = vld [vmem:[%s20573_s2 + $0x2f8] sm:$0xff]  }
 0x6bc   :  { %v19040_v55 = vmul.f32 0.05103104, %v7834_v58  ;;  %12956 = vmatpush3.bf16.msra.mxu0 %v15560_v48  ;;  %14086 = vmatmul.mubr.bf16.vlgmr.msra.gmra.mrb[132].mxu1 %v18355_v50  ;;  %v7837_v24 = vadd.f32 %v13948_v18, %v12678_v41  ;;  %v15581_v48 = vld [vmem:[%s20573_s2 + $0x278] sm:$0xff]  }
 0x6bd   :  { %14090 = vmatpush3.bf16.msra.mxu1 %v15559_v51  ;;  %12957 = vmatprep.subr.bf16.mxu0 %v15561_v44 }
 0x6be   :  { %v19049_v17 = vmul.f32 0.05103104, %v7837_v24  ;;  %14091 = vmatprep.subr.bf16.mxu1 %v15562_v34  ;;  %8468 = vmatprep.mubr.bf16.mxu0 %v18366_v46 }
 0x6bf   :  { %14105 = vmatprep.mubr.bf16.mxu1 %v18267_v54  ;;  %v15566_v54 = vld [vmem:[%s20573_s2 + $0x250] sm:$0xff]  }
 0x6c0   :  { %v9435_v45 = vpack.c.bf16 %v19049_v17, %v19040_v55  ;;  %12958 = vmatpush3.bf16.msra.mxu0 %v15563_v21 }
 0x6c1   :  { %14092 = vmatpush3.bf16.msra.mxu1 %v15562_v34  ;;  %12959 = vmatprep.subr.bf16.mxu0 %v15564_v31  ;;  %v15582_v34 = vld [vmem:[%s20573_s2 + $0x340] sm:$0xff]  }
 0x6c2   :  { %14093 = vmatprep.subr.bf16.mxu1 %v15565_v32 }
 0x6c3   :  { %8469 = vmatmul.mubr.bf16.gmra.mrb[244].mxu0 %v18383_v38 }
 0x6c4   :  { %12960 = vmatpush3.bf16.msra.mxu0 %v15566_v54  ;;  %8558 = vmatprep.mubr.bf16.mxu0 %v18288_v63 }
 0x6c5   :  { %14094 = vmatpush3.bf16.msra.mxu1 %v15565_v32  ;;  %12961 = vmatprep.subr.bf16.mxu0 %v15567_v53  ;;  %v15583_v32 = vld [vmem:[%s20573_s2 + $0x380] sm:$0xff]  }
 0x6c6   :  { %14095 = vmatprep.subr.bf16.mxu1 %v15568_v2 }
 0x6c8   :  { %12962 = vmatpush3.bf16.msra.mxu0 %v15569_v20 }
 0x6c9   :  { %14096 = vmatpush3.bf16.msra.mxu1 %v15568_v2  ;;  %12963 = vmatprep.subr.bf16.mxu0 %v15570_v5  ;;  %v15584_v2 = vld [vmem:[%s20573_s2 + $0x300] sm:$0xff]   ;;  %v15585_v5 = vld [vmem:[%s20573_s2 + $0x348] sm:$0xff]  }
 0x6ca   :  { %14097 = vmatprep.subr.bf16.mxu1 %v15571_v16 }
 0x6cc   :  { %12964 = vmatpush3.bf16.msra.mxu0 %v15572_v52 }
 0x6cd   :  { %14098 = vmatpush3.bf16.msra.mxu1 %v15571_v16  ;;  %12965 = vmatprep.subr.bf16.mxu0 %v15573_v23  ;;  %v15588_v23 = vld [vmem:[%s20573_s2 + $0x308] sm:$0xff]  }
 0x6ce   :  { %v12705_v13 = vpop.f32.mrb[192].mxu0  ;;  %14099 = vmatprep.subr.bf16.mxu1 %v15574_v12 }
 0x6cf   :  { %v12706_v40 = vpop.f32.mrb[193].mxu0  ;;  %v13967_v0 = vpop.f32.mrb[108].mxu1 }
 0x6d0   :  { %v12707_v18 = vadd.f32 %v12706_v40, %v12705_v13  ;;  %v12708_v60 = vpop.f32.mrb[194].mxu0  ;;  %12966 = vmatpush3.bf16.msra.mxu0 %v15575_v14  ;;  %v7923_v61 = vpop.f32.mrb[109].mxu1  ;;  %v15590_v13 = vld [vmem:[%s20573_s2 + $0x390] sm:$0xff]   ;;  %v15592_v40 = vld [vmem:[%s20573_s2 + $0x358] sm:$0xff]   ;;  %v15598_v14 = vld [vmem:[%s20573_s2 + $0x368] sm:$0xff]  }
 0x6d1   :  { %v12709_v37 = vpop.f32.mrb[195].mxu0  ;;  %14100 = vmatpush3.bf16.msra.mxu1 %v15574_v12  ;;  %v13968_v59 = vpop.f32.mrb[110].mxu1  ;;  %12967 = vmatprep.subr.bf16.mxu0 %v15576_v26  ;;  %v15591_v12 = vld [vmem:[%s20573_s2 + $0x310] sm:$0xff]  }
 0x6d2   :  { %v12710_v3 = vadd.f32 %v12709_v37, %v12708_v60  ;;  %v7924_v7 = vadd.f32 %v12707_v18, %v7923_v61  ;;  %v7926_v4 = vpop.f32.mrb[111].mxu1  ;;  %14101 = vmatprep.subr.bf16.mxu1 %v15577_v39  ;;  %v15596_v18 = vld [vmem:[%s20573_s2 + $0x3a0] sm:$0xff]   ;;  %v15599_v37 = vld [vmem:[%s20573_s2 + $0x3a8] sm:$0xff]  }
 0x6d3   :  { %v15597_v60 = vld [vmem:[%s20573_s2 + $0x320] sm:$0xff]  }
 0x6d4   :  { %v7927_v27 = vadd.f32 %v12710_v3, %v7926_v4  ;;  %12968 = vmatpush3.bf16.msra.mxu0 %v15578_v25  ;;  %v19111_v19 = vmul.f32 0.05103104, %v7924_v7  ;;  %v15600_v4 = vld [vmem:[%s20573_s2 + $0x328] sm:$0xff]  }
 0x6d5   :  { %14102 = vmatpush3.bf16.msra.mxu1 %v15577_v39  ;;  %12969 = vmatprep.subr.bf16.mxu0 %v15579_v9  ;;  %v15601_v9 = vld [vmem:[%s20573_s2 + $0x370] sm:$0xff]  }
 0x6d6   :  { %v19113_v35 = vmul.f32 0.05103104, %v7927_v27  ;;  %14103 = vmatprep.subr.bf16.mxu1 %v15580_v57  ;;  %v12711_v58 = vpop.f32.mrb[196].mxu0 }
 0x6d7   :  { %v12712_v51 = vpop.f32.mrb[197].mxu0 }
 0x6d8   :  { %v9436_v41 = vpack.c.bf16 %v19113_v35, %v19111_v19  ;;  %12970 = vmatpush3.bf16.msra.mxu0 %v15581_v48  ;;  %v12713_v24 = vadd.f32 %v12712_v51, %v12711_v58  ;;  %v12714_v44 = vpop.f32.mrb[198].mxu0  ;;  %v15602_v48 = vld [vmem:[%s20573_s2 + $0x3b0] sm:$0xff]  }
 0x6d9   :  { %14104 = vmatpush3.bf16.msra.mxu1 %v15580_v57  ;;  %12993 = vmatprep.subr.bf16.mxu0 %v15582_v34  ;;  %v12715_v21 = vpop.f32.mrb[199].mxu0  ;;  %v15604_v34 = vld [vmem:[%s20573_s2 + $0x378] sm:$0xff]  }
 0x6da   :  { %v7932_v31 = vadd.f32 %v13967_v0, %v12713_v24  ;;  %14109 = vmatprep.subr.bf16.mxu1 %v15583_v32  ;;  %v12716_v54 = vadd.f32 %v12715_v21, %v12714_v44  ;;  %v15593_v0 = vld [vmem:[%s20573_s2 + $0x398] sm:$0xff]   ;;  %v15603_v44 = vld [vmem:[%s20573_s2 + $0x330] sm:$0xff]  }
 0x6db   :  { %8559 = vmatmul.mubr.bf16.vlgmr.msra.gmra.mrb[248].mxu0 %v18347_v6  ;;  %v15586_v6 = vld [vmem:[%s20573_s2 + $0x388] sm:$0xff]  }
 0x6dc   :  { %v19130_v53 = vmul.f32 0.05103104, %v7932_v31  ;;  %12994 = vmatpush3.bf16.msra.mxu0 %v15584_v2  ;;  %14106 = vmatmul.mubr.bf16.vlgmr.msra.gmra.mrb[136].mxu1 %v18355_v50  ;;  %v7935_v20 = vadd.f32 %v13968_v59, %v12716_v54  ;;  %v19148_v50 = vld [vmem:[%s20571_s0 + $0x38] ss:$12 sps:$4 sm:$0xff]  }
 0x6dd   :  { %14110 = vmatpush3.bf16.msra.mxu1 %v15583_v32  ;;  %12995 = vmatprep.subr.bf16.mxu0 %v15585_v5  ;;  %v15605_v32 = vld [vmem:[%s20573_s2 + $0x3b8] sm:$0xff]  }
 0x6de   :  { %v19139_v16 = vmul.f32 0.05103104, %v7935_v20  ;;  %14111 = vmatprep.subr.bf16.mxu1 %v15586_v6  ;;  %8566 = vmatprep.mubr.bf16.mxu0 %v18366_v46  ;;  %v15589_v46 = vld [vmem:[%s20573_s2 + $0x350] sm:$0xff]   ;;  %v15606_v5 = vld [vmem:[%s20573_s2 + $0x338] sm:$0xff]  }
 0x6df   :  { %14125 = vmatprep.mubr.bf16.mxu1 %v19148_v50 }
 0x6e0   :  { %v9437_v52 = vpack.c.bf16 %v19139_v16, %v19130_v53  ;;  %12996 = vmatpush3.bf16.msra.mxu0 %v15588_v23 }
 0x6e1   :  { %14112 = vmatpush3.bf16.msra.mxu1 %v15586_v6  ;;  %12997 = vmatprep.subr.bf16.mxu0 %v15589_v46  ;;  %v15607_v46 = vld [vmem:[%s20573_s2 + $0x400] sm:$0xff]  }
 0x6e2   :  { %14113 = vmatprep.subr.bf16.mxu1 %v15590_v13 }
 0x6e3   :  { %8567 = vmatmul.mubr.bf16.gmra.mrb[252].mxu0 %v18383_v38  ;;  %v15594_v38 = vld [vmem:[%s20573_s2 + $0x318] sm:$0xff]  }
 0x6e4   :  { %12998 = vmatpush3.bf16.msra.mxu0 %v15591_v12  ;;  %8656 = vmatprep.mubr.bf16.mxu0 %v18288_v63  ;;  %v15595_v63 = vld [vmem:[%s20573_s2 + $0x360] sm:$0xff]  }
 0x6e5   :  { %14114 = vmatpush3.bf16.msra.mxu1 %v15590_v13  ;;  %12999 = vmatprep.subr.bf16.mxu0 %v15592_v40  ;;  %v15608_v40 = vld [vmem:[%s20573_s2 + $0x440] sm:$0xff]  }
 0x6e6   :  { %14115 = vmatprep.subr.bf16.mxu1 %v15593_v0 }
 0x6e8   :  { %13000 = vmatpush3.bf16.msra.mxu0 %v15594_v38  ;;  %v19227_v38 = vld [vmem:[%s20571_s0 + $0x30] ss:$12 sps:$4 sm:$0xff]  }
 0x6e9   :  { %14116 = vmatpush3.bf16.msra.mxu1 %v15593_v0  ;;  %13001 = vmatprep.subr.bf16.mxu0 %v15595_v63 }
 0x6ea   :  { %14117 = vmatprep.subr.bf16.mxu1 %v15596_v18 }
 0x6ec   :  { %13002 = vmatpush3.bf16.msra.mxu0 %v15597_v60  ;;  %v19238_v60 = vld [vmem:[%s20571_s0 + $0x50] ss:$12 sps:$4 sm:$0xff]  }
 0x6ed   :  { %14118 = vmatpush3.bf16.msra.mxu1 %v15596_v18  ;;  %13003 = vmatprep.subr.bf16.mxu0 %v15598_v14  ;;  %v15610_v18 = vld [vmem:[%s20573_s2 + $0x3c0] sm:$0xff]  }
 0x6ee   :  { %v12743_v61 = vpop.f32.mrb[200].mxu0  ;;  %14119 = vmatprep.subr.bf16.mxu1 %v15599_v37 }
 0x6ef   :  { %v12744_v59 = vpop.f32.mrb[201].mxu0  ;;  %v13987_v26 = vpop.f32.mrb[112].mxu1 }
 0x6f0   :  { %v12745_v3 = vadd.f32 %v12744_v59, %v12743_v61  ;;  %v12746_v7 = vpop.f32.mrb[202].mxu0  ;;  %13004 = vmatpush3.bf16.msra.mxu0 %v15600_v4  ;;  %v8021_v39 = vpop.f32.mrb[113].mxu1  ;;  %v15612_v61 = vld [vmem:[%s20573_s2 + $0x408] sm:$0xff]   ;;  %v15616_v4 = vld [vmem:[%s20573_s2 + $0x410] sm:$0xff]  }
 0x6f1   :  { %v12747_v27 = vpop.f32.mrb[203].mxu0  ;;  %14120 = vmatpush3.bf16.msra.mxu1 %v15599_v37  ;;  %v13988_v25 = vpop.f32.mrb[114].mxu1  ;;  %13005 = vmatprep.subr.bf16.mxu0 %v15601_v9  ;;  %v15613_v59 = vld [vmem:[%s20573_s2 + $0x448] sm:$0xff]   ;;  %v19279_v9 = vld [vmem:[%s20571_s0 + $0x34] ss:$12 sps:$4 sm:$0xff]  }
 0x6f2   :  { %v12748_v57 = vadd.f32 %v12747_v27, %v12746_v7  ;;  %v8022_v58 = vadd.f32 %v12745_v3, %v8021_v39  ;;  %v8024_v51 = vpop.f32.mrb[115].mxu1  ;;  %14121 = vmatprep.subr.bf16.mxu1 %v15602_v48  ;;  %v15615_v7 = vld [vmem:[%s20573_s2 + $0x3c8] sm:$0xff]   ;;  %v15617_v39 = vld [vmem:[%s20573_s2 + $0x450] sm:$0xff]  }
 0x6f3   :  { %v19270_v27 = vld [vmem:[%s20571_s0 + $0x48] ss:$12 sps:$4 sm:$0xff]  }
 0x6f4   :  { %v8025_v24 = vadd.f32 %v12748_v57, %v8024_v51  ;;  %13006 = vmatpush3.bf16.msra.mxu0 %v15603_v44  ;;  %v19206_v21 = vmul.f32 0.05103104, %v8022_v58  ;;  %v15621_v57 = vld [vmem:[%s20573_s2 + $0x418] sm:$0xff]   ;;  %v15626_v44 = vld [vmem:[%s20573_s2 + $0x3e0] sm:$0xff]  }
 0x6f5   :  { %14122 = vmatpush3.bf16.msra.mxu1 %v15602_v48  ;;  %13007 = vmatprep.subr.bf16.mxu0 %v15604_v34  ;;  %v15622_v58 = vld [vmem:[%s20573_s2 + $0x458] sm:$0xff]   ;;  %v15624_v48 = vld [vmem:[%s20573_s2 + $0x420] sm:$0xff]   ;;  %v15627_v34 = vld [vmem:[%s20573_s2 + $0x428] sm:$0xff]  }
 0x6f6   :  { %v19208_v31 = vmul.f32 0.05103104, %v8025_v24  ;;  %14123 = vmatprep.subr.bf16.mxu1 %v15605_v32  ;;  %v12749_v54 = vpop.f32.mrb[204].mxu0  ;;  %v15623_v51 = vld [vmem:[%s20573_s2 + $0x3d8] sm:$0xff]   ;;  %v15625_v24 = vld [vmem:[%s20573_s2 + $0x460] sm:$0xff]  }
 0x6f7   :  { %v12750_v2 = vpop.f32.mrb[205].mxu0 }
 0x6f8   :  { %v9438_v20 = vpack.c.bf16 %v19208_v31, %v19206_v21  ;;  %13008 = vmatpush3.bf16.msra.mxu0 %v15606_v5  ;;  %v12751_v6 = vadd.f32 %v12750_v2, %v12749_v54  ;;  %v12752_v23 = vpop.f32.mrb[206].mxu0  ;;  %v15628_v54 = vld [vmem:[%s20573_s2 + $0x468] sm:$0xff]  }
 0x6f9   :  { %14124 = vmatpush3.bf16.msra.mxu1 %v15605_v32  ;;  %13031 = vmatprep.subr.bf16.mxu0 %v15607_v46  ;;  %v12753_v13 = vpop.f32.mrb[207].mxu0  ;;  %v15629_v46 = vld [vmem:[%s20573_s2 + $0x3e8] sm:$0xff]  }
 0x6fa   :  { %v8030_v12 = vadd.f32 %v13987_v26, %v12751_v6  ;;  %14129 = vmatprep.subr.bf16.mxu1 %v15608_v40  ;;  %v12754_v0 = vadd.f32 %v12753_v13, %v12752_v23  ;;  %v19252_v26 = vld [vmem:[%s20571_s0 + $0x4c] ss:$12 sps:$4 sm:$0xff]  }
 0x6fb   :  { %8657 = vmatmul.mubr.bf16.vlgmr.msra.gmra.mrb[0].mxu0 %v19227_v38 }
 0x6fc   :  { %v19230_v63 = vmul.f32 0.05103104, %v8030_v12  ;;  %13032 = vmatpush3.bf16.msra.mxu0 %v15610_v18  ;;  %14126 = vmatmul.mubr.bf16.vlgmr.msra.gmra.mrb[140].mxu1 %v19238_v60  ;;  %v8033_v14 = vadd.f32 %v13988_v25, %v12754_v0  ;;  %v15619_v25 = vld [vmem:[%s20573_s2 + $0x3d0] sm:$0xff]  }
 0x6fd   :  { %14130 = vmatpush3.bf16.msra.mxu1 %v15608_v40  ;;  %13033 = vmatprep.subr.bf16.mxu0 %v15612_v61  ;;  %v15630_v0 = vld [vmem:[%s20573_s2 + $0x430] sm:$0xff]  }
 0x6fe   :  { %v19244_v37 = vmul.f32 0.05103104, %v8033_v14  ;;  %14131 = vmatprep.subr.bf16.mxu1 %v15613_v59  ;;  %8664 = vmatprep.mubr.bf16.mxu0 %v19252_v26 }
 0x6ff   :  { %14145 = vmatprep.mubr.bf16.mxu1 %v19148_v50 }
 0x700   :  { %13034 = vmatpush3.bf16.msra.mxu0 %v15615_v7 }
 0x701   :  { %14132 = vmatpush3.bf16.msra.mxu1 %v15613_v59  ;;  %13035 = vmatprep.subr.bf16.mxu0 %v15616_v4  ;;  %v15631_v59 = vld [vmem:[%s20573_s2 + $0x470] sm:$0xff]  }
 0x702   :  { %14133 = vmatprep.subr.bf16.mxu1 %v15617_v39  ;;  %v15632_v4 = vld [vmem:[%s20573_s2 + $0x3f0] sm:$0xff]  }
 0x703   :  { %8665 = vmatmul.mubr.bf16.gmra.mrb[4].mxu0 %v19270_v27 }
 0x704   :  { %13036 = vmatpush3.bf16.msra.mxu0 %v15619_v25  ;;  %8754 = vmatprep.mubr.bf16.mxu0 %v19279_v9 }
 0x705   :  { %14134 = vmatpush3.bf16.msra.mxu1 %v15617_v39  ;;  %13037 = vmatprep.subr.bf16.mxu0 %v15621_v57  ;;  %v15633_v39 = vld [vmem:[%s20573_s2 + $0x438] sm:$0xff]  }
 0x706   :  { %14135 = vmatprep.subr.bf16.mxu1 %v15622_v58 }
 0x708   :  { %13038 = vmatpush3.bf16.msra.mxu0 %v15623_v51 }
 0x709   :  { %14136 = vmatpush3.bf16.msra.mxu1 %v15622_v58  ;;  %13039 = vmatprep.subr.bf16.mxu0 %v15624_v48  ;;  %v15634_v58 = vld [vmem:[%s20573_s2 + $0x478] sm:$0xff]  }
 0x70a   :  { %14137 = vmatprep.subr.bf16.mxu1 %v15625_v24 }
 0x70c   :  { %13040 = vmatpush3.bf16.msra.mxu0 %v15626_v44  ;;  %v15635_v44 = vld [vmem:[%s20573_s2 + $0x3f8] sm:$0xff]  }
 0x70d   :  { %14138 = vmatpush3.bf16.msra.mxu1 %v15625_v24  ;;  %13041 = vmatprep.subr.bf16.mxu0 %v15627_v34 }
 0x70e   :  { %v12781_v32 = vpop.f32.mrb[208].mxu0  ;;  %14139 = vmatprep.subr.bf16.mxu1 %v15628_v54 }
 0x70f   :  { %v12782_v2 = vpop.f32.mrb[209].mxu0  ;;  %v14007_v5 = vpop.f32.mrb[116].mxu1 }
 0x710   :  { %v12783_v6 = vadd.f32 %v12782_v2, %v12781_v32  ;;  %v12784_v23 = vpop.f32.mrb[210].mxu0  ;;  %13042 = vmatpush3.bf16.msra.mxu0 %v15629_v46  ;;  %v8119_v13 = vpop.f32.mrb[117].mxu1 }
 0x711   :  { %v12785_v12 = vpop.f32.mrb[211].mxu0  ;;  %14140 = vmatpush3.bf16.msra.mxu1 %v15628_v54  ;;  %v14008_v40 = vpop.f32.mrb[118].mxu1  ;;  %13043 = vmatprep.subr.bf16.mxu0 %v15630_v0  ;;  %v15636_v54 = vld [vmem:[%s20574_s3 + $0x40] sm:$0xff]  }
 0x712   :  { %v12786_v18 = vadd.f32 %v12785_v12, %v12784_v23  ;;  %v8120_v14 = vadd.f32 %v12783_v6, %v8119_v13  ;;  %v8122_v61 = vpop.f32.mrb[119].mxu1  ;;  %14141 = vmatprep.subr.bf16.mxu1 %v15631_v59  ;;  %v15637_v23 = vld [vmem:[%s20574_s3 + $0x80] sm:$0xff]  }
 0x713   :  { %v15638_v12 = vld [vmem:[%s20574_s3] sm:$0xff]  }
 0x714   :  { %v8123_v7 = vadd.f32 %v12786_v18, %v8122_v61  ;;  %13044 = vmatpush3.bf16.msra.mxu0 %v15632_v4  ;;  %v19321_v25 = vmul.f32 0.05103104, %v8120_v14  ;;  %v15640_v14 = vld [vmem:[%s20574_s3 + $0x88] sm:$0xff]   ;;  %v15644_v4 = vld [vmem:[%s20574_s3 + $0x10] sm:$0xff]  }
 0x715   :  { %14142 = vmatpush3.bf16.msra.mxu1 %v15631_v59  ;;  %13045 = vmatprep.subr.bf16.mxu0 %v15633_v39  ;;  %v15641_v61 = vld [vmem:[%s20574_s3 + $0x8] sm:$0xff]   ;;  %v15642_v59 = vld [vmem:[%s20574_s3 + $0x50] sm:$0xff]   ;;  %v15645_v39 = vld [vmem:[%s20574_s3 + $0x58] sm:$0xff]  }
 0x716   :  { %v19323_v57 = vmul.f32 0.05103104, %v8123_v7  ;;  %14143 = vmatprep.subr.bf16.mxu1 %v15634_v58  ;;  %v12787_v51 = vpop.f32.mrb[212].mxu0  ;;  %v15643_v7 = vld [vmem:[%s20574_s3 + $0x90] sm:$0xff]  }
 0x717   :  { %v12788_v48 = vpop.f32.mrb[213].mxu0 }
 0x718   :  { %13046 = vmatpush3.bf16.msra.mxu0 %v15635_v44  ;;  %v12789_v34 = vadd.f32 %v12788_v48, %v12787_v51  ;;  %v12790_v32 = vpop.f32.mrb[214].mxu0  ;;  %v15647_v51 = vld [vmem:[%s20574_s3 + $0x18] sm:$0xff]   ;;  %v15648_v48 = vld [vmem:[%s20574_s3 + $0x60] sm:$0xff]  }
 0x719   :  { %14144 = vmatpush3.bf16.msra.mxu1 %v15634_v58  ;;  %13069 = vmatprep.subr.bf16.mxu0 %v15636_v54  ;;  %v12791_v2 = vpop.f32.mrb[215].mxu0  ;;  %v15646_v58 = vld [vmem:[%s20574_s3 + $0x98] sm:$0xff]   ;;  %v15649_v44 = vld [vmem:[%s20574_s3 + $0xa0] sm:$0xff]  }
 0x71a   :  { %v8128_v6 = vadd.f32 %v14007_v5, %v12789_v34  ;;  %14149 = vmatprep.subr.bf16.mxu1 %v15637_v23  ;;  %v12792_v46 = vadd.f32 %v12791_v2, %v12790_v32  ;;  %v15639_v5 = vld [vmem:[%s20574_s3 + $0x48] sm:$0xff]   ;;  %v15650_v34 = vld [vmem:[%s20574_s3 + $0x20] sm:$0xff]  }
 0x71b   :  { %8755 = vmatmul.mubr.bf16.vlgmr.msra.gmra.mrb[8].mxu0 %v19227_v38  ;;  %v15651_v32 = vld [vmem:[%s20574_s3 + $0x68] sm:$0xff]  }
 0x71c   :  { %v19340_v13 = vmul.f32 0.05103104, %v8128_v6  ;;  %13070 = vmatpush3.bf16.msra.mxu0 %v15638_v12  ;;  %14146 = vmatmul.mubr.bf16.vlgmr.msra.gmra.mrb[144].mxu1 %v19238_v60  ;;  %v8131_v0 = vadd.f32 %v14008_v40, %v12792_v46  ;;  %v15652_v2 = vld [vmem:[%s20574_s3 + $0xa8] sm:$0xff]  }
 0x71d   :  { %14150 = vmatpush3.bf16.msra.mxu1 %v15637_v23  ;;  %13071 = vmatprep.subr.bf16.mxu0 %v15639_v5 }
 0x71e   :  { %v19349_v18 = vmul.f32 0.05103104, %v8131_v0  ;;  %14151 = vmatprep.subr.bf16.mxu1 %v15640_v14  ;;  %8762 = vmatprep.mubr.bf16.mxu0 %v19252_v26  ;;  %v15653_v0 = vld [vmem:[%s20574_s3 + $0x28] sm:$0xff]  }
 0x71f   :  { %14165 = vmatprep.mubr.bf16.mxu1 %v19148_v50 }
 0x720   :  { %13072 = vmatpush3.bf16.msra.mxu0 %v15641_v61 }
 0x721   :  { %14152 = vmatpush3.bf16.msra.mxu1 %v15640_v14  ;;  %13073 = vmatprep.subr.bf16.mxu0 %v15642_v59  ;;  %v15654_v59 = vld [vmem:[%s20574_s3 + $0x70] sm:$0xff]  }
 0x722   :  { %14153 = vmatprep.subr.bf16.mxu1 %v15643_v7 }
 0x723   :  { %8763 = vmatmul.mubr.bf16.gmra.mrb[12].mxu0 %v19270_v27 }
 0x724   :  { %13074 = vmatpush3.bf16.msra.mxu0 %v15644_v4  ;;  %8852 = vmatprep.mubr.bf16.mxu0 %v19279_v9 }
 0x725   :  { %14154 = vmatpush3.bf16.msra.mxu1 %v15643_v7  ;;  %13075 = vmatprep.subr.bf16.mxu0 %v15645_v39 }
 0x726   :  { %14155 = vmatprep.subr.bf16.mxu1 %v15646_v58 }
 0x728   :  { %13076 = vmatpush3.bf16.msra.mxu0 %v15647_v51 }
 0x729   :  { %14156 = vmatpush3.bf16.msra.mxu1 %v15646_v58  ;;  %13077 = vmatprep.subr.bf16.mxu0 %v15648_v48  ;;  %v15655_v58 = vld [vmem:[%s20574_s3 + $0xb0] sm:$0xff]  }
 0x72a   :  { %14157 = vmatprep.subr.bf16.mxu1 %v15649_v44  ;;  %v15656_v48 = vld [vmem:[%s20574_s3 + $0x30] sm:$0xff]  }
 0x72c   :  { %13078 = vmatpush3.bf16.msra.mxu0 %v15650_v34 }
 0x72d   :  { %14158 = vmatpush3.bf16.msra.mxu1 %v15649_v44  ;;  %13079 = vmatprep.subr.bf16.mxu0 %v15651_v32  ;;  %v15657_v44 = vld [vmem:[%s20574_s3 + $0x78] sm:$0xff]  }
 0x72e   :  { %v12819_v54 = vpop.f32.mrb[216].mxu0  ;;  %14159 = vmatprep.subr.bf16.mxu1 %v15652_v2 }
 0x72f   :  { %v12820_v6 = vpop.f32.mrb[217].mxu0  ;;  %v14027_v23 = vpop.f32.mrb[120].mxu1 }
 0x730   :  { %v12821_v46 = vadd.f32 %v12820_v6, %v12819_v54  ;;  %v12822_v12 = vpop.f32.mrb[218].mxu0  ;;  %13080 = vmatpush3.bf16.msra.mxu0 %v15653_v0  ;;  %v8217_v5 = vpop.f32.mrb[121].mxu1  ;;  %v15658_v54 = vld [vmem:[%s20574_s3 + $0xb8] sm:$0xff]  }
 0x731   :  { %v12823_v14 = vpop.f32.mrb[219].mxu0  ;;  %14160 = vmatpush3.bf16.msra.mxu1 %v15652_v2  ;;  %v14028_v61 = vpop.f32.mrb[122].mxu1  ;;  %13081 = vmatprep.subr.bf16.mxu0 %v15654_v59 }
 0x732   :  { %v12824_v7 = vadd.f32 %v12823_v14, %v12822_v12  ;;  %v8218_v4 = vadd.f32 %v12821_v46, %v8217_v5  ;;  %v8220_v39 = vpop.f32.mrb[123].mxu1  ;;  %14161 = vmatprep.subr.bf16.mxu1 %v15655_v58  ;;  %v15659_v12 = vld [vmem:[%s20574_s3 + $0x38] sm:$0xff]   ;;  %v15660_v14 = vld [vmem:[%s20574_s3 + $0x100] sm:$0xff]  }
 0x734   :  { %v8221_v51 = vadd.f32 %v12824_v7, %v8220_v39  ;;  %13082 = vmatpush3.bf16.msra.mxu0 %v15656_v48  ;;  %v19411_v34 = vmul.f32 0.05103104, %v8218_v4  ;;  %v15661_v4 = vld [vmem:[%s20574_s3 + $0x140] sm:$0xff]  }
 0x735   :  { %14162 = vmatpush3.bf16.msra.mxu1 %v15655_v58  ;;  %13083 = vmatprep.subr.bf16.mxu0 %v15657_v44 }
 0x736   :  { %v19413_v32 = vmul.f32 0.05103104, %v8221_v51  ;;  %14163 = vmatprep.subr.bf16.mxu1 %v15658_v54  ;;  %v12825_v2 = vpop.f32.mrb[220].mxu0  ;;  %v15662_v51 = vld [vmem:[%s20574_s3 + $0xc0] sm:$0xff]  }
 0x737   :  { %v12826_v6 = vpop.f32.mrb[221].mxu0 }
 0x738   :  { %13084 = vmatpush3.bf16.msra.mxu0 %v15659_v12  ;;  %v12827_v0 = vadd.f32 %v12826_v6, %v12825_v2  ;;  %v12828_v5 = vpop.f32.mrb[222].mxu0  ;;  %v15665_v2 = vld [vmem:[%s20574_s3 + $0xc8] sm:$0xff]   ;;  %v15666_v6 = vld [vmem:[%s20574_s3 + $0x110] sm:$0xff]   ;;  %v20592_v16 = vpack.c.bf16 %v19413_v32, %v19411_v34 }
 0x739   :  { %14164 = vmatpush3.bf16.msra.mxu1 %v15658_v54  ;;  %13107 = vmatprep.subr.bf16.mxu0 %v15660_v14  ;;  %v12829_v59 = vpop.f32.mrb[223].mxu0  ;;  %v15664_v54 = vld [vmem:[%s20574_s3 + $0x148] sm:$0xff]   ;;  %v15667_v12 = vld [vmem:[%s20574_s3 + $0x150] sm:$0xff]   ;;  %v15670_v14 = vld [vmem:[%s20574_s3 + $0x158] sm:$0xff]  }
 0x73a   :  { %v8226_v7 = vadd.f32 %v14027_v23, %v12827_v0  ;;  %14169 = vmatprep.subr.bf16.mxu1 %v15661_v4  ;;  %v12830_v39 = vadd.f32 %v12829_v59, %v12828_v5  ;;  %v15663_v23 = vld [vmem:[%s20574_s3 + $0x108] sm:$0xff]   ;;  %v15668_v0 = vld [vmem:[%s20574_s3 + $0xd0] sm:$0xff]   ;;  %v15669_v5 = vld [vmem:[%s20574_s3 + $0x118] sm:$0xff]  }
 0x73b   :  { %8853 = vmatmul.mubr.bf16.vlgmr.msra.gmra.mrb[16].mxu0 %v19227_v38  ;;  %v15671_v59 = vld [vmem:[%s20574_s3 + $0xd8] sm:$0xff]  }
 0x73c   :  { %v19430_v58 = vmul.f32 0.05103104, %v8226_v7  ;;  %13108 = vmatpush3.bf16.msra.mxu0 %v15662_v51  ;;  %14166 = vmatmul.mubr.bf16.vlgmr.msra.gmra.mrb[148].mxu1 %v19238_v60  ;;  %v8229_v48 = vadd.f32 %v14028_v61, %v12830_v39  ;;  %v15672_v7 = vld [vmem:[%s20574_s3 + $0x120] sm:$0xff]   ;;  %v15675_v51 = vld [vmem:[%s20574_s3 + $0x128] sm:$0xff]  }
 0x73d   :  { %14170 = vmatpush3.bf16.msra.mxu1 %v15661_v4  ;;  %13109 = vmatprep.subr.bf16.mxu0 %v15663_v23  ;;  %v15673_v4 = vld [vmem:[%s20574_s3 + $0x160] sm:$0xff]   ;;  %v15676_v23 = vld [vmem:[%s20574_s3 + $0x168] sm:$0xff]  }
 0x73e   :  { %v19439_v44 = vmul.f32 0.05103104, %v8229_v48  ;;  %14171 = vmatprep.subr.bf16.mxu1 %v15664_v54  ;;  %8860 = vmatprep.mubr.bf16.mxu0 %v19252_v26  ;;  %v15674_v39 = vld [vmem:[%s20574_s3 + $0xe0] sm:$0xff]  }
 0x73f   :  { %14185 = vmatprep.mubr.bf16.mxu1 %v19148_v50 }
 0x740   :  { %13110 = vmatpush3.bf16.msra.mxu0 %v15665_v2 }
 0x741   :  { %14172 = vmatpush3.bf16.msra.mxu1 %v15664_v54  ;;  %13111 = vmatprep.subr.bf16.mxu0 %v15666_v6 }
 0x742   :  { %14173 = vmatprep.subr.bf16.mxu1 %v15667_v12 }
 0x743   :  { %8861 = vmatmul.mubr.bf16.gmra.mrb[20].mxu0 %v19270_v27 }
 0x744   :  { %13112 = vmatpush3.bf16.msra.mxu0 %v15668_v0  ;;  %8950 = vmatprep.mubr.bf16.mxu0 %v19279_v9  ;;  %v15677_v0 = vld [vmem:[%s20574_s3 + $0xe8] sm:$0xff]  }
 0x745   :  { %14174 = vmatpush3.bf16.msra.mxu1 %v15667_v12  ;;  %13113 = vmatprep.subr.bf16.mxu0 %v15669_v5 }
 0x746   :  { %14175 = vmatprep.subr.bf16.mxu1 %v15670_v14 }
 0x748   :  { %13114 = vmatpush3.bf16.msra.mxu0 %v15671_v59 }
 0x749   :  { %14176 = vmatpush3.bf16.msra.mxu1 %v15670_v14  ;;  %13115 = vmatprep.subr.bf16.mxu0 %v15672_v7  ;;  %v15678_v7 = vld [vmem:[%s20574_s3 + $0x130] sm:$0xff]  }
 0x74a   :  { %14177 = vmatprep.subr.bf16.mxu1 %v15673_v4 }
 0x74c   :  { %13116 = vmatpush3.bf16.msra.mxu0 %v15674_v39 }
 0x74d   :  { %14178 = vmatpush3.bf16.msra.mxu1 %v15673_v4  ;;  %13117 = vmatprep.subr.bf16.mxu0 %v15675_v51 }
 0x74e   :  { %v12857_v48 = vpop.f32.mrb[224].mxu0  ;;  %14179 = vmatprep.subr.bf16.mxu1 %v15676_v23 }
 0x74f   :  { %v12858_v54 = vpop.f32.mrb[225].mxu0  ;;  %v14047_v2 = vpop.f32.mrb[124].mxu1 }
 0x750   :  { %v12859_v6 = vadd.f32 %v12858_v54, %v12857_v48  ;;  %v12860_v12 = vpop.f32.mrb[226].mxu0  ;;  %13118 = vmatpush3.bf16.msra.mxu0 %v15677_v0  ;;  %v8315_v5 = vpop.f32.mrb[125].mxu1  ;;  %v15679_v48 = vld [vmem:[%s20574_s3 + $0x170] sm:$0xff]  }
 0x751   :  { %v12861_v14 = vpop.f32.mrb[227].mxu0  ;;  %14180 = vmatpush3.bf16.msra.mxu1 %v15676_v23  ;;  %v14048_v59 = vpop.f32.mrb[126].mxu1  ;;  %13119 = vmatprep.subr.bf16.mxu0 %v15678_v7  ;;  %v15680_v0 = vld [vmem:[%s20574_s3 + $0xf0] sm:$0xff]   ;;  %v15681_v23 = vld [vmem:[%s20574_s3 + $0x138] sm:$0xff]  }
 0x752   :  { %v12862_v4 = vadd.f32 %v12861_v14, %v12860_v12  ;;  %v8316_v39 = vadd.f32 %v12859_v6, %v8315_v5  ;;  %v8318_v51 = vpop.f32.mrb[127].mxu1  ;;  %14181 = vmatprep.subr.bf16.mxu1 %v15679_v48  ;;  %v15682_v6 = vld [vmem:[%s20574_s3 + $0x178] sm:$0xff]  }
 0x753   :  { %v15683_v7 = vld [vmem:[%s20574_s3 + $0xf8] sm:$0xff]  }
 0x754   :  { %v8319_v54 = vadd.f32 %v12862_v4, %v8318_v51  ;;  %13120 = vmatpush3.bf16.msra.mxu0 %v15680_v0  ;;  %v15685_v0 = vld [vmem:[%s20574_s3 + $0x200] sm:$0xff]  }
 0x755   :  { %14182 = vmatpush3.bf16.msra.mxu1 %v15679_v48  ;;  %13121 = vmatprep.subr.bf16.mxu0 %v15681_v23 }
 0x756   :  { %v19501_v12 = vpack.c.bf16 %v8319_v54, %v8316_v39  ;;  %14183 = vmatprep.subr.bf16.mxu1 %v15682_v6  ;;  %v12863_v5 = vpop.f32.mrb[228].mxu0  ;;  %v15684_v39 = vld [vmem:[%s20574_s3 + $0x1c0] sm:$0xff]  }
 0x757   :  { %v12864_v14 = vpop.f32.mrb[229].mxu0 }
 0x758   :  { %13122 = vmatpush3.bf16.msra.mxu0 %v15683_v7  ;;  %v12865_v4 = vadd.f32 %v12864_v14, %v12863_v5  ;;  %v12866_v51 = vpop.f32.mrb[230].mxu0  ;;  %v15686_v5 = vld [vmem:[%s20574_s3 + $0x180] sm:$0xff]   ;;  %v15688_v7 = vld [vmem:[%s20574_s3 + $0x208] sm:$0xff]  }
 0x759   :  { %14184 = vmatpush3.bf16.msra.mxu1 %v15682_v6  ;;  %13145 = vmatprep.subr.bf16.mxu0 %v15684_v39  ;;  %v12867_v48 = vpop.f32.mrb[231].mxu0  ;;  %v15692_v39 = vld [vmem:[%s20574_s3 + $0x190] sm:$0xff]  }
 0x75a   :  { %v8324_v54 = vadd.f32 %v14047_v2, %v12865_v4  ;;  %14189 = vmatprep.subr.bf16.mxu1 %v15685_v0  ;;  %v12868_v23 = vadd.f32 %v12867_v48, %v12866_v51  ;;  %v15687_v2 = vld [vmem:[%s20574_s3 + $0x1c8] sm:$0xff]   ;;  %v15690_v4 = vld [vmem:[%s20574_s3 + $0x1d0] sm:$0xff]   ;;  %v15693_v48 = vld [vmem:[%s20574_s3 + $0x1d8] sm:$0xff]  }
 0x75b   :  { %8951 = vmatmul.mubr.bf16.vlgmr.msra.gmra.mrb[24].mxu0 %v19227_v38  ;;  %v15691_v51 = vld [vmem:[%s20574_s3 + $0x210] sm:$0xff]  }
 0x75c   :  { %13146 = vmatpush3.bf16.msra.mxu0 %v15686_v5  ;;  %14186 = vmatmul.mubr.bf16.vlgmr.msra.gmra.mrb[152].mxu1 %v19238_v60  ;;  %v8327_v6 = vadd.f32 %v14048_v59, %v12868_v23  ;;  %v15689_v59 = vld [vmem:[%s20574_s3 + $0x188] sm:$0xff]   ;;  %v15696_v23 = vld [vmem:[%s20574_s3 + $0x1e0] sm:$0xff]  }
 0x75d   :  { %14190 = vmatpush3.bf16.msra.mxu1 %v15685_v0  ;;  %13147 = vmatprep.subr.bf16.mxu0 %v15687_v2  ;;  %v15695_v0 = vld [vmem:[%s20574_s3 + $0x198] sm:$0xff]   ;;  %v15697_v5 = vld [vmem:[%s20574_s3 + $0x220] sm:$0xff]   ;;  %v15699_v2 = vld [vmem:[%s20574_s3 + $0x1e8] sm:$0xff]  }
 0x75e   :  { %v19523_v14 = vpack.c.bf16 %v8327_v6, %v8324_v54  ;;  %14191 = vmatprep.subr.bf16.mxu1 %v15688_v7  ;;  %8958 = vmatprep.mubr.bf16.mxu0 %v19252_v26  ;;  %v15694_v54 = vld [vmem:[%s20574_s3 + $0x218] sm:$0xff]   ;;  %v15698_v6 = vld [vmem:[%s20574_s3 + $0x1a0] sm:$0xff]  }
 0x75f   :  { %14205 = vmatprep.mubr.bf16.mxu1 %v19148_v50 }
 0x760   :  { %13148 = vmatpush3.bf16.msra.mxu0 %v15689_v59  ;;  %v15700_v59 = vld [vmem:[%s20574_s3 + $0x228] sm:$0xff]   ;;  %v9478_v15 = vsel %vm5453_vm0, %v19523_v14, 0 }
 0x761   :  { %14192 = vmatpush3.bf16.msra.mxu1 %v15688_v7  ;;  %13149 = vmatprep.subr.bf16.mxu0 %v15690_v4 }
 0x762   :  { %14193 = vmatprep.subr.bf16.mxu1 %v15691_v51 }
 0x763   :  { %8959 = vmatmul.mubr.bf16.gmra.mrb[28].mxu0 %v19270_v27 }
 0x764   :  { %13150 = vmatpush3.bf16.msra.mxu0 %v15692_v39  ;;  %9048 = vmatprep.mubr.bf16.mxu0 %v19279_v9 }
 0x765   :  { %14194 = vmatpush3.bf16.msra.mxu1 %v15691_v51  ;;  %13151 = vmatprep.subr.bf16.mxu0 %v15693_v48 }
 0x766   :  { %14195 = vmatprep.subr.bf16.mxu1 %v15694_v54 }
 0x768   :  { %13152 = vmatpush3.bf16.msra.mxu0 %v15695_v0 }
 0x769   :  { %14196 = vmatpush3.bf16.msra.mxu1 %v15694_v54  ;;  %13153 = vmatprep.subr.bf16.mxu0 %v15696_v23  ;;  %v15701_v54 = vld [vmem:[%s20574_s3 + $0x1a8] sm:$0xff]  }
 0x76a   :  { %14197 = vmatprep.subr.bf16.mxu1 %v15697_v5 }
 0x76c   :  { %13154 = vmatpush3.bf16.msra.mxu0 %v15698_v6  ;;  %v15702_v6 = vld [vmem:[%s20574_s3 + $0x1f0] sm:$0xff]  }
 0x76d   :  { %14198 = vmatpush3.bf16.msra.mxu1 %v15697_v5  ;;  %13155 = vmatprep.subr.bf16.mxu0 %v15699_v2 }
 0x76e   :  { %v12895_v7 = vpop.f32.mrb[232].mxu0  ;;  %14199 = vmatprep.subr.bf16.mxu1 %v15700_v59 }
 0x76f   :  { %v12896_v4 = vpop.f32.mrb[233].mxu0  ;;  %v14067_v51 = vpop.f32.mrb[128].mxu1 }
 0x770   :  { %v12897_v39 = vadd.f32 %v12896_v4, %v12895_v7  ;;  %v12898_v48 = vpop.f32.mrb[234].mxu0  ;;  %13156 = vmatpush3.bf16.msra.mxu0 %v15701_v54  ;;  %v8413_v0 = vpop.f32.mrb[129].mxu1  ;;  %v15703_v7 = vld [vmem:[%s20574_s3 + $0x230] sm:$0xff]  }
 0x771   :  { %v12899_v23 = vpop.f32.mrb[235].mxu0  ;;  %14200 = vmatpush3.bf16.msra.mxu1 %v15700_v59  ;;  %v14068_v5 = vpop.f32.mrb[130].mxu1  ;;  %13157 = vmatprep.subr.bf16.mxu0 %v15702_v6  ;;  %v15704_v54 = vld [vmem:[%s20574_s3 + $0x1b0] sm:$0xff]   ;;  %v15705_v59 = vld [vmem:[%s20574_s3 + $0x1f8] sm:$0xff]  }
 0x772   :  { %v12900_v2 = vadd.f32 %v12899_v23, %v12898_v48  ;;  %v8414_v10 = vadd.f32 %v12897_v39, %v8413_v0  ;;  %v8416_v61 = vpop.f32.mrb[131].mxu1  ;;  %14201 = vmatprep.subr.bf16.mxu1 %v15703_v7  ;;  %v15706_v39 = vld [vmem:[%s20574_s3 + $0x238] sm:$0xff]  }
 0x773   :  { %v15707_v23 = vld [vmem:[%s20574_s3 + $0x1b8] sm:$0xff]  }
 0x774   :  { %v8417_v4 = vadd.f32 %v12900_v2, %v8416_v61  ;;  %13158 = vmatpush3.bf16.msra.mxu0 %v15704_v54  ;;  %v15709_v54 = vld [vmem:[%s20574_s3 + $0x2c0] sm:$0xff]  }
 0x775   :  { %14202 = vmatpush3.bf16.msra.mxu1 %v15703_v7  ;;  %13159 = vmatprep.subr.bf16.mxu0 %v15705_v59 }
 0x776   :  { %v19583_v48 = vpack.c.bf16 %v8417_v4, %v8414_v10  ;;  %14203 = vmatprep.subr.bf16.mxu1 %v15706_v39  ;;  %v12901_v0 = vpop.f32.mrb[236].mxu0  ;;  %v15708_v10 = vld [vmem:[%s20574_s3 + $0x280] sm:$0xff]  }
 0x777   :  { %v12902_v61 = vpop.f32.mrb[237].mxu0 }
 0x778   :  { %13160 = vmatpush3.bf16.msra.mxu0 %v15707_v23  ;;  %v12903_v6 = vadd.f32 %v12902_v61, %v12901_v0  ;;  %v12904_v2 = vpop.f32.mrb[238].mxu0  ;;  %v15710_v0 = vld [vmem:[%s20574_s3 + $0x240] sm:$0xff]   ;;  %v15712_v23 = vld [vmem:[%s20574_s3 + $0x2c8] sm:$0xff]  }
 0x779   :  { %14204 = vmatpush3.bf16.msra.mxu1 %v15706_v39  ;;  %13183 = vmatprep.subr.bf16.mxu0 %v15708_v10  ;;  %v12905_v7 = vpop.f32.mrb[239].mxu0  ;;  %v15716_v10 = vld [vmem:[%s20574_s3 + $0x250] sm:$0xff]  }
 0x77a   :  { %v8422_v4 = vadd.f32 %v14067_v51, %v12903_v6  ;;  %14209 = vmatprep.subr.bf16.mxu1 %v15709_v54  ;;  %v12906_v59 = vadd.f32 %v12905_v7, %v12904_v2  ;;  %v15711_v51 = vld [vmem:[%s20574_s3 + $0x288] sm:$0xff]   ;;  %v15714_v6 = vld [vmem:[%s20574_s3 + $0x290] sm:$0xff]   ;;  %v15717_v7 = vld [vmem:[%s20574_s3 + $0x298] sm:$0xff]  }
 0x77b   :  { %9049 = vmatmul.mubr.bf16.vlgmr.msra.gmra.mrb[32].mxu0 %v19227_v38  ;;  %v15715_v2 = vld [vmem:[%s20574_s3 + $0x2d0] sm:$0xff]  }
 0x77c   :  { %13184 = vmatpush3.bf16.msra.mxu0 %v15710_v0  ;;  %14206 = vmatmul.mubr.bf16.vlgmr.msra.gmra.mrb[156].mxu1 %v19238_v60  ;;  %v8425_v39 = vadd.f32 %v14068_v5, %v12906_v59  ;;  %v15713_v5 = vld [vmem:[%s20574_s3 + $0x248] sm:$0xff]   ;;  %v15720_v59 = vld [vmem:[%s20574_s3 + $0x2a0] sm:$0xff]  }
 0x77d   :  { %14210 = vmatpush3.bf16.msra.mxu1 %v15709_v54  ;;  %13185 = vmatprep.subr.bf16.mxu0 %v15711_v51  ;;  %v15719_v54 = vld [vmem:[%s20574_s3 + $0x258] sm:$0xff]   ;;  %v15721_v0 = vld [vmem:[%s20574_s3 + $0x2e0] sm:$0xff]   ;;  %v15723_v51 = vld [vmem:[%s20574_s3 + $0x2a8] sm:$0xff]  }
 0x77e   :  { %v19605_v61 = vpack.c.bf16 %v8425_v39, %v8422_v4  ;;  %14211 = vmatprep.subr.bf16.mxu1 %v15712_v23  ;;  %9056 = vmatprep.mubr.bf16.mxu0 %v19252_v26  ;;  %v15718_v4 = vld [vmem:[%s20574_s3 + $0x2d8] sm:$0xff]   ;;  %v15722_v39 = vld [vmem:[%s20574_s3 + $0x260] sm:$0xff]  }
 0x77f   :  { %14225 = vmatprep.mubr.bf16.mxu1 %v19148_v50 }
 0x780   :  { %13186 = vmatpush3.bf16.msra.mxu0 %v15713_v5  ;;  %v15724_v5 = vld [vmem:[%s20574_s3 + $0x2e8] sm:$0xff]   ;;  %v9539_v43 = vsel %vm5453_vm0, %v19605_v61, 0 }
 0x781   :  { %14212 = vmatpush3.bf16.msra.mxu1 %v15712_v23  ;;  %13187 = vmatprep.subr.bf16.mxu0 %v15714_v6 }
 0x782   :  { %14213 = vmatprep.subr.bf16.mxu1 %v15715_v2 }
 0x783   :  { %9057 = vmatmul.mubr.bf16.gmra.mrb[36].mxu0 %v19270_v27 }
 0x784   :  { %13188 = vmatpush3.bf16.msra.mxu0 %v15716_v10  ;;  %9146 = vmatprep.mubr.bf16.mxu0 %v19279_v9 }
 0x785   :  { %14214 = vmatpush3.bf16.msra.mxu1 %v15715_v2  ;;  %13189 = vmatprep.subr.bf16.mxu0 %v15717_v7 }
 0x786   :  { %14215 = vmatprep.subr.bf16.mxu1 %v15718_v4 }
 0x788   :  { %13190 = vmatpush3.bf16.msra.mxu0 %v15719_v54 }
 0x789   :  { %14216 = vmatpush3.bf16.msra.mxu1 %v15718_v4  ;;  %13191 = vmatprep.subr.bf16.mxu0 %v15720_v59  ;;  %v15725_v4 = vld [vmem:[%s20574_s3 + $0x268] sm:$0xff]  }
 0x78a   :  { %14217 = vmatprep.subr.bf16.mxu1 %v15721_v0 }
 0x78c   :  { %13192 = vmatpush3.bf16.msra.mxu0 %v15722_v39  ;;  %v15726_v39 = vld [vmem:[%s20574_s3 + $0x2b0] sm:$0xff]  }
 0x78d   :  { %14218 = vmatpush3.bf16.msra.mxu1 %v15721_v0  ;;  %13193 = vmatprep.subr.bf16.mxu0 %v15723_v51 }
 0x78e   :  { %v12933_v23 = vpop.f32.mrb[240].mxu0  ;;  %14219 = vmatprep.subr.bf16.mxu1 %v15724_v5 }
 0x78f   :  { %v12934_v6 = vpop.f32.mrb[241].mxu0  ;;  %v14087_v2 = vpop.f32.mrb[132].mxu1 }
 0x790   :  { %v12935_v10 = vadd.f32 %v12934_v6, %v12933_v23  ;;  %v12936_v7 = vpop.f32.mrb[242].mxu0  ;;  %13194 = vmatpush3.bf16.msra.mxu0 %v15725_v4  ;;  %v8511_v54 = vpop.f32.mrb[133].mxu1  ;;  %v15727_v23 = vld [vmem:[%s20574_s3 + $0x2f0] sm:$0xff]  }
 0x791   :  { %v12937_v59 = vpop.f32.mrb[243].mxu0  ;;  %14220 = vmatpush3.bf16.msra.mxu1 %v15724_v5  ;;  %v14088_v0 = vpop.f32.mrb[134].mxu1  ;;  %13195 = vmatprep.subr.bf16.mxu0 %v15726_v39  ;;  %v15728_v4 = vld [vmem:[%s20574_s3 + $0x270] sm:$0xff]   ;;  %v15729_v5 = vld [vmem:[%s20574_s3 + $0x2b8] sm:$0xff]  }
 0x792   :  { %v12938_v51 = vadd.f32 %v12937_v59, %v12936_v7  ;;  %v8512_v40 = vadd.f32 %v12935_v10, %v8511_v54  ;;  %v8514_v46 = vpop.f32.mrb[135].mxu1  ;;  %14221 = vmatprep.subr.bf16.mxu1 %v15727_v23  ;;  %v15730_v10 = vld [vmem:[%s20574_s3 + $0x2f8] sm:$0xff]  }
 0x793   :  { %v15731_v59 = vld [vmem:[%s20574_s3 + $0x278] sm:$0xff]  }
 0x794   :  { %v8515_v6 = vadd.f32 %v12938_v51, %v8514_v46  ;;  %13196 = vmatpush3.bf16.msra.mxu0 %v15728_v4  ;;  %v15733_v4 = vld [vmem:[%s20574_s3 + $0x380] sm:$0xff]  }
 0x795   :  { %14222 = vmatpush3.bf16.msra.mxu1 %v15727_v23  ;;  %13197 = vmatprep.subr.bf16.mxu0 %v15729_v5 }
 0x796   :  { %v19665_v7 = vpack.c.bf16 %v8515_v6, %v8512_v40  ;;  %14223 = vmatprep.subr.bf16.mxu1 %v15730_v10  ;;  %v12939_v54 = vpop.f32.mrb[244].mxu0  ;;  %v15732_v40 = vld [vmem:[%s20574_s3 + $0x340] sm:$0xff]  }
 0x797   :  { %v12940_v46 = vpop.f32.mrb[245].mxu0 }
 0x798   :  { %13198 = vmatpush3.bf16.msra.mxu0 %v15731_v59  ;;  %v12941_v39 = vadd.f32 %v12940_v46, %v12939_v54  ;;  %v12942_v51 = vpop.f32.mrb[246].mxu0  ;;  %v15734_v54 = vld [vmem:[%s20574_s3 + $0x300] sm:$0xff]   ;;  %v15736_v59 = vld [vmem:[%s20574_s3 + $0x388] sm:$0xff]  }
 0x799   :  { %14224 = vmatpush3.bf16.msra.mxu1 %v15730_v10  ;;  %13221 = vmatprep.subr.bf16.mxu0 %v15732_v40  ;;  %v12943_v23 = vpop.f32.mrb[247].mxu0  ;;  %v15740_v40 = vld [vmem:[%s20574_s3 + $0x310] sm:$0xff]  }
 0x79a   :  { %v8520_v6 = vadd.f32 %v14087_v2, %v12941_v39  ;;  %14229 = vmatprep.subr.bf16.mxu1 %v15733_v4  ;;  %v12944_v5 = vadd.f32 %v12943_v23, %v12942_v51  ;;  %v15735_v2 = vld [vmem:[%s20574_s3 + $0x348] sm:$0xff]   ;;  %v15738_v39 = vld [vmem:[%s20574_s3 + $0x350] sm:$0xff]   ;;  %v15741_v23 = vld [vmem:[%s20574_s3 + $0x358] sm:$0xff]  }
 0x79b   :  { %9147 = vmatmul.mubr.bf16.vlgmr.msra.gmra.mrb[40].mxu0 %v19227_v38  ;;  %v15739_v51 = vld [vmem:[%s20574_s3 + $0x390] sm:$0xff]  }
 0x79c   :  { %13222 = vmatpush3.bf16.msra.mxu0 %v15734_v54  ;;  %14226 = vmatmul.mubr.bf16.vlgmr.msra.gmra.mrb[160].mxu1 %v19238_v60  ;;  %v8523_v10 = vadd.f32 %v14088_v0, %v12944_v5  ;;  %v15737_v0 = vld [vmem:[%s20574_s3 + $0x308] sm:$0xff]   ;;  %v15744_v5 = vld [vmem:[%s20574_s3 + $0x360] sm:$0xff]  }
 0x79d   :  { %14230 = vmatpush3.bf16.msra.mxu1 %v15733_v4  ;;  %13223 = vmatprep.subr.bf16.mxu0 %v15735_v2  ;;  %v15743_v4 = vld [vmem:[%s20574_s3 + $0x318] sm:$0xff]   ;;  %v15745_v54 = vld [vmem:[%s20574_s3 + $0x3a0] sm:$0xff]   ;;  %v15747_v2 = vld [vmem:[%s20574_s3 + $0x368] sm:$0xff]  }
 0x79e   :  { %v19687_v46 = vpack.c.bf16 %v8523_v10, %v8520_v6  ;;  %14231 = vmatprep.subr.bf16.mxu1 %v15736_v59  ;;  %9154 = vmatprep.mubr.bf16.mxu0 %v19252_v26  ;;  %v15742_v6 = vld [vmem:[%s20574_s3 + $0x398] sm:$0xff]   ;;  %v15746_v10 = vld [vmem:[%s20574_s3 + $0x320] sm:$0xff]  }
 0x79f   :  { %14245 = vmatprep.mubr.bf16.mxu1 %v19148_v50 }
 0x7a0   :  { %13224 = vmatpush3.bf16.msra.mxu0 %v15737_v0  ;;  %v15748_v0 = vld [vmem:[%s20574_s3 + $0x3a8] sm:$0xff]   ;;  %v9600_v19 = vsel %vm5453_vm0, %v19687_v46, 0 }
 0x7a1   :  { %14232 = vmatpush3.bf16.msra.mxu1 %v15736_v59  ;;  %13225 = vmatprep.subr.bf16.mxu0 %v15738_v39 }
 0x7a2   :  { %14233 = vmatprep.subr.bf16.mxu1 %v15739_v51 }
 0x7a3   :  { %9155 = vmatmul.mubr.bf16.gmra.mrb[44].mxu0 %v19270_v27 }
 0x7a4   :  { %13226 = vmatpush3.bf16.msra.mxu0 %v15740_v40  ;;  %9244 = vmatprep.mubr.bf16.mxu0 %v19279_v9 }
 0x7a5   :  { %14234 = vmatpush3.bf16.msra.mxu1 %v15739_v51  ;;  %13227 = vmatprep.subr.bf16.mxu0 %v15741_v23 }
 0x7a6   :  { %14235 = vmatprep.subr.bf16.mxu1 %v15742_v6 }
 0x7a8   :  { %13228 = vmatpush3.bf16.msra.mxu0 %v15743_v4 }
 0x7a9   :  { %14236 = vmatpush3.bf16.msra.mxu1 %v15742_v6  ;;  %13229 = vmatprep.subr.bf16.mxu0 %v15744_v5  ;;  %v15749_v6 = vld [vmem:[%s20574_s3 + $0x328] sm:$0xff]  }
 0x7aa   :  { %14237 = vmatprep.subr.bf16.mxu1 %v15745_v54 }
 0x7ac   :  { %13230 = vmatpush3.bf16.msra.mxu0 %v15746_v10  ;;  %v15750_v10 = vld [vmem:[%s20574_s3 + $0x370] sm:$0xff]  }
 0x7ad   :  { %14238 = vmatpush3.bf16.msra.mxu1 %v15745_v54  ;;  %13231 = vmatprep.subr.bf16.mxu0 %v15747_v2 }
 0x7ae   :  { %v12971_v59 = vpop.f32.mrb[248].mxu0  ;;  %14239 = vmatprep.subr.bf16.mxu1 %v15748_v0 }
 0x7af   :  { %v12972_v39 = vpop.f32.mrb[249].mxu0  ;;  %v14107_v51 = vpop.f32.mrb[136].mxu1 }
 0x7b0   :  { %v12973_v40 = vadd.f32 %v12972_v39, %v12971_v59  ;;  %v12974_v23 = vpop.f32.mrb[250].mxu0  ;;  %13232 = vmatpush3.bf16.msra.mxu0 %v15749_v6  ;;  %v8609_v4 = vpop.f32.mrb[137].mxu1  ;;  %v15751_v59 = vld [vmem:[%s20574_s3 + $0x3b0] sm:$0xff]  }
 0x7b1   :  { %v12975_v5 = vpop.f32.mrb[251].mxu0  ;;  %14240 = vmatpush3.bf16.msra.mxu1 %v15748_v0  ;;  %v14108_v54 = vpop.f32.mrb[138].mxu1  ;;  %13233 = vmatprep.subr.bf16.mxu0 %v15750_v10  ;;  %v15752_v6 = vld [vmem:[%s20574_s3 + $0x330] sm:$0xff]   ;;  %v15753_v0 = vld [vmem:[%s20574_s3 + $0x378] sm:$0xff]  }
 0x7b2   :  { %v12976_v2 = vadd.f32 %v12975_v5, %v12974_v23  ;;  %v8610_v3 = vadd.f32 %v12973_v40, %v8609_v4  ;;  %v8612_v24 = vpop.f32.mrb[139].mxu1  ;;  %14241 = vmatprep.subr.bf16.mxu1 %v15751_v59  ;;  %v15754_v40 = vld [vmem:[%s20574_s3 + $0x3b8] sm:$0xff]  }
 0x7b3   :  { %v15755_v5 = vld [vmem:[%s20574_s3 + $0x338] sm:$0xff]  }
 0x7b4   :  { %v8613_v39 = vadd.f32 %v12976_v2, %v8612_v24  ;;  %13234 = vmatpush3.bf16.msra.mxu0 %v15752_v6  ;;  %v15757_v6 = vld [vmem:[%s20574_s3 + $0x440] sm:$0xff]  }
 0x7b5   :  { %14242 = vmatpush3.bf16.msra.mxu1 %v15751_v59  ;;  %13235 = vmatprep.subr.bf16.mxu0 %v15753_v0 }
 0x7b6   :  { %v19747_v23 = vpack.c.bf16 %v8613_v39, %v8610_v3  ;;  %14243 = vmatprep.subr.bf16.mxu1 %v15754_v40  ;;  %v12977_v4 = vpop.f32.mrb[252].mxu0  ;;  %v15756_v3 = vld [vmem:[%s20574_s3 + $0x400] sm:$0xff]  }
 0x7b7   :  { %v12978_v24 = vpop.f32.mrb[253].mxu0 }
 0x7b8   :  { %13236 = vmatpush3.bf16.msra.mxu0 %v15755_v5  ;;  %v12979_v10 = vadd.f32 %v12978_v24, %v12977_v4  ;;  %v12980_v2 = vpop.f32.mrb[254].mxu0  ;;  %v15758_v4 = vld [vmem:[%s20574_s3 + $0x3c0] sm:$0xff]   ;;  %v15760_v5 = vld [vmem:[%s20574_s3 + $0x448] sm:$0xff]   ;;  %v9658_v36 = vsel %vm5453_vm0, %v19747_v23, 0 }
 0x7b9   :  { %14244 = vmatpush3.bf16.msra.mxu1 %v15754_v40  ;;  %13259 = vmatprep.subr.bf16.mxu0 %v15756_v3  ;;  %v12981_v59 = vpop.f32.mrb[255].mxu0  ;;  %v15765_v3 = vld [vmem:[%s20574_s3 + $0x418] sm:$0xff]  }
 0x7ba   :  { %v8618_v39 = vadd.f32 %v14107_v51, %v12979_v10  ;;  %14249 = vmatprep.subr.bf16.mxu1 %v15757_v6  ;;  %v12982_v0 = vadd.f32 %v12981_v59, %v12980_v2  ;;  %v15759_v51 = vld [vmem:[%s20574_s3 + $0x408] sm:$0xff]   ;;  %v15762_v10 = vld [vmem:[%s20574_s3 + $0x410] sm:$0xff]   ;;  %v15766_v59 = vld [vmem:[%s20574_s3 + $0x458] sm:$0xff]  }
 0x7bb   :  { %9245 = vmatmul.mubr.bf16.vlgmr.msra.gmra.mrb[48].mxu0 %v19227_v38  ;;  %v15763_v2 = vld [vmem:[%s20574_s3 + $0x450] sm:$0xff]  }
 0x7bc   :  { %13260 = vmatpush3.bf16.msra.mxu0 %v15758_v4  ;;  %14246 = vmatmul.mubr.bf16.vlgmr.msra.gmra.mrb[164].mxu1 %v19238_v60  ;;  %v8621_v40 = vadd.f32 %v14108_v54, %v12982_v0  ;;  %v15761_v54 = vld [vmem:[%s20574_s3 + $0x3c8] sm:$0xff]   ;;  %v15770_v0 = vld [vmem:[%s20574_s3 + $0x3e0] sm:$0xff]  }
 0x7bd   :  { %14250 = vmatpush3.bf16.msra.mxu1 %v15757_v6  ;;  %13261 = vmatprep.subr.bf16.mxu0 %v15759_v51  ;;  %v15769_v6 = vld [vmem:[%s20574_s3 + $0x460] sm:$0xff]   ;;  %v15771_v4 = vld [vmem:[%s20574_s3 + $0x428] sm:$0xff]  }
 0x7be   :  { %v19769_v24 = vpack.c.bf16 %v8621_v40, %v8618_v39  ;;  %14251 = vmatprep.subr.bf16.mxu1 %v15760_v5  ;;  %9252 = vmatprep.mubr.bf16.mxu0 %v19252_v26  ;;  %v15767_v39 = vld [vmem:[%s20574_s3 + $0x3d8] sm:$0xff]   ;;  %v15772_v51 = vld [vmem:[%s20574_s3 + $0x468] sm:$0xff]  }
 0x7bf   :  { %14265 = vmatprep.mubr.bf16.mxu1 %v19148_v50  ;;  %v15764_v50 = vld [vmem:[%s20574_s3 + $0x3d0] sm:$0xff]  }
 0x7c0   :  { %13262 = vmatpush3.bf16.msra.mxu0 %v15761_v54 }
 0x7c1   :  { %14252 = vmatpush3.bf16.msra.mxu1 %v15760_v5  ;;  %13263 = vmatprep.subr.bf16.mxu0 %v15762_v10 }
 0x7c2   :  { %14253 = vmatprep.subr.bf16.mxu1 %v15763_v2 }
 0x7c3   :  { %9253 = vmatmul.mubr.bf16.gmra.mrb[52].mxu0 %v19270_v27 }
 0x7c4   :  { %13264 = vmatpush3.bf16.msra.mxu0 %v15764_v50  ;;  %9342 = vmatprep.mubr.bf16.mxu0 %v19279_v9  ;;  %v15768_v9 = vld [vmem:[%s20574_s3 + $0x420] sm:$0xff]   ;;  %v15773_v50 = vld [vmem:[%s20574_s3 + $0x3e8] sm:$0xff]  }
 0x7c5   :  { %14254 = vmatpush3.bf16.msra.mxu1 %v15763_v2  ;;  %13265 = vmatprep.subr.bf16.mxu0 %v15765_v3 }
 0x7c6   :  { %14255 = vmatprep.subr.bf16.mxu1 %v15766_v59 }
 0x7c8   :  { %13266 = vmatpush3.bf16.msra.mxu0 %v15767_v39 }
 0x7c9   :  { %14256 = vmatpush3.bf16.msra.mxu1 %v15766_v59  ;;  %13267 = vmatprep.subr.bf16.mxu0 %v15768_v9  ;;  %v15774_v9 = vld [vmem:[%s20574_s3 + $0x430] sm:$0xff]  }
 0x7ca   :  { %14257 = vmatprep.subr.bf16.mxu1 %v15769_v6 }
 0x7cc   :  { %13268 = vmatpush3.bf16.msra.mxu0 %v15770_v0 }
 0x7cd   :  { %14258 = vmatpush3.bf16.msra.mxu1 %v15769_v6  ;;  %13269 = vmatprep.subr.bf16.mxu0 %v15771_v4 }
 0x7ce   :  { %v13009_v40 = vpop.f32.mrb[0].mxu0  ;;  %14259 = vmatprep.subr.bf16.mxu1 %v15772_v51 }
 0x7cf   :  { %v13010_v5 = vpop.f32.mrb[1].mxu0  ;;  %v14127_v54 = vpop.f32.mrb[140].mxu1 }
 0x7d0   :  { %v13011_v10 = vadd.f32 %v13010_v5, %v13009_v40  ;;  %v13012_v2 = vpop.f32.mrb[2].mxu0  ;;  %13270 = vmatpush3.bf16.msra.mxu0 %v15773_v50  ;;  %v8707_v3 = vpop.f32.mrb[141].mxu1  ;;  %v15775_v40 = vld [vmem:[%s20574_s3 + $0x470] sm:$0xff]  }
 0x7d1   :  { %v13013_v59 = vpop.f32.mrb[3].mxu0  ;;  %14260 = vmatpush3.bf16.msra.mxu1 %v15772_v51  ;;  %v14128_v39 = vpop.f32.mrb[142].mxu1  ;;  %13271 = vmatprep.subr.bf16.mxu0 %v15774_v9  ;;  %v15776_v50 = vld [vmem:[%s20574_s3 + $0x3f0] sm:$0xff]   ;;  %v15777_v51 = vld [vmem:[%s20574_s3 + $0x438] sm:$0xff]  }
 0x7d2   :  { %v13014_v6 = vadd.f32 %v13013_v59, %v13012_v2  ;;  %v8708_v0 = vadd.f32 %v13011_v10, %v8707_v3  ;;  %v8710_v4 = vpop.f32.mrb[143].mxu1  ;;  %14261 = vmatprep.subr.bf16.mxu1 %v15775_v40  ;;  %v15778_v10 = vld [vmem:[%s20574_s3 + $0x478] sm:$0xff]  }
 0x7d3   :  { %v15779_v9 = vld [vmem:[%s20574_s3 + $0x3f8] sm:$0xff]  }
 0x7d4   :  { %v8711_v5 = vadd.f32 %v13014_v6, %v8710_v4  ;;  %13272 = vmatpush3.bf16.msra.mxu0 %v15776_v50 }
 0x7d5   :  { %14262 = vmatpush3.bf16.msra.mxu1 %v15775_v40  ;;  %13273 = vmatprep.subr.bf16.mxu0 %v15777_v51 }
 0x7d6   :  { %v19829_v2 = vpack.c.bf16 %v8711_v5, %v8708_v0  ;;  %14263 = vmatprep.subr.bf16.mxu1 %v15778_v10  ;;  %v13015_v3 = vpop.f32.mrb[4].mxu0 }
 0x7d7   :  { %v13016_v59 = vpop.f32.mrb[5].mxu0 }
 0x7d8   :  { %13274 = vmatpush3.bf16.msra.mxu0 %v15779_v9  ;;  %v13017_v6 = vadd.f32 %v13016_v59, %v13015_v3  ;;  %v13018_v4 = vpop.f32.mrb[6].mxu0  ;;  %v20593_v59 = vpack.c.bf16 %v19349_v18, %v19340_v13 }
 0x7d9   :  { %14264 = vmatpush3.bf16.msra.mxu1 %v15778_v10  ;;  %14569 = vmatprep.subr.msk.bf16.mxu0 %vm5453_vm0, %v19501_v12  ;;  %v13019_v0 = vpop.f32.mrb[7].mxu0  ;;  %v9475_v10 = vsel %vm5453_vm0, %v19501_v12, 0 }
 0x7da   :  { %14571 = vmatprep.subr.msk.bf16.mxu1 %vm5453_vm0, %v19583_v48  ;;  %v8716_v40 = vadd.f32 %v14127_v54, %v13017_v6  ;;  %v13020_v5 = vadd.f32 %v13019_v0, %v13018_v4  ;;  %v9536_v54 = vsel %vm5453_vm0, %v19583_v48, 0  ;;  %v20594_v0 = vpack.c.bf16 %v19439_v44, %v19430_v58 }
 0x7db   :  { %9343 = vmatmul.mubr.bf16.vlgmr.msra.gmra.mrb[56].mxu0 %v19227_v38 }
 0x7dc   :  { %14266 = vmatmul.mubr.bf16.vlgmr.msra.gmra.mrb[168].mxu1 %v19238_v60  ;;  %v8719_v50 = vadd.f32 %v14128_v39, %v13020_v5  ;;  %9350 = vmatprep.mubr.bf16.mxu0 %v19252_v26  ;;  %v9597_v26 = vsel %vm5453_vm0, %v19665_v7, 0  ;;  %v20591_v39 = vpack.c.bf16 %v19244_v37, %v19230_v63 }
 0x7dd   :  { %14281 = vmatprep.mubr.msk.bf16.mxu1 %vm5453_vm0, %v9434_v56 }
 0x7de   :  { %v19848_v51 = vpack.c.bf16 %v8719_v50, %v8716_v40 }
 0x7e1   :  { %14270 = vmatpush3.bf16.xpose.msra.mxu0 %v9475_v10 }
 0x7e2   :  { %14570 = vmatprep.subr.msk.bf16.mxu0 %vm5453_vm0, %v19523_v14  ;;  %14278 = vmatpush3.bf16.xpose.msra.mxu1 %v9536_v54 }
 0x7e3   :  { %9351 = vmatmul.mubr.bf16.gmra.mrb[60].mxu0 %v19270_v27  ;;  %14572 = vmatprep.subr.msk.bf16.mxu1 %vm5453_vm0, %v19605_v61 }
 0x7e4   :  { %14273 = vmatprep.mubr.msk.bf16.mxu0 %vm5453_vm0, %v9432_v11 }
 0x7e9   :  { %14272 = vmatpush3.bf16.xpose.msra.mxu0 %v9478_v15 }
 0x7ea   :  { %14280 = vmatpush3.bf16.xpose.msra.mxu1 %v9539_v43  ;;  %14573 = vmatprep.subr.msk.bf16.mxu0 %vm5453_vm0, %v19665_v7  ;;  %v9661_v7 = vsel %vm5453_vm0, %v19769_v24, 0 }
 0x7eb   :  { %14575 = vmatprep.subr.msk.bf16.mxu1 %vm5453_vm0, %v19747_v23 }
 0x7ee   :  { %v13047_v56 = vpop.f32.mrb[8].mxu0 }
 0x7ef   :  { %v13048_v38 = vpop.f32.mrb[9].mxu0  ;;  %v14147_v60 = vpop.f32.mrb[144].mxu1 }
 0x7f0   :  { %v13049_v49 = vadd.f32 %v13048_v38, %v13047_v56  ;;  %v13050_v8 = vpop.f32.mrb[10].mxu0  ;;  %14274 = vmatmul.mubr.msk.bf16.vlgmr.msra.gmra.mrb[64].mxu0 %vm5453_vm0, %v9433_v29  ;;  %v8805_v11 = vpop.f32.mrb[145].mxu1 }
 0x7f1   :  { %v13051_v27 = vpop.f32.mrb[11].mxu0  ;;  %14282 = vmatmul.mubr.msk.bf16.vlgmr.msra.gmra.mrb[172].mxu1 %vm5453_vm0, %v9435_v45  ;;  %14286 = vmatpush3.bf16.xpose.msra.mxu0 %v9597_v26  ;;  %v14148_v12 = vpop.f32.mrb[146].mxu1 }
 0x7f2   :  { %v13052_v14 = vadd.f32 %v13051_v27, %v13050_v8  ;;  %v8806_v48 = vadd.f32 %v13049_v49, %v8805_v11  ;;  %14289 = vmatprep.mubr.msk.bf16.mxu0 %vm5453_vm0, %v9436_v41  ;;  %14574 = vmatprep.subr.msk.bf16.mxu0 %vm5453_vm0, %v19687_v46  ;;  %v8808_v47 = vpop.f32.mrb[147].mxu1  ;;  %v9719_v46 = vsel %vm5453_vm0, %v19829_v2, 0 }
 0x7f3   :  { %14294 = vmatpush3.bf16.xpose.msra.mxu1 %v9658_v36  ;;  %14297 = vmatprep.mubr.msk.bf16.mxu1 %vm5453_vm0, %v9438_v20 }
 0x7f4   :  { %v8809_v29 = vadd.f32 %v13052_v14, %v8808_v47  ;;  %14576 = vmatprep.subr.msk.bf16.mxu1 %vm5453_vm0, %v19769_v24  ;;  %v20590_v24 = vpack.c.bf16 %v19323_v57, %v19321_v25 }
 0x7f6   :  { %v9454_v55 = vpack.c.bf16 %v8809_v29, %v8806_v48  ;;  %v13053_v17 = vpop.f32.mrb[12].mxu0 }
 0x7f7   :  { %v13054_v45 = vpop.f32.mrb[13].mxu0 }
 0x7f8   :  { %v13055_v35 = vadd.f32 %v13054_v45, %v13053_v17  ;;  %v13056_v41 = vpop.f32.mrb[14].mxu0  ;;  %v9780_v53 = vsel %vm5453_vm0, %v9454_v55, 0 }
 0x7f9   :  { %14288 = vmatpush3.bf16.xpose.msra.mxu0 %v9600_v19  ;;  %v13057_v61 = vpop.f32.mrb[15].mxu0 }
 0x7fa   :  { %14577 = vmatprep.subr.msk.bf16.mxu0 %vm5453_vm0, %v19829_v2  ;;  %v8814_v21 = vadd.f32 %v14147_v60, %v13055_v35  ;;  %v13058_v31 = vadd.f32 %v13057_v61, %v13056_v41 }
 0x7fb   :  { %14296 = vmatpush3.bf16.xpose.msra.mxu1 %v9661_v7 }
 0x7fc   :  { %14579 = vmatprep.subr.msk.bf16.mxu1 %vm5453_vm0, %v9454_v55  ;;  %v8817_v20 = vadd.f32 %v14148_v12, %v13058_v31 }
 0x7fe   :  { %v9455_v23 = vpack.c.bf16 %v8817_v20, %v8814_v21 }
 0x800   :  { %14290 = vmatmul.mubr.msk.bf16.vlgmr.msra.gmra.mrb[68].mxu0 %vm5453_vm0, %v9437_v52  ;;  %v9722_v52 = vsel %vm5453_vm0, %v19848_v51, 0  ;;  %v9783_v63 = vsel %vm5453_vm0, %v9455_v23, 0 }
 0x801   :  { %14302 = vmatpush3.bf16.xpose.msra.mxu0 %v9719_v46  ;;  %14305 = vmatprep.mubr.msk.bf16.mxu0 %vm5453_vm0, %v20590_v24 }
 0x802   :  { %14298 = vmatmul.mubr.msk.bf16.vlgmr.msra.gmra.mrb[176].mxu1 %vm5453_vm0, %v20591_v39  ;;  %14578 = vmatprep.subr.msk.bf16.mxu0 %vm5453_vm0, %v19848_v51 }
 0x803   :  { %14310 = vmatpush3.bf16.xpose.msra.mxu1 %v9780_v53  ;;  %14313 = vmatprep.mubr.msk.bf16.mxu1 %vm5453_vm0, %v20592_v16 }
 0x804   :  { %14580 = vmatprep.subr.msk.bf16.mxu1 %vm5453_vm0, %v9455_v23 }
 0x809   :  { %14304 = vmatpush3.bf16.xpose.msra.mxu0 %v9722_v52 }
 0x80b   :  { %14312 = vmatpush3.bf16.xpose.msra.mxu1 %v9783_v63 }
 0x80e   :  { %v13085_v37 = vpop.f32.mrb[16].mxu0 }
 0x80f   :  { %v13086_v25 = vpop.f32.mrb[17].mxu0  ;;  %v14167_v57 = vpop.f32.mrb[148].mxu1 }
 0x810   :  { %v13087_v2 = vadd.f32 %v13086_v25, %v13085_v37  ;;  %v13088_v3 = vpop.f32.mrb[18].mxu0  ;;  %14306 = vmatmul.mubr.msk.bf16.vlgmr.msra.gmra.mrb[72].mxu0 %vm5453_vm0, %v20593_v59  ;;  %v8903_v34 = vpop.f32.mrb[149].mxu1 }
 0x811   :  { %v13089_v32 = vpop.f32.mrb[19].mxu0  ;;  %v14168_v9 = vpop.f32.mrb[150].mxu1 }
 0x812   :  { %v13090_v6 = vadd.f32 %v13089_v32, %v13088_v3  ;;  %v8904_v4 = vadd.f32 %v13087_v2, %v8903_v34  ;;  %14314 = vmatmul.mubr.msk.bf16.vlgmr.msra.gmra.mrb[180].mxu1 %vm5453_vm0, %v20594_v0  ;;  %v8906_v40 = vpop.f32.mrb[151].mxu1 }
 0x814   :  { %v8907_v5 = vadd.f32 %v13090_v6, %v8906_v40 }
 0x816   :  { %v9456_v50 = vpack.c.bf16 %v8907_v5, %v8904_v4  ;;  %v13091_v51 = vpop.f32.mrb[20].mxu0 }
 0x817   :  { %v13092_v10 = vpop.f32.mrb[21].mxu0 }
 0x818   :  { %14317 = vmatprep.subr.bf16.mxu0 %v9456_v50  ;;  %v13093_v54 = vadd.f32 %v13092_v10, %v13091_v51  ;;  %v13094_v13 = vpop.f32.mrb[22].mxu0 }
 0x819   :  { %14318 = vmatpush3.bf16.msra.mxu0 %v9456_v50  ;;  %v13095_v18 = vpop.f32.mrb[23].mxu0 }
 0x81a   :  { %v8912_v15 = vadd.f32 %v14167_v57, %v13093_v54  ;;  %v13096_v43 = vadd.f32 %v13095_v18, %v13094_v13 }
 0x81c   :  { %v8915_v56 = vadd.f32 %v14168_v9, %v13096_v43 }
 0x81e   :  { %v9457_v38 = vpack.c.bf16 %v8915_v56, %v8912_v15 }
 0x820   :  { %14319 = vmatprep.subr.bf16.mxu0 %v9457_v38 }
 0x821   :  { %14320 = vmatpush3.bf16.msra.mxu0 %v9457_v38 }
 0x82e   :  { %v13123_v60 = vpop.f32.mrb[24].mxu0 }
 0x82f   :  { %v13124_v58 = vpop.f32.mrb[25].mxu0  ;;  %v14187_v44 = vpop.f32.mrb[152].mxu1 }
 0x830   :  { %v13125_v49 = vadd.f32 %v13124_v58, %v13123_v60  ;;  %v13126_v8 = vpop.f32.mrb[26].mxu0  ;;  %v9001_v11 = vpop.f32.mrb[153].mxu1 }
 0x831   :  { %v13127_v26 = vpop.f32.mrb[27].mxu0  ;;  %v14188_v27 = vpop.f32.mrb[154].mxu1 }
 0x832   :  { %v13128_v12 = vadd.f32 %v13127_v26, %v13126_v8  ;;  %v9002_v14 = vadd.f32 %v13125_v49, %v9001_v11  ;;  %v9004_v48 = vpop.f32.mrb[155].mxu1 }
 0x834   :  { %v9005_v36 = vadd.f32 %v13128_v12, %v9004_v48 }
 0x836   :  { %v9458_v47 = vpack.c.bf16 %v9005_v36, %v9002_v14  ;;  %v13129_v29 = vpop.f32.mrb[28].mxu0 }
 0x837   :  { %v13130_v55 = vpop.f32.mrb[29].mxu0 }
 0x838   :  { %14325 = vmatprep.subr.bf16.mxu1 %v9458_v47  ;;  %v13131_v17 = vadd.f32 %v13130_v55, %v13129_v29  ;;  %v13132_v45 = vpop.f32.mrb[30].mxu0 }
 0x839   :  { %14326 = vmatpush3.bf16.msra.mxu1 %v9458_v47  ;;  %v13133_v19 = vpop.f32.mrb[31].mxu0 }
 0x83a   :  { %v9010_v35 = vadd.f32 %v14187_v44, %v13131_v17  ;;  %v13134_v41 = vadd.f32 %v13133_v19, %v13132_v45 }
 0x83c   :  { %v9013_v61 = vadd.f32 %v14188_v27, %v13134_v41 }
 0x83e   :  { %v9459_v7 = vpack.c.bf16 %v9013_v61, %v9010_v35 }
 0x840   :  { %14327 = vmatprep.subr.bf16.mxu1 %v9459_v7 }
 0x841   :  { %14328 = vmatpush3.bf16.msra.mxu1 %v9459_v7 }
 0x84e   :  { %v13161_v21 = vpop.f32.mrb[32].mxu0 }
 0x84f   :  { %v13162_v31 = vpop.f32.mrb[33].mxu0  ;;  %v14207_v20 = vpop.f32.mrb[156].mxu1 }
 0x850   :  { %v13163_v23 = vadd.f32 %v13162_v31, %v13161_v21  ;;  %v13164_v46 = vpop.f32.mrb[34].mxu0  ;;  %v9099_v24 = vpop.f32.mrb[157].mxu1 }
 0x851   :  { %v13165_v39 = vpop.f32.mrb[35].mxu0  ;;  %v14208_v53 = vpop.f32.mrb[158].mxu1 }
 0x852   :  { %v13166_v16 = vadd.f32 %v13165_v39, %v13164_v46  ;;  %v9100_v52 = vadd.f32 %v13163_v23, %v9099_v24  ;;  %v9102_v63 = vpop.f32.mrb[159].mxu1 }
 0x854   :  { %v9103_v37 = vadd.f32 %v13166_v16, %v9102_v63 }
 0x856   :  { %v19935_v25 = vpack.c.bf16 %v9103_v37, %v9100_v52  ;;  %v13167_v57 = vpop.f32.mrb[36].mxu0 }
 0x857   :  { %v13168_v2 = vpop.f32.mrb[37].mxu0 }
 0x858   :  { %14333 = vmatprep.subr.bf16.mxu0 %v19935_v25  ;;  %v13169_v3 = vadd.f32 %v13168_v2, %v13167_v57  ;;  %v13170_v59 = vpop.f32.mrb[38].mxu0 }
 0x859   :  { %v13171_v34 = vpop.f32.mrb[39].mxu0 }
 0x85a   :  { %v9108_v32 = vadd.f32 %v14207_v20, %v13169_v3  ;;  %v13172_v9 = vadd.f32 %v13171_v34, %v13170_v59 }
 0x85c   :  { %v9111_v6 = vadd.f32 %v14208_v53, %v13172_v9 }
 0x85e   :  { %v19938_v4 = vpack.c.bf16 %v9111_v6, %v9108_v32 }
 0x86e   :  { %v13199_v0 = vpop.f32.mrb[40].mxu0 }
 0x86f   :  { %v13200_v40 = vpop.f32.mrb[41].mxu0  ;;  %v14227_v5 = vpop.f32.mrb[160].mxu1 }
 0x870   :  { %v13201_v50 = vadd.f32 %v13200_v40, %v13199_v0  ;;  %v13202_v51 = vpop.f32.mrb[42].mxu0  ;;  %v9197_v10 = vpop.f32.mrb[161].mxu1 }
 0x871   :  { %v13203_v54 = vpop.f32.mrb[43].mxu0  ;;  %v14228_v13 = vpop.f32.mrb[162].mxu1 }
 0x872   :  { %v13204_v18 = vadd.f32 %v13203_v54, %v13202_v51  ;;  %v9198_v15 = vadd.f32 %v13201_v50, %v9197_v10  ;;  %v9200_v43 = vpop.f32.mrb[163].mxu1 }
 0x874   :  { %v9201_v56 = vadd.f32 %v13204_v18, %v9200_v43 }
 0x876   :  { %v19940_v38 = vpack.c.bf16 %v9201_v56, %v9198_v15  ;;  %v13205_v60 = vpop.f32.mrb[44].mxu0 }
 0x877   :  { %v13206_v58 = vpop.f32.mrb[45].mxu0 }
 0x878   :  { %14341 = vmatprep.subr.bf16.mxu1 %v19940_v38  ;;  %v13207_v44 = vadd.f32 %v13206_v58, %v13205_v60  ;;  %v13208_v49 = vpop.f32.mrb[46].mxu0 }
 0x879   :  { %v13209_v8 = vpop.f32.mrb[47].mxu0 }
 0x87a   :  { %v9206_v11 = vadd.f32 %v14227_v5, %v13207_v44  ;;  %v13210_v26 = vadd.f32 %v13209_v8, %v13208_v49 }
 0x87c   :  { %v9209_v27 = vadd.f32 %v14228_v13, %v13210_v26 }
 0x87e   :  { %v19943_v12 = vpack.c.bf16 %v9209_v27, %v9206_v11 }
 0x88e   :  { %v13237_v14 = vpop.f32.mrb[48].mxu0 }
 0x88f   :  { %v13238_v48 = vpop.f32.mrb[49].mxu0  ;;  %v14247_v36 = vpop.f32.mrb[164].mxu1 }
 0x890   :  { %v13239_v47 = vadd.f32 %v13238_v48, %v13237_v14  ;;  %v13240_v29 = vpop.f32.mrb[50].mxu0  ;;  %v9295_v55 = vpop.f32.mrb[165].mxu1 }
 0x891   :  { %v13241_v17 = vpop.f32.mrb[51].mxu0  ;;  %v14248_v45 = vpop.f32.mrb[166].mxu1 }
 0x892   :  { %v13242_v19 = vadd.f32 %v13241_v17, %v13240_v29  ;;  %v9296_v35 = vadd.f32 %v13239_v47, %v9295_v55  ;;  %v9298_v41 = vpop.f32.mrb[167].mxu1 }
 0x894   :  { %v9299_v61 = vadd.f32 %v13242_v19, %v9298_v41 }
 0x896   :  { %v19945_v7 = vpack.c.bf16 %v9299_v61, %v9296_v35  ;;  %v13243_v21 = vpop.f32.mrb[52].mxu0 }
 0x897   :  { %v13244_v31 = vpop.f32.mrb[53].mxu0 }
 0x898   :  { %v13245_v20 = vadd.f32 %v13244_v31, %v13243_v21  ;;  %v13246_v23 = vpop.f32.mrb[54].mxu0 }
 0x899   :  { %v13247_v46 = vpop.f32.mrb[55].mxu0 }
 0x89a   :  { %v9304_v24 = vadd.f32 %v14247_v36, %v13245_v20  ;;  %v13248_v39 = vadd.f32 %v13247_v46, %v13246_v23 }
 0x89c   :  { %v9307_v53 = vadd.f32 %v14248_v45, %v13248_v39 }
 0x89e   :  { %v19947_v16 = vpack.c.bf16 %v9307_v53, %v9304_v24 }
 0x8ae   :  { %v13275_v52 = vpop.f32.mrb[56].mxu0 }
 0x8af   :  { %v13276_v63 = vpop.f32.mrb[57].mxu0  ;;  %v14267_v37 = vpop.f32.mrb[168].mxu1 }
 0x8b0   :  { %v13277_v57 = vadd.f32 %v13276_v63, %v13275_v52  ;;  %v13278_v2 = vpop.f32.mrb[58].mxu0  ;;  %v9393_v3 = vpop.f32.mrb[169].mxu1 }
 0x8b1   :  { %v13279_v59 = vpop.f32.mrb[59].mxu0  ;;  %v14268_v34 = vpop.f32.mrb[170].mxu1 }
 0x8b2   :  { %v13280_v32 = vadd.f32 %v13279_v59, %v13278_v2  ;;  %v9394_v9 = vadd.f32 %v13277_v57, %v9393_v3  ;;  %v9396_v6 = vpop.f32.mrb[171].mxu1 }
 0x8b4   :  { %v9397_v0 = vadd.f32 %v13280_v32, %v9396_v6 }
 0x8b6   :  { %v19949_v40 = vpack.c.bf16 %v9397_v0, %v9394_v9  ;;  %v13281_v5 = vpop.f32.mrb[60].mxu0 }
 0x8b7   :  { %v13282_v50 = vpop.f32.mrb[61].mxu0 }
 0x8b8   :  { %v13283_v51 = vadd.f32 %v13282_v50, %v13281_v5  ;;  %v13284_v10 = vpop.f32.mrb[62].mxu0 }
 0x8b9   :  { %v13285_v54 = vpop.f32.mrb[63].mxu0 }
 0x8ba   :  { %v9402_v13 = vadd.f32 %v14267_v37, %v13283_v51  ;;  %v13286_v18 = vadd.f32 %v13285_v54, %v13284_v10 }
 0x8bc   :  { %v9405_v15 = vadd.f32 %v14268_v34, %v13286_v18 }
 0x8be   :  { %v19951_v43 = vpack.c.bf16 %v9405_v15, %v9402_v13 }
 0x8c3   :  { %v14275_v56 = vpop.f32.mrb[64].mxu0 }
 0x8c4   :  { %v9514_v60 = vpop.f32.mrb[65].mxu0  ;;  %v14283_v58 = vpop.f32.mrb[172].mxu1  ;;  %v19965_v36 = vsel %vm17651_vm1, %v14275_v56, -1e+30 }
 0x8c5   :  { %v19955_v44 = vsel %vm17657_vm2, %v9514_v60, -1e+30  ;;  %v14276_v49 = vpop.f32.mrb[66].mxu0  ;;  %v9575_v8 = vpop.f32.mrb[173].mxu1  ;;  %v9864_v55 = vsel %vm5852_vm3, %v19965_v36, -inf }
 0x8c6   :  { %v9517_v11 = vpop.f32.mrb[67].mxu0  ;;  %v14284_v26 = vpop.f32.mrb[174].mxu1  ;;  %v9858_v48 = vsel %vm5852_vm3, %v19955_v44, -inf  ;;  %v19971_v29 = vsel %vm17665_vm4, %v14276_v49, -1e+30 }
 0x8c7   :  { %v19959_v27 = vsel %vm17673_vm5, %v9517_v11, -1e+30  ;;  %v9578_v14 = vpop.f32.mrb[175].mxu1  ;;  %9859 = vmax.xlane.f32.xlu0 %v9858_v48  ;;  %v19977_v17 = vsel %vm17657_vm2, %v9575_v8, -1e+30  ;;  %v9867_v45 = vsel %vm5852_vm3, %v19971_v29, -inf }
 0x8c8   :  { %v9861_v47 = vsel %vm5852_vm3, %v19959_v27, -inf  ;;  %v19983_v19 = vsel %vm17673_vm5, %v9578_v14, -1e+30  ;;  %v9870_v35 = vsel %vm5852_vm3, %v19977_v17, -inf  ;;  %v19989_v41 = vsel %vm17651_vm1, %v14283_v58, -1e+30 }
 0x8c9   :  { %9862 = vmax.xlane.f32.xlu1 %v9861_v47  ;;  %v9873_v61 = vsel %vm5852_vm3, %v19983_v19, -inf  ;;  %v19995_v21 = vsel %vm17665_vm4, %v14284_v26, -1e+30  ;;  %v9876_v31 = vsel %vm5852_vm3, %v19989_v41, -inf }
 0x8ca   :  { %v9879_v46 = vsel %vm5852_vm3, %v19995_v21, -inf }
 0x8cb   :  { %9865 = vmax.xlane.f32.xlu0 %v9864_v55 }
 0x8cd   :  { %9868 = vmax.xlane.f32.xlu1 %v9867_v45 }
 0x8cf   :  { %9871 = vmax.xlane.f32.xlu0 %v9870_v35 }
 0x8d1   :  { %9874 = vmax.xlane.f32.xlu1 %v9873_v61 }
 0x8d3   :  { %v14291_v20 = vpop.f32.mrb[68].mxu0  ;;  %9877 = vmax.xlane.f32.xlu0 %v9876_v31 }
 0x8d4   :  { %v9636_v23 = vpop.f32.mrb[69].mxu0  ;;  %v20013_v3 = vsel %vm17651_vm1, %v14291_v20, -1e+30 }
 0x8d5   :  { %v20003_v24 = vsel %vm17657_vm2, %v9636_v23, -1e+30  ;;  %v14299_v39 = vpop.f32.mrb[176].mxu1  ;;  %9880 = vmax.xlane.f32.xlu1 %v9879_v46  ;;  %v14292_v53 = vpop.f32.mrb[70].mxu0  ;;  %v9888_v9 = vsel %vm5852_vm3, %v20013_v3, -inf }
 0x8d6   :  { %v9697_v52 = vpop.f32.mrb[177].mxu1  ;;  %v9639_v63 = vpop.f32.mrb[71].mxu0  ;;  %v9882_v2 = vsel %vm5852_vm3, %v20003_v24, -inf  ;;  %v20019_v32 = vsel %vm17665_vm4, %v14292_v53, -1e+30 }
 0x8d7   :  { %v20007_v37 = vsel %vm17673_vm5, %v9639_v63, -1e+30  ;;  %v14300_v57 = vpop.f32.mrb[178].mxu1  ;;  %9883 = vmax.xlane.f32.xlu0 %v9882_v2  ;;  %v20025_v6 = vsel %vm17657_vm2, %v9697_v52, -1e+30  ;;  %v9891_v0 = vsel %vm5852_vm3, %v20019_v32, -inf }
 0x8d8   :  { %v9700_v59 = vpop.f32.mrb[179].mxu1  ;;  %v9885_v34 = vsel %vm5852_vm3, %v20007_v37, -inf  ;;  %v9894_v50 = vsel %vm5852_vm3, %v20025_v6, -inf  ;;  %v20037_v51 = vsel %vm17651_vm1, %v14299_v39, -1e+30 }
 0x8d9   :  { %9886 = vmax.xlane.f32.xlu1 %v9885_v34  ;;  %v20031_v5 = vsel %vm17673_vm5, %v9700_v59, -1e+30  ;;  %v20043_v54 = vsel %vm17665_vm4, %v14300_v57, -1e+30  ;;  %v9900_v13 = vsel %vm5852_vm3, %v20037_v51, -inf }
 0x8da   :  { %v9897_v10 = vsel %vm5852_vm3, %v20031_v5, -inf  ;;  %v9903_v56 = vsel %vm5852_vm3, %v20043_v54, -inf }
 0x8db   :  { %9889 = vmax.xlane.f32.xlu0 %v9888_v9 }
 0x8dd   :  { %9892 = vmax.xlane.f32.xlu1 %v9891_v0 }
 0x8df   :  { %9895 = vmax.xlane.f32.xlu0 %v9894_v50 }
 0x8e1   :  { %9898 = vmax.xlane.f32.xlu1 %v9897_v10 }
 0x8e3   :  { %v14307_v18 = vpop.f32.mrb[72].mxu0  ;;  %9901 = vmax.xlane.f32.xlu0 %v9900_v13 }
 0x8e4   :  { %v9758_v15 = vpop.f32.mrb[73].mxu0  ;;  %v20061_v47 = vsel %vm17651_vm1, %v14307_v18, -1e+30 }
 0x8e5   :  { %v20051_v60 = vsel %vm17657_vm2, %v9758_v15, -1e+30  ;;  %v14315_v58 = vpop.f32.mrb[180].mxu1  ;;  %9904 = vmax.xlane.f32.xlu1 %v9903_v56  ;;  %v14308_v49 = vpop.f32.mrb[74].mxu0  ;;  %v9912_v61 = vsel %vm5852_vm3, %v20061_v47, -inf }
 0x8e6   :  { %v9819_v8 = vpop.f32.mrb[181].mxu1  ;;  %v9761_v11 = vpop.f32.mrb[75].mxu0  ;;  %v9906_v48 = vsel %vm5852_vm3, %v20051_v60, -inf  ;;  %v20067_v35 = vsel %vm17665_vm4, %v14308_v49, -1e+30 }
 0x8e7   :  { %v20055_v26 = vsel %vm17673_vm5, %v9761_v11, -1e+30  ;;  %v14316_v14 = vpop.f32.mrb[182].mxu1  ;;  %9907 = vmax.xlane.f32.xlu0 %v9906_v48  ;;  %v20073_v31 = vsel %vm17657_vm2, %v9819_v8, -1e+30  ;;  %v9915_v20 = vsel %vm5852_vm3, %v20067_v35, -inf }
 0x8e8   :  { %v9822_v55 = vpop.f32.mrb[183].mxu1  ;;  %v9909_v45 = vsel %vm5852_vm3, %v20055_v26, -inf  ;;  %v9918_v46 = vsel %vm5852_vm3, %v20073_v31, -inf  ;;  %v20085_v39 = vsel %vm17651_vm1, %v14315_v58, -1e+30 }
 0x8e9   :  { %9910 = vmax.xlane.f32.xlu1 %v9909_v45  ;;  %v20079_v23 = vsel %vm17673_vm5, %v9822_v55, -1e+30  ;;  %v20091_v53 = vsel %vm17665_vm4, %v14316_v14, -1e+30  ;;  %v9924_v62 = vsel %vm5852_vm3, %v20085_v39, -inf }
 0x8ea   :  { %v9921_v1 = vsel %vm5852_vm3, %v20079_v23, -inf  ;;  %v9927_v52 = vsel %vm5852_vm3, %v20091_v53, -inf }
 0x8eb   :  { %9913 = vmax.xlane.f32.xlu0 %v9912_v61 }
 0x8ed   :  { %9916 = vmax.xlane.f32.xlu1 %v9915_v20 }
 0x8ef   :  { %9919 = vmax.xlane.f32.xlu0 %v9918_v46 }
 0x8f1   :  { %9922 = vmax.xlane.f32.xlu1 %v9921_v1 }
 0x8f3   :  { %9925 = vmax.xlane.f32.xlu0 %v9924_v62 }
 0x8f5   :  { %9928 = vmax.xlane.f32.xlu1 %v9927_v52 }
 0x954   :  { %v9860_v42 = vpop.xlane.xlu0 %9859 }
 0x955   :  { %v9930_v63 = vsub.f32 %v19955_v44, %v9860_v42 }
 0x956   :  { %v9863_v57 = vpop.xlane.xlu1 %9862 }
 0x957   :  { %v9931_v2 = vsub.f32 %v19959_v27, %v9863_v57  ;;  %v9954_v59 = vmul.f32 1.442695, %v9930_v63 }
 0x958   :  { %v9866_v28 = vpop.xlane.xlu0 %9865 }
 0x959   :  { %v9956_v34 = vmul.f32 1.442695, %v9931_v2  ;;  %15225 = vpow2.f32 %v9954_v59  ;;  %v9932_v9 = vsub.f32 %v19965_v36, %v9866_v28 }
 0x95a   :  { %v9869_v0 = vpop.xlane.xlu1 %9868 }
 0x95b   :  { %15227 = vpow2.f32 %v9956_v34  ;;  %v9933_v50 = vsub.f32 %v19971_v29, %v9869_v0  ;;  %v9958_v10 = vmul.f32 1.442695, %v9932_v9 }
 0x95c   :  { %v9872_v18 = vpop.xlane.xlu0 %9871 }
 0x95d   :  { %v9960_v13 = vmul.f32 1.442695, %v9933_v50  ;;  %15229 = vpow2.f32 %v9958_v10  ;;  %v9934_v15 = vsub.f32 %v19977_v17, %v9872_v18 }
 0x95e   :  { %v9875_v44 = vpop.xlane.xlu1 %9874 }
 0x95f   :  { %15231 = vpow2.f32 %v9960_v13  ;;  %v9935_v27 = vsub.f32 %v19983_v19, %v9875_v44  ;;  %v9962_v56 = vmul.f32 1.442695, %v9934_v15 }
 0x960   :  { %v9878_v49 = vpop.xlane.xlu0 %9877 }
 0x961   :  { %v9964_v58 = vmul.f32 1.442695, %v9935_v27  ;;  %15233 = vpow2.f32 %v9962_v56  ;;  %v9936_v36 = vsub.f32 %v19989_v41, %v9878_v49 }
 0x962   :  { %v9881_v8 = vpop.xlane.xlu1 %9880 }
 0x963   :  { %15235 = vpow2.f32 %v9964_v58  ;;  %v9937_v29 = vsub.f32 %v19995_v21, %v9881_v8  ;;  %v20105_v11 = vpop.eup %15225  ;;  %v9966_v14 = vmul.f32 1.442695, %v9936_v36 }
 0x964   :  { %v9884_v55 = vpop.xlane.xlu0 %9883  ;;  %v10002_v19 = vsel %vm5852_vm3, %v20105_v11, 0.0 }
 0x965   :  { %v20107_v48 = vpop.eup %15227  ;;  %v9968_v17 = vmul.f32 1.442695, %v9937_v29  ;;  %15237 = vpow2.f32 %v9966_v14  ;;  %v9938_v45 = vsub.f32 %v20003_v24, %v9884_v55  ;;  %10003 = vadd.xlane.f32.xlu0 %v10002_v19 }
 0x966   :  { %v9887_v61 = vpop.xlane.xlu1 %9886  ;;  %v10005_v41 = vsel %vm5852_vm3, %v20107_v48, 0.0 }
 0x967   :  { %15239 = vpow2.f32 %v9968_v17  ;;  %v9939_v21 = vsub.f32 %v20007_v37, %v9887_v61  ;;  %10006 = vadd.xlane.f32.xlu1 %v10005_v41  ;;  %v20115_v20 = vpop.eup %15229  ;;  %v9970_v46 = vmul.f32 1.442695, %v9938_v45 }
 0x968   :  { %v9890_v52 = vpop.xlane.xlu0 %9889  ;;  %v10008_v42 = vsel %vm5852_vm3, %v20115_v20, 0.0 }
 0x969   :  { %v20117_v1 = vpop.eup %15231  ;;  %v9972_v62 = vmul.f32 1.442695, %v9939_v21  ;;  %15241 = vpow2.f32 %v9970_v46  ;;  %v9940_v24 = vsub.f32 %v20013_v3, %v9890_v52  ;;  %10009 = vadd.xlane.f32.xlu0 %v10008_v42 }
 0x96a   :  { %v9893_v63 = vpop.xlane.xlu1 %9892  ;;  %v10011_v57 = vsel %vm5852_vm3, %v20117_v1, 0.0 }
 0x96b   :  { %15243 = vpow2.f32 %v9972_v62  ;;  %v9941_v37 = vsub.f32 %v20019_v32, %v9893_v63  ;;  %10012 = vadd.xlane.f32.xlu1 %v10011_v57  ;;  %v20125_v2 = vpop.eup %15233  ;;  %v9974_v59 = vmul.f32 1.442695, %v9940_v24 }
 0x96c   :  { %v9896_v9 = vpop.xlane.xlu0 %9895  ;;  %v10014_v0 = vsel %vm5852_vm3, %v20125_v2, 0.0 }
 0x96d   :  { %v20127_v34 = vpop.eup %15235  ;;  %v9976_v28 = vmul.f32 1.442695, %v9941_v37  ;;  %15245 = vpow2.f32 %v9974_v59  ;;  %v9942_v3 = vsub.f32 %v20025_v6, %v9896_v9  ;;  %10015 = vadd.xlane.f32.xlu0 %v10014_v0 }
 0x96e   :  { %v9899_v50 = vpop.xlane.xlu1 %9898  ;;  %v10017_v10 = vsel %vm5852_vm3, %v20127_v34, 0.0 }
 0x96f   :  { %15247 = vpow2.f32 %v9976_v28  ;;  %v9943_v32 = vsub.f32 %v20031_v5, %v9899_v50  ;;  %10018 = vadd.xlane.f32.xlu1 %v10017_v10  ;;  %v20135_v13 = vpop.eup %15237  ;;  %v9978_v18 = vmul.f32 1.442695, %v9942_v3 }
 0x970   :  { %v9902_v27 = vpop.xlane.xlu0 %9901  ;;  %v10020_v56 = vsel %vm5852_vm3, %v20135_v13, 0.0 }
 0x971   :  { %v20137_v15 = vpop.eup %15239  ;;  %v9980_v44 = vmul.f32 1.442695, %v9943_v32  ;;  %15249 = vpow2.f32 %v9978_v18  ;;  %v9944_v6 = vsub.f32 %v20037_v51, %v9902_v27  ;;  %10021 = vadd.xlane.f32.xlu0 %v10020_v56 }
 0x972   :  { %v9905_v58 = vpop.xlane.xlu1 %9904  ;;  %v10023_v49 = vsel %vm5852_vm3, %v20137_v15, 0.0 }
 0x973   :  { %15251 = vpow2.f32 %v9980_v44  ;;  %v9945_v5 = vsub.f32 %v20043_v54, %v9905_v58  ;;  %10024 = vadd.xlane.f32.xlu1 %v10023_v49  ;;  %v20145_v36 = vpop.eup %15241  ;;  %v9982_v8 = vmul.f32 1.442695, %v9944_v6 }
 0x974   :  { %v9908_v17 = vpop.xlane.xlu0 %9907  ;;  %v10026_v55 = vsel %vm5852_vm3, %v20145_v36, 0.0 }
 0x975   :  { %v20147_v29 = vpop.eup %15243  ;;  %v9984_v14 = vmul.f32 1.442695, %v9945_v5  ;;  %15253 = vpow2.f32 %v9982_v8  ;;  %v9946_v51 = vsub.f32 %v20051_v60, %v9908_v17  ;;  %10027 = vadd.xlane.f32.xlu0 %v10026_v55 }
 0x976   :  { %v9911_v19 = vpop.xlane.xlu1 %9910  ;;  %v10029_v45 = vsel %vm5852_vm3, %v20147_v29, 0.0 }
 0x977   :  { %15255 = vpow2.f32 %v9984_v14  ;;  %v9947_v54 = vsub.f32 %v20055_v26, %v9911_v19  ;;  %10030 = vadd.xlane.f32.xlu1 %v10029_v45  ;;  %v20155_v61 = vpop.eup %15245  ;;  %v9986_v41 = vmul.f32 1.442695, %v9946_v51 }
 0x978   :  { %v9914_v62 = vpop.xlane.xlu0 %9913  ;;  %v10032_v52 = vsel %vm5852_vm3, %v20155_v61, 0.0 }
 0x979   :  { %v20157_v21 = vpop.eup %15247  ;;  %v9988_v46 = vmul.f32 1.442695, %v9947_v54  ;;  %15257 = vpow2.f32 %v9986_v41  ;;  %v9948_v60 = vsub.f32 %v20061_v47, %v9914_v62  ;;  %10033 = vadd.xlane.f32.xlu0 %v10032_v52 }
 0x97a   :  { %v9917_v42 = vpop.xlane.xlu1 %9916  ;;  %v10035_v24 = vsel %vm5852_vm3, %v20157_v21, 0.0 }
 0x97b   :  { %15259 = vpow2.f32 %v9988_v46  ;;  %v9949_v26 = vsub.f32 %v20067_v35, %v9917_v42  ;;  %10036 = vadd.xlane.f32.xlu1 %v10035_v24  ;;  %v20165_v63 = vpop.eup %15249  ;;  %v9990_v57 = vmul.f32 1.442695, %v9948_v60 }
 0x97c   :  { %v9920_v28 = vpop.xlane.xlu0 %9919  ;;  %v10038_v9 = vsel %vm5852_vm3, %v20165_v63, 0.0 }
 0x97d   :  { %v20167_v37 = vpop.eup %15251  ;;  %v9992_v59 = vmul.f32 1.442695, %v9949_v26  ;;  %15261 = vpow2.f32 %v9990_v57  ;;  %v9950_v47 = vsub.f32 %v20073_v31, %v9920_v28  ;;  %10039 = vadd.xlane.f32.xlu0 %v10038_v9 }
 0x97e   :  { %v9923_v0 = vpop.xlane.xlu1 %9922  ;;  %v10041_v3 = vsel %vm5852_vm3, %v20167_v37, 0.0 }
 0x97f   :  { %15263 = vpow2.f32 %v9992_v59  ;;  %v9951_v35 = vsub.f32 %v20079_v23, %v9923_v0  ;;  %10042 = vadd.xlane.f32.xlu1 %v10041_v3  ;;  %v20175_v50 = vpop.eup %15253  ;;  %v9994_v10 = vmul.f32 1.442695, %v9950_v47 }
 0x980   :  { %v9926_v44 = vpop.xlane.xlu0 %9925  ;;  %v10044_v27 = vsel %vm5852_vm3, %v20175_v50, 0.0 }
 0x981   :  { %v20177_v32 = vpop.eup %15255  ;;  %v9996_v18 = vmul.f32 1.442695, %v9951_v35  ;;  %15265 = vpow2.f32 %v9994_v10  ;;  %v9952_v31 = vsub.f32 %v20085_v39, %v9926_v44  ;;  %10045 = vadd.xlane.f32.xlu0 %v10044_v27 }
 0x982   :  { %v9929_v56 = vpop.xlane.xlu1 %9928  ;;  %v10047_v6 = vsel %vm5852_vm3, %v20177_v32, 0.0 }
 0x983   :  { %15267 = vpow2.f32 %v9996_v18  ;;  %v9953_v23 = vsub.f32 %v20091_v53, %v9929_v56  ;;  %10048 = vadd.xlane.f32.xlu1 %v10047_v6  ;;  %v20185_v58 = vpop.eup %15257  ;;  %v9998_v49 = vmul.f32 1.442695, %v9952_v31 }
 0x984   :  { %v10050_v14 = vsel %vm5852_vm3, %v20185_v58, 0.0 }
 0x985   :  { %v20187_v5 = vpop.eup %15259  ;;  %v10000_v8 = vmul.f32 1.442695, %v9953_v23  ;;  %15269 = vpow2.f32 %v9998_v49  ;;  %10051 = vadd.xlane.f32.xlu0 %v10050_v14 }
 0x986   :  { %v10053_v39 = vsel %vm5852_vm3, %v20187_v5, 0.0 }
 0x987   :  { %15271 = vpow2.f32 %v10000_v8  ;;  %10054 = vadd.xlane.f32.xlu1 %v10053_v39  ;;  %v20193_v17 = vpop.eup %15261 }
 0x988   :  { %v10056_v55 = vsel %vm5852_vm3, %v20193_v17, 0.0 }
 0x989   :  { %v20195_v53 = vpop.eup %15263  ;;  %10057 = vadd.xlane.f32.xlu0 %v10056_v55 }
 0x98a   :  { %v10059_v51 = vsel %vm5852_vm3, %v20195_v53, 0.0 }
 0x98b   :  { %10060 = vadd.xlane.f32.xlu1 %v10059_v51  ;;  %v20201_v19 = vpop.eup %15265 }
 0x98c   :  { %v10062_v54 = vsel %vm5852_vm3, %v20201_v19, 0.0 }
 0x98d   :  { %v20203_v45 = vpop.eup %15267  ;;  %10063 = vadd.xlane.f32.xlu0 %v10062_v54 }
 0x98e   :  { %v10065_v41 = vsel %vm5852_vm3, %v20203_v45, 0.0 }
 0x98f   :  { %10066 = vadd.xlane.f32.xlu1 %v10065_v41  ;;  %v20209_v46 = vpop.eup %15269 }
 0x990   :  { %v10068_v52 = vsel %vm5852_vm3, %v20209_v46, 0.0 }
 0x991   :  { %v20211_v62 = vpop.eup %15271  ;;  %10069 = vadd.xlane.f32.xlu0 %v10068_v52 }
 0x992   :  { %v10071_v60 = vsel %vm5852_vm3, %v20211_v62, 0.0 }
 0x993   :  { %10072 = vadd.xlane.f32.xlu1 %v10071_v60 }
 0x9f2   :  { %v10004_v42 = vpop.xlane.xlu0 %10003 }
 0x9f3   :  { %15273 = vrcp.f32 %v10004_v42 }
 0x9f4   :  { %v10007_v24 = vpop.xlane.xlu1 %10006 }
 0x9f5   :  { %15275 = vrcp.f32 %v10007_v24 }
 0x9f6   :  { %v10010_v26 = vpop.xlane.xlu0 %10009 }
 0x9f7   :  { %15277 = vrcp.f32 %v10010_v26 }
 0x9f8   :  { %v10013_v57 = vpop.xlane.xlu1 %10012 }
 0x9f9   :  { %15279 = vrcp.f32 %v10013_v57 }
 0x9fa   :  { %v10016_v59 = vpop.xlane.xlu0 %10015 }
 0x9fb   :  { %15281 = vrcp.f32 %v10016_v59 }
 0x9fc   :  { %v10019_v28 = vpop.xlane.xlu1 %10018 }
 0x9fd   :  { %15283 = vrcp.f32 %v10019_v28  ;;  %v15274_v9 = vpop.eup %15273 }
 0x9fe   :  { %v10022_v0 = vpop.xlane.xlu0 %10021  ;;  %v10098_v35 = vmul.f32 %v15274_v9, %v20105_v11 }
 0x9ff   :  { %v15276_v47 = vpop.eup %15275  ;;  %15285 = vrcp.f32 %v10022_v0 }
 0xa00   :  { %v10025_v3 = vpop.xlane.xlu1 %10024  ;;  %v10099_v10 = vmul.f32 %v15276_v47, %v20107_v48 }
 0xa01   :  { %15287 = vrcp.f32 %v10025_v3  ;;  %v15278_v18 = vpop.eup %15277 }
 0xa02   :  { %v10122_v44 = vpack.c.bf16 %v10099_v10, %v10098_v35  ;;  %v10028_v31 = vpop.xlane.xlu0 %10027  ;;  %v10100_v56 = vmul.f32 %v15278_v18, %v20115_v20 }
 0xa03   :  { %v15280_v27 = vpop.eup %15279  ;;  %15289 = vrcp.f32 %v10028_v31 }
 0xa04   :  { %v10101_v6 = vmul.f32 %v15280_v27, %v20117_v1  ;;  %14321 = vmatprep.mubr.msk.bf16.mxu0 %vm5852_vm3, %v10122_v44  ;;  %v10031_v23 = vpop.xlane.xlu1 %10030 }
 0xa05   :  { %15291 = vrcp.f32 %v10031_v23  ;;  %v15282_v49 = vpop.eup %15281 }
 0xa06   :  { %v10123_v8 = vpack.c.bf16 %v10101_v6, %v10100_v56  ;;  %v10034_v11 = vpop.xlane.xlu0 %10033  ;;  %v10102_v39 = vmul.f32 %v15282_v49, %v20125_v2 }
 0xa07   :  { %v15284_v14 = vpop.eup %15283  ;;  %15293 = vrcp.f32 %v10034_v11 }
 0xa08   :  { %14322 = vmatmul.mubr.msk.bf16.vlgmr.msra.gmra.mrb[76].mxu0 %vm5852_vm3, %v10123_v8  ;;  %v10037_v48 = vpop.xlane.xlu1 %10036  ;;  %v10103_v55 = vmul.f32 %v15284_v14, %v20127_v34 }
 0xa09   :  { %14334 = vmatpush3.bf16.msra.mxu0 %v19935_v25  ;;  %15295 = vrcp.f32 %v10037_v48  ;;  %v15286_v20 = vpop.eup %15285 }
 0xa0a   :  { %14335 = vmatprep.subr.bf16.mxu0 %v19938_v4  ;;  %v10124_v1 = vpack.c.bf16 %v10103_v55, %v10102_v39  ;;  %v10040_v54 = vpop.xlane.xlu0 %10039  ;;  %v10104_v41 = vmul.f32 %v15286_v20, %v20135_v13 }
 0xa0b   :  { %v15288_v51 = vpop.eup %15287  ;;  %15297 = vrcp.f32 %v10040_v54 }
 0xa0c   :  { %v10105_v52 = vmul.f32 %v15288_v51, %v20137_v15  ;;  %14329 = vmatprep.mubr.msk.bf16.mxu1 %vm5852_vm3, %v10124_v1  ;;  %v10043_v60 = vpop.xlane.xlu1 %10042  ;;  %v15783_v1 = vld [vmem:[%s20575_s4 + $0x1c] ss:$12 sps:$4 sm:$0xff]  }
 0xa0d   :  { %14336 = vmatpush3.bf16.msra.mxu0 %v19938_v4  ;;  %15299 = vrcp.f32 %v10043_v60  ;;  %v15290_v2 = vpop.eup %15289  ;;  %v15788_v60 = vld [vmem:[%s20575_s4 + $0x4c] ss:$12 sps:$4 sm:$0xff]  }
 0xa0e   :  { %14349 = vmatprep.subr.bf16.mxu0 %v19945_v7  ;;  %v10125_v25 = vpack.c.bf16 %v10105_v52, %v10104_v41  ;;  %v10046_v42 = vpop.xlane.xlu0 %10045  ;;  %v10106_v13 = vmul.f32 %v15290_v2, %v20145_v36  ;;  %v15785_v52 = vld [vmem:[%s20575_s4 + $0x34] ss:$12 sps:$4 sm:$0xff]  }
 0xa0f   :  { %v15292_v34 = vpop.eup %15291  ;;  %15301 = vrcp.f32 %v10046_v42  ;;  %v15789_v2 = vld [vmem:[%s20575_s4 + $0x48] ss:$12 sps:$4 sm:$0xff]   ;;  %v15792_v42 = vld [vmem:[%s20575_s4 + $0x50] ss:$12 sps:$4 sm:$0xff]  }
 0xa10   :  { %14330 = vmatmul.mubr.msk.bf16.vlgmr.msra.gmra.mrb[184].mxu1 %vm5852_vm3, %v10125_v25  ;;  %v10049_v24 = vpop.xlane.xlu1 %10048  ;;  %v10107_v15 = vmul.f32 %v15292_v34, %v20147_v29  ;;  %v15790_v25 = vld [vmem:[%s20575_s4 + $0x38] ss:$12 sps:$4 sm:$0xff]  }
 0xa11   :  { %14342 = vmatpush3.bf16.msra.mxu1 %v19940_v38  ;;  %15303 = vrcp.f32 %v10049_v24  ;;  %v15294_v26 = vpop.eup %15293  ;;  %v15791_v34 = vld [vmem:[%s20575_s4 + $0x64] ss:$12 sps:$4 sm:$0xff]   ;;  %v15793_v24 = vld [vmem:[%s20575_s4 + $0x68] ss:$12 sps:$4 sm:$0xff]  }
 0xa12   :  { %14343 = vmatprep.subr.bf16.mxu1 %v19943_v12  ;;  %v10126_v4 = vpack.c.bf16 %v10107_v15, %v10106_v13  ;;  %v10052_v59 = vpop.xlane.xlu0 %10051  ;;  %v10108_v28 = vmul.f32 %v15294_v26, %v20155_v61 }
 0xa13   :  { %v15296_v57 = vpop.eup %15295  ;;  %15305 = vrcp.f32 %v10052_v59 }
 0xa14   :  { %v10109_v9 = vmul.f32 %v15296_v57, %v20157_v21  ;;  %14337 = vmatprep.mubr.msk.bf16.mxu0 %vm5852_vm3, %v10126_v4  ;;  %v10055_v47 = vpop.xlane.xlu1 %10054 }
 0xa15   :  { %14344 = vmatpush3.bf16.msra.mxu1 %v19943_v12  ;;  %15307 = vrcp.f32 %v10055_v47  ;;  %v15298_v36 = vpop.eup %15297  ;;  %v15795_v47 = vld [vmem:[%s20575_s4 + $0x7c] ss:$12 sps:$4 sm:$0xff]  }
 0xa16   :  { %v10127_v38 = vpack.c.bf16 %v10109_v9, %v10108_v28  ;;  %14357 = vmatprep.subr.bf16.mxu1 %v19949_v40  ;;  %v10058_v0 = vpop.xlane.xlu0 %10057  ;;  %v10110_v61 = vmul.f32 %v15298_v36, %v20165_v63  ;;  %v15794_v28 = vld [vmem:[%s20575_s4 + $0x60] ss:$12 sps:$4 sm:$0xff]  }
 0xa17   :  { %v15300_v29 = vpop.eup %15299  ;;  %15309 = vrcp.f32 %v10058_v0 }
 0xa18   :  { %14338 = vmatmul.mubr.msk.bf16.vlgmr.msra.gmra.mrb[80].mxu0 %vm5852_vm3, %v10127_v38  ;;  %v10061_v3 = vpop.xlane.xlu1 %10060  ;;  %v10111_v21 = vmul.f32 %v15300_v29, %v20167_v37  ;;  %v15780_v37 = vld [vmem:[%s20575_s4 + $0x4] ss:$12 sps:$4 sm:$0xff]   ;;  %v15796_v38 = vld [vmem:[%s20575_s4 + $0x80] ss:$12 sps:$4 sm:$0xff]  }
 0xa19   :  { %14350 = vmatpush3.bf16.msra.mxu0 %v19945_v7  ;;  %15311 = vrcp.f32 %v10061_v3  ;;  %v15302_v35 = vpop.eup %15301 }
 0xa1a   :  { %14351 = vmatprep.subr.bf16.mxu0 %v19947_v16  ;;  %v10128_v12 = vpack.c.bf16 %v10111_v21, %v10110_v61  ;;  %v10064_v18 = vpop.xlane.xlu0 %10063  ;;  %v10112_v44 = vmul.f32 %v15302_v35, %v20175_v50  ;;  %v15797_v61 = vld [vmem:[%s20575_s4 + $0x78] ss:$12 sps:$4 sm:$0xff]   ;;  %v15798_v35 = vld [vmem:[%s20575_s4 + $0x94] ss:$12 sps:$4 sm:$0xff]  }
 0xa1b   :  { %v15304_v10 = vpop.eup %15303  ;;  %15313 = vrcp.f32 %v10064_v18 }
 0xa1c   :  { %v10113_v27 = vmul.f32 %v15304_v10, %v20177_v32  ;;  %14345 = vmatprep.mubr.msk.bf16.mxu1 %vm5852_vm3, %v10128_v12  ;;  %v10067_v31 = vpop.xlane.xlu1 %10066  ;;  %v15799_v12 = vld [vmem:[%s20575_s4 + $0x98] ss:$12 sps:$4 sm:$0xff]   ;;  %v15800_v10 = vld [vmem:[%s20575_s4 + $0x90] ss:$12 sps:$4 sm:$0xff]  }
 0xa1d   :  { %14352 = vmatpush3.bf16.msra.mxu0 %v19947_v16  ;;  %15315 = vrcp.f32 %v10067_v31  ;;  %v15306_v63 = vpop.eup %15305  ;;  %v15802_v31 = vld [vmem:[%s20575_s4 + $0xb0] ss:$12 sps:$4 sm:$0xff]  }
 0xa1e   :  { %v10129_v7 = vpack.c.bf16 %v10113_v27, %v10112_v44  ;;  %10482 = vmatprep.subr.bf16.mxu0 %v15780_v37  ;;  %v10070_v6 = vpop.xlane.xlu0 %10069  ;;  %v10114_v32 = vmul.f32 %v15306_v63, %v20185_v58  ;;  %v15801_v44 = vld [vmem:[%s20575_s4 + $0xac] ss:$12 sps:$4 sm:$0xff]  }
 0xa1f   :  { %v15308_v56 = vpop.eup %15307  ;;  %15317 = vrcp.f32 %v10070_v6 }
 0xa20   :  { %14346 = vmatmul.mubr.msk.bf16.vlgmr.msra.gmra.mrb[188].mxu1 %vm5852_vm3, %v10129_v7  ;;  %v10073_v50 = vpop.xlane.xlu1 %10072  ;;  %v10115_v23 = vmul.f32 %v15308_v56, %v20187_v5  ;;  %v15803_v56 = vld [vmem:[%s20575_s4 + $0xa8] ss:$12 sps:$4 sm:$0xff]  }
 0xa21   :  { %14358 = vmatpush3.bf16.msra.mxu1 %v19949_v40  ;;  %15319 = vrcp.f32 %v10073_v50  ;;  %v15310_v16 = vpop.eup %15309  ;;  %v15781_v40 = vld [vmem:[%s20575_s4 + $0x8] ss:$12 sps:$4 sm:$0xff]   ;;  %v15804_v50 = vld [vmem:[%s20575_s4 + $0xc4] ss:$12 sps:$4 sm:$0xff]  }
 0xa22   :  { %14359 = vmatprep.subr.bf16.mxu1 %v19951_v43  ;;  %v10130_v49 = vpack.c.bf16 %v10115_v23, %v10114_v32  ;;  %v10116_v14 = vmul.f32 %v15310_v16, %v20193_v17  ;;  %v15805_v32 = vld [vmem:[%s20575_s4 + $0xc8] ss:$12 sps:$4 sm:$0xff]   ;;  %v15806_v23 = vld [vmem:[%s20575_s4 + $0xc0] ss:$12 sps:$4 sm:$0xff]  }
 0xa23   :  { %v15312_v8 = vpop.eup %15311 }
 0xa24   :  { %v10117_v11 = vmul.f32 %v15312_v8, %v20195_v53  ;;  %14353 = vmatprep.mubr.msk.bf16.mxu0 %vm5852_vm3, %v10130_v49  ;;  %v15782_v53 = vld [vmem:[%s20575_s4] ss:$12 sps:$4 sm:$0xff]   ;;  %v15807_v8 = vld [vmem:[%s20575_s4 + $0xdc] ss:$12 sps:$4 sm:$0xff]  }
 0xa25   :  { %14360 = vmatpush3.bf16.msra.mxu1 %v19951_v43  ;;  %v15314_v48 = vpop.eup %15313  ;;  %v20595_v43 = vmov 0  }
 0xa26   :  { %v10131_v58 = vpack.c.bf16 %v10117_v11, %v10116_v14  ;;  %14365 = vmatprep.subr.bf16.mxu1 %v15781_v40  ;;  %v10118_v39 = vmul.f32 %v15314_v48, %v20201_v19  ;;  %v15808_v14 = vld [vmem:[%s20575_s4 + $0xe0] ss:$12 sps:$4 sm:$0xff]  }
 0xa27   :  { %v15316_v5 = vpop.eup %15315 }
 0xa28   :  { %14354 = vmatmul.mubr.msk.bf16.vlgmr.msra.gmra.mrb[84].mxu0 %vm5852_vm3, %v10131_v58  ;;  %v10119_v17 = vmul.f32 %v15316_v5, %v20203_v45  ;;  %v15784_v45 = vld [vmem:[%s20575_s4 + $0x18] ss:$12 sps:$4 sm:$0xff]  }
 0xa29   :  { %10483 = vmatpush1.bf16.msra.mxu0 %v15782_v53  ;;  %10514 = vmatprep.mubr.bf16.mxu0 %v20595_v43  ;;  %v15318_v55 = vpop.eup %15317  ;;  %v15812_v53 = vld [vmem:[%s20575_s4 + $0xf0] ss:$12 sps:$4 sm:$0xff]  }
 0xa2a   :  { %v10132_v20 = vpack.c.bf16 %v10119_v17, %v10118_v39  ;;  %10484 = vmatprep.subr.bf16.mxu0 %v15783_v1  ;;  %v10120_v54 = vmul.f32 %v15318_v55, %v20209_v46  ;;  %v15786_v46 = vld [vmem:[%s20575_s4 + $0x30] ss:$12 sps:$4 sm:$0xff]   ;;  %v15810_v39 = vld [vmem:[%s20575_s4 + $0xf4] ss:$12 sps:$4 sm:$0xff]   ;;  %v15811_v17 = vld [vmem:[%s20575_s4 + $0xf8] ss:$12 sps:$4 sm:$0xff]  }
 0xa2b   :  { %v15320_v51 = vpop.eup %15319 }
 0xa2c   :  { %v10121_v19 = vmul.f32 %v15320_v51, %v20211_v62  ;;  %14361 = vmatprep.mubr.msk.bf16.mxu1 %vm5852_vm3, %v10132_v20  ;;  %v15787_v62 = vld [vmem:[%s20575_s4 + $0x20] ss:$12 sps:$4 sm:$0xff]   ;;  %v15814_v51 = vld [vmem:[%s20575_s4 + $0x110] ss:$12 sps:$4 sm:$0xff]  }
 0xa2d   :  { %10485 = vmatpush1.bf16.msra.mxu0 %v15784_v45  ;;  %v15813_v20 = vld [vmem:[%s20575_s4 + $0x10c] ss:$12 sps:$4 sm:$0xff]  }
 0xa2e   :  { %v10133_v41 = vpack.c.bf16 %v10121_v19, %v10120_v54  ;;  %10486 = vmatprep.subr.bf16.mxu0 %v15785_v52 }
 0xa30   :  { %14362 = vmatmul.mubr.msk.bf16.vlgmr.msra.gmra.mrb[192].mxu1 %vm5852_vm3, %v10133_v41  ;;  %v15815_v41 = vld [vmem:[%s20575_s4 + $0x108] ss:$12 sps:$4 sm:$0xff]  }
 0xa31   :  { %14366 = vmatpush3.bf16.msra.mxu1 %v15781_v40  ;;  %10487 = vmatpush1.bf16.msra.mxu0 %v15786_v46  ;;  %v15809_v40 = vld [vmem:[%s20575_s4 + $0xd8] ss:$12 sps:$4 sm:$0xff]  }
 0xa32   :  { %14367 = vmatprep.subr.bf16.mxu1 %v15787_v62  ;;  %10488 = vmatprep.subr.bf16.mxu0 %v15788_v60  ;;  %v15816_v46 = vld [vmem:[%s20575_s4 + $0x124] ss:$12 sps:$4 sm:$0xff]   ;;  %v15818_v60 = vld [vmem:[%s20575_s4 + $0x120] ss:$12 sps:$4 sm:$0xff]  }
 0xa35   :  { %14368 = vmatpush3.bf16.msra.mxu1 %v15787_v62  ;;  %10489 = vmatpush1.bf16.msra.mxu0 %v15789_v2  ;;  %v15817_v62 = vld [vmem:[%s20575_s4 + $0x128] ss:$12 sps:$4 sm:$0xff]  }
 0xa36   :  { %14369 = vmatprep.subr.bf16.mxu1 %v15790_v25  ;;  %10590 = vmatprep.subr.bf16.mxu0 %v15791_v34  ;;  %v15819_v34 = vld [vmem:[%s20575_s4 + $0x13c] ss:$12 sps:$4 sm:$0xff]  }
 0xa39   :  { %14370 = vmatpush3.bf16.msra.mxu1 %v15790_v25 }
 0xa3a   :  { %14371 = vmatprep.subr.bf16.mxu1 %v15792_v42 }
 0xa3d   :  { %14372 = vmatpush3.bf16.msra.mxu1 %v15792_v42  ;;  %v15820_v42 = vld [vmem:[%s20575_s4 + $0x140] ss:$12 sps:$4 sm:$0xff]  }
 0xa3e   :  { %14377 = vmatprep.subr.bf16.mxu1 %v15793_v24 }
 0xadb   :  { %v14323_v13 = vpop.f32.mrb[76].mxu0 }
 0xadc   :  { %v10174_v15 = vpop.f32.mrb[77].mxu0 }
 0xadd   :  { %v14324_v26 = vpop.f32.mrb[78].mxu0 }
 0xade   :  { %v10465_v4 = vpack.c.bf16 %v14324_v26, %v14323_v13  ;;  %v10177_v57 = vpop.f32.mrb[79].mxu0  ;;  %v15821_v26 = vld [vmem:[%s20575_s4 + $0x138] ss:$12 sps:$4 sm:$0xff]  }
 0xadf   :  { %v10464_v59 = vpack.c.bf16 %v10177_v57, %v10174_v15  ;;  %v15822_v57 = vld [vmem:[%s20575_s4 + $0x154] ss:$12 sps:$4 sm:$0xff]  }
 0xae1   :  { %11821 = vmatmul.mubr.msk.bf16.vlgmr.msra.gmra.mrb[88].mxu0 %vm5453_vm0, %v10464_v59  ;;  %14373 = vmatprep.mubr.msk.bf16.mxu1 %vm5453_vm0, %v10464_v59  ;;  %v15823_v59 = vld [vmem:[%s20575_s4 + $0x158] ss:$12 sps:$4 sm:$0xff]  }
 0xae2   :  { %14374 = vmatmul.mubr.msk.bf16.vlgmr.msra.gmra.mrb[196].mxu1 %vm5453_vm0, %v10465_v4  ;;  %10591 = vmatpush1.bf16.msra.mxu0 %v15794_v28  ;;  %v15824_v28 = vld [vmem:[%s20575_s4 + $0x150] ss:$12 sps:$4 sm:$0xff]  }
 0xae3   :  { %14378 = vmatpush3.bf16.msra.mxu1 %v15793_v24  ;;  %v14331_v9 = vpop.f32.mrb[184].mxu1  ;;  %10592 = vmatprep.subr.bf16.mxu0 %v15795_v47  ;;  %v15826_v47 = vld [vmem:[%s20575_s4 + $0x170] ss:$12 sps:$4 sm:$0xff]  }
 0xae4   :  { %v10229_v36 = vpop.f32.mrb[185].mxu1  ;;  %14379 = vmatprep.subr.bf16.mxu1 %v15796_v38  ;;  %10524 = vmatprep.mubr.bf16.mxu0 %v20595_v43 }
 0xae5   :  { %v14332_v29 = vpop.f32.mrb[186].mxu1 }
 0xae6   :  { %v10467_v0 = vpack.c.bf16 %v14332_v29, %v14331_v9  ;;  %v10232_v3 = vpop.f32.mrb[187].mxu1  ;;  %10593 = vmatpush1.bf16.msra.mxu0 %v15797_v61  ;;  %v15825_v9 = vld [vmem:[%s20575_s4 + $0x16c] ss:$12 sps:$4 sm:$0xff]   ;;  %v15829_v29 = vld [vmem:[%s20575_s4 + $0x188] ss:$12 sps:$4 sm:$0xff]  }
 0xae7   :  { %v10466_v21 = vpack.c.bf16 %v10232_v3, %v10229_v36  ;;  %14380 = vmatpush3.bf16.msra.mxu1 %v15796_v38  ;;  %10594 = vmatprep.subr.bf16.mxu0 %v15798_v35  ;;  %v15827_v36 = vld [vmem:[%s20575_s4 + $0x168] ss:$12 sps:$4 sm:$0xff]   ;;  %v15828_v38 = vld [vmem:[%s20575_s4 + $0x184] ss:$12 sps:$4 sm:$0xff]   ;;  %v15832_v61 = vld [vmem:[%s20575_s4 + $0x1a0] ss:$12 sps:$4 sm:$0xff]  }
 0xae8   :  { %14381 = vmatprep.subr.bf16.mxu1 %v15799_v12  ;;  %v15831_v3 = vld [vmem:[%s20575_s4 + $0x19c] ss:$12 sps:$4 sm:$0xff]   ;;  %v15834_v35 = vld [vmem:[%s20575_s4 + $0x1b4] ss:$12 sps:$4 sm:$0xff]  }
 0xae9   :  { %11822 = vmatmul.mubr.msk.bf16.gmra.mrb[92].mxu0 %vm5453_vm0, %v10465_v4  ;;  %14385 = vmatprep.mubr.msk.bf16.mxu1 %vm5453_vm0, %v10466_v21 }
 0xaea   :  { %10595 = vmatpush1.bf16.msra.mxu0 %v15800_v10  ;;  %10622 = vmatprep.mubr.bf16.mxu0 %v20595_v43  ;;  %v15836_v10 = vld [vmem:[%s20575_s4 + $0x1b0] ss:$12 sps:$4 sm:$0xff]  }
 0xaeb   :  { %14382 = vmatpush3.bf16.msra.mxu1 %v15799_v12  ;;  %v14339_v18 = vpop.f32.mrb[80].mxu0  ;;  %10596 = vmatprep.subr.bf16.mxu0 %v15801_v44  ;;  %v15835_v12 = vld [vmem:[%s20575_s4 + $0x1b8] ss:$12 sps:$4 sm:$0xff]   ;;  %v15838_v44 = vld [vmem:[%s20575_s4 + $0x1d0] ss:$12 sps:$4 sm:$0xff]  }
 0xaec   :  { %v10284_v27 = vpop.f32.mrb[81].mxu0  ;;  %14383 = vmatprep.subr.bf16.mxu1 %v15802_v31 }
 0xaed   :  { %v14340_v63 = vpop.f32.mrb[82].mxu0 }
 0xaee   :  { %v20344_v7 = vpack.c.bf16 %v14340_v63, %v14339_v18  ;;  %v10287_v37 = vpop.f32.mrb[83].mxu0  ;;  %10597 = vmatpush1.bf16.msra.mxu0 %v15803_v56  ;;  %v15837_v18 = vld [vmem:[%s20575_s4 + $0x1cc] ss:$12 sps:$4 sm:$0xff]   ;;  %v15841_v63 = vld [vmem:[%s20575_s4 + $0x1e8] ss:$12 sps:$4 sm:$0xff]  }
 0xaef   :  { %v10468_v6 = vpack.c.bf16 %v10287_v37, %v10284_v27  ;;  %14384 = vmatpush3.bf16.msra.mxu1 %v15802_v31  ;;  %10698 = vmatprep.subr.bf16.mxu0 %v15804_v50  ;;  %v15839_v27 = vld [vmem:[%s20575_s4 + $0x1c8] ss:$12 sps:$4 sm:$0xff]   ;;  %v15840_v31 = vld [vmem:[%s20575_s4 + $0x1e4] ss:$12 sps:$4 sm:$0xff]   ;;  %v15844_v56 = vld [vmem:[%s20575_s4 + $0x200] ss:$12 sps:$4 sm:$0xff]  }
 0xaf0   :  { %14389 = vmatprep.subr.bf16.mxu1 %v15805_v32  ;;  %v15843_v37 = vld [vmem:[%s20575_s4 + $0x1fc] ss:$12 sps:$4 sm:$0xff]   ;;  %v15846_v50 = vld [vmem:[%s20575_s4 + $0x214] ss:$12 sps:$4 sm:$0xff]  }
 0xaf1   :  { %11825 = vmatmul.mubr.msk.bf16.vlgmr.msra.gmra.mrb[88].mxu0 %vm5453_vm0, %v10466_v21  ;;  %v15833_v21 = vld [vmem:[%s20575_s4 + $0x198] ss:$12 sps:$4 sm:$0xff]  }
 0xaf2   :  { %14386 = vmatmul.mubr.msk.bf16.vlgmr.msra.gmra.mrb[196].mxu1 %vm5453_vm0, %v10467_v0  ;;  %10699 = vmatpush1.bf16.msra.mxu0 %v15806_v23  ;;  %v15848_v23 = vld [vmem:[%s20575_s4 + $0x210] ss:$12 sps:$4 sm:$0xff]  }
 0xaf3   :  { %14390 = vmatpush3.bf16.msra.mxu1 %v15805_v32  ;;  %14397 = vmatprep.mubr.msk.bf16.mxu1 %vm5453_vm0, %v10468_v6  ;;  %v14347_v16 = vpop.f32.mrb[188].mxu1  ;;  %v15847_v32 = vld [vmem:[%s20575_s4 + $0x218] ss:$12 sps:$4 sm:$0xff]  }
 0xaf4   :  { %v10339_v49 = vpop.f32.mrb[189].mxu1  ;;  %10700 = vmatprep.subr.bf16.mxu0 %v15807_v8  ;;  %14391 = vmatprep.subr.bf16.mxu1 %v15808_v14  ;;  %v15851_v8 = vld [vmem:[%s20575_s4 + $0x228] ss:$12 sps:$4 sm:$0xff]  }
 0xaf5   :  { %v14348_v11 = vpop.f32.mrb[190].mxu1  ;;  %10632 = vmatprep.mubr.bf16.mxu0 %v20595_v43 }
 0xaf6   :  { %v20368_v48 = vpack.c.bf16 %v14348_v11, %v14347_v16  ;;  %v10342_v58 = vpop.f32.mrb[191].mxu1  ;;  %10701 = vmatpush1.bf16.msra.mxu0 %v15809_v40  ;;  %v15849_v16 = vld [vmem:[%s20575_s4 + $0x22c] ss:$12 sps:$4 sm:$0xff]  }
 0xaf7   :  { %v20373_v5 = vpack.c.bf16 %v10342_v58, %v10339_v49  ;;  %14392 = vmatpush3.bf16.msra.mxu1 %v15808_v14  ;;  %10702 = vmatprep.subr.bf16.mxu0 %v15810_v39  ;;  %v15850_v49 = vld [vmem:[%s20575_s4 + $0x230] ss:$12 sps:$4 sm:$0xff]  }
 0xaf8   :  { %14393 = vmatprep.subr.bf16.mxu1 %v15811_v17 }
 0xaf9   :  { %11826 = vmatmul.mubr.msk.bf16.gmra.mrb[92].mxu0 %vm5453_vm0, %v10467_v0  ;;  %v15830_v0 = vld [vmem:[%s20575_s4 + $0x180] ss:$12 sps:$4 sm:$0xff]  }
 0xafa   :  { %10703 = vmatpush1.bf16.msra.mxu0 %v15812_v53  ;;  %10730 = vmatprep.mubr.bf16.mxu0 %v20595_v43 }
 0xafb   :  { %14394 = vmatpush3.bf16.msra.mxu1 %v15811_v17  ;;  %v14355_v55 = vpop.f32.mrb[84].mxu0  ;;  %10704 = vmatprep.subr.bf16.mxu0 %v15813_v20 }
 0xafc   :  { %v10394_v1 = vpop.f32.mrb[85].mxu0  ;;  %14395 = vmatprep.subr.bf16.mxu1 %v15814_v51 }
 0xafd   :  { %v14356_v54 = vpop.f32.mrb[86].mxu0 }
 0xafe   :  { %v20392_v19 = vpack.c.bf16 %v14356_v54, %v14355_v55  ;;  %v10397_v45 = vpop.f32.mrb[87].mxu0  ;;  %10705 = vmatpush1.bf16.msra.mxu0 %v15815_v41 }
 0xaff   :  { %v20397_v52 = vpack.c.bf16 %v10397_v45, %v10394_v1  ;;  %14396 = vmatpush3.bf16.msra.mxu1 %v15814_v51  ;;  %10806 = vmatprep.subr.bf16.mxu0 %v15816_v46 }
 0xb00   :  { %14401 = vmatprep.subr.bf16.mxu1 %v15817_v62 }
 0xb01   :  { %11829 = vmatmul.mubr.msk.bf16.vlgmr.msra.gmra.mrb[88].mxu0 %vm5453_vm0, %v10468_v6  ;;  %v15845_v6 = vld [vmem:[%s20575_s4 + $0x1f8] ss:$12 sps:$4 sm:$0xff]  }
 0xb02   :  { %14398 = vmatmul.mubr.msk.bf16.vlgmr.msra.gmra.mrb[196].mxu1 %vm5453_vm0, %v20344_v7  ;;  %10807 = vmatpush1.bf16.msra.mxu0 %v15818_v60 }
 0xb03   :  { %14402 = vmatpush3.bf16.msra.mxu1 %v15817_v62  ;;  %14409 = vmatprep.mubr.msk.bf16.mxu1 %vm5453_vm0, %v20373_v5  ;;  %v14363_v2 = vpop.f32.mrb[192].mxu1 }
 0xb04   :  { %v10449_v25 = vpop.f32.mrb[193].mxu1  ;;  %10808 = vmatprep.subr.bf16.mxu0 %v15819_v34  ;;  %14403 = vmatprep.subr.bf16.mxu1 %v15820_v42 }
 0xb05   :  { %v14364_v24 = vpop.f32.mrb[194].mxu1  ;;  %10740 = vmatprep.mubr.bf16.mxu0 %v20595_v43 }
 0xb06   :  { %v20420_v13 = vpack.c.bf16 %v14364_v24, %v14363_v2  ;;  %v10452_v15 = vpop.f32.mrb[195].mxu1  ;;  %10809 = vmatpush1.bf16.msra.mxu0 %v15821_v26 }
 0xb07   :  { %v20425_v4 = vpack.c.bf16 %v10452_v15, %v10449_v25  ;;  %14404 = vmatpush3.bf16.msra.mxu1 %v15820_v42  ;;  %10810 = vmatprep.subr.bf16.mxu0 %v15822_v57 }
 0xb08   :  { %14405 = vmatprep.subr.bf16.mxu1 %v15823_v59 }
 0xb09   :  { %11830 = vmatmul.mubr.msk.bf16.gmra.mrb[92].mxu0 %vm5453_vm0, %v20344_v7  ;;  %v15842_v7 = vld [vmem:[%s20575_s4 + $0x1e0] ss:$12 sps:$4 sm:$0xff]   ;;  %s15877_s4 = smov [#allocation2]  }
 0xb0a   :  { %10811 = vmatpush1.bf16.msra.mxu0 %v15824_v28  ;;  %10838 = vmatprep.mubr.bf16.mxu0 %v20595_v43  ;;  %s11214_s10 = sshll.u32 %s15877_s4, 4  ;;  %s11215_s10 = int_to_ptr.vmem [resolvable:$true] %s11214_s10 }
 0xb0b   :  { %14406 = vmatpush3.bf16.msra.mxu1 %v15823_v59  ;;  %10812 = vmatprep.subr.bf16.mxu0 %v15825_v9  ;;  %s15852_s3 = scalar_lea.vmem %s11215_s10, 3072  ;;  %p15857_p1 = scmp.lt.s32.totalorder %s11215_s10, %s11215_s10 }
 0xb0c   :  { %14407 = vmatprep.subr.bf16.mxu1 %v15826_v47  ;;  %p15853_p0 = scmp.ne.s32.totalorder %s11215_s10, %s15852_s3  ;;  %p15858_p2 = scmp.lt.s32.totalorder %s15852_s3, %s15852_s3 }
 0xb0e   :  { %10813 = vmatpush1.bf16.msra.mxu0 %v15827_v36  ;;  %p15859_p3 = por %p15858_p2, %p15857_p1 }
 0xb0f   :  { %14408 = vmatpush3.bf16.msra.mxu1 %v15826_v47  ;;  %10914 = vmatprep.subr.bf16.mxu0 %v15828_v38 }
 0xb10   :  { %14413 = vmatprep.subr.bf16.mxu1 %v15829_v29  ;;  %p15860_p4 = pnand %p15859_p3, %p15853_p0 }
 0xb11   :  { %11833 = vmatmul.mubr.msk.bf16.vlgmr.msra.gmra.mrb[88].mxu0 %vm5453_vm0, %v20373_v5 }
 0xb12   :  { %14410 = vmatmul.mubr.msk.bf16.vlgmr.msra.gmra.mrb[196].mxu1 %vm5453_vm0, %v20368_v48  ;;  %10915 = vmatpush1.bf16.msra.mxu0 %v15830_v0 }
 0xb13   :  { %14414 = vmatpush3.bf16.msra.mxu1 %v15829_v29  ;;  %14421 = vmatprep.mubr.msk.bf16.mxu1 %vm5453_vm0, %v20397_v52 }
 0xb14   :  { %10916 = vmatprep.subr.bf16.mxu0 %v15831_v3  ;;  %14415 = vmatprep.subr.bf16.mxu1 %v15832_v61 }
 0xb15   :  { %10848 = vmatprep.mubr.bf16.mxu0 %v20595_v43 }
 0xb16   :  { %10917 = vmatpush1.bf16.msra.mxu0 %v15833_v21 }
 0xb17   :  { %14416 = vmatpush3.bf16.msra.mxu1 %v15832_v61  ;;  %10918 = vmatprep.subr.bf16.mxu0 %v15834_v35 }
 0xb18   :  { %14417 = vmatprep.subr.bf16.mxu1 %v15835_v12 }
 0xb19   :  { %11834 = vmatmul.mubr.msk.bf16.gmra.mrb[92].mxu0 %vm5453_vm0, %v20368_v48 }
 0xb1a   :  { %10919 = vmatpush1.bf16.msra.mxu0 %v15836_v10  ;;  %10946 = vmatprep.mubr.bf16.mxu0 %v20595_v43 }
 0xb1b   :  { %14418 = vmatpush3.bf16.msra.mxu1 %v15835_v12  ;;  %10920 = vmatprep.subr.bf16.mxu0 %v15837_v18 }
 0xb1c   :  { %14419 = vmatprep.subr.bf16.mxu1 %v15838_v44 }
 0xb1e   :  { %10921 = vmatpush1.bf16.msra.mxu0 %v15839_v27 }
 0xb1f   :  { %14420 = vmatpush3.bf16.msra.mxu1 %v15838_v44  ;;  %11022 = vmatprep.subr.bf16.mxu0 %v15840_v31 }
 0xb20   :  { %14425 = vmatprep.subr.bf16.mxu1 %v15841_v63 }
 0xb21   :  { %11837 = vmatmul.mubr.msk.bf16.vlgmr.msra.gmra.mrb[88].mxu0 %vm5453_vm0, %v20397_v52 }
 0xb22   :  { %14422 = vmatmul.mubr.msk.bf16.vlgmr.msra.gmra.mrb[196].mxu1 %vm5453_vm0, %v20392_v19  ;;  %11023 = vmatpush1.bf16.msra.mxu0 %v15842_v7 }
 0xb23   :  { %14426 = vmatpush3.bf16.msra.mxu1 %v15841_v63  ;;  %14433 = vmatprep.mubr.msk.bf16.mxu1 %vm5453_vm0, %v20425_v4 }
 0xb24   :  { %11024 = vmatprep.subr.bf16.mxu0 %v15843_v37  ;;  %14427 = vmatprep.subr.bf16.mxu1 %v15844_v56 }
 0xb25   :  { %10956 = vmatprep.mubr.bf16.mxu0 %v20595_v43 }
 0xb26   :  { %11025 = vmatpush1.bf16.msra.mxu0 %v15845_v6 }
 0xb27   :  { %14428 = vmatpush3.bf16.msra.mxu1 %v15844_v56  ;;  %11026 = vmatprep.subr.bf16.mxu0 %v15846_v50 }
 0xb28   :  { %14429 = vmatprep.subr.bf16.mxu1 %v15847_v32 }
 0xb29   :  { %11838 = vmatmul.mubr.msk.bf16.gmra.mrb[92].mxu0 %vm5453_vm0, %v20392_v19 }
 0xb2a   :  { %11027 = vmatpush1.bf16.msra.mxu0 %v15848_v23  ;;  %11054 = vmatprep.mubr.bf16.mxu0 %v20595_v43 }
 0xb2b   :  { %14430 = vmatpush3.bf16.msra.mxu1 %v15847_v32  ;;  %11028 = vmatprep.subr.bf16.mxu0 %v15849_v16 }
 0xb2c   :  { %14431 = vmatprep.subr.bf16.mxu1 %v15850_v49 }
 0xb2e   :  { %11029 = vmatpush1.bf16.msra.mxu0 %v15851_v8 }
 0xb2f   :  { %14432 = vmatpush3.bf16.msra.mxu1 %v15850_v49 }
 0xb31   :  { %11841 = vmatmul.mubr.msk.bf16.vlgmr.msra.gmra.mrb[88].mxu0 %vm5453_vm0, %v20425_v4 }
 0xb32   :  { %14434 = vmatmul.mubr.msk.bf16.vlgmr.msra.gmra.mrb[196].mxu1 %vm5453_vm0, %v20420_v13  ;;  %11064 = vmatprep.mubr.bf16.mxu0 %v20595_v43 }
 0xb39   :  { %11842 = vmatmul.mubr.msk.bf16.gmra.mrb[92].mxu0 %vm5453_vm0, %v20420_v13 }
 0xc04   :  { %v11056_v14 = vpop.f32.mrb[88].mxu0 }
 0xc05   :  { %v11184_v11 = vadd.f32 %v11056_v14, %v18811_v30  ;;  %v14435_v48 = vpop.f32.mrb[196].mxu1  ;;  %v11058_v58 = vpop.f32.mrb[89].mxu0 }
 0xc06   :  { %v11192_v40 = vadd.f32 %v14435_v48, %v18816_v33  ;;  %v11185_v5 = vadd.f32 %v11058_v58, %v18818_v22  ;;  %v11109_v39 = vpop.f32.mrb[197].mxu1  ;;  %v11060_v17 = vpop.f32.mrb[90].mxu0 }
 0xc07   :  { %11197 = vst [vmem:[#allocation2 + $0x60] sm:$0xff] %v11184_v11  ;;  %v11186_v53 = vadd.f32 %v11109_v39, %v18816_v33  ;;  %v11187_v55 = vadd.f32 %v11060_v17, %v18811_v30  ;;  %v14436_v43 = vpop.f32.mrb[198].mxu1  ;;  %v11062_v20 = vpop.f32.mrb[91].mxu0 }
 0xc08   :  { %11205 = vst [vmem:[#allocation2 + $0xa0] sm:$0xff] %v11192_v40  ;;  %11198 = vst [vmem:[#allocation2 + $0x68] sm:$0xff] %v11185_v5  ;;  %v11195_v1 = vadd.f32 %v14436_v43, %v18816_v33  ;;  %v11188_v51 = vadd.f32 %v11062_v20, %v18818_v22  ;;  %v11112_v54 = vpop.f32.mrb[199].mxu1 }
 0xc09   :  { %11199 = vst [vmem:[#allocation2 + $0x70] sm:$0xff] %v11186_v53  ;;  %11200 = vst [vmem:[#allocation2 + $0x78] sm:$0xff] %v11187_v55  ;;  %v11189_v19 = vadd.f32 %v11112_v54, %v18816_v33 }
 0xc0a   :  { %11208 = vst [vmem:[#allocation2 + $0xb8] sm:$0xff] %v11195_v1  ;;  %11201 = vst [vmem:[#allocation2 + $0x80] sm:$0xff] %v11188_v51 }
 0xc0b   :  { %11202 = vst [vmem:[#allocation2 + $0x88] sm:$0xff] %v11189_v19 }
 0xc0c   :  { %v11066_v45 = vpop.f32.mrb[92].mxu0 }
 0xc0d   :  { %v11190_v41 = vadd.f32 %v11066_v45, %v18811_v30  ;;  %v11068_v52 = vpop.f32.mrb[93].mxu0 }
 0xc0e   :  { %v11191_v46 = vadd.f32 %v11068_v52, %v18818_v22  ;;  %v11070_v62 = vpop.f32.mrb[94].mxu0 }
 0xc0f   :  { %11203 = vst [vmem:[#allocation2 + $0x90] sm:$0xff] %v11190_v41  ;;  %v11193_v60 = vadd.f32 %v11070_v62, %v18811_v30  ;;  %v11072_v2 = vpop.f32.mrb[95].mxu0 }
 0xc10   :  { %11204 = vst [vmem:[#allocation2 + $0x98] sm:$0xff] %v11191_v46  ;;  %v11194_v25 = vadd.f32 %v11072_v2, %v18818_v22 }
 0xc11   :  { %11206 = vst [vmem:[#allocation2 + $0xa8] sm:$0xff] %v11193_v60 }
 0xc12   :  { %11207 = vst [vmem:[#allocation2 + $0xb0] sm:$0xff] %v11194_v25 }
 0xc13   :  { %15863 = shalt.err (!%p15860_p4)
}
 0xc14   :  { %s15864_s13 = scalar_lea.hbm %s20577_s6, 3072 }
 0xc15   :  { %p15865_p5 = scmp.ne.s32.totalorder %s20577_s6, %s15864_s13  ;;  %p15868_p6 = scmp.lt.u32.totalorder %s15864_s13, %s20577_s6 }
 0xc17   :  { %p15870_p7 = pnand %p15868_p6, %p15865_p5 }
 0xc19   :  { %15873 = shalt.err (!%p15870_p7)
}
 0xc1a   :  { %s15878_s18 = smov 384   ;;  %s15879_s19 = smov 24  }
 0xc1b   :  { %11220 = dma.vmem_to_hbm [thread:$0]  %s11215_s10, 3072, %s20577_s6, [#allocation3], %s15878_s18, %s15878_s18, %s15879_s19  }
 0xc1c   :  { %15874 = dma.done.wait [#allocation3], 3072  }
 0xc1d   :  { %15875 = vsyncadd [#allocation3], 4294964224 }
 0xc1e   :  { %11224 = vsyncpa [#allocation3], 1 }

</bundles_post_ra>
